<compile_context>
chip_gen: v7x
topology: tpu7x:2x2x1
jax: 0.10.0
libtpu: 0.0.40
codegen_flags: <defaults>
</compile_context>

<pallas_src>
import functools

import jax
import jax.numpy as jnp
from jax import lax
from jax.experimental import pallas as pl
from jax.experimental.pallas import tpu as pltpu


_VMEM_SPEC = pl.BlockSpec(memory_space=pltpu.MemorySpace.VMEM)


# ----------------------------------------------------------------------------
# Pallas kernels
# ----------------------------------------------------------------------------

def _linear_logsoftmax_kernel(x_ref, w_ref, b_ref, o_ref, m_ref, l_ref):
    """Fused x @ W + b -> log_softmax, tiled over rows (axis 0 of grid) AND the
    vocab/N axis (axis 2), with a two-pass online logsumexp over vocab tiles
    (grid axis 1 is the pass).  Pass 0 accumulates (max, sum-exp); pass 1
    recomputes the logits tile and writes the normalized log-probs."""
    p = pl.program_id(1)
    j = pl.program_id(2)

    logits = (jnp.dot(x_ref[...].astype(jnp.bfloat16), w_ref[...],
                      preferred_element_type=jnp.float32) + b_ref[...])

    @pl.when(jnp.logical_and(p == 0, j == 0))
    def _():
        m_ref[...] = jnp.full(m_ref.shape, -jnp.inf, m_ref.dtype)
        l_ref[...] = jnp.zeros(l_ref.shape, l_ref.dtype)

    @pl.when(p == 0)
    def _():
        m_prev = m_ref[...]
        m_new = jnp.maximum(m_prev, jnp.max(logits, axis=-1, keepdims=True))
        l_ref[...] = (l_ref[...] * jnp.exp(m_prev - m_new)
                      + jnp.sum(jnp.exp(logits - m_new), axis=-1, keepdims=True))
        m_ref[...] = m_new
        o_ref[...] = logits            # defined placeholder; overwritten in pass 1

    @pl.when(p == 1)
    def _():
        o_ref[...] = logits - (m_ref[...] + jnp.log(l_ref[...]))


def _vae_head_kernel(hidden_ref, mlw_ref, mlb_ref, noise_ref,
                     l2h_w_ref, l2h_b_ref, ml_ref, hdec_ref):
    """Fused [mean|logvar] projection + reparameterization + latent2hidden.
    mean|logvar are emitted as ONE (B, 2*latent) output (split in plain JAX)."""
    latent = noise_ref.shape[-1]
    ml = (jnp.dot(hidden_ref[...].astype(jnp.bfloat16), mlw_ref[...],
                  preferred_element_type=jnp.float32) + mlb_ref[...])
    mean = ml[:, :latent]
    log_var = ml[:, latent:]
    z = mean + noise_ref[...] * jnp.exp(0.5 * log_var)
    ml_ref[...] = ml
    hdec_ref[...] = (jnp.dot(z.astype(jnp.bfloat16), l2h_w_ref[...],
                             preferred_element_type=jnp.float32) + l2h_b_ref[...])


def _make_gru_stack_kernel(num_layers, hid_size, t_chunk):
    """Multi-layer GRU recurrence, streamed over time chunks.

    Grid = (batch_chunks ['parallel'], time_chunks ['arbitrary']).
    gi0 (layer-0 input projections, biases pre-folded) and the top-layer output
    stream through VMEM in (t_chunk, Bc, ·) blocks; weights use constant
    index_maps (stay resident).  The (Bc, L*H) h_n output block is resident
    across the time axis and doubles as the carried hidden state."""
    H = hid_size
    L = num_layers

    def kernel(*refs):
        idx = 0
        gi0_ref = refs[idx]; idx += 1                              # (tc, Bc, 3H) f32
        wih_refs = refs[idx: idx + L - 1]; idx += L - 1            # (H, 3H) bf16
        bih_refs = refs[idx: idx + L - 1]; idx += L - 1            # (1, 3H) f32
        whh_refs = refs[idx: idx + L]; idx += L                    # (H, 3H) bf16
        bhn_refs = refs[idx: idx + L]; idx += L                    # (1, H)  f32
        h0_ref = refs[idx]; idx += 1                               # (Bc, L*H) f32
        out_ref = refs[idx]; idx += 1                              # (tc, Bc, H) f32
        hlast_ref = refs[idx]; idx += 1                            # (Bc, L*H) f32

        @pl.when(pl.program_id(1) == 0)
        def _():
            hlast_ref[...] = h0_ref[...]

        def gru_cell(gi, h, whh_ref, bhn_ref):
            # PyTorch gate layout along 3H: [r, z, n].  b_ih and the r/z slice of
            # b_hh are pre-folded into `gi`; only the n-gate hidden bias remains
            # inside the r*(...) term.  Weight refs are indexed here (no hoisted
            # whole-weight vreg loads); operands cast to bf16 for the MXU, f32 acc.
            gh = jnp.dot(h.astype(jnp.bfloat16), whh_ref[...],
                         preferred_element_type=jnp.float32)
            r = jax.nn.sigmoid(gi[:, 0:H] + gh[:, 0:H])
            z = jax.nn.sigmoid(gi[:, H:2 * H] + gh[:, H:2 * H])
            n = jnp.tanh(gi[:, 2 * H:3 * H] + r * (gh[:, 2 * H:3 * H] + bhn_ref[...]))
            return (1.0 - z) * n + z * h

        def step(t, hs):
            hs = list(hs)
            x_l = gru_cell(gi0_ref[t], hs[0], whh_refs[0], bhn_refs[0])
            hs[0] = x_l
            for l in range(1, L):
                gi_l = (jnp.dot(x_l.astype(jnp.bfloat16), wih_refs[l - 1][...],
                                preferred_element_type=jnp.float32)
                        + bih_refs[l - 1][...])
                x_l = gru_cell(gi_l, hs[l], whh_refs[l], bhn_refs[l])
                hs[l] = x_l
            out_ref[t] = x_l            # top-layer output for this time step
            return tuple(hs)

        hs0 = tuple(hlast_ref[:, l * H:(l + 1) * H] for l in range(L))
        unroll = True if t_chunk <= 8 else 4
        hs_final = lax.fori_loop(0, t_chunk, step, hs0, unroll=unroll)
        for l in range(L):
            hlast_ref[:, l * H:(l + 1) * H] = hs_final[l]

    return kernel


# ----------------------------------------------------------------------------
# Wrappers
# ----------------------------------------------------------------------------

def linear_logsoftmax(x, w_t, b, *, row_block=128, col_block=2048):
    """x: (M, K) f32; w_t: (K, N) bf16; b: (1, N) f32 -> (M, N) f32 log-probs.
    Rows padded to a multiple of row_block; vocab tiled with two-pass logsumexp."""
    M, K = x.shape
    N = w_t.shape[1]
    col_block = min(col_block, N)
    if N % col_block != 0:
        col_block = N
    M_pad = pl.cdiv(M, row_block) * row_block
    if M_pad != M:
        x = jnp.pad(x, ((0, M_pad - M), (0, 0)))

    # TODO(synk): weight/bias specs could use pipeline_mode=pl.Buffered(1)
    # (constant index_map) to halve their resident footprint at large vocab.
    out = pl.pallas_call(
        _linear_logsoftmax_kernel,
        out_shape=jax.ShapeDtypeStruct((M_pad, N), jnp.float32),
        grid_spec=pltpu.PrefetchScalarGridSpec(
            num_scalar_prefetch=0,
            grid=(M_pad // row_block, 2, N // col_block),
            in_specs=[pl.BlockSpec((row_block, K), lambda i, p, j: (i, 0)),
                      pl.BlockSpec((K, col_block), lambda i, p, j: (0, j)),
                      pl.BlockSpec((1, col_block), lambda i, p, j: (0, j))],
            out_specs=pl.BlockSpec((row_block, col_block), lambda i, p, j: (i, j)),
            scratch_shapes=[pltpu.VMEM((row_block, 1), jnp.float32),
                            pltpu.VMEM((row_block, 1), jnp.float32)]),
        compiler_params=pltpu.CompilerParams(
            dimension_semantics=("parallel", "arbitrary", "arbitrary")),
    )(x, w_t, b)
    return out[:M] if M_pad != M else out


def vae_head(hidden, ml_w, ml_b, noise, l2h_w, l2h_b):
    B = hidden.shape[0]
    latent = noise.shape[1]
    LH = l2h_w.shape[1]
    return pl.pallas_call(
        _vae_head_kernel,
        out_shape=(jax.ShapeDtypeStruct((B, 2 * latent), jnp.float32),
                   jax.ShapeDtypeStruct((B, LH), jnp.float32)),
        in_specs=[_VMEM_SPEC] * 6,
        out_specs=(_VMEM_SPEC, _VMEM_SPEC),
    )(hidden, ml_w, ml_b, noise, l2h_w, l2h_b)


def gru_stack(gi0, stack, h0, *, t_chunk=4, batch_chunks=2):
    """gi0: (T, B, 3H) f32 precomputed layer-0 input projections (biases folded).
    stack: {'wih','bih' (layers>=1 lists), 'whh','bhn' (all-layer lists)}.
    h0: (B, L*H) f32.  Returns (top-layer outputs (T,B,H), h_n (B, L*H))."""
    T, B, threeH = gi0.shape
    H = threeH // 3
    L = len(stack["whh"])
    if T % t_chunk != 0:
        t_chunk = T
    if B % batch_chunks != 0 or (B // batch_chunks) % 8 != 0:
        batch_chunks = 1
    Bc = B // batch_chunks
    nL1 = L - 1

    in_specs = (
        [pl.BlockSpec((t_chunk, Bc, 3 * H), lambda b, t: (t, b, 0))]
        + [pl.BlockSpec((H, 3 * H), lambda b, t: (0, 0))] * nL1      # wih
        + [pl.BlockSpec((1, 3 * H), lambda b, t: (0, 0))] * nL1      # bih
        + [pl.BlockSpec((H, 3 * H), lambda b, t: (0, 0))] * L        # whh
        + [pl.BlockSpec((1, H), lambda b, t: (0, 0))] * L            # bhn
        + [pl.BlockSpec((Bc, L * H), lambda b, t: (b, 0))]           # h0
    )
    out_specs = (
        pl.BlockSpec((t_chunk, Bc, H), lambda b, t: (t, b, 0)),      # top-layer out
        pl.BlockSpec((Bc, L * H), lambda b, t: (b, 0)),              # h_n (resident)
    )
    inputs = ([gi0] + list(stack["wih"]) + list(stack["bih"])
              + list(stack["whh"]) + list(stack["bhn"]) + [h0])
    return pl.pallas_call(
        _make_gru_stack_kernel(L, H, t_chunk),
        out_shape=(jax.ShapeDtypeStruct((T, B, H), jnp.float32),
                   jax.ShapeDtypeStruct((B, L * H), jnp.float32)),
        grid_spec=pltpu.PrefetchScalarGridSpec(
            num_scalar_prefetch=0,
            grid=(batch_chunks, T // t_chunk),
            in_specs=in_specs,
            out_specs=out_specs),
        compiler_params=pltpu.CompilerParams(
            dimension_semantics=("parallel", "arbitrary")),
    )(*inputs)


# ----------------------------------------------------------------------------
# Parameters (PyTorch-like) + host-side fusion/folding
# ----------------------------------------------------------------------------

def make_params(key, num_class, emb_size, hid_size, hid_layers, latent_size):
    keys = iter(jax.random.split(key, 64))
    scale = 0.1

    def rnd(shape):
        return (scale * jax.random.normal(next(keys), shape)).astype(jnp.float32)

    def gru_layers(in_size):
        layers = []
        for l in range(hid_layers):
            din = in_size if l == 0 else hid_size
            layers.append({
                # stored pre-transposed for x @ W^T
                "w_ih_t": rnd((din, 3 * hid_size)),
                "w_hh_t": rnd((hid_size, 3 * hid_size)),
                "b_ih": rnd((1, 3 * hid_size)),
                "b_hh": rnd((1, 3 * hid_size)),
            })
        return layers

    return {
        "emb": rnd((num_class, emb_size)),
        "enc": gru_layers(emb_size),
        "dec": gru_layers(emb_size),
        "mean_w_t": rnd((hid_size * hid_layers, latent_size)),
        "mean_b": rnd((1, latent_size)),
        "logvar_w_t": rnd((hid_size * hid_layers, latent_size)),
        "logvar_b": rnd((1, latent_size)),
        "lat2hid_w_t": rnd((latent_size, hid_layers * hid_size)),
        "lat2hid_b": rnd((1, hid_layers * hid_size)),
        "out_w_t": rnd((hid_size, num_class)),
        "out_b": rnd((1, num_class)),
    }


def prepare_params(params, hid_size):
    """One-time (outside jit) weight fusion / folding:
    * embedding folded into enc+dec layer-0 input projections -> (vocab, 6H) table,
    * b_ih + r/z slice of b_hh folded into the input-projection bias,
    * mean_z | logvar_z weights concatenated -> one (L*H, 2*latent) matmul,
    * matmul weights cast to bf16 (f32 accumulation in-kernel)."""
    H = hid_size
    bf16 = jnp.bfloat16

    def fold_bias(lp):
        zeros_n = jnp.zeros((1, H), jnp.float32)
        return lp["b_ih"] + jnp.concatenate([lp["b_hh"][:, :2 * H], zeros_n], 1)

    def prep_stack(stack):
        return {
            "w_in0": stack[0]["w_ih_t"],
            "b_in0": fold_bias(stack[0]),
            "wih": [lp["w_ih_t"].astype(bf16) for lp in stack[1:]],
            "bih": [fold_bias(lp) for lp in stack[1:]],
            "whh": [lp["w_hh_t"].astype(bf16) for lp in stack],
            "bhn": [lp["b_hh"][:, 2 * H:] for lp in stack],
        }

    enc = prep_stack(params["enc"])
    dec = prep_stack(params["dec"])

    # Fold the embedding table into the hoisted layer-0 projections for BOTH
    # stacks: one gather of a (6H,) row per token replaces emb lookup + matmul.
    in_proj_w = jnp.concatenate([enc["w_in0"], dec["w_in0"]], axis=1)   # (E, 6H)
    in_proj_b = jnp.concatenate([enc["b_in0"], dec["b_in0"]], axis=1)   # (1, 6H)
    gi_table = params["emb"] @ in_proj_w + in_proj_b                    # (V, 6H) f32

    keep = ("wih", "bih", "whh", "bhn")
    return {
        "gi_table": gi_table,
        "enc": {k: enc[k] for k in keep},
        "dec": {k: dec[k] for k in keep},
        "head_w": jnp.concatenate(
            [params["mean_w_t"], params["logvar_w_t"]], 1).astype(bf16),
        "head_b": jnp.concatenate([params["mean_b"], params["logvar_b"]], 1),
        "lat2hid_w_t": params["lat2hid_w_t"].astype(bf16),
        "lat2hid_b": params["lat2hid_b"],
        "out_w_t": params["out_w_t"].astype(bf16),
        "out_b": params["out_b"],
    }


# ----------------------------------------------------------------------------
# Forward pass (mirrors SeqVAEModel.forward, eval mode)
# ----------------------------------------------------------------------------

def seq_vae_forward(prepared, input_data, noise, hid_layers, hid_size,
                    t_chunk=4, batch_chunks=2):
    T, B = input_data.shape
    H, L = hid_size, hid_layers
    latent = noise.shape[1]

    # Layer-0 input-gate projections for BOTH GRU stacks, folded with the
    # embedding offline: just a per-token row gather from a (vocab, 6H) table.
    # TODO(synk): table gather + reshapes stay as plain-JAX glue.
    gi_all = jnp.take(prepared["gi_table"], input_data, axis=0)      # (T, B, 6H)
    gi_enc = gi_all[..., :3 * H]
    gi_dec = gi_all[..., 3 * H:]

    # Encoder GRU: streamed over time, h_n emitted directly as (B, L*H)
    # (== PyTorch hidden.permute(1,0,2).reshape(B,-1) layout, no XLA transpose).
    h0 = jnp.zeros((B, L * H), jnp.float32)
    _, h_enc = gru_stack(gi_enc, prepared["enc"], h0,
                         t_chunk=t_chunk, batch_chunks=batch_chunks)  # (B, L*H)

    # Fused VAE head: [mean|logvar] matmul + reparameterize + latent2hidden.
    ml, hid_dec = vae_head(h_enc, prepared["head_w"], prepared["head_b"], noise,
                           prepared["lat2hid_w_t"], prepared["lat2hid_b"])
    mean, log_var = ml[:, :latent], ml[:, latent:]

    # Decoder GRU (word_dropout_rate == 0.0 path: same token projections),
    # initial hidden consumed directly in (B, L*H) layout (== view(B,L,H).permute).
    dec_out, _ = gru_stack(gi_dec, prepared["dec"], hid_dec,
                           t_chunk=t_chunk, batch_chunks=batch_chunks)  # (T, B, H)

    # Output projection fused with log_softmax (row- and vocab-tiled).
    V = prepared["out_w_t"].shape[1]
    logp = linear_logsoftmax(dec_out.reshape(T * B, H),
                             prepared["out_w_t"], prepared["out_b"])
    return logp.reshape(T, B, V), mean, log_var


# ----------------------------------------------------------------------------
# Main
# ----------------------------------------------------------------------------

if __name__ == "__main__":
    # Small but TPU-friendly shapes: H / 3H / vocab multiples of 128 (lane-dense
    # stores), batch a multiple of 16 so the batch grid axis splits into two
    # 8-row (sublane-aligned) chunks for v7x megacore.
    NUM_CLASS = 128
    EMB_SIZE = 32
    HID_SIZE = 128
    HID_LAYERS = 2
    LATENT = 32
    SEQ = 8
    BATCH = 16

    key = jax.random.PRNGKey(0)
    k_param, k_tok, k_noise = jax.random.split(key, 3)

    params = make_params(k_param, NUM_CLASS, EMB_SIZE, HID_SIZE,
                         HID_LAYERS, LATENT)
    prepared = prepare_params(params, HID_SIZE)

    input_data = jax.random.randint(k_tok, (SEQ, BATCH), 0, NUM_CLASS,
                                    dtype=jnp.int32)
    noise = jax.random.normal(k_noise, (BATCH, LATENT), dtype=jnp.float32)

    fwd = jax.jit(functools.partial(seq_vae_forward,
                                    hid_layers=HID_LAYERS, hid_size=HID_SIZE,
                                    t_chunk=4, batch_chunks=2))
    logits, mean, log_var = fwd(prepared, input_data, noise)
    jax.block_until_ready((logits, mean, log_var))

    assert logits.shape == (SEQ, BATCH, NUM_CLASS)
    assert mean.shape == (BATCH, LATENT)
    assert log_var.shape == (BATCH, LATENT)
    assert bool(jnp.all(jnp.isfinite(logits)))
    # log_softmax sanity: rows sum to ~1 in prob space
    assert jnp.allclose(jnp.exp(logits).sum(-1), 1.0, atol=1e-3)

    print("KERNEL_OK")
</pallas_src>

<mosaic_0001>
module attributes {stable_mosaic.version = 11 : i64} {
  func.func @kernel(%arg0: i32, %arg1: i32, %arg2: memref<4x8x384xf32, #tpu.memory_space<vmem>>, %arg3: memref<128x384xbf16, #tpu.memory_space<vmem>>, %arg4: memref<1x384xf32, #tpu.memory_space<vmem>>, %arg5: memref<128x384xbf16, #tpu.memory_space<vmem>>, %arg6: memref<128x384xbf16, #tpu.memory_space<vmem>>, %arg7: memref<1x128xf32, #tpu.memory_space<vmem>>, %arg8: memref<1x128xf32, #tpu.memory_space<vmem>>, %arg9: memref<8x256xf32, #tpu.memory_space<vmem>>, %arg10: memref<4x8x128xf32, #tpu.memory_space<vmem>>, %arg11: memref<8x256xf32, #tpu.memory_space<vmem>>) attributes {dimension_semantics = [#tpu.dimension_semantics<parallel>, #tpu.dimension_semantics<arbitrary>], iteration_bounds = array<i64: 2, 2>, scalar_prefetch = 0 : i64, scratch_operands = 0 : i64, tpu.core_type = #tpu.core_type<tc>, window_params = [{transform_indices = @transform_0, window_bounds = array<i64: 4, 8, 384>}, {pipeline_mode = #tpu.pipeline_mode<synchronous>, transform_indices = @transform_1, window_bounds = array<i64: 128, 384>}, {pipeline_mode = #tpu.pipeline_mode<synchronous>, transform_indices = @transform_2, window_bounds = array<i64: 1, 384>}, {pipeline_mode = #tpu.pipeline_mode<synchronous>, transform_indices = @transform_3, window_bounds = array<i64: 128, 384>}, {pipeline_mode = #tpu.pipeline_mode<synchronous>, transform_indices = @transform_4, window_bounds = array<i64: 128, 384>}, {pipeline_mode = #tpu.pipeline_mode<synchronous>, transform_indices = @transform_5, window_bounds = array<i64: 1, 128>}, {pipeline_mode = #tpu.pipeline_mode<synchronous>, transform_indices = @transform_6, window_bounds = array<i64: 1, 128>}, {transform_indices = @transform_7, window_bounds = array<i64: 8, 256>}, {transform_indices = @transform_8, window_bounds = array<i64: 4, 8, 128>}, {transform_indices = @transform_9, window_bounds = array<i64: 8, 256>}]} {
    %c0_i32 = arith.constant 0 : i32
    %0 = arith.cmpi eq, %arg1, %c0_i32 : i32
    %1 = arith.extui %0 : i1 to i32
    %c0_i32_0 = arith.constant 0 : i32
    %2 = arith.cmpi ne, %1, %c0_i32_0 : i32
    scf.if %2 {
      %c0_107 = arith.constant 0 : index
      %c0_108 = arith.constant 0 : index
      %315 = vector.load %arg9[%c0_107, %c0_108] : memref<8x256xf32, #tpu.memory_space<vmem>>, vector<8x256xf32>
      %c0_109 = arith.constant 0 : index
      %c0_110 = arith.constant 0 : index
      %316 = vector.load %arg11[%c0_109, %c0_110] : memref<8x256xf32, #tpu.memory_space<vmem>>, vector<8x256xf32>
      tpu.vector_store %arg11[%c0_109, %c0_110], %315 {strides = array<i32>} : memref<8x256xf32, #tpu.memory_space<vmem>>, vector<8x256xf32>,
    } else {
    }
    %c0 = arith.constant 0 : index
    %c0_1 = arith.constant 0 : index
    %3 = vector.load %arg11[%c0, %c0_1] : memref<8x256xf32, #tpu.memory_space<vmem>>, vector<8x128xf32>
    %c0_2 = arith.constant 0 : index
    %c128 = arith.constant 128 : index
    %4 = vector.load %arg11[%c0_2, %c128] : memref<8x256xf32, #tpu.memory_space<vmem>>, vector<8x128xf32>
    %c0_i32_3 = arith.constant 0 : i32
    %5 = arith.index_cast %c0_i32_3 : i32 to index
    %c0_4 = arith.constant 0 : index
    %c0_5 = arith.constant 0 : index
    %6 = vector.load %arg2[%5, %c0_4, %c0_5] : memref<4x8x384xf32, #tpu.memory_space<vmem>>, vector<1x8x384xf32>
    %7 = vector.shape_cast %6 : vector<1x8x384xf32> to vector<8x384xf32>
    %8 = arith.truncf %3 : vector<8x128xf32> to vector<8x128xbf16>
    %c0_6 = arith.constant 0 : index
    %c0_7 = arith.constant 0 : index
    %9 = vector.load %arg5[%c0_6, %c0_7] : memref<128x384xbf16, #tpu.memory_space<vmem>>, vector<128x384xbf16>
    %cst = arith.constant dense<0.000000e+00> : vector<8x384xf32>
    %10 = tpu.matmul %8, %9, %cst {dimension_numbers = #tpu.dot_dimension_numbers<[1], [0], [0], [1], [0, 0, 1, 1], [], []>} : vector<8x128xbf16>, vector<128x384xbf16>, vector<8x384xf32> -> vector<8x384xf32>
    %11 = vector.extract_strided_slice %7 {offsets = [0, 0], sizes = [8, 128], strides = [1, 1]} : vector<8x384xf32> to vector<8x128xf32>
    %12 = vector.extract_strided_slice %10 {offsets = [0, 0], sizes = [8, 128], strides = [1, 1]} : vector<8x384xf32> to vector<8x128xf32>
    %13 = arith.addf %11, %12 : vector<8x128xf32>
    %14 = arith.negf %13 : vector<8x128xf32>
    %15 = math.exp %14 : vector<8x128xf32>
    %cst_8 = arith.constant 1.000000e+00 : f32
    %16 = vector.broadcast %cst_8 : f32 to vector<8x128xf32>
    %17 = arith.addf %16, %15 : vector<8x128xf32>
    %18 = arith.divf %16, %17 : vector<8x128xf32>
    %19 = vector.extract_strided_slice %7 {offsets = [0, 128], sizes = [8, 128], strides = [1, 1]} : vector<8x384xf32> to vector<8x128xf32>
    %20 = vector.extract_strided_slice %10 {offsets = [0, 128], sizes = [8, 128], strides = [1, 1]} : vector<8x384xf32> to vector<8x128xf32>
    %21 = arith.addf %19, %20 : vector<8x128xf32>
    %22 = arith.negf %21 : vector<8x128xf32>
    %23 = math.exp %22 : vector<8x128xf32>
    %cst_9 = arith.constant 1.000000e+00 : f32
    %24 = vector.broadcast %cst_9 : f32 to vector<8x128xf32>
    %25 = arith.addf %24, %23 : vector<8x128xf32>
    %26 = arith.divf %24, %25 : vector<8x128xf32>
    %27 = vector.extract_strided_slice %7 {offsets = [0, 256], sizes = [8, 128], strides = [1, 1]} : vector<8x384xf32> to vector<8x128xf32>
    %28 = vector.extract_strided_slice %10 {offsets = [0, 256], sizes = [8, 128], strides = [1, 1]} : vector<8x384xf32> to vector<8x128xf32>
    %c0_10 = arith.constant 0 : index
    %c0_11 = arith.constant 0 : index
    %29 = vector.load %arg7[%c0_10, %c0_11] : memref<1x128xf32, #tpu.memory_space<vmem>>, vector<1x128xf32>
    %30 = vector.broadcast %29 : vector<1x128xf32> to vector<8x128xf32>
    %31 = arith.addf %28, %30 : vector<8x128xf32>
    %32 = arith.mulf %18, %31 : vector<8x128xf32>
    %33 = arith.addf %27, %32 : vector<8x128xf32>
    %34 = math.tanh %33 : vector<8x128xf32>
    %cst_12 = arith.constant 1.000000e+00 : f32
    %35 = vector.broadcast %cst_12 : f32 to vector<8x128xf32>
    %36 = arith.subf %35, %26 : vector<8x128xf32>
    %37 = arith.mulf %36, %34 : vector<8x128xf32>
    %38 = arith.mulf %26, %3 : vector<8x128xf32>
    %39 = arith.addf %37, %38 : vector<8x128xf32>
    %40 = arith.truncf %39 : vector<8x128xf32> to vector<8x128xbf16>
    %c0_13 = arith.constant 0 : index
    %c0_14 = arith.constant 0 : index
    %41 = vector.load %arg3[%c0_13, %c0_14] : memref<128x384xbf16, #tpu.memory_space<vmem>>, vector<128x384xbf16>
    %cst_15 = arith.constant dense<0.000000e+00> : vector<8x384xf32>
    %42 = tpu.matmul %40, %41, %cst_15 {dimension_numbers = #tpu.dot_dimension_numbers<[1], [0], [0], [1], [0, 0, 1, 1], [], []>} : vector<8x128xbf16>, vector<128x384xbf16>, vector<8x384xf32> -> vector<8x384xf32>
    %c0_16 = arith.constant 0 : index
    %c0_17 = arith.constant 0 : index
    %43 = vector.load %arg4[%c0_16, %c0_17] : memref<1x384xf32, #tpu.memory_space<vmem>>, vector<1x384xf32>
    %44 = vector.broadcast %43 : vector<1x384xf32> to vector<8x384xf32>
    %45 = arith.addf %42, %44 : vector<8x384xf32>
    %46 = arith.truncf %4 : vector<8x128xf32> to vector<8x128xbf16>
    %c0_18 = arith.constant 0 : index
    %c0_19 = arith.constant 0 : index
    %47 = vector.load %arg6[%c0_18, %c0_19] : memref<128x384xbf16, #tpu.memory_space<vmem>>, vector<128x384xbf16>
    %cst_20 = arith.constant dense<0.000000e+00> : vector<8x384xf32>
    %48 = tpu.matmul %46, %47, %cst_20 {dimension_numbers = #tpu.dot_dimension_numbers<[1], [0], [0], [1], [0, 0, 1, 1], [], []>} : vector<8x128xbf16>, vector<128x384xbf16>, vector<8x384xf32> -> vector<8x384xf32>
    %49 = vector.extract_strided_slice %45 {offsets = [0, 0], sizes = [8, 128], strides = [1, 1]} : vector<8x384xf32> to vector<8x128xf32>
    %50 = vector.extract_strided_slice %48 {offsets = [0, 0], sizes = [8, 128], strides = [1, 1]} : vector<8x384xf32> to vector<8x128xf32>
    %51 = arith.addf %49, %50 : vector<8x128xf32>
    %52 = arith.negf %51 : vector<8x128xf32>
    %53 = math.exp %52 : vector<8x128xf32>
    %cst_21 = arith.constant 1.000000e+00 : f32
    %54 = vector.broadcast %cst_21 : f32 to vector<8x128xf32>
    %55 = arith.addf %54, %53 : vector<8x128xf32>
    %56 = arith.divf %54, %55 : vector<8x128xf32>
    %57 = vector.extract_strided_slice %45 {offsets = [0, 128], sizes = [8, 128], strides = [1, 1]} : vector<8x384xf32> to vector<8x128xf32>
    %58 = vector.extract_strided_slice %48 {offsets = [0, 128], sizes = [8, 128], strides = [1, 1]} : vector<8x384xf32> to vector<8x128xf32>
    %59 = arith.addf %57, %58 : vector<8x128xf32>
    %60 = arith.negf %59 : vector<8x128xf32>
    %61 = math.exp %60 : vector<8x128xf32>
    %cst_22 = arith.constant 1.000000e+00 : f32
    %62 = vector.broadcast %cst_22 : f32 to vector<8x128xf32>
    %63 = arith.addf %62, %61 : vector<8x128xf32>
    %64 = arith.divf %62, %63 : vector<8x128xf32>
    %65 = vector.extract_strided_slice %45 {offsets = [0, 256], sizes = [8, 128], strides = [1, 1]} : vector<8x384xf32> to vector<8x128xf32>
    %66 = vector.extract_strided_slice %48 {offsets = [0, 256], sizes = [8, 128], strides = [1, 1]} : vector<8x384xf32> to vector<8x128xf32>
    %c0_23 = arith.constant 0 : index
    %c0_24 = arith.constant 0 : index
    %67 = vector.load %arg8[%c0_23, %c0_24] : memref<1x128xf32, #tpu.memory_space<vmem>>, vector<1x128xf32>
    %68 = vector.broadcast %67 : vector<1x128xf32> to vector<8x128xf32>
    %69 = arith.addf %66, %68 : vector<8x128xf32>
    %70 = arith.mulf %56, %69 : vector<8x128xf32>
    %71 = arith.addf %65, %70 : vector<8x128xf32>
    %72 = math.tanh %71 : vector<8x128xf32>
    %cst_25 = arith.constant 1.000000e+00 : f32
    %73 = vector.broadcast %cst_25 : f32 to vector<8x128xf32>
    %74 = arith.subf %73, %64 : vector<8x128xf32>
    %75 = arith.mulf %74, %72 : vector<8x128xf32>
    %76 = arith.mulf %64, %4 : vector<8x128xf32>
    %77 = arith.addf %75, %76 : vector<8x128xf32>
    %78 = arith.index_cast %c0_i32_3 : i32 to index
    %c0_26 = arith.constant 0 : index
    %c0_27 = arith.constant 0 : index
    %79 = vector.load %arg10[%78, %c0_26, %c0_27] : memref<4x8x128xf32, #tpu.memory_space<vmem>>, vector<1x8x128xf32>
    %80 = vector.shape_cast %79 : vector<1x8x128xf32> to vector<8x128xf32>
    %81 = vector.shape_cast %77 : vector<8x128xf32> to vector<1x8x128xf32>
    tpu.vector_store %arg10[%78, %c0_26, %c0_27], %81 {strides = array<i32>} : memref<4x8x128xf32, #tpu.memory_space<vmem>>, vector<1x8x128xf32>,
    %c1_i32 = arith.constant 1 : i32
    %82 = arith.index_cast %c1_i32 : i32 to index
    %c0_28 = arith.constant 0 : index
    %c0_29 = arith.constant 0 : index
    %83 = vector.load %arg2[%82, %c0_28, %c0_29] : memref<4x8x384xf32, #tpu.memory_space<vmem>>, vector<1x8x384xf32>
    %84 = vector.shape_cast %83 : vector<1x8x384xf32> to vector<8x384xf32>
    %85 = arith.truncf %39 : vector<8x128xf32> to vector<8x128xbf16>
    %c0_30 = arith.constant 0 : index
    %c0_31 = arith.constant 0 : index
    %86 = vector.load %arg5[%c0_30, %c0_31] : memref<128x384xbf16, #tpu.memory_space<vmem>>, vector<128x384xbf16>
    %cst_32 = arith.constant dense<0.000000e+00> : vector<8x384xf32>
    %87 = tpu.matmul %85, %86, %cst_32 {dimension_numbers = #tpu.dot_dimension_numbers<[1], [0], [0], [1], [0, 0, 1, 1], [], []>} : vector<8x128xbf16>, vector<128x384xbf16>, vector<8x384xf32> -> vector<8x384xf32>
    %88 = vector.extract_strided_slice %84 {offsets = [0, 0], sizes = [8, 128], strides = [1, 1]} : vector<8x384xf32> to vector<8x128xf32>
    %89 = vector.extract_strided_slice %87 {offsets = [0, 0], sizes = [8, 128], strides = [1, 1]} : vector<8x384xf32> to vector<8x128xf32>
    %90 = arith.addf %88, %89 : vector<8x128xf32>
    %91 = arith.negf %90 : vector<8x128xf32>
    %92 = math.exp %91 : vector<8x128xf32>
    %cst_33 = arith.constant 1.000000e+00 : f32
    %93 = vector.broadcast %cst_33 : f32 to vector<8x128xf32>
    %94 = arith.addf %93, %92 : vector<8x128xf32>
    %95 = arith.divf %93, %94 : vector<8x128xf32>
    %96 = vector.extract_strided_slice %84 {offsets = [0, 128], sizes = [8, 128], strides = [1, 1]} : vector<8x384xf32> to vector<8x128xf32>
    %97 = vector.extract_strided_slice %87 {offsets = [0, 128], sizes = [8, 128], strides = [1, 1]} : vector<8x384xf32> to vector<8x128xf32>
    %98 = arith.addf %96, %97 : vector<8x128xf32>
    %99 = arith.negf %98 : vector<8x128xf32>
    %100 = math.exp %99 : vector<8x128xf32>
    %cst_34 = arith.constant 1.000000e+00 : f32
    %101 = vector.broadcast %cst_34 : f32 to vector<8x128xf32>
    %102 = arith.addf %101, %100 : vector<8x128xf32>
    %103 = arith.divf %101, %102 : vector<8x128xf32>
    %104 = vector.extract_strided_slice %84 {offsets = [0, 256], sizes = [8, 128], strides = [1, 1]} : vector<8x384xf32> to vector<8x128xf32>
    %105 = vector.extract_strided_slice %87 {offsets = [0, 256], sizes = [8, 128], strides = [1, 1]} : vector<8x384xf32> to vector<8x128xf32>
    %c0_35 = arith.constant 0 : index
    %c0_36 = arith.constant 0 : index
    %106 = vector.load %arg7[%c0_35, %c0_36] : memref<1x128xf32, #tpu.memory_space<vmem>>, vector<1x128xf32>
    %107 = vector.broadcast %106 : vector<1x128xf32> to vector<8x128xf32>
    %108 = arith.addf %105, %107 : vector<8x128xf32>
    %109 = arith.mulf %95, %108 : vector<8x128xf32>
    %110 = arith.addf %104, %109 : vector<8x128xf32>
    %111 = math.tanh %110 : vector<8x128xf32>
    %cst_37 = arith.constant 1.000000e+00 : f32
    %112 = vector.broadcast %cst_37 : f32 to vector<8x128xf32>
    %113 = arith.subf %112, %103 : vector<8x128xf32>
    %114 = arith.mulf %113, %111 : vector<8x128xf32>
    %115 = arith.mulf %103, %39 : vector<8x128xf32>
    %116 = arith.addf %114, %115 : vector<8x128xf32>
    %117 = arith.truncf %116 : vector<8x128xf32> to vector<8x128xbf16>
    %c0_38 = arith.constant 0 : index
    %c0_39 = arith.constant 0 : index
    %118 = vector.load %arg3[%c0_38, %c0_39] : memref<128x384xbf16, #tpu.memory_space<vmem>>, vector<128x384xbf16>
    %cst_40 = arith.constant dense<0.000000e+00> : vector<8x384xf32>
    %119 = tpu.matmul %117, %118, %cst_40 {dimension_numbers = #tpu.dot_dimension_numbers<[1], [0], [0], [1], [0, 0, 1, 1], [], []>} : vector<8x128xbf16>, vector<128x384xbf16>, vector<8x384xf32> -> vector<8x384xf32>
    %c0_41 = arith.constant 0 : index
    %c0_42 = arith.constant 0 : index
    %120 = vector.load %arg4[%c0_41, %c0_42] : memref<1x384xf32, #tpu.memory_space<vmem>>, vector<1x384xf32>
    %121 = vector.broadcast %120 : vector<1x384xf32> to vector<8x384xf32>
    %122 = arith.addf %119, %121 : vector<8x384xf32>
    %123 = arith.truncf %77 : vector<8x128xf32> to vector<8x128xbf16>
    %c0_43 = arith.constant 0 : index
    %c0_44 = arith.constant 0 : index
    %124 = vector.load %arg6[%c0_43, %c0_44] : memref<128x384xbf16, #tpu.memory_space<vmem>>, vector<128x384xbf16>
    %cst_45 = arith.constant dense<0.000000e+00> : vector<8x384xf32>
    %125 = tpu.matmul %123, %124, %cst_45 {dimension_numbers = #tpu.dot_dimension_numbers<[1], [0], [0], [1], [0, 0, 1, 1], [], []>} : vector<8x128xbf16>, vector<128x384xbf16>, vector<8x384xf32> -> vector<8x384xf32>
    %126 = vector.extract_strided_slice %122 {offsets = [0, 0], sizes = [8, 128], strides = [1, 1]} : vector<8x384xf32> to vector<8x128xf32>
    %127 = vector.extract_strided_slice %125 {offsets = [0, 0], sizes = [8, 128], strides = [1, 1]} : vector<8x384xf32> to vector<8x128xf32>
    %128 = arith.addf %126, %127 : vector<8x128xf32>
    %129 = arith.negf %128 : vector<8x128xf32>
    %130 = math.exp %129 : vector<8x128xf32>
    %cst_46 = arith.constant 1.000000e+00 : f32
    %131 = vector.broadcast %cst_46 : f32 to vector<8x128xf32>
    %132 = arith.addf %131, %130 : vector<8x128xf32>
    %133 = arith.divf %131, %132 : vector<8x128xf32>
    %134 = vector.extract_strided_slice %122 {offsets = [0, 128], sizes = [8, 128], strides = [1, 1]} : vector<8x384xf32> to vector<8x128xf32>
    %135 = vector.extract_strided_slice %125 {offsets = [0, 128], sizes = [8, 128], strides = [1, 1]} : vector<8x384xf32> to vector<8x128xf32>
    %136 = arith.addf %134, %135 : vector<8x128xf32>
    %137 = arith.negf %136 : vector<8x128xf32>
    %138 = math.exp %137 : vector<8x128xf32>
    %cst_47 = arith.constant 1.000000e+00 : f32
    %139 = vector.broadcast %cst_47 : f32 to vector<8x128xf32>
    %140 = arith.addf %139, %138 : vector<8x128xf32>
    %141 = arith.divf %139, %140 : vector<8x128xf32>
    %142 = vector.extract_strided_slice %122 {offsets = [0, 256], sizes = [8, 128], strides = [1, 1]} : vector<8x384xf32> to vector<8x128xf32>
    %143 = vector.extract_strided_slice %125 {offsets = [0, 256], sizes = [8, 128], strides = [1, 1]} : vector<8x384xf32> to vector<8x128xf32>
    %c0_48 = arith.constant 0 : index
    %c0_49 = arith.constant 0 : index
    %144 = vector.load %arg8[%c0_48, %c0_49] : memref<1x128xf32, #tpu.memory_space<vmem>>, vector<1x128xf32>
    %145 = vector.broadcast %144 : vector<1x128xf32> to vector<8x128xf32>
    %146 = arith.addf %143, %145 : vector<8x128xf32>
    %147 = arith.mulf %133, %146 : vector<8x128xf32>
    %148 = arith.addf %142, %147 : vector<8x128xf32>
    %149 = math.tanh %148 : vector<8x128xf32>
    %cst_50 = arith.constant 1.000000e+00 : f32
    %150 = vector.broadcast %cst_50 : f32 to vector<8x128xf32>
    %151 = arith.subf %150, %141 : vector<8x128xf32>
    %152 = arith.mulf %151, %149 : vector<8x128xf32>
    %153 = arith.mulf %141, %77 : vector<8x128xf32>
    %154 = arith.addf %152, %153 : vector<8x128xf32>
    %155 = arith.index_cast %c1_i32 : i32 to index
    %c0_51 = arith.constant 0 : index
    %c0_52 = arith.constant 0 : index
    %156 = vector.load %arg10[%155, %c0_51, %c0_52] : memref<4x8x128xf32, #tpu.memory_space<vmem>>, vector<1x8x128xf32>
    %157 = vector.shape_cast %156 : vector<1x8x128xf32> to vector<8x128xf32>
    %158 = vector.shape_cast %154 : vector<8x128xf32> to vector<1x8x128xf32>
    tpu.vector_store %arg10[%155, %c0_51, %c0_52], %158 {strides = array<i32>} : memref<4x8x128xf32, #tpu.memory_space<vmem>>, vector<1x8x128xf32>,
    %c2_i32 = arith.constant 2 : i32
    %159 = arith.index_cast %c2_i32 : i32 to index
    %c0_53 = arith.constant 0 : index
    %c0_54 = arith.constant 0 : index
    %160 = vector.load %arg2[%159, %c0_53, %c0_54] : memref<4x8x384xf32, #tpu.memory_space<vmem>>, vector<1x8x384xf32>
    %161 = vector.shape_cast %160 : vector<1x8x384xf32> to vector<8x384xf32>
    %162 = arith.truncf %116 : vector<8x128xf32> to vector<8x128xbf16>
    %c0_55 = arith.constant 0 : index
    %c0_56 = arith.constant 0 : index
    %163 = vector.load %arg5[%c0_55, %c0_56] : memref<128x384xbf16, #tpu.memory_space<vmem>>, vector<128x384xbf16>
    %cst_57 = arith.constant dense<0.000000e+00> : vector<8x384xf32>
    %164 = tpu.matmul %162, %163, %cst_57 {dimension_numbers = #tpu.dot_dimension_numbers<[1], [0], [0], [1], [0, 0, 1, 1], [], []>} : vector<8x128xbf16>, vector<128x384xbf16>, vector<8x384xf32> -> vector<8x384xf32>
    %165 = vector.extract_strided_slice %161 {offsets = [0, 0], sizes = [8, 128], strides = [1, 1]} : vector<8x384xf32> to vector<8x128xf32>
    %166 = vector.extract_strided_slice %164 {offsets = [0, 0], sizes = [8, 128], strides = [1, 1]} : vector<8x384xf32> to vector<8x128xf32>
    %167 = arith.addf %165, %166 : vector<8x128xf32>
    %168 = arith.negf %167 : vector<8x128xf32>
    %169 = math.exp %168 : vector<8x128xf32>
    %cst_58 = arith.constant 1.000000e+00 : f32
    %170 = vector.broadcast %cst_58 : f32 to vector<8x128xf32>
    %171 = arith.addf %170, %169 : vector<8x128xf32>
    %172 = arith.divf %170, %171 : vector<8x128xf32>
    %173 = vector.extract_strided_slice %161 {offsets = [0, 128], sizes = [8, 128], strides = [1, 1]} : vector<8x384xf32> to vector<8x128xf32>
    %174 = vector.extract_strided_slice %164 {offsets = [0, 128], sizes = [8, 128], strides = [1, 1]} : vector<8x384xf32> to vector<8x128xf32>
    %175 = arith.addf %173, %174 : vector<8x128xf32>
    %176 = arith.negf %175 : vector<8x128xf32>
    %177 = math.exp %176 : vector<8x128xf32>
    %cst_59 = arith.constant 1.000000e+00 : f32
    %178 = vector.broadcast %cst_59 : f32 to vector<8x128xf32>
    %179 = arith.addf %178, %177 : vector<8x128xf32>
    %180 = arith.divf %178, %179 : vector<8x128xf32>
    %181 = vector.extract_strided_slice %161 {offsets = [0, 256], sizes = [8, 128], strides = [1, 1]} : vector<8x384xf32> to vector<8x128xf32>
    %182 = vector.extract_strided_slice %164 {offsets = [0, 256], sizes = [8, 128], strides = [1, 1]} : vector<8x384xf32> to vector<8x128xf32>
    %c0_60 = arith.constant 0 : index
    %c0_61 = arith.constant 0 : index
    %183 = vector.load %arg7[%c0_60, %c0_61] : memref<1x128xf32, #tpu.memory_space<vmem>>, vector<1x128xf32>
    %184 = vector.broadcast %183 : vector<1x128xf32> to vector<8x128xf32>
    %185 = arith.addf %182, %184 : vector<8x128xf32>
    %186 = arith.mulf %172, %185 : vector<8x128xf32>
    %187 = arith.addf %181, %186 : vector<8x128xf32>
    %188 = math.tanh %187 : vector<8x128xf32>
    %cst_62 = arith.constant 1.000000e+00 : f32
    %189 = vector.broadcast %cst_62 : f32 to vector<8x128xf32>
    %190 = arith.subf %189, %180 : vector<8x128xf32>
    %191 = arith.mulf %190, %188 : vector<8x128xf32>
    %192 = arith.mulf %180, %116 : vector<8x128xf32>
    %193 = arith.addf %191, %192 : vector<8x128xf32>
    %194 = arith.truncf %193 : vector<8x128xf32> to vector<8x128xbf16>
    %c0_63 = arith.constant 0 : index
    %c0_64 = arith.constant 0 : index
    %195 = vector.load %arg3[%c0_63, %c0_64] : memref<128x384xbf16, #tpu.memory_space<vmem>>, vector<128x384xbf16>
    %cst_65 = arith.constant dense<0.000000e+00> : vector<8x384xf32>
    %196 = tpu.matmul %194, %195, %cst_65 {dimension_numbers = #tpu.dot_dimension_numbers<[1], [0], [0], [1], [0, 0, 1, 1], [], []>} : vector<8x128xbf16>, vector<128x384xbf16>, vector<8x384xf32> -> vector<8x384xf32>
    %c0_66 = arith.constant 0 : index
    %c0_67 = arith.constant 0 : index
    %197 = vector.load %arg4[%c0_66, %c0_67] : memref<1x384xf32, #tpu.memory_space<vmem>>, vector<1x384xf32>
    %198 = vector.broadcast %197 : vector<1x384xf32> to vector<8x384xf32>
    %199 = arith.addf %196, %198 : vector<8x384xf32>
    %200 = arith.truncf %154 : vector<8x128xf32> to vector<8x128xbf16>
    %c0_68 = arith.constant 0 : index
    %c0_69 = arith.constant 0 : index
    %201 = vector.load %arg6[%c0_68, %c0_69] : memref<128x384xbf16, #tpu.memory_space<vmem>>, vector<128x384xbf16>
    %cst_70 = arith.constant dense<0.000000e+00> : vector<8x384xf32>
    %202 = tpu.matmul %200, %201, %cst_70 {dimension_numbers = #tpu.dot_dimension_numbers<[1], [0], [0], [1], [0, 0, 1, 1], [], []>} : vector<8x128xbf16>, vector<128x384xbf16>, vector<8x384xf32> -> vector<8x384xf32>
    %203 = vector.extract_strided_slice %199 {offsets = [0, 0], sizes = [8, 128], strides = [1, 1]} : vector<8x384xf32> to vector<8x128xf32>
    %204 = vector.extract_strided_slice %202 {offsets = [0, 0], sizes = [8, 128], strides = [1, 1]} : vector<8x384xf32> to vector<8x128xf32>
    %205 = arith.addf %203, %204 : vector<8x128xf32>
    %206 = arith.negf %205 : vector<8x128xf32>
    %207 = math.exp %206 : vector<8x128xf32>
    %cst_71 = arith.constant 1.000000e+00 : f32
    %208 = vector.broadcast %cst_71 : f32 to vector<8x128xf32>
    %209 = arith.addf %208, %207 : vector<8x128xf32>
    %210 = arith.divf %208, %209 : vector<8x128xf32>
    %211 = vector.extract_strided_slice %199 {offsets = [0, 128], sizes = [8, 128], strides = [1, 1]} : vector<8x384xf32> to vector<8x128xf32>
    %212 = vector.extract_strided_slice %202 {offsets = [0, 128], sizes = [8, 128], strides = [1, 1]} : vector<8x384xf32> to vector<8x128xf32>
    %213 = arith.addf %211, %212 : vector<8x128xf32>
    %214 = arith.negf %213 : vector<8x128xf32>
    %215 = math.exp %214 : vector<8x128xf32>
    %cst_72 = arith.constant 1.000000e+00 : f32
    %216 = vector.broadcast %cst_72 : f32 to vector<8x128xf32>
    %217 = arith.addf %216, %215 : vector<8x128xf32>
    %218 = arith.divf %216, %217 : vector<8x128xf32>
    %219 = vector.extract_strided_slice %199 {offsets = [0, 256], sizes = [8, 128], strides = [1, 1]} : vector<8x384xf32> to vector<8x128xf32>
    %220 = vector.extract_strided_slice %202 {offsets = [0, 256], sizes = [8, 128], strides = [1, 1]} : vector<8x384xf32> to vector<8x128xf32>
    %c0_73 = arith.constant 0 : index
    %c0_74 = arith.constant 0 : index
    %221 = vector.load %arg8[%c0_73, %c0_74] : memref<1x128xf32, #tpu.memory_space<vmem>>, vector<1x128xf32>
    %222 = vector.broadcast %221 : vector<1x128xf32> to vector<8x128xf32>
    %223 = arith.addf %220, %222 : vector<8x128xf32>
    %224 = arith.mulf %210, %223 : vector<8x128xf32>
    %225 = arith.addf %219, %224 : vector<8x128xf32>
    %226 = math.tanh %225 : vector<8x128xf32>
    %cst_75 = arith.constant 1.000000e+00 : f32
    %227 = vector.broadcast %cst_75 : f32 to vector<8x128xf32>
    %228 = arith.subf %227, %218 : vector<8x128xf32>
    %229 = arith.mulf %228, %226 : vector<8x128xf32>
    %230 = arith.mulf %218, %154 : vector<8x128xf32>
    %231 = arith.addf %229, %230 : vector<8x128xf32>
    %232 = arith.index_cast %c2_i32 : i32 to index
    %c0_76 = arith.constant 0 : index
    %c0_77 = arith.constant 0 : index
    %233 = vector.load %arg10[%232, %c0_76, %c0_77] : memref<4x8x128xf32, #tpu.memory_space<vmem>>, vector<1x8x128xf32>
    %234 = vector.shape_cast %233 : vector<1x8x128xf32> to vector<8x128xf32>
    %235 = vector.shape_cast %231 : vector<8x128xf32> to vector<1x8x128xf32>
    tpu.vector_store %arg10[%232, %c0_76, %c0_77], %235 {strides = array<i32>} : memref<4x8x128xf32, #tpu.memory_space<vmem>>, vector<1x8x128xf32>,
    %c3_i32 = arith.constant 3 : i32
    %236 = arith.index_cast %c3_i32 : i32 to index
    %c0_78 = arith.constant 0 : index
    %c0_79 = arith.constant 0 : index
    %237 = vector.load %arg2[%236, %c0_78, %c0_79] : memref<4x8x384xf32, #tpu.memory_space<vmem>>, vector<1x8x384xf32>
    %238 = vector.shape_cast %237 : vector<1x8x384xf32> to vector<8x384xf32>
    %239 = arith.truncf %193 : vector<8x128xf32> to vector<8x128xbf16>
    %c0_80 = arith.constant 0 : index
    %c0_81 = arith.constant 0 : index
    %240 = vector.load %arg5[%c0_80, %c0_81] : memref<128x384xbf16, #tpu.memory_space<vmem>>, vector<128x384xbf16>
    %cst_82 = arith.constant dense<0.000000e+00> : vector<8x384xf32>
    %241 = tpu.matmul %239, %240, %cst_82 {dimension_numbers = #tpu.dot_dimension_numbers<[1], [0], [0], [1], [0, 0, 1, 1], [], []>} : vector<8x128xbf16>, vector<128x384xbf16>, vector<8x384xf32> -> vector<8x384xf32>
    %242 = vector.extract_strided_slice %238 {offsets = [0, 0], sizes = [8, 128], strides = [1, 1]} : vector<8x384xf32> to vector<8x128xf32>
    %243 = vector.extract_strided_slice %241 {offsets = [0, 0], sizes = [8, 128], strides = [1, 1]} : vector<8x384xf32> to vector<8x128xf32>
    %244 = arith.addf %242, %243 : vector<8x128xf32>
    %245 = arith.negf %244 : vector<8x128xf32>
    %246 = math.exp %245 : vector<8x128xf32>
    %cst_83 = arith.constant 1.000000e+00 : f32
    %247 = vector.broadcast %cst_83 : f32 to vector<8x128xf32>
    %248 = arith.addf %247, %246 : vector<8x128xf32>
    %249 = arith.divf %247, %248 : vector<8x128xf32>
    %250 = vector.extract_strided_slice %238 {offsets = [0, 128], sizes = [8, 128], strides = [1, 1]} : vector<8x384xf32> to vector<8x128xf32>
    %251 = vector.extract_strided_slice %241 {offsets = [0, 128], sizes = [8, 128], strides = [1, 1]} : vector<8x384xf32> to vector<8x128xf32>
    %252 = arith.addf %250, %251 : vector<8x128xf32>
    %253 = arith.negf %252 : vector<8x128xf32>
    %254 = math.exp %253 : vector<8x128xf32>
    %cst_84 = arith.constant 1.000000e+00 : f32
    %255 = vector.broadcast %cst_84 : f32 to vector<8x128xf32>
    %256 = arith.addf %255, %254 : vector<8x128xf32>
    %257 = arith.divf %255, %256 : vector<8x128xf32>
    %258 = vector.extract_strided_slice %238 {offsets = [0, 256], sizes = [8, 128], strides = [1, 1]} : vector<8x384xf32> to vector<8x128xf32>
    %259 = vector.extract_strided_slice %241 {offsets = [0, 256], sizes = [8, 128], strides = [1, 1]} : vector<8x384xf32> to vector<8x128xf32>
    %c0_85 = arith.constant 0 : index
    %c0_86 = arith.constant 0 : index
    %260 = vector.load %arg7[%c0_85, %c0_86] : memref<1x128xf32, #tpu.memory_space<vmem>>, vector<1x128xf32>
    %261 = vector.broadcast %260 : vector<1x128xf32> to vector<8x128xf32>
    %262 = arith.addf %259, %261 : vector<8x128xf32>
    %263 = arith.mulf %249, %262 : vector<8x128xf32>
    %264 = arith.addf %258, %263 : vector<8x128xf32>
    %265 = math.tanh %264 : vector<8x128xf32>
    %cst_87 = arith.constant 1.000000e+00 : f32
    %266 = vector.broadcast %cst_87 : f32 to vector<8x128xf32>
    %267 = arith.subf %266, %257 : vector<8x128xf32>
    %268 = arith.mulf %267, %265 : vector<8x128xf32>
    %269 = arith.mulf %257, %193 : vector<8x128xf32>
    %270 = arith.addf %268, %269 : vector<8x128xf32>
    %271 = arith.truncf %270 : vector<8x128xf32> to vector<8x128xbf16>
    %c0_88 = arith.constant 0 : index
    %c0_89 = arith.constant 0 : index
    %272 = vector.load %arg3[%c0_88, %c0_89] : memref<128x384xbf16, #tpu.memory_space<vmem>>, vector<128x384xbf16>
    %cst_90 = arith.constant dense<0.000000e+00> : vector<8x384xf32>
    %273 = tpu.matmul %271, %272, %cst_90 {dimension_numbers = #tpu.dot_dimension_numbers<[1], [0], [0], [1], [0, 0, 1, 1], [], []>} : vector<8x128xbf16>, vector<128x384xbf16>, vector<8x384xf32> -> vector<8x384xf32>
    %c0_91 = arith.constant 0 : index
    %c0_92 = arith.constant 0 : index
    %274 = vector.load %arg4[%c0_91, %c0_92] : memref<1x384xf32, #tpu.memory_space<vmem>>, vector<1x384xf32>
    %275 = vector.broadcast %274 : vector<1x384xf32> to vector<8x384xf32>
    %276 = arith.addf %273, %275 : vector<8x384xf32>
    %277 = arith.truncf %231 : vector<8x128xf32> to vector<8x128xbf16>
    %c0_93 = arith.constant 0 : index
    %c0_94 = arith.constant 0 : index
    %278 = vector.load %arg6[%c0_93, %c0_94] : memref<128x384xbf16, #tpu.memory_space<vmem>>, vector<128x384xbf16>
    %cst_95 = arith.constant dense<0.000000e+00> : vector<8x384xf32>
    %279 = tpu.matmul %277, %278, %cst_95 {dimension_numbers = #tpu.dot_dimension_numbers<[1], [0], [0], [1], [0, 0, 1, 1], [], []>} : vector<8x128xbf16>, vector<128x384xbf16>, vector<8x384xf32> -> vector<8x384xf32>
    %280 = vector.extract_strided_slice %276 {offsets = [0, 0], sizes = [8, 128], strides = [1, 1]} : vector<8x384xf32> to vector<8x128xf32>
    %281 = vector.extract_strided_slice %279 {offsets = [0, 0], sizes = [8, 128], strides = [1, 1]} : vector<8x384xf32> to vector<8x128xf32>
    %282 = arith.addf %280, %281 : vector<8x128xf32>
    %283 = arith.negf %282 : vector<8x128xf32>
    %284 = math.exp %283 : vector<8x128xf32>
    %cst_96 = arith.constant 1.000000e+00 : f32
    %285 = vector.broadcast %cst_96 : f32 to vector<8x128xf32>
    %286 = arith.addf %285, %284 : vector<8x128xf32>
    %287 = arith.divf %285, %286 : vector<8x128xf32>
    %288 = vector.extract_strided_slice %276 {offsets = [0, 128], sizes = [8, 128], strides = [1, 1]} : vector<8x384xf32> to vector<8x128xf32>
    %289 = vector.extract_strided_slice %279 {offsets = [0, 128], sizes = [8, 128], strides = [1, 1]} : vector<8x384xf32> to vector<8x128xf32>
    %290 = arith.addf %288, %289 : vector<8x128xf32>
    %291 = arith.negf %290 : vector<8x128xf32>
    %292 = math.exp %291 : vector<8x128xf32>
    %cst_97 = arith.constant 1.000000e+00 : f32
    %293 = vector.broadcast %cst_97 : f32 to vector<8x128xf32>
    %294 = arith.addf %293, %292 : vector<8x128xf32>
    %295 = arith.divf %293, %294 : vector<8x128xf32>
    %296 = vector.extract_strided_slice %276 {offsets = [0, 256], sizes = [8, 128], strides = [1, 1]} : vector<8x384xf32> to vector<8x128xf32>
    %297 = vector.extract_strided_slice %279 {offsets = [0, 256], sizes = [8, 128], strides = [1, 1]} : vector<8x384xf32> to vector<8x128xf32>
    %c0_98 = arith.constant 0 : index
    %c0_99 = arith.constant 0 : index
    %298 = vector.load %arg8[%c0_98, %c0_99] : memref<1x128xf32, #tpu.memory_space<vmem>>, vector<1x128xf32>
    %299 = vector.broadcast %298 : vector<1x128xf32> to vector<8x128xf32>
    %300 = arith.addf %297, %299 : vector<8x128xf32>
    %301 = arith.mulf %287, %300 : vector<8x128xf32>
    %302 = arith.addf %296, %301 : vector<8x128xf32>
    %303 = math.tanh %302 : vector<8x128xf32>
    %cst_100 = arith.constant 1.000000e+00 : f32
    %304 = vector.broadcast %cst_100 : f32 to vector<8x128xf32>
    %305 = arith.subf %304, %295 : vector<8x128xf32>
    %306 = arith.mulf %305, %303 : vector<8x128xf32>
    %307 = arith.mulf %295, %231 : vector<8x128xf32>
    %308 = arith.addf %306, %307 : vector<8x128xf32>
    %309 = arith.index_cast %c3_i32 : i32 to index
    %c0_101 = arith.constant 0 : index
    %c0_102 = arith.constant 0 : index
    %310 = vector.load %arg10[%309, %c0_101, %c0_102] : memref<4x8x128xf32, #tpu.memory_space<vmem>>, vector<1x8x128xf32>
    %311 = vector.shape_cast %310 : vector<1x8x128xf32> to vector<8x128xf32>
    %312 = vector.shape_cast %308 : vector<8x128xf32> to vector<1x8x128xf32>
    tpu.vector_store %arg10[%309, %c0_101, %c0_102], %312 {strides = array<i32>} : memref<4x8x128xf32, #tpu.memory_space<vmem>>, vector<1x8x128xf32>,
    %c4_i32 = arith.constant 4 : i32
    %c0_103 = arith.constant 0 : index
    %c0_104 = arith.constant 0 : index
    %313 = vector.load %arg11[%c0_103, %c0_104] : memref<8x256xf32, #tpu.memory_space<vmem>>, vector<8x128xf32>
    tpu.vector_store %arg11[%c0_103, %c0_104], %270 {strides = array<i32>} : memref<8x256xf32, #tpu.memory_space<vmem>>, vector<8x128xf32>,
    %c0_105 = arith.constant 0 : index
    %c128_106 = arith.constant 128 : index
    %314 = vector.load %arg11[%c0_105, %c128_106] : memref<8x256xf32, #tpu.memory_space<vmem>>, vector<8x128xf32>
    tpu.vector_store %arg11[%c0_105, %c128_106], %308 {strides = array<i32>} : memref<8x256xf32, #tpu.memory_space<vmem>>, vector<8x128xf32>,
    return
  }
  func.func @transform_0(%arg0: i32, %arg1: i32) -> (i32, i32, i32) {
    %c0_i32 = arith.constant 0 : i32
    %c0_i32_0 = arith.constant 0 : i32
    return %arg1, %arg0, %c0_i32 : i32, i32, i32
  }
  func.func @transform_1(%arg0: i32, %arg1: i32) -> (i32, i32) {
    %c0_i32 = arith.constant 0 : i32
    %c0_i32_0 = arith.constant 0 : i32
    %c0_i32_1 = arith.constant 0 : i32
    return %c0_i32, %c0_i32_0 : i32, i32
  }
  func.func @transform_2(%arg0: i32, %arg1: i32) -> (i32, i32) {
    %c0_i32 = arith.constant 0 : i32
    %c0_i32_0 = arith.constant 0 : i32
    %c0_i32_1 = arith.constant 0 : i32
    return %c0_i32, %c0_i32_0 : i32, i32
  }
  func.func @transform_3(%arg0: i32, %arg1: i32) -> (i32, i32) {
    %c0_i32 = arith.constant 0 : i32
    %c0_i32_0 = arith.constant 0 : i32
    %c0_i32_1 = arith.constant 0 : i32
    return %c0_i32, %c0_i32_0 : i32, i32
  }
  func.func @transform_4(%arg0: i32, %arg1: i32) -> (i32, i32) {
    %c0_i32 = arith.constant 0 : i32
    %c0_i32_0 = arith.constant 0 : i32
    %c0_i32_1 = arith.constant 0 : i32
    return %c0_i32, %c0_i32_0 : i32, i32
  }
  func.func @transform_5(%arg0: i32, %arg1: i32) -> (i32, i32) {
    %c0_i32 = arith.constant 0 : i32
    %c0_i32_0 = arith.constant 0 : i32
    %c0_i32_1 = arith.constant 0 : i32
    return %c0_i32, %c0_i32_0 : i32, i32
  }
  func.func @transform_6(%arg0: i32, %arg1: i32) -> (i32, i32) {
    %c0_i32 = arith.constant 0 : i32
    %c0_i32_0 = arith.constant 0 : i32
    %c0_i32_1 = arith.constant 0 : i32
    return %c0_i32, %c0_i32_0 : i32, i32
  }
  func.func @transform_7(%arg0: i32, %arg1: i32) -> (i32, i32) {
    %c0_i32 = arith.constant 0 : i32
    %c0_i32_0 = arith.constant 0 : i32
    return %arg0, %c0_i32 : i32, i32
  }
  func.func @transform_8(%arg0: i32, %arg1: i32) -> (i32, i32, i32) {
    %c0_i32 = arith.constant 0 : i32
    %c0_i32_0 = arith.constant 0 : i32
    return %arg1, %arg0, %c0_i32 : i32, i32, i32
  }
  func.func @transform_9(%arg0: i32, %arg1: i32) -> (i32, i32) {
    %c0_i32 = arith.constant 0 : i32
    %c0_i32_0 = arith.constant 0 : i32
    return %arg0, %c0_i32 : i32, i32
  }
}

module attributes {stable_mosaic.version = 11 : i64} {
  func.func @_vae_head_kernel(%arg0: memref<16x256xf32, #tpu.memory_space<vmem>>, %arg1: memref<256x64xbf16, #tpu.memory_space<vmem>>, %arg2: memref<1x64xf32, #tpu.memory_space<vmem>>, %arg3: memref<16x32xf32, #tpu.memory_space<vmem>>, %arg4: memref<32x256xbf16, #tpu.memory_space<vmem>>, %arg5: memref<1x256xf32, #tpu.memory_space<vmem>>, %arg6: memref<16x64xf32, #tpu.memory_space<vmem>>, %arg7: memref<16x256xf32, #tpu.memory_space<vmem>>) attributes {dimension_semantics = [], scalar_prefetch = 0 : i64, scratch_operands = 0 : i64, tpu.core_type = #tpu.core_type<tc>} {
    %c0 = arith.constant 0 : index
    %c0_0 = arith.constant 0 : index
    %0 = vector.load %arg0[%c0, %c0_0] : memref<16x256xf32, #tpu.memory_space<vmem>>, vector<16x256xf32>
    %1 = arith.truncf %0 : vector<16x256xf32> to vector<16x256xbf16>
    %c0_1 = arith.constant 0 : index
    %c0_2 = arith.constant 0 : index
    %2 = vector.load %arg1[%c0_1, %c0_2] : memref<256x64xbf16, #tpu.memory_space<vmem>>, vector<256x64xbf16>
    %cst = arith.constant dense<0.000000e+00> : vector<16x64xf32>
    %3 = tpu.matmul %1, %2, %cst {dimension_numbers = #tpu.dot_dimension_numbers<[1], [0], [0], [1], [0, 0, 1, 1], [], []>} : vector<16x256xbf16>, vector<256x64xbf16>, vector<16x64xf32> -> vector<16x64xf32>
    %c0_3 = arith.constant 0 : index
    %c0_4 = arith.constant 0 : index
    %4 = vector.load %arg2[%c0_3, %c0_4] : memref<1x64xf32, #tpu.memory_space<vmem>>, vector<1x64xf32>
    %5 = vector.broadcast %4 : vector<1x64xf32> to vector<16x64xf32>
    %6 = arith.addf %3, %5 : vector<16x64xf32>
    %7 = vector.extract_strided_slice %6 {offsets = [0, 0], sizes = [16, 32], strides = [1, 1]} : vector<16x64xf32> to vector<16x32xf32>
    %8 = vector.extract_strided_slice %6 {offsets = [0, 32], sizes = [16, 32], strides = [1, 1]} : vector<16x64xf32> to vector<16x32xf32>
    %c0_5 = arith.constant 0 : index
    %c0_6 = arith.constant 0 : index
    %9 = vector.load %arg3[%c0_5, %c0_6] : memref<16x32xf32, #tpu.memory_space<vmem>>, vector<16x32xf32>
    %cst_7 = arith.constant 5.000000e-01 : f32
    %10 = vector.broadcast %cst_7 : f32 to vector<16x32xf32>
    %11 = arith.mulf %10, %8 : vector<16x32xf32>
    %12 = math.exp %11 : vector<16x32xf32>
    %13 = arith.mulf %9, %12 : vector<16x32xf32>
    %14 = arith.addf %7, %13 : vector<16x32xf32>
    %c0_8 = arith.constant 0 : index
    %c0_9 = arith.constant 0 : index
    %15 = vector.load %arg6[%c0_8, %c0_9] : memref<16x64xf32, #tpu.memory_space<vmem>>, vector<16x64xf32>
    tpu.vector_store %arg6[%c0_8, %c0_9], %6 {strides = array<i32>} : memref<16x64xf32, #tpu.memory_space<vmem>>, vector<16x64xf32>,
    %16 = arith.truncf %14 : vector<16x32xf32> to vector<16x32xbf16>
    %c0_10 = arith.constant 0 : index
    %c0_11 = arith.constant 0 : index
    %17 = vector.load %arg4[%c0_10, %c0_11] : memref<32x256xbf16, #tpu.memory_space<vmem>>, vector<32x256xbf16>
    %cst_12 = arith.constant dense<0.000000e+00> : vector<16x256xf32>
    %18 = tpu.matmul %16, %17, %cst_12 {dimension_numbers = #tpu.dot_dimension_numbers<[1], [0], [0], [1], [0, 0, 1, 1], [], []>} : vector<16x32xbf16>, vector<32x256xbf16>, vector<16x256xf32> -> vector<16x256xf32>
    %c0_13 = arith.constant 0 : index
    %c0_14 = arith.constant 0 : index
    %19 = vector.load %arg5[%c0_13, %c0_14] : memref<1x256xf32, #tpu.memory_space<vmem>>, vector<1x256xf32>
    %20 = vector.broadcast %19 : vector<1x256xf32> to vector<16x256xf32>
    %21 = arith.addf %18, %20 : vector<16x256xf32>
    %c0_15 = arith.constant 0 : index
    %c0_16 = arith.constant 0 : index
    %22 = vector.load %arg7[%c0_15, %c0_16] : memref<16x256xf32, #tpu.memory_space<vmem>>, vector<16x256xf32>
    tpu.vector_store %arg7[%c0_15, %c0_16], %21 {strides = array<i32>} : memref<16x256xf32, #tpu.memory_space<vmem>>, vector<16x256xf32>,
    return
  }
}

module attributes {stable_mosaic.version = 11 : i64} {
  func.func @_linear_logsoftmax_kernel(%arg0: i32, %arg1: i32, %arg2: i32, %arg3: memref<128x128xf32, #tpu.memory_space<vmem>>, %arg4: memref<128x128xbf16, #tpu.memory_space<vmem>>, %arg5: memref<1x128xf32, #tpu.memory_space<vmem>>, %arg6: memref<128x128xf32, #tpu.memory_space<vmem>>, %arg7: memref<128x1xf32, #tpu.memory_space<vmem>>, %arg8: memref<128x1xf32, #tpu.memory_space<vmem>>) attributes {dimension_semantics = [#tpu.dimension_semantics<parallel>, #tpu.dimension_semantics<arbitrary>, #tpu.dimension_semantics<arbitrary>], iteration_bounds = array<i64: 1, 2, 1>, scalar_prefetch = 0 : i64, scratch_operands = 2 : i64, tpu.core_type = #tpu.core_type<tc>, window_params = [{transform_indices = @transform_0, window_bounds = array<i64: 128, 128>}, {transform_indices = @transform_1, window_bounds = array<i64: 128, 128>}, {transform_indices = @transform_2, window_bounds = array<i64: 1, 128>}, {transform_indices = @transform_3, window_bounds = array<i64: 128, 128>}]} {
    %c0 = arith.constant 0 : index
    %c0_0 = arith.constant 0 : index
    %0 = vector.load %arg3[%c0, %c0_0] : memref<128x128xf32, #tpu.memory_space<vmem>>, vector<128x128xf32>
    %1 = arith.truncf %0 : vector<128x128xf32> to vector<128x128xbf16>
    %c0_1 = arith.constant 0 : index
    %c0_2 = arith.constant 0 : index
    %2 = vector.load %arg4[%c0_1, %c0_2] : memref<128x128xbf16, #tpu.memory_space<vmem>>, vector<128x128xbf16>
    %cst = arith.constant dense<0.000000e+00> : vector<128x128xf32>
    %3 = tpu.matmul %1, %2, %cst {dimension_numbers = #tpu.dot_dimension_numbers<[1], [0], [0], [1], [0, 0, 1, 1], [], []>} : vector<128x128xbf16>, vector<128x128xbf16>, vector<128x128xf32> -> vector<128x128xf32>
    %c0_3 = arith.constant 0 : index
    %c0_4 = arith.constant 0 : index
    %4 = vector.load %arg5[%c0_3, %c0_4] : memref<1x128xf32, #tpu.memory_space<vmem>>, vector<1x128xf32>
    %5 = vector.broadcast %4 : vector<1x128xf32> to vector<128x128xf32>
    %6 = arith.addf %3, %5 : vector<128x128xf32>
    %c0_i32 = arith.constant 0 : i32
    %7 = arith.cmpi eq, %arg1, %c0_i32 : i32
    %c0_i32_5 = arith.constant 0 : i32
    %8 = arith.cmpi eq, %arg2, %c0_i32_5 : i32
    %9 = arith.andi %7, %8 : i1
    %10 = arith.extui %9 : i1 to i32
    %c0_i32_6 = arith.constant 0 : i32
    %11 = arith.cmpi ne, %10, %c0_i32_6 : i32
    scf.if %11 {
      %cst_10 = arith.constant 0xFF800000 : f32
      %18 = vector.broadcast %cst_10 : f32 to vector<128x1xf32>
      %c0_11 = arith.constant 0 : index
      %c0_12 = arith.constant 0 : index
      %19 = vector.load %arg7[%c0_11, %c0_12] : memref<128x1xf32, #tpu.memory_space<vmem>>, vector<128x1xf32>
      tpu.vector_store %arg7[%c0_11, %c0_12], %18 {strides = array<i32>} : memref<128x1xf32, #tpu.memory_space<vmem>>, vector<128x1xf32>,
      %cst_13 = arith.constant 0.000000e+00 : f32
      %20 = vector.broadcast %cst_13 : f32 to vector<128x1xf32>
      %c0_14 = arith.constant 0 : index
      %c0_15 = arith.constant 0 : index
      %21 = vector.load %arg8[%c0_14, %c0_15] : memref<128x1xf32, #tpu.memory_space<vmem>>, vector<128x1xf32>
      tpu.vector_store %arg8[%c0_14, %c0_15], %20 {strides = array<i32>} : memref<128x1xf32, #tpu.memory_space<vmem>>, vector<128x1xf32>,
    } else {
    }
    %c0_i32_7 = arith.constant 0 : i32
    %12 = arith.cmpi eq, %arg1, %c0_i32_7 : i32
    %13 = arith.extui %12 : i1 to i32
    %c0_i32_8 = arith.constant 0 : i32
    %14 = arith.cmpi ne, %13, %c0_i32_8 : i32
    scf.if %14 {
      %c0_10 = arith.constant 0 : index
      %c0_11 = arith.constant 0 : index
      %18 = vector.load %arg7[%c0_10, %c0_11] : memref<128x1xf32, #tpu.memory_space<vmem>>, vector<128x1xf32>
      %cst_12 = arith.constant dense<0xFF800000> : vector<128xf32>
      %19 = vector.multi_reduction <maximumf>, %6, %cst_12 [1] : vector<128x128xf32> to vector<128xf32>
      %20 = vector.shape_cast %19 : vector<128xf32> to vector<128x1xf32>
      %21 = arith.maximumf %18, %20 : vector<128x1xf32>
      %c0_13 = arith.constant 0 : index
      %c0_14 = arith.constant 0 : index
      %22 = vector.load %arg8[%c0_13, %c0_14] : memref<128x1xf32, #tpu.memory_space<vmem>>, vector<128x1xf32>
      %23 = arith.subf %18, %21 : vector<128x1xf32>
      %24 = math.exp %23 : vector<128x1xf32>
      %25 = arith.mulf %22, %24 : vector<128x1xf32>
      %26 = vector.broadcast %21 : vector<128x1xf32> to vector<128x128xf32>
      %27 = arith.subf %6, %26 : vector<128x128xf32>
      %28 = math.exp %27 : vector<128x128xf32>
      %cst_15 = arith.constant dense<0.000000e+00> : vector<128xf32>
      %29 = vector.multi_reduction <add>, %28, %cst_15 [1] : vector<128x128xf32> to vector<128xf32>
      %30 = vector.shape_cast %29 : vector<128xf32> to vector<128x1xf32>
      %31 = arith.addf %25, %30 : vector<128x1xf32>
      %c0_16 = arith.constant 0 : index
      %c0_17 = arith.constant 0 : index
      %32 = vector.load %arg8[%c0_16, %c0_17] : memref<128x1xf32, #tpu.memory_space<vmem>>, vector<128x1xf32>
      tpu.vector_store %arg8[%c0_16, %c0_17], %31 {strides = array<i32>} : memref<128x1xf32, #tpu.memory_space<vmem>>, vector<128x1xf32>,
      %c0_18 = arith.constant 0 : index
      %c0_19 = arith.constant 0 : index
      %33 = vector.load %arg7[%c0_18, %c0_19] : memref<128x1xf32, #tpu.memory_space<vmem>>, vector<128x1xf32>
      tpu.vector_store %arg7[%c0_18, %c0_19], %21 {strides = array<i32>} : memref<128x1xf32, #tpu.memory_space<vmem>>, vector<128x1xf32>,
      %c0_20 = arith.constant 0 : index
      %c0_21 = arith.constant 0 : index
      %34 = vector.load %arg6[%c0_20, %c0_21] : memref<128x128xf32, #tpu.memory_space<vmem>>, vector<128x128xf32>
      tpu.vector_store %arg6[%c0_20, %c0_21], %6 {strides = array<i32>} : memref<128x128xf32, #tpu.memory_space<vmem>>, vector<128x128xf32>,
    } else {
    }
    %c1_i32 = arith.constant 1 : i32
    %15 = arith.cmpi eq, %arg1, %c1_i32 : i32
    %16 = arith.extui %15 : i1 to i32
    %c0_i32_9 = arith.constant 0 : i32
    %17 = arith.cmpi ne, %16, %c0_i32_9 : i32
    scf.if %17 {
      %c0_10 = arith.constant 0 : index
      %c0_11 = arith.constant 0 : index
      %18 = vector.load %arg7[%c0_10, %c0_11] : memref<128x1xf32, #tpu.memory_space<vmem>>, vector<128x1xf32>
      %c0_12 = arith.constant 0 : index
      %c0_13 = arith.constant 0 : index
      %19 = vector.load %arg8[%c0_12, %c0_13] : memref<128x1xf32, #tpu.memory_space<vmem>>, vector<128x1xf32>
      %20 = math.log %19 : vector<128x1xf32>
      %21 = arith.addf %18, %20 : vector<128x1xf32>
      %22 = vector.broadcast %21 : vector<128x1xf32> to vector<128x128xf32>
      %23 = arith.subf %6, %22 : vector<128x128xf32>
      %c0_14 = arith.constant 0 : index
      %c0_15 = arith.constant 0 : index
      %24 = vector.load %arg6[%c0_14, %c0_15] : memref<128x128xf32, #tpu.memory_space<vmem>>, vector<128x128xf32>
      tpu.vector_store %arg6[%c0_14, %c0_15], %23 {strides = array<i32>} : memref<128x128xf32, #tpu.memory_space<vmem>>, vector<128x128xf32>,
    } else {
    }
    return
  }
  func.func @transform_0(%arg0: i32, %arg1: i32, %arg2: i32) -> (i32, i32) {
    %c0_i32 = arith.constant 0 : i32
    %c0_i32_0 = arith.constant 0 : i32
    return %arg0, %c0_i32 : i32, i32
  }
  func.func @transform_1(%arg0: i32, %arg1: i32, %arg2: i32) -> (i32, i32) {
    %c0_i32 = arith.constant 0 : i32
    %c0_i32_0 = arith.constant 0 : i32
    return %c0_i32, %arg2 : i32, i32
  }
  func.func @transform_2(%arg0: i32, %arg1: i32, %arg2: i32) -> (i32, i32) {
    %c0_i32 = arith.constant 0 : i32
    %c0_i32_0 = arith.constant 0 : i32
    return %c0_i32, %arg2 : i32, i32
  }
  func.func @transform_3(%arg0: i32, %arg1: i32, %arg2: i32) -> (i32, i32) {
    %c0_i32 = arith.constant 0 : i32
    return %arg0, %arg2 : i32, i32
  }
}

module attributes {stable_mosaic.version = 11 : i64} {
  func.func @kernel(%arg0: i32, %arg1: i32, %arg2: memref<4x8x384xf32, #tpu.memory_space<vmem>>, %arg3: memref<128x384xbf16, #tpu.memory_space<vmem>>, %arg4: memref<1x384xf32, #tpu.memory_space<vmem>>, %arg5: memref<128x384xbf16, #tpu.memory_space<vmem>>, %arg6: memref<128x384xbf16, #tpu.memory_space<vmem>>, %arg7: memref<1x128xf32, #tpu.memory_space<vmem>>, %arg8: memref<1x128xf32, #tpu.memory_space<vmem>>, %arg9: memref<8x256xf32, #tpu.memory_space<vmem>>, %arg10: memref<4x8x128xf32, #tpu.memory_space<vmem>>, %arg11: memref<8x256xf32, #tpu.memory_space<vmem>>) attributes {dimension_semantics = [#tpu.dimension_semantics<parallel>, #tpu.dimension_semantics<arbitrary>], iteration_bounds = array<i64: 2, 2>, scalar_prefetch = 0 : i64, scratch_operands = 0 : i64, tpu.core_type = #tpu.core_type<tc>, window_params = [{transform_indices = @transform_0, window_bounds = array<i64: 4, 8, 384>}, {pipeline_mode = #tpu.pipeline_mode<synchronous>, transform_indices = @transform_1, window_bounds = array<i64: 128, 384>}, {pipeline_mode = #tpu.pipeline_mode<synchronous>, transform_indices = @transform_2, window_bounds = array<i64: 1, 384>}, {pipeline_mode = #tpu.pipeline_mode<synchronous>, transform_indices = @transform_3, window_bounds = array<i64: 128, 384>}, {pipeline_mode = #tpu.pipeline_mode<synchronous>, transform_indices = @transform_4, window_bounds = array<i64: 128, 384>}, {pipeline_mode = #tpu.pipeline_mode<synchronous>, transform_indices = @transform_5, window_bounds = array<i64: 1, 128>}, {pipeline_mode = #tpu.pipeline_mode<synchronous>, transform_indices = @transform_6, window_bounds = array<i64: 1, 128>}, {transform_indices = @transform_7, window_bounds = array<i64: 8, 256>}, {transform_indices = @transform_8, window_bounds = array<i64: 4, 8, 128>}, {transform_indices = @transform_9, window_bounds = array<i64: 8, 256>}]} {
    %c0_i32 = arith.constant 0 : i32
    %0 = arith.cmpi eq, %arg1, %c0_i32 : i32
    %1 = arith.extui %0 : i1 to i32
    %c0_i32_0 = arith.constant 0 : i32
    %2 = arith.cmpi ne, %1, %c0_i32_0 : i32
    scf.if %2 {
      %c0_107 = arith.constant 0 : index
      %c0_108 = arith.constant 0 : index
      %315 = vector.load %arg9[%c0_107, %c0_108] : memref<8x256xf32, #tpu.memory_space<vmem>>, vector<8x256xf32>
      %c0_109 = arith.constant 0 : index
      %c0_110 = arith.constant 0 : index
      %316 = vector.load %arg11[%c0_109, %c0_110] : memref<8x256xf32, #tpu.memory_space<vmem>>, vector<8x256xf32>
      tpu.vector_store %arg11[%c0_109, %c0_110], %315 {strides = array<i32>} : memref<8x256xf32, #tpu.memory_space<vmem>>, vector<8x256xf32>,
    } else {
    }
    %c0 = arith.constant 0 : index
    %c0_1 = arith.constant 0 : index
    %3 = vector.load %arg11[%c0, %c0_1] : memref<8x256xf32, #tpu.memory_space<vmem>>, vector<8x128xf32>
    %c0_2 = arith.constant 0 : index
    %c128 = arith.constant 128 : index
    %4 = vector.load %arg11[%c0_2, %c128] : memref<8x256xf32, #tpu.memory_space<vmem>>, vector<8x128xf32>
    %c0_i32_3 = arith.constant 0 : i32
    %5 = arith.index_cast %c0_i32_3 : i32 to index
    %c0_4 = arith.constant 0 : index
    %c0_5 = arith.constant 0 : index
    %6 = vector.load %arg2[%5, %c0_4, %c0_5] : memref<4x8x384xf32, #tpu.memory_space<vmem>>, vector<1x8x384xf32>
    %7 = vector.shape_cast %6 : vector<1x8x384xf32> to vector<8x384xf32>
    %8 = arith.truncf %3 : vector<8x128xf32> to vector<8x128xbf16>
    %c0_6 = arith.constant 0 : index
    %c0_7 = arith.constant 0 : index
    %9 = vector.load %arg5[%c0_6, %c0_7] : memref<128x384xbf16, #tpu.memory_space<vmem>>, vector<128x384xbf16>
    %cst = arith.constant dense<0.000000e+00> : vector<8x384xf32>
    %10 = tpu.matmul %8, %9, %cst {dimension_numbers = #tpu.dot_dimension_numbers<[1], [0], [0], [1], [0, 0, 1, 1], [], []>} : vector<8x128xbf16>, vector<128x384xbf16>, vector<8x384xf32> -> vector<8x384xf32>
    %11 = vector.extract_strided_slice %7 {offsets = [0, 0], sizes = [8, 128], strides = [1, 1]} : vector<8x384xf32> to vector<8x128xf32>
    %12 = vector.extract_strided_slice %10 {offsets = [0, 0], sizes = [8, 128], strides = [1, 1]} : vector<8x384xf32> to vector<8x128xf32>
    %13 = arith.addf %11, %12 : vector<8x128xf32>
    %14 = arith.negf %13 : vector<8x128xf32>
    %15 = math.exp %14 : vector<8x128xf32>
    %cst_8 = arith.constant 1.000000e+00 : f32
    %16 = vector.broadcast %cst_8 : f32 to vector<8x128xf32>
    %17 = arith.addf %16, %15 : vector<8x128xf32>
    %18 = arith.divf %16, %17 : vector<8x128xf32>
    %19 = vector.extract_strided_slice %7 {offsets = [0, 128], sizes = [8, 128], strides = [1, 1]} : vector<8x384xf32> to vector<8x128xf32>
    %20 = vector.extract_strided_slice %10 {offsets = [0, 128], sizes = [8, 128], strides = [1, 1]} : vector<8x384xf32> to vector<8x128xf32>
    %21 = arith.addf %19, %20 : vector<8x128xf32>
    %22 = arith.negf %21 : vector<8x128xf32>
    %23 = math.exp %22 : vector<8x128xf32>
    %cst_9 = arith.constant 1.000000e+00 : f32
    %24 = vector.broadcast %cst_9 : f32 to vector<8x128xf32>
    %25 = arith.addf %24, %23 : vector<8x128xf32>
    %26 = arith.divf %24, %25 : vector<8x128xf32>
    %27 = vector.extract_strided_slice %7 {offsets = [0, 256], sizes = [8, 128], strides = [1, 1]} : vector<8x384xf32> to vector<8x128xf32>
    %28 = vector.extract_strided_slice %10 {offsets = [0, 256], sizes = [8, 128], strides = [1, 1]} : vector<8x384xf32> to vector<8x128xf32>
    %c0_10 = arith.constant 0 : index
    %c0_11 = arith.constant 0 : index
    %29 = vector.load %arg7[%c0_10, %c0_11] : memref<1x128xf32, #tpu.memory_space<vmem>>, vector<1x128xf32>
    %30 = vector.broadcast %29 : vector<1x128xf32> to vector<8x128xf32>
    %31 = arith.addf %28, %30 : vector<8x128xf32>
    %32 = arith.mulf %18, %31 : vector<8x128xf32>
    %33 = arith.addf %27, %32 : vector<8x128xf32>
    %34 = math.tanh %33 : vector<8x128xf32>
    %cst_12 = arith.constant 1.000000e+00 : f32
    %35 = vector.broadcast %cst_12 : f32 to vector<8x128xf32>
    %36 = arith.subf %35, %26 : vector<8x128xf32>
    %37 = arith.mulf %36, %34 : vector<8x128xf32>
    %38 = arith.mulf %26, %3 : vector<8x128xf32>
    %39 = arith.addf %37, %38 : vector<8x128xf32>
    %40 = arith.truncf %39 : vector<8x128xf32> to vector<8x128xbf16>
    %c0_13 = arith.constant 0 : index
    %c0_14 = arith.constant 0 : index
    %41 = vector.load %arg3[%c0_13, %c0_14] : memref<128x384xbf16, #tpu.memory_space<vmem>>, vector<128x384xbf16>
    %cst_15 = arith.constant dense<0.000000e+00> : vector<8x384xf32>
    %42 = tpu.matmul %40, %41, %cst_15 {dimension_numbers = #tpu.dot_dimension_numbers<[1], [0], [0], [1], [0, 0, 1, 1], [], []>} : vector<8x128xbf16>, vector<128x384xbf16>, vector<8x384xf32> -> vector<8x384xf32>
    %c0_16 = arith.constant 0 : index
    %c0_17 = arith.constant 0 : index
    %43 = vector.load %arg4[%c0_16, %c0_17] : memref<1x384xf32, #tpu.memory_space<vmem>>, vector<1x384xf32>
    %44 = vector.broadcast %43 : vector<1x384xf32> to vector<8x384xf32>
    %45 = arith.addf %42, %44 : vector<8x384xf32>
    %46 = arith.truncf %4 : vector<8x128xf32> to vector<8x128xbf16>
    %c0_18 = arith.constant 0 : index
    %c0_19 = arith.constant 0 : index
    %47 = vector.load %arg6[%c0_18, %c0_19] : memref<128x384xbf16, #tpu.memory_space<vmem>>, vector<128x384xbf16>
    %cst_20 = arith.constant dense<0.000000e+00> : vector<8x384xf32>
    %48 = tpu.matmul %46, %47, %cst_20 {dimension_numbers = #tpu.dot_dimension_numbers<[1], [0], [0], [1], [0, 0, 1, 1], [], []>} : vector<8x128xbf16>, vector<128x384xbf16>, vector<8x384xf32> -> vector<8x384xf32>
    %49 = vector.extract_strided_slice %45 {offsets = [0, 0], sizes = [8, 128], strides = [1, 1]} : vector<8x384xf32> to vector<8x128xf32>
    %50 = vector.extract_strided_slice %48 {offsets = [0, 0], sizes = [8, 128], strides = [1, 1]} : vector<8x384xf32> to vector<8x128xf32>
    %51 = arith.addf %49, %50 : vector<8x128xf32>
    %52 = arith.negf %51 : vector<8x128xf32>
    %53 = math.exp %52 : vector<8x128xf32>
    %cst_21 = arith.constant 1.000000e+00 : f32
    %54 = vector.broadcast %cst_21 : f32 to vector<8x128xf32>
    %55 = arith.addf %54, %53 : vector<8x128xf32>
    %56 = arith.divf %54, %55 : vector<8x128xf32>
    %57 = vector.extract_strided_slice %45 {offsets = [0, 128], sizes = [8, 128], strides = [1, 1]} : vector<8x384xf32> to vector<8x128xf32>
    %58 = vector.extract_strided_slice %48 {offsets = [0, 128], sizes = [8, 128], strides = [1, 1]} : vector<8x384xf32> to vector<8x128xf32>
    %59 = arith.addf %57, %58 : vector<8x128xf32>
    %60 = arith.negf %59 : vector<8x128xf32>
    %61 = math.exp %60 : vector<8x128xf32>
    %cst_22 = arith.constant 1.000000e+00 : f32
    %62 = vector.broadcast %cst_22 : f32 to vector<8x128xf32>
    %63 = arith.addf %62, %61 : vector<8x128xf32>
    %64 = arith.divf %62, %63 : vector<8x128xf32>
    %65 = vector.extract_strided_slice %45 {offsets = [0, 256], sizes = [8, 128], strides = [1, 1]} : vector<8x384xf32> to vector<8x128xf32>
    %66 = vector.extract_strided_slice %48 {offsets = [0, 256], sizes = [8, 128], strides = [1, 1]} : vector<8x384xf32> to vector<8x128xf32>
    %c0_23 = arith.constant 0 : index
    %c0_24 = arith.constant 0 : index
    %67 = vector.load %arg8[%c0_23, %c0_24] : memref<1x128xf32, #tpu.memory_space<vmem>>, vector<1x128xf32>
    %68 = vector.broadcast %67 : vector<1x128xf32> to vector<8x128xf32>
    %69 = arith.addf %66, %68 : vector<8x128xf32>
    %70 = arith.mulf %56, %69 : vector<8x128xf32>
    %71 = arith.addf %65, %70 : vector<8x128xf32>
    %72 = math.tanh %71 : vector<8x128xf32>
    %cst_25 = arith.constant 1.000000e+00 : f32
    %73 = vector.broadcast %cst_25 : f32 to vector<8x128xf32>
    %74 = arith.subf %73, %64 : vector<8x128xf32>
    %75 = arith.mulf %74, %72 : vector<8x128xf32>
    %76 = arith.mulf %64, %4 : vector<8x128xf32>
    %77 = arith.addf %75, %76 : vector<8x128xf32>
    %78 = arith.index_cast %c0_i32_3 : i32 to index
    %c0_26 = arith.constant 0 : index
    %c0_27 = arith.constant 0 : index
    %79 = vector.load %arg10[%78, %c0_26, %c0_27] : memref<4x8x128xf32, #tpu.memory_space<vmem>>, vector<1x8x128xf32>
    %80 = vector.shape_cast %79 : vector<1x8x128xf32> to vector<8x128xf32>
    %81 = vector.shape_cast %77 : vector<8x128xf32> to vector<1x8x128xf32>
    tpu.vector_store %arg10[%78, %c0_26, %c0_27], %81 {strides = array<i32>} : memref<4x8x128xf32, #tpu.memory_space<vmem>>, vector<1x8x128xf32>,
    %c1_i32 = arith.constant 1 : i32
    %82 = arith.index_cast %c1_i32 : i32 to index
    %c0_28 = arith.constant 0 : index
    %c0_29 = arith.constant 0 : index
    %83 = vector.load %arg2[%82, %c0_28, %c0_29] : memref<4x8x384xf32, #tpu.memory_space<vmem>>, vector<1x8x384xf32>
    %84 = vector.shape_cast %83 : vector<1x8x384xf32> to vector<8x384xf32>
    %85 = arith.truncf %39 : vector<8x128xf32> to vector<8x128xbf16>
    %c0_30 = arith.constant 0 : index
    %c0_31 = arith.constant 0 : index
    %86 = vector.load %arg5[%c0_30, %c0_31] : memref<128x384xbf16, #tpu.memory_space<vmem>>, vector<128x384xbf16>
    %cst_32 = arith.constant dense<0.000000e+00> : vector<8x384xf32>
    %87 = tpu.matmul %85, %86, %cst_32 {dimension_numbers = #tpu.dot_dimension_numbers<[1], [0], [0], [1], [0, 0, 1, 1], [], []>} : vector<8x128xbf16>, vector<128x384xbf16>, vector<8x384xf32> -> vector<8x384xf32>
    %88 = vector.extract_strided_slice %84 {offsets = [0, 0], sizes = [8, 128], strides = [1, 1]} : vector<8x384xf32> to vector<8x128xf32>
    %89 = vector.extract_strided_slice %87 {offsets = [0, 0], sizes = [8, 128], strides = [1, 1]} : vector<8x384xf32> to vector<8x128xf32>
    %90 = arith.addf %88, %89 : vector<8x128xf32>
    %91 = arith.negf %90 : vector<8x128xf32>
    %92 = math.exp %91 : vector<8x128xf32>
    %cst_33 = arith.constant 1.000000e+00 : f32
    %93 = vector.broadcast %cst_33 : f32 to vector<8x128xf32>
    %94 = arith.addf %93, %92 : vector<8x128xf32>
    %95 = arith.divf %93, %94 : vector<8x128xf32>
    %96 = vector.extract_strided_slice %84 {offsets = [0, 128], sizes = [8, 128], strides = [1, 1]} : vector<8x384xf32> to vector<8x128xf32>
    %97 = vector.extract_strided_slice %87 {offsets = [0, 128], sizes = [8, 128], strides = [1, 1]} : vector<8x384xf32> to vector<8x128xf32>
    %98 = arith.addf %96, %97 : vector<8x128xf32>
    %99 = arith.negf %98 : vector<8x128xf32>
    %100 = math.exp %99 : vector<8x128xf32>
    %cst_34 = arith.constant 1.000000e+00 : f32
    %101 = vector.broadcast %cst_34 : f32 to vector<8x128xf32>
    %102 = arith.addf %101, %100 : vector<8x128xf32>
    %103 = arith.divf %101, %102 : vector<8x128xf32>
    %104 = vector.extract_strided_slice %84 {offsets = [0, 256], sizes = [8, 128], strides = [1, 1]} : vector<8x384xf32> to vector<8x128xf32>
    %105 = vector.extract_strided_slice %87 {offsets = [0, 256], sizes = [8, 128], strides = [1, 1]} : vector<8x384xf32> to vector<8x128xf32>
    %c0_35 = arith.constant 0 : index
    %c0_36 = arith.constant 0 : index
    %106 = vector.load %arg7[%c0_35, %c0_36] : memref<1x128xf32, #tpu.memory_space<vmem>>, vector<1x128xf32>
    %107 = vector.broadcast %106 : vector<1x128xf32> to vector<8x128xf32>
    %108 = arith.addf %105, %107 : vector<8x128xf32>
    %109 = arith.mulf %95, %108 : vector<8x128xf32>
    %110 = arith.addf %104, %109 : vector<8x128xf32>
    %111 = math.tanh %110 : vector<8x128xf32>
    %cst_37 = arith.constant 1.000000e+00 : f32
    %112 = vector.broadcast %cst_37 : f32 to vector<8x128xf32>
    %113 = arith.subf %112, %103 : vector<8x128xf32>
    %114 = arith.mulf %113, %111 : vector<8x128xf32>
    %115 = arith.mulf %103, %39 : vector<8x128xf32>
    %116 = arith.addf %114, %115 : vector<8x128xf32>
    %117 = arith.truncf %116 : vector<8x128xf32> to vector<8x128xbf16>
    %c0_38 = arith.constant 0 : index
    %c0_39 = arith.constant 0 : index
    %118 = vector.load %arg3[%c0_38, %c0_39] : memref<128x384xbf16, #tpu.memory_space<vmem>>, vector<128x384xbf16>
    %cst_40 = arith.constant dense<0.000000e+00> : vector<8x384xf32>
    %119 = tpu.matmul %117, %118, %cst_40 {dimension_numbers = #tpu.dot_dimension_numbers<[1], [0], [0], [1], [0, 0, 1, 1], [], []>} : vector<8x128xbf16>, vector<128x384xbf16>, vector<8x384xf32> -> vector<8x384xf32>
    %c0_41 = arith.constant 0 : index
    %c0_42 = arith.constant 0 : index
    %120 = vector.load %arg4[%c0_41, %c0_42] : memref<1x384xf32, #tpu.memory_space<vmem>>, vector<1x384xf32>
    %121 = vector.broadcast %120 : vector<1x384xf32> to vector<8x384xf32>
    %122 = arith.addf %119, %121 : vector<8x384xf32>
    %123 = arith.truncf %77 : vector<8x128xf32> to vector<8x128xbf16>
    %c0_43 = arith.constant 0 : index
    %c0_44 = arith.constant 0 : index
    %124 = vector.load %arg6[%c0_43, %c0_44] : memref<128x384xbf16, #tpu.memory_space<vmem>>, vector<128x384xbf16>
    %cst_45 = arith.constant dense<0.000000e+00> : vector<8x384xf32>
    %125 = tpu.matmul %123, %124, %cst_45 {dimension_numbers = #tpu.dot_dimension_numbers<[1], [0], [0], [1], [0, 0, 1, 1], [], []>} : vector<8x128xbf16>, vector<128x384xbf16>, vector<8x384xf32> -> vector<8x384xf32>
    %126 = vector.extract_strided_slice %122 {offsets = [0, 0], sizes = [8, 128], strides = [1, 1]} : vector<8x384xf32> to vector<8x128xf32>
    %127 = vector.extract_strided_slice %125 {offsets = [0, 0], sizes = [8, 128], strides = [1, 1]} : vector<8x384xf32> to vector<8x128xf32>
    %128 = arith.addf %126, %127 : vector<8x128xf32>
    %129 = arith.negf %128 : vector<8x128xf32>
    %130 = math.exp %129 : vector<8x128xf32>
    %cst_46 = arith.constant 1.000000e+00 : f32
    %131 = vector.broadcast %cst_46 : f32 to vector<8x128xf32>
    %132 = arith.addf %131, %130 : vector<8x128xf32>
    %133 = arith.divf %131, %132 : vector<8x128xf32>
    %134 = vector.extract_strided_slice %122 {offsets = [0, 128], sizes = [8, 128], strides = [1, 1]} : vector<8x384xf32> to vector<8x128xf32>
    %135 = vector.extract_strided_slice %125 {offsets = [0, 128], sizes = [8, 128], strides = [1, 1]} : vector<8x384xf32> to vector<8x128xf32>
    %136 = arith.addf %134, %135 : vector<8x128xf32>
    %137 = arith.negf %136 : vector<8x128xf32>
    %138 = math.exp %137 : vector<8x128xf32>
    %cst_47 = arith.constant 1.000000e+00 : f32
    %139 = vector.broadcast %cst_47 : f32 to vector<8x128xf32>
    %140 = arith.addf %139, %138 : vector<8x128xf32>
    %141 = arith.divf %139, %140 : vector<8x128xf32>
    %142 = vector.extract_strided_slice %122 {offsets = [0, 256], sizes = [8, 128], strides = [1, 1]} : vector<8x384xf32> to vector<8x128xf32>
    %143 = vector.extract_strided_slice %125 {offsets = [0, 256], sizes = [8, 128], strides = [1, 1]} : vector<8x384xf32> to vector<8x128xf32>
    %c0_48 = arith.constant 0 : index
    %c0_49 = arith.constant 0 : index
    %144 = vector.load %arg8[%c0_48, %c0_49] : memref<1x128xf32, #tpu.memory_space<vmem>>, vector<1x128xf32>
    %145 = vector.broadcast %144 : vector<1x128xf32> to vector<8x128xf32>
    %146 = arith.addf %143, %145 : vector<8x128xf32>
    %147 = arith.mulf %133, %146 : vector<8x128xf32>
    %148 = arith.addf %142, %147 : vector<8x128xf32>
    %149 = math.tanh %148 : vector<8x128xf32>
    %cst_50 = arith.constant 1.000000e+00 : f32
    %150 = vector.broadcast %cst_50 : f32 to vector<8x128xf32>
    %151 = arith.subf %150, %141 : vector<8x128xf32>
    %152 = arith.mulf %151, %149 : vector<8x128xf32>
    %153 = arith.mulf %141, %77 : vector<8x128xf32>
    %154 = arith.addf %152, %153 : vector<8x128xf32>
    %155 = arith.index_cast %c1_i32 : i32 to index
    %c0_51 = arith.constant 0 : index
    %c0_52 = arith.constant 0 : index
    %156 = vector.load %arg10[%155, %c0_51, %c0_52] : memref<4x8x128xf32, #tpu.memory_space<vmem>>, vector<1x8x128xf32>
    %157 = vector.shape_cast %156 : vector<1x8x128xf32> to vector<8x128xf32>
    %158 = vector.shape_cast %154 : vector<8x128xf32> to vector<1x8x128xf32>
    tpu.vector_store %arg10[%155, %c0_51, %c0_52], %158 {strides = array<i32>} : memref<4x8x128xf32, #tpu.memory_space<vmem>>, vector<1x8x128xf32>,
    %c2_i32 = arith.constant 2 : i32
    %159 = arith.index_cast %c2_i32 : i32 to index
    %c0_53 = arith.constant 0 : index
    %c0_54 = arith.constant 0 : index
    %160 = vector.load %arg2[%159, %c0_53, %c0_54] : memref<4x8x384xf32, #tpu.memory_space<vmem>>, vector<1x8x384xf32>
    %161 = vector.shape_cast %160 : vector<1x8x384xf32> to vector<8x384xf32>
    %162 = arith.truncf %116 : vector<8x128xf32> to vector<8x128xbf16>
    %c0_55 = arith.constant 0 : index
    %c0_56 = arith.constant 0 : index
    %163 = vector.load %arg5[%c0_55, %c0_56] : memref<128x384xbf16, #tpu.memory_space<vmem>>, vector<128x384xbf16>
    %cst_57 = arith.constant dense<0.000000e+00> : vector<8x384xf32>
    %164 = tpu.matmul %162, %163, %cst_57 {dimension_numbers = #tpu.dot_dimension_numbers<[1], [0], [0], [1], [0, 0, 1, 1], [], []>} : vector<8x128xbf16>, vector<128x384xbf16>, vector<8x384xf32> -> vector<8x384xf32>
    %165 = vector.extract_strided_slice %161 {offsets = [0, 0], sizes = [8, 128], strides = [1, 1]} : vector<8x384xf32> to vector<8x128xf32>
    %166 = vector.extract_strided_slice %164 {offsets = [0, 0], sizes = [8, 128], strides = [1, 1]} : vector<8x384xf32> to vector<8x128xf32>
    %167 = arith.addf %165, %166 : vector<8x128xf32>
    %168 = arith.negf %167 : vector<8x128xf32>
    %169 = math.exp %168 : vector<8x128xf32>
    %cst_58 = arith.constant 1.000000e+00 : f32
    %170 = vector.broadcast %cst_58 : f32 to vector<8x128xf32>
    %171 = arith.addf %170, %169 : vector<8x128xf32>
    %172 = arith.divf %170, %171 : vector<8x128xf32>
    %173 = vector.extract_strided_slice %161 {offsets = [0, 128], sizes = [8, 128], strides = [1, 1]} : vector<8x384xf32> to vector<8x128xf32>
    %174 = vector.extract_strided_slice %164 {offsets = [0, 128], sizes = [8, 128], strides = [1, 1]} : vector<8x384xf32> to vector<8x128xf32>
    %175 = arith.addf %173, %174 : vector<8x128xf32>
    %176 = arith.negf %175 : vector<8x128xf32>
    %177 = math.exp %176 : vector<8x128xf32>
    %cst_59 = arith.constant 1.000000e+00 : f32
    %178 = vector.broadcast %cst_59 : f32 to vector<8x128xf32>
    %179 = arith.addf %178, %177 : vector<8x128xf32>
    %180 = arith.divf %178, %179 : vector<8x128xf32>
    %181 = vector.extract_strided_slice %161 {offsets = [0, 256], sizes = [8, 128], strides = [1, 1]} : vector<8x384xf32> to vector<8x128xf32>
    %182 = vector.extract_strided_slice %164 {offsets = [0, 256], sizes = [8, 128], strides = [1, 1]} : vector<8x384xf32> to vector<8x128xf32>
    %c0_60 = arith.constant 0 : index
    %c0_61 = arith.constant 0 : index
    %183 = vector.load %arg7[%c0_60, %c0_61] : memref<1x128xf32, #tpu.memory_space<vmem>>, vector<1x128xf32>
    %184 = vector.broadcast %183 : vector<1x128xf32> to vector<8x128xf32>
    %185 = arith.addf %182, %184 : vector<8x128xf32>
    %186 = arith.mulf %172, %185 : vector<8x128xf32>
    %187 = arith.addf %181, %186 : vector<8x128xf32>
    %188 = math.tanh %187 : vector<8x128xf32>
    %cst_62 = arith.constant 1.000000e+00 : f32
    %189 = vector.broadcast %cst_62 : f32 to vector<8x128xf32>
    %190 = arith.subf %189, %180 : vector<8x128xf32>
    %191 = arith.mulf %190, %188 : vector<8x128xf32>
    %192 = arith.mulf %180, %116 : vector<8x128xf32>
    %193 = arith.addf %191, %192 : vector<8x128xf32>
    %194 = arith.truncf %193 : vector<8x128xf32> to vector<8x128xbf16>
    %c0_63 = arith.constant 0 : index
    %c0_64 = arith.constant 0 : index
    %195 = vector.load %arg3[%c0_63, %c0_64] : memref<128x384xbf16, #tpu.memory_space<vmem>>, vector<128x384xbf16>
    %cst_65 = arith.constant dense<0.000000e+00> : vector<8x384xf32>
    %196 = tpu.matmul %194, %195, %cst_65 {dimension_numbers = #tpu.dot_dimension_numbers<[1], [0], [0], [1], [0, 0, 1, 1], [], []>} : vector<8x128xbf16>, vector<128x384xbf16>, vector<8x384xf32> -> vector<8x384xf32>
    %c0_66 = arith.constant 0 : index
    %c0_67 = arith.constant 0 : index
    %197 = vector.load %arg4[%c0_66, %c0_67] : memref<1x384xf32, #tpu.memory_space<vmem>>, vector<1x384xf32>
    %198 = vector.broadcast %197 : vector<1x384xf32> to vector<8x384xf32>
    %199 = arith.addf %196, %198 : vector<8x384xf32>
    %200 = arith.truncf %154 : vector<8x128xf32> to vector<8x128xbf16>
    %c0_68 = arith.constant 0 : index
    %c0_69 = arith.constant 0 : index
    %201 = vector.load %arg6[%c0_68, %c0_69] : memref<128x384xbf16, #tpu.memory_space<vmem>>, vector<128x384xbf16>
    %cst_70 = arith.constant dense<0.000000e+00> : vector<8x384xf32>
    %202 = tpu.matmul %200, %201, %cst_70 {dimension_numbers = #tpu.dot_dimension_numbers<[1], [0], [0], [1], [0, 0, 1, 1], [], []>} : vector<8x128xbf16>, vector<128x384xbf16>, vector<8x384xf32> -> vector<8x384xf32>
    %203 = vector.extract_strided_slice %199 {offsets = [0, 0], sizes = [8, 128], strides = [1, 1]} : vector<8x384xf32> to vector<8x128xf32>
    %204 = vector.extract_strided_slice %202 {offsets = [0, 0], sizes = [8, 128], strides = [1, 1]} : vector<8x384xf32> to vector<8x128xf32>
    %205 = arith.addf %203, %204 : vector<8x128xf32>
    %206 = arith.negf %205 : vector<8x128xf32>
    %207 = math.exp %206 : vector<8x128xf32>
    %cst_71 = arith.constant 1.000000e+00 : f32
    %208 = vector.broadcast %cst_71 : f32 to vector<8x128xf32>
    %209 = arith.addf %208, %207 : vector<8x128xf32>
    %210 = arith.divf %208, %209 : vector<8x128xf32>
    %211 = vector.extract_strided_slice %199 {offsets = [0, 128], sizes = [8, 128], strides = [1, 1]} : vector<8x384xf32> to vector<8x128xf32>
    %212 = vector.extract_strided_slice %202 {offsets = [0, 128], sizes = [8, 128], strides = [1, 1]} : vector<8x384xf32> to vector<8x128xf32>
    %213 = arith.addf %211, %212 : vector<8x128xf32>
    %214 = arith.negf %213 : vector<8x128xf32>
    %215 = math.exp %214 : vector<8x128xf32>
    %cst_72 = arith.constant 1.000000e+00 : f32
    %216 = vector.broadcast %cst_72 : f32 to vector<8x128xf32>
    %217 = arith.addf %216, %215 : vector<8x128xf32>
    %218 = arith.divf %216, %217 : vector<8x128xf32>
    %219 = vector.extract_strided_slice %199 {offsets = [0, 256], sizes = [8, 128], strides = [1, 1]} : vector<8x384xf32> to vector<8x128xf32>
    %220 = vector.extract_strided_slice %202 {offsets = [0, 256], sizes = [8, 128], strides = [1, 1]} : vector<8x384xf32> to vector<8x128xf32>
    %c0_73 = arith.constant 0 : index
    %c0_74 = arith.constant 0 : index
    %221 = vector.load %arg8[%c0_73, %c0_74] : memref<1x128xf32, #tpu.memory_space<vmem>>, vector<1x128xf32>
    %222 = vector.broadcast %221 : vector<1x128xf32> to vector<8x128xf32>
    %223 = arith.addf %220, %222 : vector<8x128xf32>
    %224 = arith.mulf %210, %223 : vector<8x128xf32>
    %225 = arith.addf %219, %224 : vector<8x128xf32>
    %226 = math.tanh %225 : vector<8x128xf32>
    %cst_75 = arith.constant 1.000000e+00 : f32
    %227 = vector.broadcast %cst_75 : f32 to vector<8x128xf32>
    %228 = arith.subf %227, %218 : vector<8x128xf32>
    %229 = arith.mulf %228, %226 : vector<8x128xf32>
    %230 = arith.mulf %218, %154 : vector<8x128xf32>
    %231 = arith.addf %229, %230 : vector<8x128xf32>
    %232 = arith.index_cast %c2_i32 : i32 to index
    %c0_76 = arith.constant 0 : index
    %c0_77 = arith.constant 0 : index
    %233 = vector.load %arg10[%232, %c0_76, %c0_77] : memref<4x8x128xf32, #tpu.memory_space<vmem>>, vector<1x8x128xf32>
    %234 = vector.shape_cast %233 : vector<1x8x128xf32> to vector<8x128xf32>
    %235 = vector.shape_cast %231 : vector<8x128xf32> to vector<1x8x128xf32>
    tpu.vector_store %arg10[%232, %c0_76, %c0_77], %235 {strides = array<i32>} : memref<4x8x128xf32, #tpu.memory_space<vmem>>, vector<1x8x128xf32>,
    %c3_i32 = arith.constant 3 : i32
    %236 = arith.index_cast %c3_i32 : i32 to index
    %c0_78 = arith.constant 0 : index
    %c0_79 = arith.constant 0 : index
    %237 = vector.load %arg2[%236, %c0_78, %c0_79] : memref<4x8x384xf32, #tpu.memory_space<vmem>>, vector<1x8x384xf32>
    %238 = vector.shape_cast %237 : vector<1x8x384xf32> to vector<8x384xf32>
    %239 = arith.truncf %193 : vector<8x128xf32> to vector<8x128xbf16>
    %c0_80 = arith.constant 0 : index
    %c0_81 = arith.constant 0 : index
    %240 = vector.load %arg5[%c0_80, %c0_81] : memref<128x384xbf16, #tpu.memory_space<vmem>>, vector<128x384xbf16>
    %cst_82 = arith.constant dense<0.000000e+00> : vector<8x384xf32>
    %241 = tpu.matmul %239, %240, %cst_82 {dimension_numbers = #tpu.dot_dimension_numbers<[1], [0], [0], [1], [0, 0, 1, 1], [], []>} : vector<8x128xbf16>, vector<128x384xbf16>, vector<8x384xf32> -> vector<8x384xf32>
    %242 = vector.extract_strided_slice %238 {offsets = [0, 0], sizes = [8, 128], strides = [1, 1]} : vector<8x384xf32> to vector<8x128xf32>
    %243 = vector.extract_strided_slice %241 {offsets = [0, 0], sizes = [8, 128], strides = [1, 1]} : vector<8x384xf32> to vector<8x128xf32>
    %244 = arith.addf %242, %243 : vector<8x128xf32>
    %245 = arith.negf %244 : vector<8x128xf32>
    %246 = math.exp %245 : vector<8x128xf32>
    %cst_83 = arith.constant 1.000000e+00 : f32
    %247 = vector.broadcast %cst_83 : f32 to vector<8x128xf32>
    %248 = arith.addf %247, %246 : vector<8x128xf32>
    %249 = arith.divf %247, %248 : vector<8x128xf32>
    %250 = vector.extract_strided_slice %238 {offsets = [0, 128], sizes = [8, 128], strides = [1, 1]} : vector<8x384xf32> to vector<8x128xf32>
    %251 = vector.extract_strided_slice %241 {offsets = [0, 128], sizes = [8, 128], strides = [1, 1]} : vector<8x384xf32> to vector<8x128xf32>
    %252 = arith.addf %250, %251 : vector<8x128xf32>
    %253 = arith.negf %252 : vector<8x128xf32>
    %254 = math.exp %253 : vector<8x128xf32>
    %cst_84 = arith.constant 1.000000e+00 : f32
    %255 = vector.broadcast %cst_84 : f32 to vector<8x128xf32>
    %256 = arith.addf %255, %254 : vector<8x128xf32>
    %257 = arith.divf %255, %256 : vector<8x128xf32>
    %258 = vector.extract_strided_slice %238 {offsets = [0, 256], sizes = [8, 128], strides = [1, 1]} : vector<8x384xf32> to vector<8x128xf32>
    %259 = vector.extract_strided_slice %241 {offsets = [0, 256], sizes = [8, 128], strides = [1, 1]} : vector<8x384xf32> to vector<8x128xf32>
    %c0_85 = arith.constant 0 : index
    %c0_86 = arith.constant 0 : index
    %260 = vector.load %arg7[%c0_85, %c0_86] : memref<1x128xf32, #tpu.memory_space<vmem>>, vector<1x128xf32>
    %261 = vector.broadcast %260 : vector<1x128xf32> to vector<8x128xf32>
    %262 = arith.addf %259, %261 : vector<8x128xf32>
    %263 = arith.mulf %249, %262 : vector<8x128xf32>
    %264 = arith.addf %258, %263 : vector<8x128xf32>
    %265 = math.tanh %264 : vector<8x128xf32>
    %cst_87 = arith.constant 1.000000e+00 : f32
    %266 = vector.broadcast %cst_87 : f32 to vector<8x128xf32>
    %267 = arith.subf %266, %257 : vector<8x128xf32>
    %268 = arith.mulf %267, %265 : vector<8x128xf32>
    %269 = arith.mulf %257, %193 : vector<8x128xf32>
    %270 = arith.addf %268, %269 : vector<8x128xf32>
    %271 = arith.truncf %270 : vector<8x128xf32> to vector<8x128xbf16>
    %c0_88 = arith.constant 0 : index
    %c0_89 = arith.constant 0 : index
    %272 = vector.load %arg3[%c0_88, %c0_89] : memref<128x384xbf16, #tpu.memory_space<vmem>>, vector<128x384xbf16>
    %cst_90 = arith.constant dense<0.000000e+00> : vector<8x384xf32>
    %273 = tpu.matmul %271, %272, %cst_90 {dimension_numbers = #tpu.dot_dimension_numbers<[1], [0], [0], [1], [0, 0, 1, 1], [], []>} : vector<8x128xbf16>, vector<128x384xbf16>, vector<8x384xf32> -> vector<8x384xf32>
    %c0_91 = arith.constant 0 : index
    %c0_92 = arith.constant 0 : index
    %274 = vector.load %arg4[%c0_91, %c0_92] : memref<1x384xf32, #tpu.memory_space<vmem>>, vector<1x384xf32>
    %275 = vector.broadcast %274 : vector<1x384xf32> to vector<8x384xf32>
    %276 = arith.addf %273, %275 : vector<8x384xf32>
    %277 = arith.truncf %231 : vector<8x128xf32> to vector<8x128xbf16>
    %c0_93 = arith.constant 0 : index
    %c0_94 = arith.constant 0 : index
    %278 = vector.load %arg6[%c0_93, %c0_94] : memref<128x384xbf16, #tpu.memory_space<vmem>>, vector<128x384xbf16>
    %cst_95 = arith.constant dense<0.000000e+00> : vector<8x384xf32>
    %279 = tpu.matmul %277, %278, %cst_95 {dimension_numbers = #tpu.dot_dimension_numbers<[1], [0], [0], [1], [0, 0, 1, 1], [], []>} : vector<8x128xbf16>, vector<128x384xbf16>, vector<8x384xf32> -> vector<8x384xf32>
    %280 = vector.extract_strided_slice %276 {offsets = [0, 0], sizes = [8, 128], strides = [1, 1]} : vector<8x384xf32> to vector<8x128xf32>
    %281 = vector.extract_strided_slice %279 {offsets = [0, 0], sizes = [8, 128], strides = [1, 1]} : vector<8x384xf32> to vector<8x128xf32>
    %282 = arith.addf %280, %281 : vector<8x128xf32>
    %283 = arith.negf %282 : vector<8x128xf32>
    %284 = math.exp %283 : vector<8x128xf32>
    %cst_96 = arith.constant 1.000000e+00 : f32
    %285 = vector.broadcast %cst_96 : f32 to vector<8x128xf32>
    %286 = arith.addf %285, %284 : vector<8x128xf32>
    %287 = arith.divf %285, %286 : vector<8x128xf32>
    %288 = vector.extract_strided_slice %276 {offsets = [0, 128], sizes = [8, 128], strides = [1, 1]} : vector<8x384xf32> to vector<8x128xf32>
    %289 = vector.extract_strided_slice %279 {offsets = [0, 128], sizes = [8, 128], strides = [1, 1]} : vector<8x384xf32> to vector<8x128xf32>
    %290 = arith.addf %288, %289 : vector<8x128xf32>
    %291 = arith.negf %290 : vector<8x128xf32>
    %292 = math.exp %291 : vector<8x128xf32>
    %cst_97 = arith.constant 1.000000e+00 : f32
    %293 = vector.broadcast %cst_97 : f32 to vector<8x128xf32>
    %294 = arith.addf %293, %292 : vector<8x128xf32>
    %295 = arith.divf %293, %294 : vector<8x128xf32>
    %296 = vector.extract_strided_slice %276 {offsets = [0, 256], sizes = [8, 128], strides = [1, 1]} : vector<8x384xf32> to vector<8x128xf32>
    %297 = vector.extract_strided_slice %279 {offsets = [0, 256], sizes = [8, 128], strides = [1, 1]} : vector<8x384xf32> to vector<8x128xf32>
    %c0_98 = arith.constant 0 : index
    %c0_99 = arith.constant 0 : index
    %298 = vector.load %arg8[%c0_98, %c0_99] : memref<1x128xf32, #tpu.memory_space<vmem>>, vector<1x128xf32>
    %299 = vector.broadcast %298 : vector<1x128xf32> to vector<8x128xf32>
    %300 = arith.addf %297, %299 : vector<8x128xf32>
    %301 = arith.mulf %287, %300 : vector<8x128xf32>
    %302 = arith.addf %296, %301 : vector<8x128xf32>
    %303 = math.tanh %302 : vector<8x128xf32>
    %cst_100 = arith.constant 1.000000e+00 : f32
    %304 = vector.broadcast %cst_100 : f32 to vector<8x128xf32>
    %305 = arith.subf %304, %295 : vector<8x128xf32>
    %306 = arith.mulf %305, %303 : vector<8x128xf32>
    %307 = arith.mulf %295, %231 : vector<8x128xf32>
    %308 = arith.addf %306, %307 : vector<8x128xf32>
    %309 = arith.index_cast %c3_i32 : i32 to index
    %c0_101 = arith.constant 0 : index
    %c0_102 = arith.constant 0 : index
    %310 = vector.load %arg10[%309, %c0_101, %c0_102] : memref<4x8x128xf32, #tpu.memory_space<vmem>>, vector<1x8x128xf32>
    %311 = vector.shape_cast %310 : vector<1x8x128xf32> to vector<8x128xf32>
    %312 = vector.shape_cast %308 : vector<8x128xf32> to vector<1x8x128xf32>
    tpu.vector_store %arg10[%309, %c0_101, %c0_102], %312 {strides = array<i32>} : memref<4x8x128xf32, #tpu.memory_space<vmem>>, vector<1x8x128xf32>,
    %c4_i32 = arith.constant 4 : i32
    %c0_103 = arith.constant 0 : index
    %c0_104 = arith.constant 0 : index
    %313 = vector.load %arg11[%c0_103, %c0_104] : memref<8x256xf32, #tpu.memory_space<vmem>>, vector<8x128xf32>
    tpu.vector_store %arg11[%c0_103, %c0_104], %270 {strides = array<i32>} : memref<8x256xf32, #tpu.memory_space<vmem>>, vector<8x128xf32>,
    %c0_105 = arith.constant 0 : index
    %c128_106 = arith.constant 128 : index
    %314 = vector.load %arg11[%c0_105, %c128_106] : memref<8x256xf32, #tpu.memory_space<vmem>>, vector<8x128xf32>
    tpu.vector_store %arg11[%c0_105, %c128_106], %308 {strides = array<i32>} : memref<8x256xf32, #tpu.memory_space<vmem>>, vector<8x128xf32>,
    return
  }
  func.func @transform_0(%arg0: i32, %arg1: i32) -> (i32, i32, i32) {
    %c0_i32 = arith.constant 0 : i32
    %c0_i32_0 = arith.constant 0 : i32
    return %arg1, %arg0, %c0_i32 : i32, i32, i32
  }
  func.func @transform_1(%arg0: i32, %arg1: i32) -> (i32, i32) {
    %c0_i32 = arith.constant 0 : i32
    %c0_i32_0 = arith.constant 0 : i32
    %c0_i32_1 = arith.constant 0 : i32
    return %c0_i32, %c0_i32_0 : i32, i32
  }
  func.func @transform_2(%arg0: i32, %arg1: i32) -> (i32, i32) {
    %c0_i32 = arith.constant 0 : i32
    %c0_i32_0 = arith.constant 0 : i32
    %c0_i32_1 = arith.constant 0 : i32
    return %c0_i32, %c0_i32_0 : i32, i32
  }
  func.func @transform_3(%arg0: i32, %arg1: i32) -> (i32, i32) {
    %c0_i32 = arith.constant 0 : i32
    %c0_i32_0 = arith.constant 0 : i32
    %c0_i32_1 = arith.constant 0 : i32
    return %c0_i32, %c0_i32_0 : i32, i32
  }
  func.func @transform_4(%arg0: i32, %arg1: i32) -> (i32, i32) {
    %c0_i32 = arith.constant 0 : i32
    %c0_i32_0 = arith.constant 0 : i32
    %c0_i32_1 = arith.constant 0 : i32
    return %c0_i32, %c0_i32_0 : i32, i32
  }
  func.func @transform_5(%arg0: i32, %arg1: i32) -> (i32, i32) {
    %c0_i32 = arith.constant 0 : i32
    %c0_i32_0 = arith.constant 0 : i32
    %c0_i32_1 = arith.constant 0 : i32
    return %c0_i32, %c0_i32_0 : i32, i32
  }
  func.func @transform_6(%arg0: i32, %arg1: i32) -> (i32, i32) {
    %c0_i32 = arith.constant 0 : i32
    %c0_i32_0 = arith.constant 0 : i32
    %c0_i32_1 = arith.constant 0 : i32
    return %c0_i32, %c0_i32_0 : i32, i32
  }
  func.func @transform_7(%arg0: i32, %arg1: i32) -> (i32, i32) {
    %c0_i32 = arith.constant 0 : i32
    %c0_i32_0 = arith.constant 0 : i32
    return %arg0, %c0_i32 : i32, i32
  }
  func.func @transform_8(%arg0: i32, %arg1: i32) -> (i32, i32, i32) {
    %c0_i32 = arith.constant 0 : i32
    %c0_i32_0 = arith.constant 0 : i32
    return %arg1, %arg0, %c0_i32 : i32, i32, i32
  }
  func.func @transform_9(%arg0: i32, %arg1: i32) -> (i32, i32) {
    %c0_i32 = arith.constant 0 : i32
    %c0_i32_0 = arith.constant 0 : i32
    return %arg0, %c0_i32 : i32, i32
  }
}

</mosaic_0001>

<bundles_post_ra>
// kernel: seq_vae_forward.5
= control target key start
LH: loop header
LB: loop body
LE: loop exit
PB: predicated region body
PF: predicated region fallthrough
CT: control target
= control target key end

     0   :  { %vm228_vm0 = vcmask 523264   ;;  %v399_v39 = vmov 0   ;;  %vm268_vm1 = vcmask 261120   ;;  %v238_v51 = vlaneseq  ;;  %s543_s1 = inlined_call_operand.vmem [shape: bf16[256,64], index: 1, kind: input, shape index: {}]   ;;  %s544_s0 = inlined_call_operand.vmem [shape: f32[16,256], index: 0, kind: input, shape index: {}]   ;;  %s545_s2 = inlined_call_operand.vmem [shape: f32[1,64], index: 2, kind: input, shape index: {}]   ;;  %s546_s6 = inlined_call_operand.vmem [shape: f32[16,64], index: 6, kind: output, shape index: {0}]   ;;  %s547_s4 = inlined_call_operand.vmem [shape: bf16[32,256], index: 4, kind: input, shape index: {}]   ;;  %s548_s3 = inlined_call_operand.vmem [shape: f32[16,32], index: 3, kind: input, shape index: {}]   ;;  %s549_s5 = inlined_call_operand.vmem [shape: f32[1,256], index: 5, kind: input, shape index: {}]   ;;  %s550_s7 = inlined_call_operand.vmem [shape: f32[16,256], index: 7, kind: output, shape index: {1}]  }
   0x1   :  { %v373_v0 = vld [vmem:[%s543_s1 + $0x40] sm:$0xff]   ;;  %v375_v2 = vld [vmem:[%s543_s1 + $0x48] sm:$0xff]   ;;  %v377_v4 = vld [vmem:[%s543_s1 + $0x50] sm:$0xff]   ;;  %304 = vmatprep.mubr.bf16.mxu1 %v399_v39 }
   0x2   :  { %v374_v1 = vld [vmem:[%s543_s1] sm:$0xff]   ;;  %349 = vmatprep.subr.bf16.mxu0 %v373_v0  ;;  %v376_v3 = vld [vmem:[%s543_s1 + $0x8] sm:$0xff]   ;;  %v378_v5 = vld [vmem:[%s543_s1 + $0x10] sm:$0xff]   ;;  %v239_v52 = vshrl.u32 %v238_v51, 7 }
   0x3   :  { %350 = vmatpush3.bf16.msra.mxu0 %v374_v1  ;;  %v379_v6 = vld [vmem:[%s543_s1 + $0x58] sm:$0xff]   ;;  %v381_v8 = vld [vmem:[%s543_s1 + $0x60] sm:$0xff]   ;;  %v383_v10 = vld [vmem:[%s543_s1 + $0x68] sm:$0xff]  }
   0x4   :  { %351 = vmatprep.subr.bf16.mxu0 %v375_v2  ;;  %v380_v7 = vld [vmem:[%s543_s1 + $0x18] sm:$0xff]   ;;  %v382_v9 = vld [vmem:[%s543_s1 + $0x20] sm:$0xff]   ;;  %v27_v11 = vld [vmem:[%s544_s0 + $0x8] sm:$0xff]  ;;  %v240_v53 = vsub.s32 0, %v239_v52  ;;  %v244_v55 = vsub.s32 1, %v239_v52 }
   0x5   :  { %v29_v12 = vld [vmem:[%s544_s0 + $0x18] sm:$0xff]  ;;  %v384_v14 = vld [vmem:[%s543_s1 + $0x28] sm:$0xff]   ;;  %v385_v15 = vld [vmem:[%s543_s1 + $0x70] sm:$0xff]  }
   0x6   :  { %v31_v13 = vpack.c.bf16 %v29_v12, %v27_v11  ;;  %v386_v16 = vld [vmem:[%s543_s1 + $0x30] sm:$0xff]   ;;  %v387_v17 = vld [vmem:[%s543_s1 + $0x78] sm:$0xff]   ;;  %v26_v19 = vld [vmem:[%s544_s0] sm:$0xff] }
   0x7   :  { %352 = vmatpush3.bf16.msra.mxu0 %v376_v3  ;;  %v388_v18 = vld [vmem:[%s543_s1 + $0x38] sm:$0xff]   ;;  %v28_v20 = vld [vmem:[%s544_s0 + $0x10] sm:$0xff]  ;;  %v327_v23 = vld [vmem:[%s545_s2] ss:$0 sm:$0xff] }
   0x8   :  { %353 = vmatprep.subr.bf16.mxu0 %v377_v4  ;;  %199 = vmatprep.mubr.bf16.mxu0 %v31_v13  ;;  %v30_v21 = vpack.c.bf16 %v28_v20, %v26_v19  ;;  %v389_v34 = vld [vmem:[%s547_s4 + $0x4] ss:$8 sps:$4 sm:$0xff]   ;;  %v391_v35 = vld [vmem:[%s547_s4] ss:$8 sps:$4 sm:$0xff]   ;;  %v392_v37 = vld [vmem:[%s547_s4 + $0x14] ss:$8 sps:$4 sm:$0xff]  }
   0x9   :  { %272 = vmatprep.subr.bf16.mxu1 %v389_v34  ;;  %v394_v38 = vld [vmem:[%s547_s4 + $0x10] ss:$8 sps:$4 sm:$0xff]   ;;  %v208_v42 = vld [vmem:[%s548_s3] sm:$0xff]  ;;  %v209_v44 = vld [vmem:[%s548_s3 + $0x8] sm:$0xff] }
   0xa   :  { %273 = vmatpush1.bf16.msra.mxu1 %v391_v35  ;;  %v236_v54 = vld [vmem:[%s549_s5] sm:$0x3] }
   0xb   :  { %354 = vmatpush3.bf16.msra.mxu0 %v378_v5  ;;  %274 = vmatprep.subr.bf16.mxu1 %v392_v37  ;;  %v241_v56 = vrot.slane %v236_v54, %v240_v53  ;;  %v245_v57 = vrot.slane %v236_v54, %v244_v55 }
   0xc   :  { %355 = vmatprep.subr.bf16.mxu0 %v379_v6 }
   0xe   :  { %275 = vmatpush1.bf16.msra.mxu1 %v394_v38 }
   0xf   :  { %356 = vmatpush3.bf16.msra.mxu0 %v380_v7 }
  0x10   :  { %357 = vmatprep.subr.bf16.mxu0 %v381_v8 }
  0x13   :  { %358 = vmatpush3.bf16.msra.mxu0 %v382_v9 }
  0x14   :  { %359 = vmatprep.subr.bf16.mxu0 %v383_v10 }
  0x17   :  { %360 = vmatpush3.bf16.msra.mxu0 %v384_v14 }
  0x18   :  { %361 = vmatprep.subr.bf16.mxu0 %v385_v15 }
  0x1b   :  { %362 = vmatpush3.bf16.msra.mxu0 %v386_v16 }
  0x1c   :  { %363 = vmatprep.subr.bf16.mxu0 %v387_v17 }
  0x1f   :  { %364 = vmatpush3.bf16.msra.mxu0 %v388_v18 }
  0x22   :  { %200 = vmatmul.mubr.bf16.vlgmr.msra.gmra.mrb[0].mxu0 %v30_v21 }
  0xf5   :  { %v365_v22 = vpop.f32.mrb[0].mxu0 }
  0xf6   :  { %v366_v24 = vpop.f32.mrb[1].mxu0 }
  0xf7   :  { %v367_v25 = vadd.f32 %v366_v24, %v365_v22  ;;  %v368_v26 = vpop.f32.mrb[2].mxu0 }
  0xf8   :  { %v369_v27 = vpop.f32.mrb[3].mxu0 }
  0xf9   :  { %v202_v28 = vadd.f32 %v367_v25, %v327_v23  ;;  %v370_v29 = vadd.f32 %v369_v27, %v368_v26 }
  0xfb   :  { %v210_v30 = vmul.f32 0.5, %v202_v28  ;;  %229 = vst.msk [vmem:[%s546_s6] sm:$0xff] %vm228_vm0, %v202_v28  ;;  %v205_v31 = vadd.f32 %v370_v29, %v327_v23 }
  0xfd   :  { %v212_v32 = vmul.f32 1.442695, %v210_v30  ;;  %v211_v33 = vmul.f32 0.5, %v205_v31  ;;  %230 = vst.msk [vmem:[%s546_s6 + $0x8] sm:$0xff] %vm228_vm0, %v205_v31  ;;  %s400_s6 = smov 96  }
  0xff   :  { %395 = vpow2.f32 %v212_v32  ;;  %v214_v36 = vmul.f32 1.442695, %v211_v33 }
 0x101   :  { %397 = vpow2.f32 %v214_v36 }
 0x109   :  { %v396_v40 = vpop.eup %395 }
 0x10a   :  { %218 = vrot.lane.b32.xlu0 %v396_v40, %s400_s6 }
 0x10b   :  { %v398_v41 = vpop.eup %397 }
 0x10e   :  { %220 = vrot.lane.b32.xlu0 %v398_v41, %s400_s6 }
 0x17c   :  { %v219_v43 = vpop.permute.xlu0 %218 }
 0x17d   :  { %v224_v45 = vmul.f32 %v219_v43, %v208_v42 }
 0x17f   :  { %v226_v48 = vadd.f32 %v224_v45, %v202_v28 }
 0x180   :  { %v221_v46 = vpop.permute.xlu0 %220 }
 0x181   :  { %v225_v47 = vmul.f32 %v221_v46, %v209_v44 }
 0x183   :  { %v227_v49 = vadd.f32 %v225_v47, %v205_v31 }
 0x185   :  { %v231_v50 = vpack.c.bf16 %v227_v49, %v226_v48 }
 0x187   :  { %348 = vmatmul.mubr.msk.bf16.vlgmr.msra.gmra.mrb[0].mxu1 %vm268_vm1, %v231_v50 }
 0x25a   :  { %v306_v58 = vpop.f32.mrb[0].mxu1 }
 0x25b   :  { %v307_v59 = vadd.f32 %v306_v58, %v241_v56  ;;  %v308_v60 = vpop.f32.mrb[1].mxu1 }
 0x25c   :  { %v309_v61 = vadd.f32 %v308_v60, %v245_v57  ;;  %v310_v62 = vpop.f32.mrb[2].mxu1 }
 0x25d   :  { %315 = vst [vmem:[%s550_s7] sm:$0xff] %v307_v59  ;;  %v311_v63 = vadd.f32 %v310_v62, %v241_v56  ;;  %v312_v0 = vpop.f32.mrb[3].mxu1 }
 0x25e   :  { %316 = vst [vmem:[%s550_s7 + $0x8] sm:$0xff] %v309_v61  ;;  %v313_v1 = vadd.f32 %v312_v0, %v245_v57 }
 0x25f   :  { %317 = vst [vmem:[%s550_s7 + $0x10] sm:$0xff] %v311_v63 }
 0x260   :  { %318 = vst [vmem:[%s550_s7 + $0x18] sm:$0xff] %v313_v1 }

// kernel: seq_vae_forward.7
= control target key start
LH: loop header
LB: loop body
LE: loop exit
PB: predicated region body
PF: predicated region fallthrough
CT: control target
= control target key end

     0   :  { %8 = vsyncpa [#allocation5], 0  ;;  %s1428_s12 = smov 0   ;;  %s1430_s13 = smov 0   ;;  %s1918_s0 = inlined_call_operand.vmem [shape: f32[128,128], index: 0, kind: input, shape index: {}]   ;;  %s1919_s1 = inlined_call_operand.vmem [shape: bf16[128,128], index: 1, kind: input, shape index: {}]   ;;  %s1920_s2 = inlined_call_operand.vmem [shape: f32[1,128], index: 2, kind: input, shape index: {}]   ;;  %s1921_s3 = inlined_call_operand.hbm [shape: f32[128,128], index: 3, kind: output, shape index: {}]  }
   0x1   :  { %s1432_s14 = smov 0  }
   0x2 LB: > { %s1115_s15 = sadd.s32 4294967295, %s1399_s14   ;;  %s29_s16 = sadd.s32 1, %s1395_s13  ;;  %s1399_s14 = sphi %s1432_s14, %s14_s14   ;;  %s1395_s13 = sphi %s1430_s13, %s1943_s13   ;;  %s1391_s12 = sphi %s1428_s12, %s1942_s12  }
   0x3   : > { %p31_p0 = scmp.ge.s32.totalorder %s29_s16, 2  ;;  %p1120_p1 = scmp.ge.s32.totalorder %s1399_s14, 1 }
   0x4   : > { %p177_p2 = scmp.lt.s32.totalorder %s1399_s14, 3 }
   0x5   : > { %s1945_s16 = smov (%p31_p0, %s29_s16), 0 }
   0x6   : > { %p178_p3 = pnand %p1120_p1, %p177_p2 }
   0x8   : > { %181 = sbr.rel (%p178_p3) target bundleno = 952 (0x3b8), region = 32 }
   0xf   : > { %v1239_v0 = vld [vmem:[%s1919_s1] sm:$0xff]   ;;  %v1240_v1 = vld [vmem:[%s1919_s1 + $0x8] sm:$0xff]   ;;  %v1241_v2 = vld [vmem:[%s1919_s1 + $0x10] sm:$0xff]   ;;  %p410_p4 = scmp.eq.s32.totalorder %s1391_s12, 0 }
  0x10   : > { %1154 = vmatprep.subr.bf16.mxu0 %v1239_v0  ;;  %1186 = vmatprep.subr.bf16.mxu1 %v1239_v0  ;;  %v1242_v3 = vld [vmem:[%s1919_s1 + $0x18] sm:$0xff]   ;;  %v218_v4 = vld [vmem:[%s1918_s0] sm:$0xff]  ;;  %v219_v5 = vld [vmem:[%s1918_s0 + $0x8] sm:$0xff]  ;;  %vm416_vm0 = vcmask (%p410_p4), 7168  }
  0x11   : > { %1155 = vmatpush3.bf16.msra.mxu0 %v1239_v0  ;;  %1194 = vmatpush3.bf16.msra.mxu1 %v1239_v0  ;;  %v226_v6 = vld [vmem:[%s1918_s0 + $0x40] sm:$0xff]  ;;  %v234_v7 = vpack.c.bf16 %v219_v5, %v218_v4  ;;  %v227_v8 = vld [vmem:[%s1918_s0 + $0x48] sm:$0xff]  ;;  %v1245_v12 = vld [vmem:[%s1919_s1 + $0x30] sm:$0xff]  }
  0x12   : > { %1156 = vmatprep.subr.bf16.mxu0 %v1240_v1  ;;  %1187 = vmatprep.subr.bf16.mxu1 %v1240_v1  ;;  %v238_v9 = vpack.c.bf16 %v227_v8, %v226_v6  ;;  %v1243_v10 = vld [vmem:[%s1919_s1 + $0x20] sm:$0xff]   ;;  %v1244_v11 = vld [vmem:[%s1919_s1 + $0x28] sm:$0xff]   ;;  %v1246_v13 = vld [vmem:[%s1919_s1 + $0x38] sm:$0xff]  }
  0x13   : > { %1170 = vmatprep.mubr.bf16.mxu0 %v234_v7  ;;  %v220_v14 = vld [vmem:[%s1918_s0 + $0x10] sm:$0xff]  ;;  %v221_v15 = vld [vmem:[%s1918_s0 + $0x18] sm:$0xff]  ;;  %v222_v18 = vld [vmem:[%s1918_s0 + $0x20] sm:$0xff] }
  0x14   : > { %1178 = vmatprep.mubr.bf16.mxu1 %v238_v9  ;;  %v228_v16 = vld [vmem:[%s1918_s0 + $0x50] sm:$0xff]  ;;  %v229_v17 = vld [vmem:[%s1918_s0 + $0x58] sm:$0xff]  ;;  %v223_v19 = vld [vmem:[%s1918_s0 + $0x28] sm:$0xff]  ;;  %v235_v22 = vpack.c.bf16 %v221_v15, %v220_v14 }
  0x15   : > { %1157 = vmatpush3.bf16.msra.mxu0 %v1240_v1  ;;  %1195 = vmatpush3.bf16.msra.mxu1 %v1240_v1  ;;  %v230_v20 = vld [vmem:[%s1918_s0 + $0x60] sm:$0xff]  ;;  %v231_v21 = vld [vmem:[%s1918_s0 + $0x68] sm:$0xff]  ;;  %v239_v23 = vpack.c.bf16 %v229_v17, %v228_v16  ;;  %v236_v24 = vpack.c.bf16 %v223_v19, %v222_v18  ;;  %v224_v26 = vld [vmem:[%s1918_s0 + $0x30] sm:$0xff]  ;;  %v1401_v1 = vmov (%p410_p4), -inf  }
  0x16   : > { %1158 = vmatprep.subr.bf16.mxu0 %v1241_v2  ;;  %1188 = vmatprep.subr.bf16.mxu1 %v1241_v2  ;;  %v240_v25 = vpack.c.bf16 %v231_v21, %v230_v20  ;;  %v225_v27 = vld [vmem:[%s1918_s0 + $0x38] sm:$0xff]  ;;  %v232_v28 = vld [vmem:[%s1918_s0 + $0x70] sm:$0xff]  ;;  %v1121_v32 = vld [vmem:[%s1920_s2] ss:$0 sm:$0xff]  ;;  %417 = vst.msk [vmem:[#allocation2] sm:$0xff] (%p410_p4), %vm416_vm0, %v1401_v1 }
  0x17   : > { %v233_v29 = vld [vmem:[%s1918_s0 + $0x78] sm:$0xff]  ;;  %v237_v30 = vpack.c.bf16 %v225_v27, %v224_v26  ;;  %418 = vst.msk [vmem:[#allocation2 + $0x8] sm:$0xff] (%p410_p4), %vm416_vm0, %v1401_v1  ;;  %419 = vst.msk [vmem:[#allocation2 + $0x10] sm:$0xff] (%p410_p4), %vm416_vm0, %v1401_v1 }
  0x18   : > { %v241_v31 = vpack.c.bf16 %v233_v29, %v232_v28  ;;  %420 = vst.msk [vmem:[#allocation2 + $0x18] sm:$0xff] (%p410_p4), %vm416_vm0, %v1401_v1  ;;  %421 = vst.msk [vmem:[#allocation2 + $0x20] sm:$0xff] (%p410_p4), %vm416_vm0, %v1401_v1 }
  0x19   : > { %1159 = vmatpush3.bf16.msra.mxu0 %v1241_v2  ;;  %1196 = vmatpush3.bf16.msra.mxu1 %v1241_v2  ;;  %422 = vst.msk [vmem:[#allocation2 + $0x28] sm:$0xff] (%p410_p4), %vm416_vm0, %v1401_v1  ;;  %423 = vst.msk [vmem:[#allocation2 + $0x30] sm:$0xff] (%p410_p4), %vm416_vm0, %v1401_v1  ;;  %v1402_v2 = vmov (%p410_p4), 0.0  }
  0x1a   : > { %1160 = vmatprep.subr.bf16.mxu0 %v1242_v3  ;;  %1189 = vmatprep.subr.bf16.mxu1 %v1242_v3  ;;  %424 = vst.msk [vmem:[#allocation2 + $0x38] sm:$0xff] (%p410_p4), %vm416_vm0, %v1401_v1  ;;  %425 = vst.msk [vmem:[#allocation2 + $0x40] sm:$0xff] (%p410_p4), %vm416_vm0, %v1401_v1 }
  0x1b   : > { %426 = vst.msk [vmem:[#allocation2 + $0x48] sm:$0xff] (%p410_p4), %vm416_vm0, %v1401_v1  ;;  %427 = vst.msk [vmem:[#allocation2 + $0x50] sm:$0xff] (%p410_p4), %vm416_vm0, %v1401_v1 }
  0x1c   : > { %428 = vst.msk [vmem:[#allocation2 + $0x58] sm:$0xff] (%p410_p4), %vm416_vm0, %v1401_v1  ;;  %429 = vst.msk [vmem:[#allocation2 + $0x60] sm:$0xff] (%p410_p4), %vm416_vm0, %v1401_v1 }
  0x1d   : > { %1161 = vmatpush3.bf16.msra.mxu0 %v1242_v3  ;;  %1197 = vmatpush3.bf16.msra.mxu1 %v1242_v3  ;;  %430 = vst.msk [vmem:[#allocation2 + $0x68] sm:$0xff] (%p410_p4), %vm416_vm0, %v1401_v1  ;;  %431 = vst.msk [vmem:[#allocation2 + $0x70] sm:$0xff] (%p410_p4), %vm416_vm0, %v1401_v1 }
  0x1e   : > { %1162 = vmatprep.subr.bf16.mxu0 %v1243_v10  ;;  %1190 = vmatprep.subr.bf16.mxu1 %v1243_v10  ;;  %432 = vst.msk [vmem:[#allocation2 + $0x78] sm:$0xff] (%p410_p4), %vm416_vm0, %v1401_v1  ;;  %433 = vst.msk [vmem:[#allocation3] sm:$0xff] (%p410_p4), %vm416_vm0, %v1402_v2 }
  0x1f   : > { %434 = vst.msk [vmem:[#allocation3 + $0x8] sm:$0xff] (%p410_p4), %vm416_vm0, %v1402_v2  ;;  %435 = vst.msk [vmem:[#allocation3 + $0x10] sm:$0xff] (%p410_p4), %vm416_vm0, %v1402_v2 }
  0x20   : > { %436 = vst.msk [vmem:[#allocation3 + $0x18] sm:$0xff] (%p410_p4), %vm416_vm0, %v1402_v2  ;;  %437 = vst.msk [vmem:[#allocation3 + $0x20] sm:$0xff] (%p410_p4), %vm416_vm0, %v1402_v2 }
  0x21   : > { %1163 = vmatpush3.bf16.msra.mxu0 %v1243_v10  ;;  %1198 = vmatpush3.bf16.msra.mxu1 %v1243_v10  ;;  %438 = vst.msk [vmem:[#allocation3 + $0x28] sm:$0xff] (%p410_p4), %vm416_vm0, %v1402_v2  ;;  %439 = vst.msk [vmem:[#allocation3 + $0x30] sm:$0xff] (%p410_p4), %vm416_vm0, %v1402_v2 }
  0x22   : > { %1164 = vmatprep.subr.bf16.mxu0 %v1244_v11  ;;  %1191 = vmatprep.subr.bf16.mxu1 %v1244_v11  ;;  %440 = vst.msk [vmem:[#allocation3 + $0x38] sm:$0xff] (%p410_p4), %vm416_vm0, %v1402_v2  ;;  %441 = vst.msk [vmem:[#allocation3 + $0x40] sm:$0xff] (%p410_p4), %vm416_vm0, %v1402_v2 }
  0x23   : > { %442 = vst.msk [vmem:[#allocation3 + $0x48] sm:$0xff] (%p410_p4), %vm416_vm0, %v1402_v2  ;;  %443 = vst.msk [vmem:[#allocation3 + $0x50] sm:$0xff] (%p410_p4), %vm416_vm0, %v1402_v2 }
  0x24   : > { %444 = vst.msk [vmem:[#allocation3 + $0x58] sm:$0xff] (%p410_p4), %vm416_vm0, %v1402_v2  ;;  %445 = vst.msk [vmem:[#allocation3 + $0x60] sm:$0xff] (%p410_p4), %vm416_vm0, %v1402_v2 }
  0x25   : > { %1165 = vmatpush3.bf16.msra.mxu0 %v1244_v11  ;;  %1199 = vmatpush3.bf16.msra.mxu1 %v1244_v11  ;;  %446 = vst.msk [vmem:[#allocation3 + $0x68] sm:$0xff] (%p410_p4), %vm416_vm0, %v1402_v2  ;;  %447 = vst.msk [vmem:[#allocation3 + $0x70] sm:$0xff] (%p410_p4), %vm416_vm0, %v1402_v2 }
  0x26   : > { %1166 = vmatprep.subr.bf16.mxu0 %v1245_v12  ;;  %1192 = vmatprep.subr.bf16.mxu1 %v1245_v12  ;;  %448 = vst.msk [vmem:[#allocation3 + $0x78] sm:$0xff] (%p410_p4), %vm416_vm0, %v1402_v2 }
  0x29   : > { %1167 = vmatpush3.bf16.msra.mxu0 %v1245_v12  ;;  %1200 = vmatpush3.bf16.msra.mxu1 %v1245_v12 }
  0x2a   : > { %1168 = vmatprep.subr.bf16.mxu0 %v1246_v13  ;;  %1193 = vmatprep.subr.bf16.mxu1 %v1246_v13 }
  0x2d   : > { %1169 = vmatpush3.bf16.msra.mxu0 %v1246_v13  ;;  %1201 = vmatpush3.bf16.msra.mxu1 %v1246_v13 }
  0x30   : > { %1171 = vmatmul.mubr.bf16.vlgmr.msra.gmra.mrb[0].mxu0 %v235_v22  ;;  %1179 = vmatmul.mubr.bf16.vlgmr.msra.gmra.mrb[0].mxu1 %v239_v23 }
  0x31   : > { %1174 = vmatprep.mubr.bf16.mxu0 %v236_v24  ;;  %1182 = vmatprep.mubr.bf16.mxu1 %v240_v25 }
  0x38   : > { %1175 = vmatmul.mubr.bf16.gmra.mrb[4].mxu0 %v237_v30  ;;  %1183 = vmatmul.mubr.bf16.gmra.mrb[4].mxu1 %v241_v31 }
 0x103   : > { %v1172_v33 = vpop.f32.mrb[0].mxu0  ;;  %v1180_v34 = vpop.f32.mrb[0].mxu1 }
 0x104   : > { %v1525_v35 = vadd.f32 %v1172_v33, %v1121_v32  ;;  %v1527_v36 = vadd.f32 %v1180_v34, %v1121_v32  ;;  %v347_v37 = vpop.f32.mrb[1].mxu0  ;;  %v379_v38 = vpop.f32.mrb[1].mxu1 }
 0x105   : > { %v1529_v39 = vadd.f32 %v1121_v32, %v347_v37  ;;  %v1531_v40 = vadd.f32 %v1121_v32, %v379_v38  ;;  %v1173_v41 = vpop.f32.mrb[2].mxu0  ;;  %v1181_v42 = vpop.f32.mrb[2].mxu1 }
 0x106   : > { %v1533_v43 = vadd.f32 %v1173_v41, %v1121_v32  ;;  %v1535_v44 = vadd.f32 %v1181_v42, %v1121_v32  ;;  %v350_v45 = vpop.f32.mrb[3].mxu0  ;;  %v382_v46 = vpop.f32.mrb[3].mxu1 }
 0x107   : > { %v1537_v47 = vadd.f32 %v1121_v32, %v350_v45  ;;  %v1539_v48 = vadd.f32 %v1121_v32, %v382_v46 }
 0x109   : > { %1923 = vst [vmem:[#allocation7_spill] sm:$0xff] %v1539_v48  ;;  %415 = sbr.rel (!%p410_p4) target bundleno = 272 (0x110), region = 36 }
 0x10b   : > { %v1176_v49 = vpop.f32.mrb[4].mxu0  ;;  %v1184_v50 = vpop.f32.mrb[4].mxu1 }
 0x10c   : > { %v1541_v51 = vadd.f32 %v1176_v49, %v1121_v32  ;;  %v1543_v52 = vadd.f32 %v1184_v50, %v1121_v32  ;;  %v363_v53 = vpop.f32.mrb[5].mxu0  ;;  %v395_v54 = vpop.f32.mrb[5].mxu1 }
 0x10d   : > { %v1545_v55 = vadd.f32 %v1121_v32, %v363_v53  ;;  %v1547_v56 = vadd.f32 %v1121_v32, %v395_v54  ;;  %v1177_v57 = vpop.f32.mrb[6].mxu0  ;;  %v1185_v58 = vpop.f32.mrb[6].mxu1 }
 0x10e   : > { %v1549_v59 = vadd.f32 %v1177_v57, %v1121_v32  ;;  %v1551_v60 = vadd.f32 %v1185_v58, %v1121_v32  ;;  %v366_v61 = vpop.f32.mrb[7].mxu0  ;;  %v398_v62 = vpop.f32.mrb[7].mxu1 }
 0x10f   : > { %v1553_v63 = vadd.f32 %v1121_v32, %v366_v61  ;;  %v1555_v0 = vadd.f32 %v1121_v32, %v398_v62 }
 0x110 PF: > { %p1131_p5 = scmp.ne.s32.totalorder %s1391_s12, 0 }
 0x111   : > { %472 = vmax.xlane.f32.xlu1 (!%p1131_p5), %v1525_v35  ;;  %468 = vmax.xlane.f32.xlu0 (!%p1131_p5), %v1529_v39  ;;  %805 = vst [vmem:[#allocation4] sm:$0xff] (!%p1131_p5), %v1529_v39  ;;  %806 = vst [vmem:[#allocation4 + $0x8] sm:$0xff] (!%p1131_p5), %v1537_v47  ;;  %v1403_v3 = vmov (!%p1131_p5), 0   ;;  %v1624_v4 = vld [vmem:[#allocation2 + $0x10] sm:$0xff] (!%p1131_p5)  ;;  %v1626_v5 = vld [vmem:[#allocation2] sm:$0xff] (!%p1131_p5)  ;;  %vm772_vm1 = vcmask (!%p1131_p5), 7168  }
 0x112   : > { %451 = sbr.rel (%p1131_p5) target bundleno = 749 (0x2ed), region = 40  ;;  %807 = vst [vmem:[#allocation4 + $0x10] sm:$0xff] (!%p1131_p5), %v1525_v35  ;;  %808 = vst [vmem:[#allocation4 + $0x18] sm:$0xff] (!%p1131_p5), %v1533_v43  ;;  %1247 = vset.pattern.permute.xlu0 (!%p1131_p5), %v1403_v3  ;;  %1248 = vset.pattern.permute.xlu1 (!%p1131_p5), %v1403_v3  ;;  %v1634_v10 = vld [vmem:[#allocation2 + $0x18] sm:$0xff] (!%p1131_p5)  ;;  %v1636_v11 = vld [vmem:[#allocation2 + $0x8] sm:$0xff] (!%p1131_p5) }
 0x113   : > { %809 = vst [vmem:[#allocation4 + $0x20] sm:$0xff] (!%p1131_p5), %v1545_v55  ;;  %810 = vst [vmem:[#allocation4 + $0x28] sm:$0xff] (!%p1131_p5), %v1553_v63  ;;  %v1653_v18 = vld [vmem:[#allocation2 + $0x28] sm:$0xff] (!%p1131_p5)  ;;  %v1655_v19 = vld [vmem:[#allocation2 + $0x20] sm:$0xff] (!%p1131_p5) }
 0x114   : > { %811 = vst [vmem:[#allocation4 + $0x30] sm:$0xff] (!%p1131_p5), %v1541_v51  ;;  %812 = vst [vmem:[#allocation4 + $0x38] sm:$0xff] (!%p1131_p5), %v1549_v59  ;;  %v1672_v26 = vld [vmem:[#allocation2 + $0x38] sm:$0xff] (!%p1131_p5)  ;;  %v1674_v27 = vld [vmem:[#allocation2 + $0x30] sm:$0xff] (!%p1131_p5) }
 0x115   : > { %813 = vst [vmem:[#allocation4 + $0x40] sm:$0xff] (!%p1131_p5), %v1531_v40  ;;  %814 = vst [vmem:[#allocation4 + $0x48] sm:$0xff] (!%p1131_p5), %v1539_v48  ;;  %474 = vmax.xlane.f32.xlu1 (!%p1131_p5), %v1533_v43  ;;  %470 = vmax.xlane.f32.xlu0 (!%p1131_p5), %v1537_v47  ;;  %v1691_v34 = vld [vmem:[#allocation2 + $0x48] sm:$0xff] (!%p1131_p5)  ;;  %v1693_v37 = vld [vmem:[#allocation2 + $0x40] sm:$0xff] (!%p1131_p5) }
 0x116   : > { %815 = vst [vmem:[#allocation4 + $0x50] sm:$0xff] (!%p1131_p5), %v1527_v36  ;;  %816 = vst [vmem:[#allocation4 + $0x58] sm:$0xff] (!%p1131_p5), %v1535_v44  ;;  %v1710_v50 = vld [vmem:[#allocation2 + $0x58] sm:$0xff] (!%p1131_p5)  ;;  %v1712_v53 = vld [vmem:[#allocation2 + $0x50] sm:$0xff] (!%p1131_p5) }
 0x117   : > { %817 = vst [vmem:[#allocation4 + $0x60] sm:$0xff] (!%p1131_p5), %v1547_v56  ;;  %818 = vst [vmem:[#allocation4 + $0x68] sm:$0xff] (!%p1131_p5), %v1555_v0  ;;  %v1730_v2 = vld [vmem:[#allocation2 + $0x68] sm:$0xff] (!%p1131_p5)  ;;  %v1732_v3 = vld [vmem:[#allocation2 + $0x60] sm:$0xff] (!%p1131_p5) }
 0x118   : > { %819 = vst [vmem:[#allocation4 + $0x70] sm:$0xff] (!%p1131_p5), %v1543_v52  ;;  %820 = vst [vmem:[#allocation4 + $0x78] sm:$0xff] (!%p1131_p5), %v1551_v60 }
 0x119   : > { %478 = vmax.xlane.f32.xlu1 %v1553_v63  ;;  %476 = vmax.xlane.f32.xlu0 %v1545_v55 }
 0x11d   : > { %482 = vmax.xlane.f32.xlu1 %v1549_v59  ;;  %480 = vmax.xlane.f32.xlu0 %v1541_v51 }
 0x121   : > { %486 = vmax.xlane.f32.xlu1 %v1539_v48  ;;  %484 = vmax.xlane.f32.xlu0 %v1531_v40 }
 0x125   : > { %490 = vmax.xlane.f32.xlu1 %v1535_v44  ;;  %488 = vmax.xlane.f32.xlu0 %v1527_v36 }
 0x129   : > { %494 = vmax.xlane.f32.xlu1 %v1555_v0  ;;  %492 = vmax.xlane.f32.xlu0 %v1547_v56 }
 0x12d   : > { %498 = vmax.xlane.f32.xlu1 %v1551_v60  ;;  %496 = vmax.xlane.f32.xlu0 %v1543_v52 }
 0x19e   : > { %v473_v6 = vpop.xlane.xlu1 %472  ;;  %v469_v7 = vpop.xlane.xlu0 %468 }
 0x19f   : > { %v1629_v8 = vmax.f32 %v1624_v4, %v473_v6  ;;  %v1632_v9 = vmax.f32 %v1626_v5, %v469_v7 }
 0x1a1   : > { %791 = vst.msk [vmem:[#allocation2 + $0x10] sm:$0xff] %vm772_vm1, %v1629_v8  ;;  %789 = vst.msk [vmem:[#allocation2] sm:$0xff] %vm772_vm1, %v1632_v9  ;;  %598 = vperm.xlu0 %1247, %v1632_v9  }
 0x1a2   : > { %v475_v14 = vpop.xlane.xlu1 %474  ;;  %v471_v15 = vpop.xlane.xlu0 %470 }
 0x1a3   : > { %v1648_v16 = vmax.f32 %v1634_v10, %v475_v14  ;;  %v1651_v17 = vmax.f32 %v1636_v11, %v471_v15 }
 0x1a5   : > { %792 = vst.msk [vmem:[#allocation2 + $0x18] sm:$0xff] %vm772_vm1, %v1648_v16  ;;  %790 = vst.msk [vmem:[#allocation2 + $0x8] sm:$0xff] %vm772_vm1, %v1651_v17  ;;  %603 = vperm.xlu1 %1248, %v1651_v17  }
 0x1a6   : > { %v479_v22 = vpop.xlane.xlu1 %478  ;;  %v477_v23 = vpop.xlane.xlu0 %476 }
 0x1a7   : > { %v1667_v24 = vmax.f32 %v1653_v18, %v479_v22  ;;  %v1670_v25 = vmax.f32 %v1655_v19, %v477_v23 }
 0x1a9   : > { %794 = vst.msk [vmem:[#allocation2 + $0x28] sm:$0xff] %vm772_vm1, %v1667_v24  ;;  %608 = vperm.xlu1 %1248, %v1629_v8   ;;  %793 = vst.msk [vmem:[#allocation2 + $0x20] sm:$0xff] %vm772_vm1, %v1670_v25 }
 0x1aa   : > { %v483_v30 = vpop.xlane.xlu1 %482  ;;  %v481_v31 = vpop.xlane.xlu0 %480 }
 0x1ab   : > { %v1686_v32 = vmax.f32 %v1672_v26, %v483_v30  ;;  %v1689_v33 = vmax.f32 %v1674_v27, %v481_v31  ;;  %v1750_v30 = vld [vmem:[#allocation2 + $0x78] sm:$0xff]  ;;  %v1752_v31 = vld [vmem:[#allocation2 + $0x70] sm:$0xff] }
 0x1ad   : > { %796 = vst.msk [vmem:[#allocation2 + $0x38] sm:$0xff] %vm772_vm1, %v1686_v32  ;;  %613 = vperm.xlu1 %1248, %v1648_v16   ;;  %795 = vst.msk [vmem:[#allocation2 + $0x30] sm:$0xff] %vm772_vm1, %v1689_v33 }
 0x1ae   : > { %v487_v42 = vpop.xlane.xlu1 %486  ;;  %v485_v45 = vpop.xlane.xlu0 %484 }
 0x1af   : > { %v1705_v46 = vmax.f32 %v1691_v34, %v487_v42  ;;  %v1708_v49 = vmax.f32 %v1693_v37, %v485_v45 }
 0x1b1   : > { %798 = vst.msk [vmem:[#allocation2 + $0x48] sm:$0xff] %vm772_vm1, %v1705_v46  ;;  %618 = vperm.xlu1 %1248, %v1670_v25   ;;  %643 = vperm.xlu0 %1247, %v1705_v46   ;;  %797 = vst.msk [vmem:[#allocation2 + $0x40] sm:$0xff] %vm772_vm1, %v1708_v49 }
 0x1b2   : > { %v491_v58 = vpop.xlane.xlu1 %490  ;;  %v489_v61 = vpop.xlane.xlu0 %488 }
 0x1b3   : > { %v1725_v62 = vmax.f32 %v1710_v50, %v491_v58  ;;  %v1728_v1 = vmax.f32 %v1712_v53, %v489_v61 }
 0x1b5   : > { %800 = vst.msk [vmem:[#allocation2 + $0x58] sm:$0xff] %vm772_vm1, %v1725_v62  ;;  %623 = vperm.xlu1 %1248, %v1667_v24   ;;  %653 = vperm.xlu0 %1247, %v1725_v62   ;;  %799 = vst.msk [vmem:[#allocation2 + $0x50] sm:$0xff] %vm772_vm1, %v1728_v1 }
 0x1b6   : > { %v495_v14 = vpop.xlane.xlu1 %494  ;;  %v493_v15 = vpop.xlane.xlu0 %492 }
 0x1b7   : > { %v1745_v22 = vmax.f32 %v1730_v2, %v495_v14  ;;  %v1748_v23 = vmax.f32 %v1732_v3, %v493_v15 }
 0x1b9   : > { %802 = vst.msk [vmem:[#allocation2 + $0x68] sm:$0xff] %vm772_vm1, %v1745_v22  ;;  %628 = vperm.xlu1 %1248, %v1689_v33   ;;  %663 = vperm.xlu0 %1247, %v1745_v22   ;;  %801 = vst.msk [vmem:[#allocation2 + $0x60] sm:$0xff] %vm772_vm1, %v1748_v23 }
 0x1ba   : > { %v499_v58 = vpop.xlane.xlu1 %498  ;;  %v497_v61 = vpop.xlane.xlu0 %496 }
 0x1bb   : > { %v1765_v14 = vmax.f32 %v1750_v30, %v499_v58  ;;  %v1768_v15 = vmax.f32 %v1752_v31, %v497_v61 }
 0x1bd   : > { %804 = vst.msk [vmem:[#allocation2 + $0x78] sm:$0xff] %vm772_vm1, %v1765_v14  ;;  %633 = vperm.xlu1 %1248, %v1686_v32   ;;  %673 = vperm.xlu0 %1247, %v1765_v14   ;;  %803 = vst.msk [vmem:[#allocation2 + $0x70] sm:$0xff] %vm772_vm1, %v1768_v15 }
 0x1c1   : > { %638 = vperm.xlu1 %1248, %v1708_v49  }
 0x1c5   : > { %648 = vperm.xlu1 %1248, %v1728_v1  }
 0x1c9   : > { %658 = vperm.xlu1 %1248, %v1748_v23  }
 0x1cd   : > { %668 = vperm.xlu1 %1248, %v1768_v15  }
 0x220   : > { %v599_v58 = vpop.permute.xlu0 %598 }
 0x221   : > { %v676_v61 = vsub.f32 %v1529_v39, %v599_v58 }
 0x223   : > { %v692_v42 = vmul.f32 1.442695, %v676_v61 }
 0x224   : > { %v604_v7 = vpop.permute.xlu1 %603 }
 0x225   : > { %1249 = vpow2.f32 %v692_v42  ;;  %v677_v6 = vsub.f32 %v1537_v47, %v604_v7 }
 0x227   : > { %v694_v45 = vmul.f32 1.442695, %v677_v6 }
 0x228   : > { %v609_v57 = vpop.permute.xlu1 %608 }
 0x229   : > { %1251 = vpow2.f32 %v694_v45  ;;  %v678_v54 = vsub.f32 %v1525_v35, %v609_v57 }
 0x22b   : > { %v696_v38 = vmul.f32 1.442695, %v678_v54 }
 0x22c   : > { %v614_v41 = vpop.permute.xlu1 %613 }
 0x22d   : > { %1253 = vpow2.f32 %v696_v38  ;;  %v679_v28 = vsub.f32 %v1533_v43, %v614_v41 }
 0x22f   : > { %v1250_v29 = vpop.eup %1249  ;;  %v698_v20 = vmul.f32 1.442695, %v679_v28 }
 0x230   : > { %v619_v12 = vpop.permute.xlu1 %618  ;;  %724 = vadd.xlane.f32.xlu1 %v1250_v29  ;;  %v644_v7 = vpop.permute.xlu0 %643 }
 0x231   : > { %1255 = vpow2.f32 %v698_v20  ;;  %v680_v58 = vsub.f32 %v1545_v55, %v619_v12  ;;  %v685_v12 = vsub.f32 %v1539_v48, %v644_v7 }
 0x233   : > { %v1252_v42 = vpop.eup %1251  ;;  %v700_v61 = vmul.f32 1.442695, %v680_v58  ;;  %v710_v13 = vmul.f32 1.442695, %v685_v12 }
 0x234   : > { %v624_v6 = vpop.permute.xlu1 %623  ;;  %726 = vadd.xlane.f32.xlu0 %v1252_v42  ;;  %v654_v41 = vpop.permute.xlu0 %653 }
 0x235   : > { %1257 = vpow2.f32 %v700_v61  ;;  %v681_v57 = vsub.f32 %v1553_v63, %v624_v6 }
 0x237   : > { %v1254_v54 = vpop.eup %1253  ;;  %v702_v45 = vmul.f32 1.442695, %v681_v57  ;;  %v687_v57 = vsub.f32 %v1535_v44, %v654_v41 }
 0x238   : > { %v629_v38 = vpop.permute.xlu1 %628  ;;  %728 = vadd.xlane.f32.xlu0 %v1254_v54  ;;  %v664_v61 = vpop.permute.xlu0 %663 }
 0x239   : > { %1259 = vpow2.f32 %v702_v45  ;;  %v682_v28 = vsub.f32 %v1541_v51, %v629_v38  ;;  %v714_v7 = vmul.f32 1.442695, %v687_v57 }
 0x23b   : > { %v1256_v29 = vpop.eup %1255  ;;  %v704_v20 = vmul.f32 1.442695, %v682_v28 }
 0x23c   : > { %v634_v21 = vpop.permute.xlu1 %633  ;;  %730 = vadd.xlane.f32.xlu1 %v1256_v29  ;;  %v689_v29 = vsub.f32 %v1555_v0, %v664_v61 }
 0x23d   : > { %1261 = vpow2.f32 %v704_v20  ;;  %v683_v58 = vsub.f32 %v1549_v59, %v634_v21  ;;  %v674_v21 = vpop.permute.xlu0 %673 }
 0x23e   : > { %v718_v41 = vmul.f32 1.442695, %v689_v29 }
 0x23f   : > { %v1258_v42 = vpop.eup %1257  ;;  %v706_v6 = vmul.f32 1.442695, %v683_v58 }
 0x240   : > { %v639_v54 = vpop.permute.xlu1 %638  ;;  %732 = vadd.xlane.f32.xlu0 %v1258_v42  ;;  %v691_v42 = vsub.f32 %v1551_v60, %v674_v21 }
 0x241   : > { %1263 = vpow2.f32 %v706_v6  ;;  %v684_v45 = vsub.f32 %v1531_v40, %v639_v54 }
 0x242   : > { %1265 = vpow2.f32 %v710_v13  ;;  %v722_v61 = vmul.f32 1.442695, %v691_v42  ;;  %v1924_v42 = vsub.f32 %v1626_v5, %v1632_v9  ;;  %v1928_v5 = vsub.f32 %v1655_v19, %v1670_v25 }
 0x243   : > { %v1260_v38 = vpop.eup %1259  ;;  %v708_v28 = vmul.f32 1.442695, %v684_v45  ;;  %v1930_v19 = vsub.f32 %v1674_v27, %v1689_v33  ;;  %v1932_v27 = vsub.f32 %v1691_v34, %v1705_v46  ;;  %v1935_v34 = vsub.f32 %v1712_v53, %v1728_v1 }
 0x244   : > { %v649_v20 = vpop.permute.xlu1 %648  ;;  %734 = vadd.xlane.f32.xlu1 %v1260_v38  ;;  %v556_v9 = vmul.f32 1.442695, %v1928_v5 }
 0x245   : > { %1267 = vpow2.f32 %v708_v28  ;;  %v686_v58 = vsub.f32 %v1527_v36, %v649_v20  ;;  %v560_v25 = vmul.f32 1.442695, %v1930_v19  ;;  %v566_v33 = vmul.f32 1.442695, %v1932_v27 }
 0x246   : > { %1269 = vpow2.f32 %v714_v7  ;;  %v568_v46 = vmul.f32 1.442695, %v1935_v34 }
 0x247   : > { %v1262_v12 = vpop.eup %1261  ;;  %v712_v48 = vmul.f32 1.442695, %v686_v58 }
 0x248   : > { %v659_v6 = vpop.permute.xlu1 %658  ;;  %736 = vadd.xlane.f32.xlu0 %v1262_v12 }
 0x249   : > { %1271 = vpow2.f32 %v712_v48  ;;  %v688_v13 = vsub.f32 %v1547_v56, %v659_v6  ;;  %v548_v6 = vmul.f32 1.442695, %v1924_v42 }
 0x24a   : > { %1273 = vpow2.f32 %v718_v41 }
 0x24b   : > { %v1264_v57 = vpop.eup %1263  ;;  %v716_v54 = vmul.f32 1.442695, %v688_v13  ;;  %v1925_v13 = vsub.f32 %v1636_v11, %v1651_v17 }
 0x24c   : > { %v669_v45 = vpop.permute.xlu1 %668  ;;  %738 = vadd.xlane.f32.xlu1 %v1264_v57  ;;  %v1266_v28 = vpop.eup %1265 }
 0x24d   : > { %1275 = vpow2.f32 %v716_v54  ;;  %v690_v38 = vsub.f32 %v1543_v52, %v669_v45  ;;  %v550_v57 = vmul.f32 1.442695, %v1925_v13  ;;  %v1926_v54 = vsub.f32 %v1624_v4, %v1629_v8 }
 0x24e   : > { %1277 = vpow2.f32 %v722_v61  ;;  %v1927_v45 = vsub.f32 %v1634_v10, %v1648_v16  ;;  %v1929_v4 = vsub.f32 %v1653_v18, %v1667_v24  ;;  %v519_v18 = vld [vmem:[#allocation3 + $0x18] sm:$0xff]  ;;  %v1931_v13 = vsub.f32 %v1672_v26, %v1686_v32 }
 0x24f   : > { %v1268_v20 = vpop.eup %1267  ;;  %v720_v7 = vmul.f32 1.442695, %v690_v38  ;;  %v552_v61 = vmul.f32 1.442695, %v1926_v54 }
 0x250   : > { %740 = vadd.xlane.f32.xlu0 %v1268_v20  ;;  %742 = vadd.xlane.f32.xlu1 %v1266_v28  ;;  %v1270_v29 = vpop.eup %1269  ;;  %v554_v38 = vmul.f32 1.442695, %v1927_v45  ;;  %v516_v20 = vld [vmem:[#allocation3] sm:$0xff]  ;;  %v558_v8 = vmul.f32 1.442695, %v1929_v4  ;;  %v522_v4 = vld [vmem:[#allocation3 + $0x30] sm:$0xff] }
 0x251   : > { %1279 = vpow2.f32 %v720_v7 }
 0x252   : > { %1281 = vpow2.f32 %v548_v6 }
 0x253   : > { %v1272_v48 = vpop.eup %1271  ;;  %1283 = vpow2.f32 %v550_v57  ;;  %v562_v57 = vmul.f32 1.442695, %v1931_v13 }
 0x254   : > { %744 = vadd.xlane.f32.xlu0 %v1272_v48  ;;  %746 = vadd.xlane.f32.xlu1 %v1270_v29  ;;  %v1274_v21 = vpop.eup %1273  ;;  %1285 = vpow2.f32 %v552_v61  ;;  %v517_v29 = vld [vmem:[#allocation3 + $0x8] sm:$0xff] }
 0x255   : > { %1287 = vpow2.f32 %v554_v38  ;;  %v520_v38 = vld [vmem:[#allocation3 + $0x20] sm:$0xff] }
 0x256   : > { %1289 = vpow2.f32 %v556_v9 }
 0x257   : > { %v1276_v58 = vpop.eup %1275  ;;  %1291 = vpow2.f32 %v558_v8  ;;  %v1936_v8 = vsub.f32 %v1730_v2, %v1745_v22  ;;  %v1939_v2 = vsub.f32 %v1752_v31, %v1768_v15  ;;  %v527_v15 = vld [vmem:[#allocation3 + $0x58] sm:$0xff] }
 0x258   : > { %748 = vadd.xlane.f32.xlu0 %v1276_v58  ;;  %750 = vadd.xlane.f32.xlu1 %v1274_v21  ;;  %v1278_v12 = vpop.eup %1277  ;;  %v518_v58 = vld [vmem:[#allocation3 + $0x10] sm:$0xff]  ;;  %1293 = vpow2.f32 %v560_v25 }
 0x259   : > { %1295 = vpow2.f32 %v562_v57  ;;  %v576_v22 = vmul.f32 1.442695, %v1939_v2 }
 0x25a   : > { %1297 = vpow2.f32 %v566_v33 }
 0x25b   : > { %v1280_v41 = vpop.eup %1279 }
 0x25c   : > { %752 = vadd.xlane.f32.xlu0 %v1280_v41  ;;  %754 = vadd.xlane.f32.xlu1 %v1278_v12  ;;  %v1282_v28 = vpop.eup %1281 }
 0x25d   : > { %v580_v7 = vmul.f32 %v1282_v28, %v516_v20  ;;  %v1284_v11 = vpop.eup %1283  ;;  %v1933_v20 = vsub.f32 %v1693_v37, %v1708_v49 }
 0x25e   : > { %v581_v10 = vmul.f32 %v1284_v11, %v517_v29  ;;  %v1286_v16 = vpop.eup %1285  ;;  %v1934_v11 = vsub.f32 %v1710_v50, %v1725_v62  ;;  %v1937_v50 = vsub.f32 %v1732_v3, %v1748_v23 }
 0x25f   : > { %v582_v41 = vmul.f32 %v1286_v16, %v518_v58  ;;  %v1288_v42 = vpop.eup %1287  ;;  %v564_v5 = vmul.f32 1.442695, %v1933_v20  ;;  %v523_v58 = vld [vmem:[#allocation3 + $0x38] sm:$0xff] }
 0x260   : > { %v583_v54 = vmul.f32 %v1288_v42, %v519_v18  ;;  %v1290_v61 = vpop.eup %1289  ;;  %v572_v62 = vmul.f32 1.442695, %v1937_v50  ;;  %v524_v18 = vld [vmem:[#allocation3 + $0x40] sm:$0xff] }
 0x261   : > { %v584_v26 = vmul.f32 %v1290_v61, %v520_v38  ;;  %v1292_v32 = vpop.eup %1291  ;;  %1299 = vpow2.f32 %v564_v5  ;;  %v526_v61 = vld [vmem:[#allocation3 + $0x50] sm:$0xff] }
 0x262   : > { %v1294_v49 = vpop.eup %1293 }
 0x263   : > { %v586_v53 = vmul.f32 %v1294_v49, %v522_v4  ;;  %v1296_v1 = vpop.eup %1295  ;;  %v530_v4 = vld [vmem:[#allocation3 + $0x70] sm:$0xff] }
 0x264   : > { %v587_v3 = vmul.f32 %v1296_v1, %v523_v58 }
 0x2bd   : > { %v725_v17 = vpop.xlane.xlu1 %724 }
 0x2be   : > { %v756_v48 = vadd.f32 %v725_v17, %v580_v7  ;;  %v521_v7 = vld [vmem:[#allocation3 + $0x28] sm:$0xff]  ;;  %v570_v17 = vmul.f32 1.442695, %v1934_v11 }
 0x2bf   : > { %v585_v37 = vmul.f32 %v1292_v32, %v521_v7  ;;  %v529_v32 = vld [vmem:[#allocation3 + $0x68] sm:$0xff] }
 0x2c0   : > { %773 = vst.msk [vmem:[#allocation3] sm:$0xff] %vm772_vm1, %v756_v48  ;;  %1301 = vpow2.f32 %v570_v17 }
 0x2c1   : > { %v727_v21 = vpop.xlane.xlu0 %726  ;;  %1303 = vpow2.f32 %v568_v46 }
 0x2c2   : > { %v757_v12 = vadd.f32 %v727_v21, %v581_v10  ;;  %v574_v10 = vmul.f32 1.442695, %v1936_v8 }
 0x2c4   : > { %774 = vst.msk [vmem:[#allocation3 + $0x8] sm:$0xff] %vm772_vm1, %v757_v12  ;;  %1305 = vpow2.f32 %v574_v10  ;;  %v1938_v12 = vsub.f32 %v1750_v30, %v1765_v14 }
 0x2c5   : > { %v729_v6 = vpop.xlane.xlu0 %728  ;;  %1307 = vpow2.f32 %v572_v62 }
 0x2c6   : > { %v758_v24 = vadd.f32 %v729_v6, %v582_v41  ;;  %v578_v19 = vmul.f32 1.442695, %v1938_v12  ;;  %v1298_v41 = vpop.eup %1297  ;;  %v525_v6 = vld [vmem:[#allocation3 + $0x48] sm:$0xff] }
 0x2c7   : > { %v1300_v23 = vpop.eup %1299  ;;  %v589_v30 = vmul.f32 %v1298_v41, %v525_v6 }
 0x2c8   : > { %775 = vst.msk [vmem:[#allocation3 + $0x10] sm:$0xff] %vm772_vm1, %v758_v24  ;;  %1309 = vpow2.f32 %v578_v19  ;;  %v588_v14 = vmul.f32 %v1300_v23, %v524_v18 }
 0x2c9   : > { %v731_v45 = vpop.xlane.xlu1 %730  ;;  %1311 = vpow2.f32 %v576_v22 }
 0x2ca   : > { %v759_v28 = vadd.f32 %v731_v45, %v583_v54  ;;  %v1302_v13 = vpop.eup %1301 }
 0x2cb   : > { %v1304_v57 = vpop.eup %1303  ;;  %v591_v33 = vmul.f32 %v1302_v13, %v527_v15 }
 0x2cc   : > { %776 = vst.msk [vmem:[#allocation3 + $0x18] sm:$0xff] %vm772_vm1, %v759_v28  ;;  %v590_v28 = vmul.f32 %v1304_v57, %v526_v61 }
 0x2cd   : > { %v733_v9 = vpop.xlane.xlu0 %732 }
 0x2ce   : > { %v760_v29 = vadd.f32 %v733_v9, %v584_v26  ;;  %v1306_v27 = vpop.eup %1305  ;;  %v528_v9 = vld [vmem:[#allocation3 + $0x60] sm:$0xff] }
 0x2cf   : > { %v1308_v20 = vpop.eup %1307 }
 0x2d0   : > { %777 = vst.msk [vmem:[#allocation3 + $0x20] sm:$0xff] %vm772_vm1, %v760_v29  ;;  %v593_v29 = vmul.f32 %v1306_v27, %v529_v32  ;;  %v592_v34 = vmul.f32 %v1308_v20, %v528_v9 }
 0x2d1   : > { %v735_v48 = vpop.xlane.xlu1 %734 }
 0x2d2   : > { %v761_v16 = vadd.f32 %v735_v48, %v585_v37  ;;  %v1310_v17 = vpop.eup %1309  ;;  %v531_v48 = vld [vmem:[#allocation3 + $0x78] sm:$0xff] }
 0x2d3   : > { %v1312_v46 = vpop.eup %1311 }
 0x2d4   : > { %778 = vst.msk [vmem:[#allocation3 + $0x28] sm:$0xff] %vm772_vm1, %v761_v16  ;;  %v595_v16 = vmul.f32 %v1310_v17, %v531_v48  ;;  %v594_v50 = vmul.f32 %v1312_v46, %v530_v4 }
 0x2d5   : > { %v737_v21 = vpop.xlane.xlu0 %736 }
 0x2d6   : > { %v762_v25 = vadd.f32 %v737_v21, %v586_v53 }
 0x2d8   : > { %779 = vst.msk [vmem:[#allocation3 + $0x30] sm:$0xff] %vm772_vm1, %v762_v25 }
 0x2d9   : > { %v739_v42 = vpop.xlane.xlu1 %738 }
 0x2da   : > { %v763_v24 = vadd.f32 %v739_v42, %v587_v3 }
 0x2dc   : > { %780 = vst.msk [vmem:[#allocation3 + $0x38] sm:$0xff] %vm772_vm1, %v763_v24 }
 0x2dd   : > { %v743_v54 = vpop.xlane.xlu1 %742  ;;  %v741_v31 = vpop.xlane.xlu0 %740 }
 0x2de   : > { %v765_v45 = vadd.f32 %v743_v54, %v589_v30  ;;  %v764_v38 = vadd.f32 %v741_v31, %v588_v14 }
 0x2e0   : > { %782 = vst.msk [vmem:[#allocation3 + $0x48] sm:$0xff] %vm772_vm1, %v765_v45  ;;  %781 = vst.msk [vmem:[#allocation3 + $0x40] sm:$0xff] %vm772_vm1, %v764_v38 }
 0x2e1   : > { %v747_v5 = vpop.xlane.xlu1 %746  ;;  %v745_v26 = vpop.xlane.xlu0 %744 }
 0x2e2   : > { %v767_v7 = vadd.f32 %v747_v5, %v591_v33  ;;  %v766_v11 = vadd.f32 %v745_v26, %v590_v28 }
 0x2e4   : > { %784 = vst.msk [vmem:[#allocation3 + $0x58] sm:$0xff] %vm772_vm1, %v767_v7  ;;  %783 = vst.msk [vmem:[#allocation3 + $0x50] sm:$0xff] %vm772_vm1, %v766_v11 }
 0x2e5   : > { %v751_v37 = vpop.xlane.xlu1 %750  ;;  %v749_v49 = vpop.xlane.xlu0 %748 }
 0x2e6   : > { %v769_v8 = vadd.f32 %v751_v37, %v593_v29  ;;  %v768_v10 = vadd.f32 %v749_v49, %v592_v34 }
 0x2e8   : > { %786 = vst.msk [vmem:[#allocation3 + $0x68] sm:$0xff] %vm772_vm1, %v769_v8  ;;  %785 = vst.msk [vmem:[#allocation3 + $0x60] sm:$0xff] %vm772_vm1, %v768_v10 }
 0x2e9   : > { %v755_v62 = vpop.xlane.xlu1 %754  ;;  %v753_v53 = vpop.xlane.xlu0 %752 }
 0x2ea   : > { %v771_v1 = vadd.f32 %v755_v62, %v595_v16  ;;  %v770_v21 = vadd.f32 %v753_v53, %v594_v50 }
 0x2ec   : > { %788 = vst.msk [vmem:[#allocation3 + $0x78] sm:$0xff] %vm772_vm1, %v771_v1  ;;  %787 = vst.msk [vmem:[#allocation3 + $0x70] sm:$0xff] %vm772_vm1, %v770_v21 }
 0x2ed PF: > { %p1132_p6 = scmp.ne.s32.totalorder %s1391_s12, 1 }
 0x2ee   : > { %v843_v58 = vld [vmem:[#allocation3 + $0x10] sm:$0xff] (!%p1132_p6)  ;;  %v1404_v12 = vmov (!%p1132_p6), 0   ;;  %v841_v19 = vld [vmem:[#allocation3] sm:$0xff] (!%p1132_p6)  ;;  %v844_v25 = vld [vmem:[#allocation3 + $0x18] sm:$0xff] (!%p1132_p6) }
 0x2ef   : > { %824 = sbr.rel (%p1132_p6) target bundleno = 926 (0x39e), region = 44  ;;  %1314 = vset.pattern.permute.xlu1 (!%p1132_p6), %v1404_v12  ;;  %1313 = vset.pattern.permute.xlu0 (!%p1132_p6), %v1404_v12  ;;  %1315 = vlog2.f32 (!%p1132_p6), %v843_v58  ;;  %v842_v2 = vld [vmem:[#allocation3 + $0x8] sm:$0xff] (!%p1132_p6)  ;;  %v845_v41 = vld [vmem:[#allocation3 + $0x20] sm:$0xff] (!%p1132_p6)  ;;  %v848_v3 = vld [vmem:[#allocation3 + $0x38] sm:$0xff] (!%p1132_p6) }
 0x2f0   : > { %1317 = vlog2.f32 (!%p1132_p6), %v841_v19  ;;  %v846_v22 = vld [vmem:[#allocation3 + $0x28] sm:$0xff] (!%p1132_p6)  ;;  %v847_v23 = vld [vmem:[#allocation3 + $0x30] sm:$0xff] (!%p1132_p6)  ;;  %v849_v6 = vld [vmem:[#allocation3 + $0x40] sm:$0xff] (!%p1132_p6) }
 0x2f1   : > { %1319 = vlog2.f32 (!%p1132_p6), %v844_v25  ;;  %v850_v42 = vld [vmem:[#allocation3 + $0x48] sm:$0xff] (!%p1132_p6)  ;;  %v827_v24 = vld [vmem:[#allocation2 + $0x10] sm:$0xff] (!%p1132_p6)  ;;  %v825_v14 = vld [vmem:[#allocation2] sm:$0xff] (!%p1132_p6) }
 0x2f2   : > { %1321 = vlog2.f32 (!%p1132_p6), %v842_v2  ;;  %v852_v57 = vld [vmem:[#allocation3 + $0x58] sm:$0xff] (!%p1132_p6)  ;;  %v851_v61 = vld [vmem:[#allocation3 + $0x50] sm:$0xff] (!%p1132_p6)  ;;  %v826_v33 = vld [vmem:[#allocation2 + $0x8] sm:$0xff] (!%p1132_p6) }
 0x2f3   : > { %1323 = vlog2.f32 (!%p1132_p6), %v846_v22  ;;  %v828_v15 = vld [vmem:[#allocation2 + $0x18] sm:$0xff] (!%p1132_p6)  ;;  %v854_v7 = vld [vmem:[#allocation3 + $0x68] sm:$0xff] (!%p1132_p6)  ;;  %v853_v46 = vld [vmem:[#allocation3 + $0x60] sm:$0xff] (!%p1132_p6) }
 0x2f4   : > { %1325 = vlog2.f32 (!%p1132_p6), %v845_v41  ;;  %v830_v29 = vld [vmem:[#allocation2 + $0x28] sm:$0xff] (!%p1132_p6)  ;;  %v829_v49 = vld [vmem:[#allocation2 + $0x20] sm:$0xff] (!%p1132_p6)  ;;  %v856_v8 = vld [vmem:[#allocation3 + $0x78] sm:$0xff] (!%p1132_p6) }
 0x2f5   : > { %1327 = vlog2.f32 (!%p1132_p6), %v848_v3  ;;  %v832_v50 = vld [vmem:[#allocation2 + $0x38] sm:$0xff] (!%p1132_p6)  ;;  %v855_v53 = vld [vmem:[#allocation3 + $0x70] sm:$0xff] (!%p1132_p6)  ;;  %v834_v2 = vld [vmem:[#allocation2 + $0x48] sm:$0xff] (!%p1132_p6) }
 0x2f6   : > { %1329 = vlog2.f32 %v847_v23  ;;  %v831_v21 = vld [vmem:[#allocation2 + $0x30] sm:$0xff]  ;;  %v833_v3 = vld [vmem:[#allocation2 + $0x40] sm:$0xff] }
 0x2f7   : > { %1331 = vlog2.f32 %v850_v42 }
 0x2f8   : > { %1333 = vlog2.f32 %v849_v6 }
 0x2f9   : > { %v1316_v18 = vpop.eup %1315  ;;  %1335 = vlog2.f32 %v852_v57 }
 0x2fa   : > { %v1318_v13 = vpop.eup %1317  ;;  %v862_v30 = vmul.f32 0.6931472, %v1316_v18  ;;  %1337 = vlog2.f32 %v851_v61  ;;  %v838_v61 = vld [vmem:[#allocation2 + $0x68] sm:$0xff] }
 0x2fb   : > { %v1320_v54 = vpop.eup %1319  ;;  %v858_v31 = vmul.f32 0.6931472, %v1318_v13  ;;  %1339 = vlog2.f32 %v854_v7 }
 0x2fc   : > { %v1322_v45 = vpop.eup %1321  ;;  %v891_v38 = vadd.f32 %v862_v30, %v827_v24  ;;  %v864_v27 = vmul.f32 0.6931472, %v1320_v54  ;;  %1341 = vlog2.f32 %v853_v46  ;;  %v836_v24 = vld [vmem:[#allocation2 + $0x58] sm:$0xff] }
 0x2fd   : > { %v1324_v28 = vpop.eup %1323  ;;  %v889_v20 = vadd.f32 %v858_v31, %v825_v14  ;;  %v860_v5 = vmul.f32 0.6931472, %v1322_v45  ;;  %1343 = vlog2.f32 %v856_v8  ;;  %v835_v14 = vld [vmem:[#allocation2 + $0x50] sm:$0xff] }
 0x2fe   : > { %v1326_v26 = vpop.eup %1325  ;;  %917 = vperm.xlu1 %1314, %v891_v38   ;;  %v892_v32 = vadd.f32 %v864_v27, %v828_v15  ;;  %v868_v9 = vmul.f32 0.6931472, %v1324_v28  ;;  %1345 = vlog2.f32 %v855_v53  ;;  %v837_v27 = vld [vmem:[#allocation2 + $0x60] sm:$0xff] }
 0x2ff   : > { %v1328_v11 = vpop.eup %1327  ;;  %907 = vperm.xlu0 %1313, %v889_v20   ;;  %v890_v17 = vadd.f32 %v860_v5, %v826_v33  ;;  %v866_v34 = vmul.f32 0.6931472, %v1326_v26  ;;  %v840_v5 = vld [vmem:[#allocation2 + $0x78] sm:$0xff] }
 0x300   : > { %v1330_v37 = vpop.eup %1329  ;;  %v894_v48 = vadd.f32 %v868_v9, %v830_v29  ;;  %v872_v4 = vmul.f32 0.6931472, %v1328_v11 }
 0x301   : > { %v1332_v10 = vpop.eup %1331  ;;  %v893_v16 = vadd.f32 %v866_v34, %v829_v49  ;;  %v870_v62 = vmul.f32 0.6931472, %v1330_v37 }
 0x302   : > { %922 = vperm.xlu1 %1314, %v892_v32   ;;  %v1334_v1 = vpop.eup %1333  ;;  %v896_v58 = vadd.f32 %v872_v4, %v832_v50  ;;  %v876_v12 = vmul.f32 0.6931472, %v1332_v10  ;;  %v839_v32 = vld [vmem:[#allocation2 + $0x70] sm:$0xff] }
 0x303   : > { %912 = vperm.xlu0 %1313, %v890_v17   ;;  %v1336_v19 = vpop.eup %1335  ;;  %v895_v25 = vadd.f32 %v870_v62, %v831_v21  ;;  %v874_v22 = vmul.f32 0.6931472, %v1334_v1 }
 0x304   : > { %v1338_v41 = vpop.eup %1337  ;;  %v898_v23 = vadd.f32 %v876_v12, %v834_v2  ;;  %v880_v42 = vmul.f32 0.6931472, %v1336_v19 }
 0x305   : > { %v1340_v6 = vpop.eup %1339  ;;  %v897_v18 = vadd.f32 %v874_v22, %v833_v3  ;;  %v878_v13 = vmul.f32 0.6931472, %v1338_v41 }
 0x306   : > { %932 = vperm.xlu1 %1314, %v894_v48   ;;  %v1342_v30 = vpop.eup %1341  ;;  %v900_v57 = vadd.f32 %v880_v42, %v836_v24  ;;  %v884_v54 = vmul.f32 0.6931472, %v1340_v6 }
 0x307   : > { %927 = vperm.xlu0 %1313, %v893_v16   ;;  %v1344_v31 = vpop.eup %1343  ;;  %v899_v15 = vadd.f32 %v878_v13, %v835_v14  ;;  %v882_v45 = vmul.f32 0.6931472, %v1342_v30 }
 0x308   : > { %v1346_v38 = vpop.eup %1345  ;;  %v902_v33 = vadd.f32 %v884_v54, %v838_v61  ;;  %v888_v28 = vmul.f32 0.6931472, %v1344_v31 }
 0x309   : > { %v901_v20 = vadd.f32 %v882_v45, %v837_v27  ;;  %v886_v26 = vmul.f32 0.6931472, %v1346_v38 }
 0x30a   : > { %942 = vperm.xlu1 %1314, %v896_v58   ;;  %v904_v9 = vadd.f32 %v888_v28, %v840_v5 }
 0x30b   : > { %937 = vperm.xlu0 %1313, %v895_v25   ;;  %v903_v7 = vadd.f32 %v886_v26, %v839_v32 }
 0x30e   : > { %952 = vperm.xlu1 %1314, %v898_v23  }
 0x30f   : > { %947 = vperm.xlu0 %1313, %v897_v18  }
 0x312   : > { %962 = vperm.xlu1 %1314, %v900_v57  }
 0x313   : > { %957 = vperm.xlu0 %1313, %v899_v15  }
 0x316   : > { %972 = vperm.xlu1 %1314, %v902_v33  }
 0x317   : > { %967 = vperm.xlu0 %1313, %v901_v20  }
 0x31a   : > { %982 = vperm.xlu1 %1314, %v904_v9  }
 0x31b   : > { %977 = vperm.xlu0 %1313, %v903_v7  }
 0x37d   : > { %v918_v11 = vpop.permute.xlu1 %917 }
 0x37e   : > { %v987_v17 = vsub.f32 %v1525_v35, %v918_v11  ;;  %v908_v29 = vpop.permute.xlu0 %907 }
 0x37f   : > { %v985_v34 = vsub.f32 %v1529_v39, %v908_v29 }
 0x380   : > { %1003 = vst [vmem:[#allocation4 + $0x10] sm:$0xff] %v987_v17 }
 0x381   : > { %1001 = vst [vmem:[#allocation4] sm:$0xff] %v985_v34  ;;  %v923_v46 = vpop.permute.xlu1 %922 }
 0x382   : > { %v988_v37 = vsub.f32 %v1533_v43, %v923_v46  ;;  %v913_v49 = vpop.permute.xlu0 %912 }
 0x383   : > { %v986_v48 = vsub.f32 %v1537_v47, %v913_v49  ;;  %v1940_v47 = vld [vmem:[#allocation7_spill] sm:$0xff] }
 0x384   : > { %1004 = vst [vmem:[#allocation4 + $0x18] sm:$0xff] %v988_v37 }
 0x385   : > { %1002 = vst [vmem:[#allocation4 + $0x8] sm:$0xff] %v986_v48  ;;  %v933_v4 = vpop.permute.xlu1 %932 }
 0x386   : > { %v990_v8 = vsub.f32 %v1553_v63, %v933_v4  ;;  %v928_v10 = vpop.permute.xlu0 %927 }
 0x387   : > { %v989_v16 = vsub.f32 %v1545_v55, %v928_v10 }
 0x388   : > { %1006 = vst [vmem:[#allocation4 + $0x28] sm:$0xff] %v990_v8 }
 0x389   : > { %1005 = vst [vmem:[#allocation4 + $0x20] sm:$0xff] %v989_v16  ;;  %v943_v35 = vpop.permute.xlu1 %942 }
 0x38a   : > { %v992_v39 = vsub.f32 %v1549_v59, %v943_v35  ;;  %v938_v50 = vpop.permute.xlu0 %937 }
 0x38b   : > { %v991_v62 = vsub.f32 %v1541_v51, %v938_v50 }
 0x38c   : > { %1008 = vst [vmem:[#allocation4 + $0x38] sm:$0xff] %v992_v39 }
 0x38d   : > { %1007 = vst [vmem:[#allocation4 + $0x30] sm:$0xff] %v991_v62  ;;  %v953_v43 = vpop.permute.xlu1 %952 }
 0x38e   : > { %v994_v53 = vsub.f32 %v1940_v47, %v953_v43  ;;  %v948_v1 = vpop.permute.xlu0 %947 }
 0x38f   : > { %v993_v21 = vsub.f32 %v1531_v40, %v948_v1 }
 0x390   : > { %1010 = vst [vmem:[#allocation4 + $0x48] sm:$0xff] %v994_v53 }
 0x391   : > { %1009 = vst [vmem:[#allocation4 + $0x40] sm:$0xff] %v993_v21  ;;  %v963_v63 = vpop.permute.xlu1 %962 }
 0x392   : > { %v996_v55 = vsub.f32 %v1535_v44, %v963_v63  ;;  %v958_v58 = vpop.permute.xlu0 %957 }
 0x393   : > { %v995_v12 = vsub.f32 %v1527_v36, %v958_v58 }
 0x394   : > { %1012 = vst [vmem:[#allocation4 + $0x58] sm:$0xff] %v996_v55 }
 0x395   : > { %1011 = vst [vmem:[#allocation4 + $0x50] sm:$0xff] %v995_v12  ;;  %v973_v59 = vpop.permute.xlu1 %972 }
 0x396   : > { %v998_v51 = vsub.f32 %v1555_v0, %v973_v59  ;;  %v968_v19 = vpop.permute.xlu0 %967 }
 0x397   : > { %v997_v25 = vsub.f32 %v1547_v56, %v968_v19 }
 0x398   : > { %1014 = vst [vmem:[#allocation4 + $0x68] sm:$0xff] %v998_v51 }
 0x399   : > { %1013 = vst [vmem:[#allocation4 + $0x60] sm:$0xff] %v997_v25  ;;  %v983_v2 = vpop.permute.xlu1 %982 }
 0x39a   : > { %v1000_v40 = vsub.f32 %v1551_v60, %v983_v2  ;;  %v978_v22 = vpop.permute.xlu0 %977 }
 0x39b   : > { %v999_v41 = vsub.f32 %v1543_v52, %v978_v22 }
 0x39c   : > { %1016 = vst [vmem:[#allocation4 + $0x78] sm:$0xff] %v1000_v40 }
 0x39d   : > { %1015 = vst [vmem:[#allocation4 + $0x70] sm:$0xff] %v999_v41 }
 0x39e PF: > { %p1883_p7 = scmp.eq.s32.totalorder %s1115_s15, 1  ;;  %s1405_s23 = smov [#allocation4]  }
 0x39f   : > { %s1027_s24 = sshll.u32 %s1405_s23, 4  ;;  %s1028_s24 = int_to_ptr.vmem [resolvable:$true] %s1027_s24 }
 0x3a0   : > { %s1347_s25 = scalar_lea.vmem %s1028_s24, 2048  ;;  %p1354_p11 = scmp.lt.s32.totalorder %s1028_s24, %s1028_s24 }
 0x3a1   : > { %p1348_p8 = scmp.ne.s32.totalorder %s1028_s24, %s1347_s25  ;;  %p1355_p12 = scmp.lt.s32.totalorder %s1347_s25, %s1347_s25 }
 0x3a3   : > { %p1349_p9 = pnand %p1348_p8, %p1883_p7  ;;  %p1356_p13 = por %p1355_p12, %p1354_p11 }
 0x3a5   : > { %p1350_p10 = pneg %p1349_p9 }
 0x3a7   : > { %p1357_p0 = pnand %p1356_p13, %p1350_p10 }
 0x3a9   : > { %1360 = shalt.err (!%p1357_p0)
}
 0x3aa   : > { %s1361_s15 = scalar_lea.hbm %s1921_s3, 2048 }
 0x3ab   : > { %p1362_p1 = scmp.ne.s32.totalorder %s1921_s3, %s1361_s15  ;;  %p1367_p4 = scmp.lt.u32.totalorder %s1361_s15, %s1921_s3 }
 0x3ad   : > { %p1363_p2 = pnand %p1362_p1, %p1883_p7 }
 0x3af   : > { %p1364_p3 = pneg %p1363_p2 }
 0x3b1   : > { %p1369_p5 = pnand %p1367_p4, %p1364_p3 }
 0x3b3   : > { %1372 = shalt.err (!%p1369_p5)
}
 0x3b4   : > { %s1406_s5 = smov 128   ;;  %s1407_s6 = smov 8  }
 0x3b5   : > { %1203 = dma.vmem_to_hbm [thread:$0]  (%p1883_p7), %s1028_s24, 2048, %s1921_s3, [#allocation5], %s1406_s5, %s1406_s5, %s1407_s6  }
 0x3b6   : > { %1386 = dma.done.wait (%p1883_p7), [#allocation5], 2048  }
 0x3b7   : > { %1388 = vsyncadd (%p1883_p7), [#allocation5], 4294965248 }
 0x3b8 PF: > { %s14_s14 = sadd.s32 1, %s1399_s14   ;;  %s1942_s12 = smov %s1395_s13 }
 0x3b9   : > { %p11_p6 = scmp.ge.s32.totalorder %s14_s14, 4   ;;  %s1943_s13 = smov %s1945_s16 }
 0x3bb   :  { %13 = sbr.rel (!%p11_p6) target bundleno = 2 (0x2), region = 78 }
 0x3c2   :  { %1043 = vsyncpa [#allocation5], 1 }
 0x3c3   :  { %1045 = vsyncpa [#allocation5 + $0x1], 1 }

// kernel: seq_vae_forward.4
= control target key start
LH: loop header
LB: loop body
LE: loop exit
PB: predicated region body
PF: predicated region fallthrough
CT: control target
= control target key end

     0   :  { %s6481_s0 = inlined_call_operand.vmem [shape: f32[8,16,384], index: 0, kind: input, shape index: {}]   ;;  %s6482_s1 = inlined_call_operand.vmem [shape: bf16[128,384], index: 1, kind: input, shape index: {}]   ;;  %s6483_s2 = inlined_call_operand.vmem [shape: f32[1,384], index: 2, kind: input, shape index: {}]   ;;  %s6484_s3 = inlined_call_operand.vmem [shape: bf16[128,384], index: 3, kind: input, shape index: {}]   ;;  %s6485_s4 = inlined_call_operand.vmem [shape: bf16[128,384], index: 4, kind: input, shape index: {}]   ;;  %s6486_s5 = inlined_call_operand.vmem [shape: f32[1,128], index: 5, kind: input, shape index: {}]   ;;  %s6487_s6 = inlined_call_operand.vmem [shape: f32[1,128], index: 6, kind: input, shape index: {}]   ;;  %s6488_s7 = inlined_call_operand.vmem [shape: f32[16,256], index: 7, kind: input, shape index: {}]   ;;  %s6489_s8 = inlined_call_operand.hbm [shape: f32[8,16,128], index: 8, kind: output, shape index: {0}]   ;;  %s6490_s9 = inlined_call_operand.vmem [shape: f32[16,256], index: 9, kind: output, shape index: {1}]  }
   0x1   :  { %6495 = sst [smem:[#allocation10_spill]] %s6481_s0 }
   0x2   :  { %15 = vsyncpa [#allocation4], 0 }
   0x3   :  { %17 = vsyncpa [#allocation4 + $0x1], 0  ;;  %s5081_s30 = smov 0   ;;  %s5083_s10 = smov 0  }
   0x4   :  { %s5085_s11 = smov 0   ;;  %s5087_s12 = smov 0  }
   0x5   :  { %s5089_s13 = smov 0   ;;  %s5091_s14 = smov 0  }
   0x6   :  { %s5093_s15 = smov 0   ;;  %s5095_s16 = smov 0  }
   0x7 LB: > { %6496 = sst [smem:[#allocation6_spill]] %s5018_s15  ;;  %s3808_s17 = sadd.s32 4294967295, %s5022_s16   ;;  %s5022_s16 = sphi %s5095_s16, %s23_s16   ;;  %s5018_s15 = sphi %s5093_s15, %s6507_s15   ;;  %s5014_s14 = sphi %s5091_s14, %s6512_s14   ;;  %s5010_s13 = sphi %s5089_s13, %s6505_s13   ;;  %s5006_s12 = sphi %s5087_s12, %s6511_s12   ;;  %s5002_s11 = sphi %s5085_s11, %s6510_s11   ;;  %s4998_s10 = sphi %s5083_s10, %s6509_s10   ;;  %s4994_s30 = sphi %s5081_s30, %s6508_s30  }
   0x8   : > { %s3809_s18 = sadd.s32 4294967294, %s5022_s16   ;;  %s32_s19 = sadd.s32 1, %s5014_s14 }
   0x9   : > { %p33_p0 = scmp.ge.s32.totalorder %s32_s19, 2  ;;  %s35_s20 = sadd.s32 1, %s5018_s15 }
   0xa   : > { %p51_p1 = scmp.ne.s32.totalorder %s5002_s11, %s4998_s10  ;;  %p52_p2 = scmp.eq.s32.totalorder %s5022_s16, 0 }
   0xb   : > { %s6514_s19 = smov (%p33_p0, %s32_s19), 0  ;;  %s6516_s20 = smov (!%p33_p0, %s35_s20), %s5018_s15 }
   0xc   : > { %6497 = sst [smem:[#allocation7_spill]] %s6514_s19  ;;  %s39_s21 = ssub.s32 %s5014_s14, %s6514_s19 }
   0xd   : > { %p5133_p3 = por %p52_p2, %p51_p1  ;;  %p37_p4 = scmp.ge.s32.totalorder %s6516_s20, 2 }
   0xe   : > { %p235_p5 = scmp.eq.s32.totalorder %s3808_s17, 3  ;;  %p240_p6 = scmp.ne.s32.totalorder %s4998_s10, %s4994_s30 }
   0xf   : > { %p241_p7 = scmp.eq.s32.totalorder %s3809_s18, 3  ;;  %s6518_s20 = smov (%p37_p4, %s6516_s20), 0 }
  0x10   : > { %6499 = sst [smem:[#allocation8_spill]] %s6518_s20  ;;  %p5141_p8 = por %p235_p5, %p51_p1 }
  0x11   : > { %p5145_p9 = por %p241_p7, %p240_p6  ;;  %s40_s25 = ssub.s32 %s5018_s15, %s6518_s20 }
  0x12   : > { %s41_s26 = sor.u32 %s40_s25, %s39_s21  ;;  %s44_s27 = sadd.s32 1, %s5002_s11 }
  0x13   : > { %s6501_s24 = scalar_select %p5145_p9, 1, 0 }
  0x14   : > { %p42_p10 = scmp.eq.s32.totalorder %s41_s26, 0  ;;  %p3811_p11 = scmp.ge.s32.totalorder %s5022_s16, 4 }
  0x15   : > { %6502 = sst [smem:[#allocation9_spill]] %s6501_s24 }
  0x16   : > { %s5153_s28 = scalar_select %p42_p10, %s5002_s11, %s44_s27  }
  0x17   : > { %301 = sbr.rel (%p3811_p11) target bundleno = 45 (0x2d), region = 40 }
  0x1e   : > { %304 = sbr.rel (!%p5133_p3) target bundleno = 45 (0x2d), region = 44  ;;  %s306_s29 = sand.u32 (%p5133_p3), 1, %s5002_s11  }
  0x1f   : > { %s4528_s17 = smul.u32 (%p5133_p3), 3, %s5018_s15  ;;  %s6503_s0 = sld [smem:[#allocation10_spill]] (%p5133_p3) }
  0x20   : > { %s4527_s18 = smul.u32 (%p5133_p3), 96, %s306_s29 }
  0x21   : > { %s4529_s19 = smul.u32 (%p5133_p3), 24, %s5014_s14 }
  0x22   : > { %s308_s27 = scalar_lea.vmem (%p5133_p3), [#allocation2], %s4527_s18 }
  0x23   : > { %s312_s24 = sadd.s32 (%p5133_p3), %s4529_s19, %s4528_s17 }
  0x24   : > { %s3814_s20 = sshll.u32 (%p5133_p3), %s312_s24, 3 }
  0x25   : > { %s314_s26 = scalar_lea.vmem %s6503_s0, %s3814_s20 }
  0x26   : > { %v327_v0 = vld [vmem:[%s314_s26] sm:$0xff]  ;;  %v329_v1 = vld [vmem:[%s314_s26 + $0x8] sm:$0xff]  ;;  %v331_v2 = vld [vmem:[%s314_s26 + $0x10] sm:$0xff] }
  0x27   : > { %328 = vst [vmem:[%s308_s27] sm:$0xff] %v327_v0  ;;  %330 = vst [vmem:[%s308_s27 + $0x8] sm:$0xff] %v329_v1  ;;  %v333_v3 = vld [vmem:[%s314_s26 + $0x30] sm:$0xff]  ;;  %v335_v4 = vld [vmem:[%s314_s26 + $0x38] sm:$0xff] }
  0x28   : > { %332 = vst [vmem:[%s308_s27 + $0x10] sm:$0xff] %v331_v2  ;;  %v337_v5 = vld [vmem:[%s314_s26 + $0x40] sm:$0xff]  ;;  %334 = vst [vmem:[%s308_s27 + $0x18] sm:$0xff] %v333_v3  ;;  %v341_v7 = vld [vmem:[%s314_s26 + $0x68] sm:$0xff] }
  0x29   : > { %336 = vst [vmem:[%s308_s27 + $0x20] sm:$0xff] %v335_v4  ;;  %338 = vst [vmem:[%s308_s27 + $0x28] sm:$0xff] %v337_v5  ;;  %v339_v6 = vld [vmem:[%s314_s26 + $0x60] sm:$0xff]  ;;  %v343_v8 = vld [vmem:[%s314_s26 + $0x70] sm:$0xff] }
  0x2a   : > { %340 = vst [vmem:[%s308_s27 + $0x30] sm:$0xff] %v339_v6  ;;  %342 = vst [vmem:[%s308_s27 + $0x38] sm:$0xff] %v341_v7  ;;  %v345_v9 = vld [vmem:[%s314_s26 + $0x90] sm:$0xff]  ;;  %v347_v10 = vld [vmem:[%s314_s26 + $0x98] sm:$0xff] }
  0x2b   : > { %344 = vst [vmem:[%s308_s27 + $0x40] sm:$0xff] %v343_v8  ;;  %v349_v11 = vld [vmem:[%s314_s26 + $0xa0] sm:$0xff]  ;;  %346 = vst [vmem:[%s308_s27 + $0x48] sm:$0xff] %v345_v9 }
  0x2c   : > { %348 = vst [vmem:[%s308_s27 + $0x50] sm:$0xff] %v347_v10  ;;  %350 = vst [vmem:[%s308_s27 + $0x58] sm:$0xff] %v349_v11 }
  0x2d PF: > { %p3815_p12 = scmp.ge.s32.totalorder %s5022_s16, 1  ;;  %p363_p13 = scmp.lt.s32.totalorder %s5022_s16, 5 }
  0x2f   : > { %p364_p0 = pnand %p3815_p12, %p363_p13 }
  0x30   : > { %s5167_s19 = sand.u32 (!%p364_p0), 1, %s4998_s10   ;;  %p416_p1 = scmp.lt.s32.totalorder (!%p364_p0), %s5010_s13, 1 }
  0x31   : > { %367 = sbr.rel (%p364_p0) target bundleno = 1641 (0x669), region = 71  ;;  %s3816_s22 = sshll.u32 (!%p364_p0), %s5167_s19, 5 }
  0x32   : > { %s4530_s20 = smul.u32 (!%p364_p0), 96, %s5167_s19  ;;  %s5183_s15 = scalar_lea.vmem (!%p364_p0), [#allocation3], %s3816_s22 }
  0x33   : > { %p3821_p2 = scmp.ne.s32.totalorder (!%p364_p0), %s5006_s12, 0 }
  0x34   : > { %s5181_s0 = scalar_lea.vmem (!%p364_p0), [#allocation2], %s4530_s20 }
  0x38   : > { %s417_s24 = scalar_select %p416_p1, %s5010_s13, 1 }
  0x39   : > { %431 = sbr.rel (%p3821_p2) target bundleno = 64 (0x40), region = 79 }
  0x3a   : > { %s4152_s29 = sshll.u32 %s417_s24, 4 }
  0x3b   : > { %s420_s21 = scalar_lea.vmem %s6488_s7, %s4152_s29  ;;  %s5179_s27 = scalar_lea.vmem %s6490_s9, %s4152_s29 }
  0x3c   : > { %v432_v12 = vld [vmem:[%s420_s21] sm:$0xff] (!%p3821_p2)  ;;  %v433_v13 = vld [vmem:[%s420_s21 + $0x8] sm:$0xff] (!%p3821_p2) }
  0x3d   : > { %434 = vst [vmem:[%s5179_s27] sm:$0xff] (!%p3821_p2), %v432_v12  ;;  %435 = vst [vmem:[%s5179_s27 + $0x8] sm:$0xff] (!%p3821_p2), %v433_v13 }
  0x40 PF: > { %v5191_v14 = vld [vmem:[%s6484_s3 + $0x4] ss:$12 sps:$4 sm:$0xff]   ;;  %v5196_v15 = vld [vmem:[%s6484_s3] ss:$12 sps:$4 sm:$0xff]   ;;  %v5024_v16 = vmov 0.0   ;;  %v5025_v17 = vmov 0  }
  0x41   : > { %4263 = vmatprep.subr.bf16.mxu1 %v5024_v16  ;;  %634 = vmatprep.mubr.bf16.mxu0 %v5025_v17  ;;  %v5204_v18 = vld [vmem:[%s6484_s3 + $0x1c] ss:$12 sps:$4 sm:$0xff]   ;;  %vm5026_vm0 = vmmov 0   ;;  %v5212_v19 = vld [vmem:[%s6484_s3 + $0x18] ss:$12 sps:$4 sm:$0xff]   ;;  %s4154_s29 = sshll.u32 %s5006_s12, 3 }
  0x42   : > { %602 = vmatprep.subr.bf16.mxu0 %v5191_v14  ;;  %4279 = vmatprep.mubr.msk.bf16.mxu1 %vm5026_vm0, %v5024_v16  ;;  %v5218_v20 = vld [vmem:[%s6484_s3 + $0x34] ss:$12 sps:$4 sm:$0xff]   ;;  %v5224_v21 = vld [vmem:[%s6484_s3 + $0x30] ss:$12 sps:$4 sm:$0xff]   ;;  %v5230_v22 = vld [vmem:[%s6484_s3 + $0x4c] ss:$12 sps:$4 sm:$0xff]   ;;  %s3681_s20 = sadd.s32 %s5010_s13, %s4154_s29 }
  0x43   : > { %603 = vmatpush1.bf16.msra.mxu0 %v5196_v15  ;;  %v4628_v23 = vld [vmem:[%s6484_s3 + $0x8] ss:$12 sps:$4 sm:$0xff]   ;;  %v5245_v25 = vld [vmem:[%s6484_s3 + $0x64] ss:$12 sps:$4 sm:$0xff]   ;;  %v4632_v26 = vld [vmem:[%s6484_s3 + $0x20] ss:$12 sps:$4 sm:$0xff]  }
  0x44   : > { %604 = vmatprep.subr.bf16.mxu0 %v5204_v18  ;;  %v5239_v24 = vld [vmem:[%s6484_s3 + $0x48] ss:$12 sps:$4 sm:$0xff]   ;;  %4264 = vmatpush3.bf16.msra.mxu1 %v4628_v23  ;;  %v5254_v27 = vld [vmem:[%s6484_s3 + $0x60] ss:$12 sps:$4 sm:$0xff]   ;;  %v4634_v28 = vld [vmem:[%s6484_s3 + $0x38] ss:$12 sps:$4 sm:$0xff]  }
  0x45   : > { %4265 = vmatprep.subr.bf16.mxu1 %v5024_v16  ;;  %v5264_v29 = vld [vmem:[%s6484_s3 + $0x7c] ss:$12 sps:$4 sm:$0xff]   ;;  %v5270_v30 = vld [vmem:[%s6484_s3 + $0x78] ss:$12 sps:$4 sm:$0xff]   ;;  %v5275_v31 = vld [vmem:[%s6484_s3 + $0x94] ss:$12 sps:$4 sm:$0xff]  }
  0x46   : > { %v4635_v32 = vld [vmem:[%s6484_s3 + $0x50] ss:$12 sps:$4 sm:$0xff]   ;;  %v4636_v34 = vld [vmem:[%s6484_s3 + $0x68] ss:$12 sps:$4 sm:$0xff]   ;;  %v5294_v35 = vld [vmem:[%s6484_s3 + $0xac] ss:$12 sps:$4 sm:$0xff]  }
  0x47   : > { %605 = vmatpush1.bf16.msra.mxu0 %v5212_v19  ;;  %v5286_v33 = vld [vmem:[%s6484_s3 + $0x90] ss:$12 sps:$4 sm:$0xff]   ;;  %v5302_v36 = vld [vmem:[%s6484_s3 + $0xa8] ss:$12 sps:$4 sm:$0xff]   ;;  %v5305_v37 = vld [vmem:[%s5179_s27] sm:$0xff]  ;;  %s4149_s22 = sshll.u32 %s3681_s20, 7 }
  0x48   : > { %606 = vmatprep.subr.bf16.mxu0 %v5218_v20  ;;  %4266 = vmatpush3.bf16.msra.mxu1 %v4632_v26  ;;  %v4637_v38 = vld [vmem:[%s6484_s3 + $0x80] ss:$12 sps:$4 sm:$0xff]   ;;  %v4638_v39 = vld [vmem:[%s6484_s3 + $0x98] ss:$12 sps:$4 sm:$0xff]   ;;  %v441_v40 = vpack.c.bf16 %v5305_v37, %v5305_v37  ;;  %v4639_v41 = vld [vmem:[%s6484_s3 + $0xb0] ss:$12 sps:$4 sm:$0xff]   ;;  %s6423_s25 = scalar_lea.hbm %s6489_s8, %s4149_s22 }
  0x49   : > { %4267 = vmatprep.subr.bf16.mxu1 %v5024_v16  ;;  %v5331_v42 = vld [vmem:[%s6482_s1 + $0x4] ss:$12 sps:$4 sm:$0xff]   ;;  %v5336_v43 = vld [vmem:[%s6482_s1] ss:$12 sps:$4 sm:$0xff]   ;;  %v4643_v44 = vld [vmem:[%s6482_s1 + $0x8] ss:$12 sps:$4 sm:$0xff]  }
  0x4a   : > { %v5346_v45 = vld [vmem:[%s6482_s1 + $0x18] ss:$12 sps:$4 sm:$0xff]   ;;  %v5351_v46 = vld [vmem:[%s6482_s1 + $0x1c] ss:$12 sps:$4 sm:$0xff]   ;;  %v4647_v47 = vld [vmem:[%s6482_s1 + $0x20] ss:$12 sps:$4 sm:$0xff]  }
  0x4b   : > { %607 = vmatpush1.bf16.msra.mxu0 %v5224_v21  ;;  %v5362_v48 = vld [vmem:[%s6482_s1 + $0x34] ss:$12 sps:$4 sm:$0xff]   ;;  %v5368_v49 = vld [vmem:[%s6482_s1 + $0x30] ss:$12 sps:$4 sm:$0xff]   ;;  %v4651_v50 = vld [vmem:[%s6482_s1 + $0x38] ss:$12 sps:$4 sm:$0xff]  }
  0x4c   : > { %608 = vmatprep.subr.bf16.mxu0 %v5230_v22  ;;  %4268 = vmatpush3.bf16.msra.mxu1 %v4634_v28  ;;  %v5378_v51 = vld [vmem:[%s6482_s1 + $0x4c] ss:$12 sps:$4 sm:$0xff]   ;;  %v5384_v52 = vld [vmem:[%s6482_s1 + $0x48] ss:$12 sps:$4 sm:$0xff]   ;;  %v4655_v53 = vld [vmem:[%s6482_s1 + $0x50] ss:$12 sps:$4 sm:$0xff]  }
  0x4d   : > { %4269 = vmatprep.subr.bf16.mxu1 %v5024_v16  ;;  %v5394_v54 = vld [vmem:[%s6482_s1 + $0x64] ss:$12 sps:$4 sm:$0xff]   ;;  %v5400_v55 = vld [vmem:[%s6482_s1 + $0x60] ss:$12 sps:$4 sm:$0xff]   ;;  %v4659_v56 = vld [vmem:[%s6482_s1 + $0x68] ss:$12 sps:$4 sm:$0xff]  }
  0x4e   : > { %v5409_v57 = vld [vmem:[%s6482_s1 + $0x7c] ss:$12 sps:$4 sm:$0xff]   ;;  %v5415_v58 = vld [vmem:[%s6482_s1 + $0x78] ss:$12 sps:$4 sm:$0xff]   ;;  %v4663_v59 = vld [vmem:[%s6482_s1 + $0x80] ss:$12 sps:$4 sm:$0xff]  }
  0x4f   : > { %609 = vmatpush1.bf16.msra.mxu0 %v5239_v24  ;;  %v5425_v60 = vld [vmem:[%s6482_s1 + $0x94] ss:$12 sps:$4 sm:$0xff]   ;;  %v5431_v61 = vld [vmem:[%s6482_s1 + $0x90] ss:$12 sps:$4 sm:$0xff]   ;;  %v4667_v62 = vld [vmem:[%s6482_s1 + $0x98] ss:$12 sps:$4 sm:$0xff]  }
  0x50   : > { %610 = vmatprep.subr.bf16.mxu0 %v5245_v25  ;;  %4270 = vmatpush3.bf16.msra.mxu1 %v4635_v32  ;;  %v5441_v63 = vld [vmem:[%s6482_s1 + $0xac] ss:$12 sps:$4 sm:$0xff]   ;;  %v5447_v0 = vld [vmem:[%s6482_s1 + $0xa8] ss:$12 sps:$4 sm:$0xff]   ;;  %v4671_v1 = vld [vmem:[%s6482_s1 + $0xb0] ss:$12 sps:$4 sm:$0xff]  }
  0x51   : > { %4271 = vmatprep.subr.bf16.mxu1 %v5024_v16  ;;  %v5457_v2 = vld [vmem:[%s6485_s4 + $0x4] ss:$12 sps:$4 sm:$0xff]   ;;  %v439_v6 = vld [vmem:[%s5181_s0 + $0x8] sm:$0xff]  ;;  %s3684_s18 = sshll.u32 %s5183_s15, 4  ;;  %s3664_s12 = scalar_lea.sflag [#allocation4], %s5167_s19  ;;  %s6425_s18 = int_to_ptr.vmem [resolvable:$true] %s3684_s18 }
  0x52   : > { %v438_v3 = vld [vmem:[%s5181_s0] sm:$0xff]  ;;  %s4928_s13 = scalar_lea.vmem %s6425_s18, 512  ;;  %s5027_s26 = smov [#allocation3]  }
  0x53   : > { %611 = vmatpush1.bf16.msra.mxu0 %v5254_v27  ;;  %p4929_p3 = scmp.ne.s32.totalorder %s6425_s18, %s4928_s13  ;;  %s4932_s24 = sshll.u32 %s5027_s26, 4  ;;  %s4933_s24 = int_to_ptr.vmem [resolvable:$false] %s4932_s24 }
  0x54   : > { %612 = vmatprep.subr.bf16.mxu0 %v5264_v29  ;;  %4272 = vmatpush3.bf16.msra.mxu1 %v4636_v34  ;;  %s4934_s17 = scalar_lea.vmem %s4933_s24, 1024  ;;  %p4935_p6 = scmp.lt.s32.totalorder %s6425_s18, %s4933_s24 }
  0x55   : > { %4273 = vmatprep.subr.bf16.mxu1 %v5024_v16  ;;  %p4930_p4 = pnand %p4929_p3, %p5141_p8  ;;  %p4936_p7 = scmp.lt.s32.totalorder %s4934_s17, %s4928_s13 }
  0x57   : > { %613 = vmatpush1.bf16.msra.mxu0 %v5270_v30  ;;  %p4931_p5 = pneg %p4930_p4  ;;  %p4937_p10 = por %p4936_p7, %p4935_p6 }
  0x58   : > { %614 = vmatprep.subr.bf16.mxu0 %v5275_v31  ;;  %4274 = vmatpush3.bf16.msra.mxu1 %v4637_v38 }
  0x59   : > { %4275 = vmatprep.subr.bf16.mxu1 %v5024_v16  ;;  %p4938_p11 = pnand %p4937_p10, %p4931_p5 }
  0x5b   : > { %615 = vmatpush1.bf16.msra.mxu0 %v5286_v33 }
  0x5c   : > { %616 = vmatprep.subr.bf16.mxu0 %v5294_v35  ;;  %4276 = vmatpush3.bf16.msra.mxu1 %v4638_v39  ;;  %v5467_v39 = vld [vmem:[%s6486_s5] ss:$0 sm:$0xff] }
  0x5d   : > { %4277 = vmatprep.subr.bf16.mxu1 %v5024_v16 }
  0x5f   : > { %617 = vmatpush1.bf16.msra.mxu0 %v5302_v36 }
  0x60   : > { %4278 = vmatpush3.bf16.msra.mxu1 %v4639_v41  ;;  %890 = vmatprep.subr.bf16.mxu0 %v5331_v42 }
  0x61   : > { %4283 = vmatprep.subr.bf16.mxu1 %v5024_v16 }
  0x62   : > { %635 = vmatmul.mubr.bf16.vlgmr.msra.gmra.mrb[0].mxu0 %v441_v40 }
  0x63   : > { %922 = vmatprep.mubr.bf16.mxu0 %v5025_v17  ;;  %4280 = vmatmul.mubr.bf16.vlgmr.msra.gmra.mrb[0].mxu1 %v441_v40 }
  0x64   : > { %4299 = vmatprep.mubr.msk.bf16.mxu1 %vm5026_vm0, %v5024_v16  ;;  %891 = vmatpush1.bf16.msra.mxu0 %v5336_v43 }
  0x65   : > { %4284 = vmatpush3.bf16.msra.mxu1 %v4643_v44  ;;  %892 = vmatprep.subr.bf16.mxu0 %v5351_v46 }
  0x66   : > { %4285 = vmatprep.subr.bf16.mxu1 %v5024_v16 }
  0x68   : > { %893 = vmatpush1.bf16.msra.mxu0 %v5346_v45 }
  0x69   : > { %4286 = vmatpush3.bf16.msra.mxu1 %v4647_v47  ;;  %894 = vmatprep.subr.bf16.mxu0 %v5362_v48  ;;  %v440_v47 = vld [vmem:[%s5181_s0 + $0x10] sm:$0xff] }
  0x6a   : > { %4287 = vmatprep.subr.bf16.mxu1 %v5024_v16 }
  0x6c   : > { %895 = vmatpush1.bf16.msra.mxu0 %v5368_v49 }
  0x6d   : > { %4288 = vmatpush3.bf16.msra.mxu1 %v4651_v50  ;;  %896 = vmatprep.subr.bf16.mxu0 %v5378_v51 }
  0x6e   : > { %4289 = vmatprep.subr.bf16.mxu1 %v5024_v16 }
  0x70   : > { %897 = vmatpush1.bf16.msra.mxu0 %v5384_v52 }
  0x71   : > { %4290 = vmatpush3.bf16.msra.mxu1 %v4655_v53  ;;  %898 = vmatprep.subr.bf16.mxu0 %v5394_v54 }
  0x72   : > { %4291 = vmatprep.subr.bf16.mxu1 %v5024_v16 }
  0x74   : > { %899 = vmatpush1.bf16.msra.mxu0 %v5400_v55 }
  0x75   : > { %4292 = vmatpush3.bf16.msra.mxu1 %v4659_v56  ;;  %900 = vmatprep.subr.bf16.mxu0 %v5409_v57 }
  0x76   : > { %4293 = vmatprep.subr.bf16.mxu1 %v5024_v16 }
  0x78   : > { %901 = vmatpush1.bf16.msra.mxu0 %v5415_v58 }
  0x79   : > { %4294 = vmatpush3.bf16.msra.mxu1 %v4663_v59  ;;  %902 = vmatprep.subr.bf16.mxu0 %v5425_v60 }
  0x7a   : > { %4295 = vmatprep.subr.bf16.mxu1 %v5024_v16 }
  0x7c   : > { %903 = vmatpush1.bf16.msra.mxu0 %v5431_v61 }
  0x7d   : > { %4296 = vmatpush3.bf16.msra.mxu1 %v4667_v62  ;;  %904 = vmatprep.subr.bf16.mxu0 %v5441_v63 }
  0x7e   : > { %4297 = vmatprep.subr.bf16.mxu1 %v5024_v16 }
  0x80   : > { %905 = vmatpush1.bf16.msra.mxu0 %v5447_v0 }
  0x81   : > { %4298 = vmatpush3.bf16.msra.mxu1 %v4671_v1  ;;  %1132 = vmatprep.subr.bf16.mxu0 %v5457_v2 }
  0x82   : > { %4303 = vmatprep.subr.bf16.mxu1 %v5024_v16 }
 0x135   : > { %v636_v4 = vpop.f32.mrb[0].mxu0 }
 0x136   : > { %v683_v5 = vadd.f32 %v636_v4, %v438_v3  ;;  %v638_v7 = vpop.f32.mrb[1].mxu0  ;;  %v677_v13 = vpop.f32.mrb[0].mxu1 }
 0x137   : > { %v640_v8 = vpop.f32.mrb[2].mxu0  ;;  %v690_v11 = vadd.f32 %v638_v7, %v439_v6  ;;  %v4281_v23 = vpop.f32.mrb[1].mxu1  ;;  %v704_v41 = vadd.f32 %v5467_v39, %v677_v13  ;;  %v4675_v6 = vld [vmem:[%s6485_s4 + $0x8] ss:$12 sps:$4 sm:$0xff]   ;;  %v5526_v13 = vld [vmem:[%s6485_s4 + $0x4c] ss:$12 sps:$4 sm:$0xff]  }
 0x138   : > { %v3846_v9 = vmul.f32 -1.442695, %v683_v5  ;;  %v641_v10 = vpop.f32.mrb[3].mxu0  ;;  %v680_v26 = vpop.f32.mrb[2].mxu1  ;;  %v5477_v5 = vld [vmem:[%s6485_s4] ss:$12 sps:$4 sm:$0xff]  }
 0x139   : > { %v3847_v12 = vmul.f32 -1.442695, %v690_v11  ;;  %v4282_v28 = vpop.f32.mrb[3].mxu1  ;;  %v5489_v8 = vld [vmem:[%s6485_s4 + $0x1c] ss:$12 sps:$4 sm:$0xff]  }
 0x13a   : > { %4848 = vpow2.f32 %v3846_v9  ;;  %v4679_v9 = vld [vmem:[%s6485_s4 + $0x20] ss:$12 sps:$4 sm:$0xff]   ;;  %v5516_v11 = vld [vmem:[%s6485_s4 + $0x30] ss:$12 sps:$4 sm:$0xff]   ;;  %v5532_v23 = vld [vmem:[%s6485_s4 + $0x48] ss:$12 sps:$4 sm:$0xff]  }
 0x13b   : > { %4850 = vpow2.f32 %v3847_v12  ;;  %v5507_v10 = vld [vmem:[%s6485_s4 + $0x34] ss:$12 sps:$4 sm:$0xff]   ;;  %v4683_v12 = vld [vmem:[%s6485_s4 + $0x38] ss:$12 sps:$4 sm:$0xff]   ;;  %v4687_v26 = vld [vmem:[%s6485_s4 + $0x50] ss:$12 sps:$4 sm:$0xff]  }
 0x13c   : > { %v5542_v28 = vld [vmem:[%s6485_s4 + $0x64] ss:$12 sps:$4 sm:$0xff]  }
 0x144   : > { %v4849_v32 = vpop.eup %4848 }
 0x145   : > { %v687_v34 = vadd.f32 1.0, %v4849_v32  ;;  %v4851_v38 = vpop.eup %4850  ;;  %v5548_v32 = vld [vmem:[%s6485_s4 + $0x60] ss:$12 sps:$4 sm:$0xff]  }
 0x146   : > { %v694_v40 = vadd.f32 1.0, %v4851_v38  ;;  %v5558_v38 = vld [vmem:[%s6485_s4 + $0x7c] ss:$12 sps:$4 sm:$0xff]  }
 0x147   : > { %4852 = vrcp.f32 %v687_v34  ;;  %v4691_v34 = vld [vmem:[%s6485_s4 + $0x68] ss:$12 sps:$4 sm:$0xff]  }
 0x148   : > { %4854 = vrcp.f32 %v694_v40  ;;  %v5564_v40 = vld [vmem:[%s6485_s4 + $0x78] ss:$12 sps:$4 sm:$0xff]  }
 0x151   : > { %v4853_v44 = vpop.eup %4852 }
 0x152   : > { %v705_v50 = vmul.f32 %v4853_v44, %v704_v41  ;;  %v4855_v56 = vpop.eup %4854  ;;  %v4695_v41 = vld [vmem:[%s6485_s4 + $0x80] ss:$12 sps:$4 sm:$0xff]  }
 0x153   : > { %v708_v59 = vsub.f32 1.0, %v4855_v56  ;;  %v710_v3 = vmul.f32 %v4855_v56, %v5305_v37  ;;  %v5497_v37 = vld [vmem:[%s6485_s4 + $0x18] ss:$12 sps:$4 sm:$0xff]   ;;  %v5574_v44 = vld [vmem:[%s6485_s4 + $0x94] ss:$12 sps:$4 sm:$0xff]  }
 0x154   : > { %v706_v53 = vadd.f32 %v705_v50, %v440_v47  ;;  %v5580_v47 = vld [vmem:[%s6485_s4 + $0x90] ss:$12 sps:$4 sm:$0xff]   ;;  %v4699_v50 = vld [vmem:[%s6485_s4 + $0x98] ss:$12 sps:$4 sm:$0xff]   ;;  %v5596_v56 = vld [vmem:[%s6485_s4 + $0xa8] ss:$12 sps:$4 sm:$0xff]  }
 0x156   : > { %4856 = vtanh.f32 %v706_v53  ;;  %v5590_v53 = vld [vmem:[%s6485_s4 + $0xac] ss:$12 sps:$4 sm:$0xff]  }
 0x160   : > { %v4857_v62 = vpop.eup %4856 }
 0x161   : > { %v709_v1 = vmul.f32 %v4857_v62, %v708_v59  ;;  %v4703_v59 = vld [vmem:[%s6485_s4 + $0xb0] ss:$12 sps:$4 sm:$0xff]   ;;  %v5602_v62 = vld [vmem:[%s5179_s27 + $0x8] sm:$0xff] }
 0x163   : > { %v5472_v4 = vadd.f32 %v710_v3, %v709_v1  ;;  %v971_v1 = vpack.c.bf16 %v5602_v62, %v5602_v62  ;;  %v4704_v3 = vld [vmem:[%s6484_s3 + $0x8] ss:$12 sps:$4 sm:$0xff]  }
 0x165   : > { %v5484_v7 = vpack.c.bf16 %v5472_v4, %v5472_v4 }
 0x167   : > { %923 = vmatmul.mubr.bf16.vlgmr.msra.gmra.mrb[4].mxu0 %v5484_v7  ;;  %4300 = vmatmul.mubr.bf16.vlgmr.msra.gmra.mrb[4].mxu1 %v5484_v7 }
 0x168   : > { %1133 = vmatpush1.bf16.msra.mxu0 %v5477_v5  ;;  %4304 = vmatpush3.bf16.msra.mxu1 %v4675_v6  ;;  %v4705_v6 = vld [vmem:[%s6484_s3 + $0x20] ss:$12 sps:$4 sm:$0xff]  }
 0x169   : > { %1134 = vmatprep.subr.bf16.mxu0 %v5489_v8  ;;  %4305 = vmatprep.subr.bf16.mxu1 %v5024_v16 }
 0x16a   : > { %1164 = vmatprep.mubr.bf16.mxu0 %v5025_v17  ;;  %4319 = vmatprep.mubr.msk.bf16.mxu1 %vm5026_vm0, %v5024_v16 }
 0x16c   : > { %1135 = vmatpush1.bf16.msra.mxu0 %v5497_v37  ;;  %4306 = vmatpush3.bf16.msra.mxu1 %v4679_v9 }
 0x16d   : > { %1136 = vmatprep.subr.bf16.mxu0 %v5507_v10  ;;  %4307 = vmatprep.subr.bf16.mxu1 %v5024_v16 }
 0x170   : > { %1137 = vmatpush1.bf16.msra.mxu0 %v5516_v11  ;;  %4308 = vmatpush3.bf16.msra.mxu1 %v4683_v12 }
 0x171   : > { %1138 = vmatprep.subr.bf16.mxu0 %v5526_v13  ;;  %4309 = vmatprep.subr.bf16.mxu1 %v5024_v16 }
 0x174   : > { %1139 = vmatpush1.bf16.msra.mxu0 %v5532_v23  ;;  %4310 = vmatpush3.bf16.msra.mxu1 %v4687_v26 }
 0x175   : > { %1140 = vmatprep.subr.bf16.mxu0 %v5542_v28  ;;  %4311 = vmatprep.subr.bf16.mxu1 %v5024_v16 }
 0x178   : > { %1141 = vmatpush1.bf16.msra.mxu0 %v5548_v32  ;;  %4312 = vmatpush3.bf16.msra.mxu1 %v4691_v34 }
 0x179   : > { %1142 = vmatprep.subr.bf16.mxu0 %v5558_v38  ;;  %4313 = vmatprep.subr.bf16.mxu1 %v5024_v16 }
 0x17c   : > { %1143 = vmatpush1.bf16.msra.mxu0 %v5564_v40  ;;  %4314 = vmatpush3.bf16.msra.mxu1 %v4695_v41 }
 0x17d   : > { %1144 = vmatprep.subr.bf16.mxu0 %v5574_v44  ;;  %4315 = vmatprep.subr.bf16.mxu1 %v5024_v16 }
 0x180   : > { %1145 = vmatpush1.bf16.msra.mxu0 %v5580_v47  ;;  %4316 = vmatpush3.bf16.msra.mxu1 %v4699_v50 }
 0x181   : > { %1146 = vmatprep.subr.bf16.mxu0 %v5590_v53  ;;  %4317 = vmatprep.subr.bf16.mxu1 %v5024_v16 }
 0x184   : > { %1147 = vmatpush1.bf16.msra.mxu0 %v5596_v56  ;;  %4318 = vmatpush3.bf16.msra.mxu1 %v4703_v59 }
 0x185   : > { %1407 = vmatprep.subr.bf16.mxu0 %v5191_v14  ;;  %4323 = vmatprep.subr.bf16.mxu1 %v5024_v16  ;;  %v4706_v14 = vld [vmem:[%s6484_s3 + $0x38] ss:$12 sps:$4 sm:$0xff]  }
 0x187   : > { %1165 = vmatmul.mubr.bf16.vlgmr.msra.gmra.mrb[4].mxu0 %v971_v1  ;;  %4320 = vmatmul.mubr.bf16.vlgmr.msra.gmra.mrb[8].mxu1 %v971_v1  ;;  %v5729_v1 = vld [vmem:[%s6487_s6] ss:$0 sm:$0xff] }
 0x188   : > { %1408 = vmatpush1.bf16.msra.mxu0 %v5196_v15  ;;  %4324 = vmatpush3.bf16.msra.mxu1 %v4704_v3  ;;  %v4707_v15 = vld [vmem:[%s6484_s3 + $0x50] ss:$12 sps:$4 sm:$0xff]  }
 0x189   : > { %1409 = vmatprep.subr.bf16.mxu0 %v5204_v18  ;;  %4325 = vmatprep.subr.bf16.mxu1 %v5024_v16  ;;  %v4708_v18 = vld [vmem:[%s6484_s3 + $0x68] ss:$12 sps:$4 sm:$0xff]  }
 0x18a   : > { %1439 = vmatprep.mubr.bf16.mxu0 %v5025_v17  ;;  %4339 = vmatprep.mubr.msk.bf16.mxu1 %vm5026_vm0, %v5024_v16 }
 0x18c   : > { %1410 = vmatpush1.bf16.msra.mxu0 %v5212_v19  ;;  %4326 = vmatpush3.bf16.msra.mxu1 %v4705_v6  ;;  %v4709_v19 = vld [vmem:[%s6484_s3 + $0x80] ss:$12 sps:$4 sm:$0xff]  }
 0x18d   : > { %1411 = vmatprep.subr.bf16.mxu0 %v5218_v20  ;;  %4327 = vmatprep.subr.bf16.mxu1 %v5024_v16  ;;  %v4710_v20 = vld [vmem:[%s6484_s3 + $0x98] ss:$12 sps:$4 sm:$0xff]  }
 0x190   : > { %1412 = vmatpush1.bf16.msra.mxu0 %v5224_v21  ;;  %4328 = vmatpush3.bf16.msra.mxu1 %v4706_v14  ;;  %v4711_v21 = vld [vmem:[%s6484_s3 + $0xb0] ss:$12 sps:$4 sm:$0xff]  }
 0x191   : > { %1413 = vmatprep.subr.bf16.mxu0 %v5230_v22  ;;  %4329 = vmatprep.subr.bf16.mxu1 %v5024_v16  ;;  %v4712_v22 = vld [vmem:[%s6482_s1 + $0x8] ss:$12 sps:$4 sm:$0xff]  }
 0x194   : > { %1414 = vmatpush1.bf16.msra.mxu0 %v5239_v24  ;;  %4330 = vmatpush3.bf16.msra.mxu1 %v4707_v15  ;;  %v4713_v24 = vld [vmem:[%s6482_s1 + $0x20] ss:$12 sps:$4 sm:$0xff]  }
 0x195   : > { %1415 = vmatprep.subr.bf16.mxu0 %v5245_v25  ;;  %4331 = vmatprep.subr.bf16.mxu1 %v5024_v16  ;;  %v4714_v25 = vld [vmem:[%s6482_s1 + $0x38] ss:$12 sps:$4 sm:$0xff]  }
 0x198   : > { %1416 = vmatpush1.bf16.msra.mxu0 %v5254_v27  ;;  %4332 = vmatpush3.bf16.msra.mxu1 %v4708_v18  ;;  %v4715_v27 = vld [vmem:[%s6482_s1 + $0x50] ss:$12 sps:$4 sm:$0xff]  }
 0x199   : > { %1417 = vmatprep.subr.bf16.mxu0 %v5264_v29  ;;  %4333 = vmatprep.subr.bf16.mxu1 %v5024_v16  ;;  %v4716_v29 = vld [vmem:[%s6482_s1 + $0x68] ss:$12 sps:$4 sm:$0xff]  }
 0x19c   : > { %1418 = vmatpush1.bf16.msra.mxu0 %v5270_v30  ;;  %4334 = vmatpush3.bf16.msra.mxu1 %v4709_v19  ;;  %v4717_v30 = vld [vmem:[%s6482_s1 + $0x80] ss:$12 sps:$4 sm:$0xff]  }
 0x19d   : > { %1419 = vmatprep.subr.bf16.mxu0 %v5275_v31  ;;  %4335 = vmatprep.subr.bf16.mxu1 %v5024_v16  ;;  %v4718_v31 = vld [vmem:[%s6482_s1 + $0x98] ss:$12 sps:$4 sm:$0xff]  }
 0x1a0   : > { %1420 = vmatpush1.bf16.msra.mxu0 %v5286_v33  ;;  %4336 = vmatpush3.bf16.msra.mxu1 %v4710_v20  ;;  %v4719_v33 = vld [vmem:[%s6482_s1 + $0xb0] ss:$12 sps:$4 sm:$0xff]  }
 0x1a1   : > { %1421 = vmatprep.subr.bf16.mxu0 %v5294_v35  ;;  %4337 = vmatprep.subr.bf16.mxu1 %v5024_v16  ;;  %v3900_v20 = vld [vmem:[%s5181_s0 + $0x18] sm:$0xff] }
 0x1a4   : > { %1422 = vmatpush1.bf16.msra.mxu0 %v5302_v36  ;;  %4338 = vmatpush3.bf16.msra.mxu1 %v4711_v21 }
 0x1a5   : > { %1695 = vmatprep.subr.bf16.mxu0 %v5331_v42  ;;  %4343 = vmatprep.subr.bf16.mxu1 %v5024_v16 }
 0x1a7   : > { %1440 = vmatmul.mubr.bf16.vlgmr.msra.gmra.mrb[8].mxu0 %v5484_v7  ;;  %4340 = vmatmul.mubr.bf16.vlgmr.msra.gmra.mrb[12].mxu1 %v5484_v7 }
 0x1a8   : > { %1696 = vmatpush1.bf16.msra.mxu0 %v5336_v43  ;;  %1727 = vmatprep.mubr.bf16.mxu0 %v5025_v17 }
 0x1a9   : > { %1697 = vmatprep.subr.bf16.mxu0 %v5351_v46  ;;  %4359 = vmatprep.mubr.msk.bf16.mxu1 %vm5026_vm0, %v5024_v16 }
 0x1aa   : > { %4344 = vmatpush3.bf16.msra.mxu1 %v4712_v22 }
 0x1ab   : > { %4345 = vmatprep.subr.bf16.mxu1 %v5024_v16 }
 0x1ac   : > { %1698 = vmatpush1.bf16.msra.mxu0 %v5346_v45  ;;  %v747_v45 = vlaneseq }
 0x1ad   : > { %1699 = vmatprep.subr.bf16.mxu0 %v5362_v48 }
 0x1ae   : > { %4346 = vmatpush3.bf16.msra.mxu1 %v4713_v24  ;;  %v748_v46 = vshrl.u32 %v747_v45, 7 }
 0x1af   : > { %4347 = vmatprep.subr.bf16.mxu1 %v5024_v16 }
 0x1b0   : > { %1700 = vmatpush1.bf16.msra.mxu0 %v5368_v49  ;;  %v5715_v48 = vsub.s32 0, %v748_v46  ;;  %v745_v49 = vld [vmem:[%s6483_s2] sm:$0x7]  ;;  %v5724_v50 = vsub.s32 2, %v748_v46 }
 0x1b1   : > { %1701 = vmatprep.subr.bf16.mxu0 %v5378_v51  ;;  %v5720_v51 = vsub.s32 1, %v748_v46 }
 0x1b2   : > { %4348 = vmatpush3.bf16.msra.mxu1 %v4714_v25  ;;  %v758_v3 = vrot.slane %v745_v49, %v5724_v50 }
 0x1b3   : > { %4349 = vmatprep.subr.bf16.mxu1 %v5024_v16 }
 0x1b4   : > { %1702 = vmatpush1.bf16.msra.mxu0 %v5384_v52  ;;  %v750_v52 = vrot.slane %v745_v49, %v5715_v48 }
 0x1b5   : > { %1703 = vmatprep.subr.bf16.mxu0 %v5394_v54 }
 0x1b6   : > { %4350 = vmatpush3.bf16.msra.mxu1 %v4715_v27  ;;  %v3901_v27 = vld [vmem:[%s5181_s0 + $0x20] sm:$0xff] }
 0x1b7   : > { %4351 = vmatprep.subr.bf16.mxu1 %v5024_v16 }
 0x1b8   : > { %1704 = vmatpush1.bf16.msra.mxu0 %v5400_v55  ;;  %v754_v55 = vrot.slane %v745_v49, %v5720_v51 }
 0x1b9   : > { %1705 = vmatprep.subr.bf16.mxu0 %v5409_v57 }
 0x1ba   : > { %4352 = vmatpush3.bf16.msra.mxu1 %v4716_v29 }
 0x1bb   : > { %4353 = vmatprep.subr.bf16.mxu1 %v5024_v16 }
 0x1bc   : > { %1706 = vmatpush1.bf16.msra.mxu0 %v5415_v58 }
 0x1bd   : > { %1707 = vmatprep.subr.bf16.mxu0 %v5425_v60 }
 0x1be   : > { %4354 = vmatpush3.bf16.msra.mxu1 %v4717_v30 }
 0x1bf   : > { %4355 = vmatprep.subr.bf16.mxu1 %v5024_v16 }
 0x1c0   : > { %1708 = vmatpush1.bf16.msra.mxu0 %v5431_v61 }
 0x1c1   : > { %1709 = vmatprep.subr.bf16.mxu0 %v5441_v63 }
 0x1c2   : > { %4356 = vmatpush3.bf16.msra.mxu1 %v4718_v31 }
 0x1c3   : > { %4357 = vmatprep.subr.bf16.mxu1 %v5024_v16 }
 0x1c4   : > { %1710 = vmatpush1.bf16.msra.mxu0 %v5447_v0 }
 0x1c5   : > { %1937 = vmatprep.subr.bf16.mxu0 %v5457_v2 }
 0x1c6   : > { %4358 = vmatpush3.bf16.msra.mxu1 %v4719_v33 }
 0x1c7   : > { %4363 = vmatprep.subr.bf16.mxu1 %v5024_v16 }
 0x23a   : > { %v965_v35 = vpop.f32.mrb[4].mxu1 }
 0x23b   : > { %v4301_v36 = vpop.f32.mrb[5].mxu1  ;;  %v966_v18 = vadd.f32 %v965_v35, %v758_v3 }
 0x23c   : > { %v968_v42 = vpop.f32.mrb[6].mxu1 }
 0x23d   : > { %v4302_v43 = vpop.f32.mrb[7].mxu1 }
 0x25a   : > { %v1166_v54 = vpop.f32.mrb[4].mxu0  ;;  %v1207_v57 = vpop.f32.mrb[8].mxu1 }
 0x25b   : > { %v4503_v58 = vadd.f32 %v1166_v54, %v750_v52  ;;  %v1168_v60 = vpop.f32.mrb[5].mxu0  ;;  %v4321_v61 = vpop.f32.mrb[9].mxu1  ;;  %v1234_v14 = vadd.f32 %v5729_v1, %v1207_v57 }
 0x25c   : > { %v1170_v63 = vpop.f32.mrb[6].mxu0  ;;  %v1210_v0 = vpop.f32.mrb[10].mxu1  ;;  %v4504_v12 = vadd.f32 %v1168_v60, %v754_v55 }
 0x25d   : > { %v3897_v2 = vmul.f32 -1.442695, %v4503_v58  ;;  %v1171_v7 = vpop.f32.mrb[7].mxu0  ;;  %v4322_v9 = vpop.f32.mrb[11].mxu1 }
 0x25e   : > { %v3898_v26 = vmul.f32 -1.442695, %v4504_v12  ;;  %v3902_v7 = vld [vmem:[%s5181_s0 + $0x28] sm:$0xff] }
 0x25f   : > { %4858 = vpow2.f32 %v3897_v2 }
 0x260   : > { %4860 = vpow2.f32 %v3898_v26 }
 0x269   : > { %v4859_v34 = vpop.eup %4858 }
 0x26a   : > { %v1217_v41 = vadd.f32 1.0, %v4859_v34  ;;  %v4861_v59 = vpop.eup %4860 }
 0x26b   : > { %v1224_v6 = vadd.f32 1.0, %v4861_v59 }
 0x26c   : > { %4862 = vrcp.f32 %v1217_v41 }
 0x26d   : > { %4864 = vrcp.f32 %v1224_v6  ;;  %v4720_v6 = vld [vmem:[%s6485_s4 + $0x8] ss:$12 sps:$4 sm:$0xff]  }
 0x276   : > { %v4863_v15 = vpop.eup %4862 }
 0x277   : > { %v1235_v19 = vmul.f32 %v4863_v15, %v1234_v14  ;;  %v4865_v35 = vpop.eup %4864  ;;  %v4739_v14 = vld [vmem:[%s6484_s3 + $0x38] ss:$12 sps:$4 sm:$0xff]  }
 0x278   : > { %v1238_v49 = vsub.f32 1.0, %v4865_v35  ;;  %v1240_v55 = vmul.f32 %v4865_v35, %v5602_v62  ;;  %v5855_v15 = vld [vmem:[%s6484_s3 + $0x4c] ss:$12 sps:$4 sm:$0xff]   ;;  %v4763_v35 = vld [vmem:[%s6482_s1 + $0x8] ss:$12 sps:$4 sm:$0xff]  }
 0x279   : > { %v1236_v21 = vadd.f32 %v1235_v19, %v966_v18  ;;  %v5861_v18 = vld [vmem:[%s6484_s3 + $0x48] ss:$12 sps:$4 sm:$0xff]   ;;  %v4743_v19 = vld [vmem:[%s6484_s3 + $0x50] ss:$12 sps:$4 sm:$0xff]  }
 0x27a   : > { %v1441_v22 = vpop.f32.mrb[8].mxu0  ;;  %v1482_v24 = vpop.f32.mrb[12].mxu1 }
 0x27b   : > { %4866 = vtanh.f32 %v1236_v21  ;;  %v1488_v25 = vadd.f32 %v3900_v20, %v1441_v22  ;;  %v1443_v29 = vpop.f32.mrb[9].mxu0  ;;  %v4341_v30 = vpop.f32.mrb[13].mxu1  ;;  %v1509_v0 = vadd.f32 %v5467_v39, %v1482_v24  ;;  %v5871_v20 = vld [vmem:[%s6484_s3 + $0x64] ss:$12 sps:$4 sm:$0xff]   ;;  %v5877_v21 = vld [vmem:[%s6484_s3 + $0x60] ss:$12 sps:$4 sm:$0xff]  }
 0x27c   : > { %v1445_v31 = vpop.f32.mrb[10].mxu0  ;;  %v1485_v33 = vpop.f32.mrb[14].mxu1  ;;  %v1495_v45 = vadd.f32 %v3901_v27, %v1443_v29  ;;  %v4747_v22 = vld [vmem:[%s6484_s3 + $0x68] ss:$12 sps:$4 sm:$0xff]   ;;  %v4751_v27 = vld [vmem:[%s6484_s3 + $0x80] ss:$12 sps:$4 sm:$0xff]  }
 0x27d   : > { %v3927_v36 = vmul.f32 -1.442695, %v1488_v25  ;;  %v1446_v42 = vpop.f32.mrb[11].mxu0  ;;  %v4342_v43 = vpop.f32.mrb[15].mxu1  ;;  %v5887_v24 = vld [vmem:[%s6484_s3 + $0x7c] ss:$12 sps:$4 sm:$0xff]  }
 0x27e   : > { %v3928_v46 = vmul.f32 -1.442695, %v1495_v45  ;;  %v5893_v25 = vld [vmem:[%s6484_s3 + $0x78] ss:$12 sps:$4 sm:$0xff]   ;;  %v5903_v29 = vld [vmem:[%s6484_s3 + $0x94] ss:$12 sps:$4 sm:$0xff]  }
 0x27f   : > { %4868 = vpow2.f32 %v3927_v36  ;;  %v5909_v30 = vld [vmem:[%s6484_s3 + $0x90] ss:$12 sps:$4 sm:$0xff]   ;;  %v4755_v31 = vld [vmem:[%s6484_s3 + $0x98] ss:$12 sps:$4 sm:$0xff]   ;;  %v5925_v36 = vld [vmem:[%s6484_s3 + $0xa8] ss:$12 sps:$4 sm:$0xff]  }
 0x280   : > { %4870 = vpow2.f32 %v3928_v46  ;;  %v5919_v33 = vld [vmem:[%s6484_s3 + $0xac] ss:$12 sps:$4 sm:$0xff]   ;;  %v4759_v42 = vld [vmem:[%s6484_s3 + $0xb0] ss:$12 sps:$4 sm:$0xff]  }
 0x281   : > { %v5942_v43 = vld [vmem:[%s6482_s1 + $0x4] ss:$12 sps:$4 sm:$0xff]   ;;  %v5947_v45 = vld [vmem:[%s6482_s1] ss:$12 sps:$4 sm:$0xff]   ;;  %v5957_v46 = vld [vmem:[%s6482_s1 + $0x1c] ss:$12 sps:$4 sm:$0xff]  }
 0x285   : > { %v4867_v52 = vpop.eup %4866 }
 0x286   : > { %v1239_v54 = vmul.f32 %v4867_v52, %v1238_v49  ;;  %v5963_v49 = vld [vmem:[%s6482_s1 + $0x18] ss:$12 sps:$4 sm:$0xff]   ;;  %v4767_v52 = vld [vmem:[%s6482_s1 + $0x20] ss:$12 sps:$4 sm:$0xff]  }
 0x288   : > { %v5736_v57 = vadd.f32 %v1240_v55, %v1239_v54  ;;  %v5973_v54 = vld [vmem:[%s6482_s1 + $0x34] ss:$12 sps:$4 sm:$0xff]   ;;  %v5979_v55 = vld [vmem:[%s6482_s1 + $0x30] ss:$12 sps:$4 sm:$0xff]  }
 0x289   : > { %v4869_v58 = vpop.eup %4868 }
 0x28a   : > { %v1492_v60 = vadd.f32 1.0, %v4869_v58  ;;  %1242 = vst [vmem:[%s5183_s15] sm:$0xff] %v5736_v57  ;;  %v4871_v61 = vpop.eup %4870  ;;  %v4771_v58 = vld [vmem:[%s6482_s1 + $0x38] ss:$12 sps:$4 sm:$0xff]  }
 0x28b   : > { %v1499_v63 = vadd.f32 1.0, %v4871_v61  ;;  %v5995_v61 = vld [vmem:[%s6482_s1 + $0x48] ss:$12 sps:$4 sm:$0xff]  }
 0x28c   : > { %4872 = vrcp.f32 %v1492_v60  ;;  %v5989_v60 = vld [vmem:[%s6482_s1 + $0x4c] ss:$12 sps:$4 sm:$0xff]  }
 0x28d   : > { %4874 = vrcp.f32 %v1499_v63  ;;  %v4775_v63 = vld [vmem:[%s6482_s1 + $0x50] ss:$12 sps:$4 sm:$0xff]  }
 0x296   : > { %v4873_v2 = vpop.eup %4872 }
 0x297   : > { %v1510_v9 = vmul.f32 %v4873_v2, %v1509_v0  ;;  %v4875_v26 = vpop.eup %4874  ;;  %v6005_v0 = vld [vmem:[%s6482_s1 + $0x64] ss:$12 sps:$4 sm:$0xff]   ;;  %v6011_v2 = vld [vmem:[%s6482_s1 + $0x60] ss:$12 sps:$4 sm:$0xff]  }
 0x298   : > { %v1513_v34 = vsub.f32 1.0, %v4875_v26  ;;  %v1515_v59 = vmul.f32 %v4875_v26, %v5472_v4  ;;  %v4721_v4 = vld [vmem:[%s6485_s4 + $0x20] ss:$12 sps:$4 sm:$0xff]  }
 0x299   : > { %v1511_v12 = vadd.f32 %v3902_v7, %v1510_v9  ;;  %v4779_v7 = vld [vmem:[%s6482_s1 + $0x68] ss:$12 sps:$4 sm:$0xff]   ;;  %v4783_v26 = vld [vmem:[%s6482_s1 + $0x80] ss:$12 sps:$4 sm:$0xff]  }
 0x29a   : > { %v6020_v9 = vld [vmem:[%s6482_s1 + $0x7c] ss:$12 sps:$4 sm:$0xff]  }
 0x29b   : > { %4876 = vtanh.f32 %v1511_v12  ;;  %v6026_v12 = vld [vmem:[%s6482_s1 + $0x78] ss:$12 sps:$4 sm:$0xff]  }
 0x2a5   : > { %v4877_v62 = vpop.eup %4876 }
 0x2a6   : > { %v1514_v41 = vmul.f32 %v4877_v62, %v1513_v34  ;;  %v6036_v34 = vld [vmem:[%s6482_s1 + $0x94] ss:$12 sps:$4 sm:$0xff]   ;;  %v6042_v62 = vld [vmem:[%s6482_s1 + $0x90] ss:$12 sps:$4 sm:$0xff]  }
 0x2a8   : > { %v5743_v3 = vadd.f32 %v1515_v59, %v1514_v41  ;;  %v4787_v41 = vld [vmem:[%s6482_s1 + $0x98] ss:$12 sps:$4 sm:$0xff]  }
 0x2a9   : > { %v6052_v59 = vld [vmem:[%s6482_s1 + $0xac] ss:$12 sps:$4 sm:$0xff]  }
 0x2aa   : > { %v5750_v39 = vpack.c.bf16 %v5743_v3, %v5743_v3 }
 0x2ac   : > { %1728 = vmatmul.mubr.bf16.vlgmr.msra.gmra.mrb[12].mxu0 %v5750_v39  ;;  %4360 = vmatmul.mubr.bf16.vlgmr.msra.gmra.mrb[16].mxu1 %v5750_v39 }
 0x2ad   : > { %1938 = vmatpush1.bf16.msra.mxu0 %v5477_v5  ;;  %4364 = vmatpush3.bf16.msra.mxu1 %v4720_v6  ;;  %v4722_v5 = vld [vmem:[%s6485_s4 + $0x38] ss:$12 sps:$4 sm:$0xff]   ;;  %v6058_v6 = vld [vmem:[%s6482_s1 + $0xa8] ss:$12 sps:$4 sm:$0xff]  }
 0x2ae   : > { %1939 = vmatprep.subr.bf16.mxu0 %v5489_v8  ;;  %4365 = vmatprep.subr.bf16.mxu1 %v5024_v16  ;;  %v4723_v8 = vld [vmem:[%s6485_s4 + $0x50] ss:$12 sps:$4 sm:$0xff]  }
 0x2af   : > { %1969 = vmatprep.mubr.bf16.mxu0 %v5025_v17  ;;  %4379 = vmatprep.mubr.msk.bf16.mxu1 %vm5026_vm0, %v5024_v16 }
 0x2b1   : > { %1940 = vmatpush1.bf16.msra.mxu0 %v5497_v37  ;;  %4366 = vmatpush3.bf16.msra.mxu1 %v4721_v4  ;;  %v4724_v37 = vld [vmem:[%s6485_s4 + $0x68] ss:$12 sps:$4 sm:$0xff]   ;;  %v6068_v4 = vld [vmem:[%s6485_s4 + $0x4] ss:$12 sps:$4 sm:$0xff]  }
 0x2b2   : > { %1941 = vmatprep.subr.bf16.mxu0 %v5507_v10  ;;  %4367 = vmatprep.subr.bf16.mxu1 %v5024_v16  ;;  %v4725_v10 = vld [vmem:[%s6485_s4 + $0x80] ss:$12 sps:$4 sm:$0xff]  }
 0x2b5   : > { %1942 = vmatpush1.bf16.msra.mxu0 %v5516_v11  ;;  %4368 = vmatpush3.bf16.msra.mxu1 %v4722_v5  ;;  %v4726_v11 = vld [vmem:[%s6485_s4 + $0x98] ss:$12 sps:$4 sm:$0xff]  }
 0x2b6   : > { %1943 = vmatprep.subr.bf16.mxu0 %v5526_v13  ;;  %4369 = vmatprep.subr.bf16.mxu1 %v5024_v16  ;;  %v4727_v13 = vld [vmem:[%s6485_s4 + $0xb0] ss:$12 sps:$4 sm:$0xff]  }
 0x2b9   : > { %1944 = vmatpush1.bf16.msra.mxu0 %v5532_v23  ;;  %4370 = vmatpush3.bf16.msra.mxu1 %v4723_v8  ;;  %v5802_v23 = vld [vmem:[%s6484_s3 + $0x4] ss:$12 sps:$4 sm:$0xff]  }
 0x2ba   : > { %1945 = vmatprep.subr.bf16.mxu0 %v5542_v28  ;;  %4371 = vmatprep.subr.bf16.mxu1 %v5024_v16  ;;  %v5808_v28 = vld [vmem:[%s6484_s3] ss:$12 sps:$4 sm:$0xff]  }
 0x2bd   : > { %1946 = vmatpush1.bf16.msra.mxu0 %v5548_v32  ;;  %4372 = vmatpush3.bf16.msra.mxu1 %v4724_v37  ;;  %v4731_v32 = vld [vmem:[%s6484_s3 + $0x8] ss:$12 sps:$4 sm:$0xff]  }
 0x2be   : > { %1947 = vmatprep.subr.bf16.mxu0 %v5558_v38  ;;  %4373 = vmatprep.subr.bf16.mxu1 %v5024_v16  ;;  %v1776_v38 = vpack.c.bf16 %v5736_v57, %v5736_v57 }
 0x2c1   : > { %1948 = vmatpush1.bf16.msra.mxu0 %v5564_v40  ;;  %4374 = vmatpush3.bf16.msra.mxu1 %v4725_v10  ;;  %v5820_v40 = vld [vmem:[%s6484_s3 + $0x1c] ss:$12 sps:$4 sm:$0xff]  }
 0x2c2   : > { %1949 = vmatprep.subr.bf16.mxu0 %v5574_v44  ;;  %4375 = vmatprep.subr.bf16.mxu1 %v5024_v16  ;;  %v5826_v44 = vld [vmem:[%s6484_s3 + $0x18] ss:$12 sps:$4 sm:$0xff]  }
 0x2c5   : > { %1950 = vmatpush1.bf16.msra.mxu0 %v5580_v47  ;;  %4376 = vmatpush3.bf16.msra.mxu1 %v4726_v11  ;;  %v4735_v47 = vld [vmem:[%s6484_s3 + $0x20] ss:$12 sps:$4 sm:$0xff]  }
 0x2c6   : > { %1951 = vmatprep.subr.bf16.mxu0 %v5590_v53  ;;  %4377 = vmatprep.subr.bf16.mxu1 %v5024_v16  ;;  %v5836_v53 = vld [vmem:[%s6484_s3 + $0x34] ss:$12 sps:$4 sm:$0xff]  }
 0x2c7   : > { %v1550_v11 = vld [vmem:[%s6483_s2] sm:$0x7] }
 0x2c9   : > { %1952 = vmatpush1.bf16.msra.mxu0 %v5596_v56  ;;  %4378 = vmatpush3.bf16.msra.mxu1 %v4727_v13  ;;  %v5845_v56 = vld [vmem:[%s6484_s3 + $0x30] ss:$12 sps:$4 sm:$0xff]   ;;  %v1555_v13 = vrot.slane %v1550_v11, %v5715_v48 }
 0x2ca   : > { %2213 = vmatprep.subr.bf16.mxu0 %v5802_v23  ;;  %4383 = vmatprep.subr.bf16.mxu1 %v5024_v16 }
 0x2cc   : > { %1970 = vmatmul.mubr.bf16.vlgmr.msra.gmra.mrb[12].mxu0 %v1776_v38  ;;  %4380 = vmatmul.mubr.bf16.vlgmr.msra.gmra.mrb[20].mxu1 %v1776_v38 }
 0x2cd   : > { %2214 = vmatpush1.bf16.msra.mxu0 %v5808_v28  ;;  %4384 = vmatpush3.bf16.msra.mxu1 %v4731_v32 }
 0x2ce   : > { %2215 = vmatprep.subr.bf16.mxu0 %v5820_v40  ;;  %4385 = vmatprep.subr.bf16.mxu1 %v5024_v16 }
 0x2cf   : > { %2245 = vmatprep.mubr.bf16.mxu0 %v5025_v17  ;;  %4399 = vmatprep.mubr.msk.bf16.mxu1 %vm5026_vm0, %v5024_v16 }
 0x2d1   : > { %2216 = vmatpush1.bf16.msra.mxu0 %v5826_v44  ;;  %4386 = vmatpush3.bf16.msra.mxu1 %v4735_v47  ;;  %v1559_v47 = vrot.slane %v1550_v11, %v5720_v51 }
 0x2d2   : > { %2217 = vmatprep.subr.bf16.mxu0 %v5836_v53  ;;  %4387 = vmatprep.subr.bf16.mxu1 %v5024_v16 }
 0x2d5   : > { %2218 = vmatpush1.bf16.msra.mxu0 %v5845_v56  ;;  %4388 = vmatpush3.bf16.msra.mxu1 %v4739_v14 }
 0x2d6   : > { %2219 = vmatprep.subr.bf16.mxu0 %v5855_v15  ;;  %4389 = vmatprep.subr.bf16.mxu1 %v5024_v16 }
 0x2d9   : > { %2220 = vmatpush1.bf16.msra.mxu0 %v5861_v18  ;;  %4390 = vmatpush3.bf16.msra.mxu1 %v4743_v19 }
 0x2da   : > { %2221 = vmatprep.subr.bf16.mxu0 %v5871_v20  ;;  %4391 = vmatprep.subr.bf16.mxu1 %v5024_v16 }
 0x2dd   : > { %2222 = vmatpush1.bf16.msra.mxu0 %v5877_v21  ;;  %4392 = vmatpush3.bf16.msra.mxu1 %v4747_v22 }
 0x2de   : > { %2223 = vmatprep.subr.bf16.mxu0 %v5887_v24  ;;  %4393 = vmatprep.subr.bf16.mxu1 %v5024_v16 }
 0x2e1   : > { %2224 = vmatpush1.bf16.msra.mxu0 %v5893_v25  ;;  %4394 = vmatpush3.bf16.msra.mxu1 %v4751_v27 }
 0x2e2   : > { %2225 = vmatprep.subr.bf16.mxu0 %v5903_v29  ;;  %4395 = vmatprep.subr.bf16.mxu1 %v5024_v16 }
 0x2e5   : > { %2226 = vmatpush1.bf16.msra.mxu0 %v5909_v30  ;;  %4396 = vmatpush3.bf16.msra.mxu1 %v4755_v31 }
 0x2e6   : > { %2227 = vmatprep.subr.bf16.mxu0 %v5919_v33  ;;  %4397 = vmatprep.subr.bf16.mxu1 %v5024_v16 }
 0x2e9   : > { %2228 = vmatpush1.bf16.msra.mxu0 %v5925_v36  ;;  %4398 = vmatpush3.bf16.msra.mxu1 %v4759_v42 }
 0x2ea   : > { %4403 = vmatprep.subr.bf16.mxu1 %v5024_v16  ;;  %2501 = vmatprep.subr.bf16.mxu0 %v5942_v43 }
 0x2ec   : > { %2246 = vmatmul.mubr.bf16.vlgmr.msra.gmra.mrb[16].mxu0 %v5750_v39  ;;  %4400 = vmatmul.mubr.bf16.vlgmr.msra.gmra.mrb[24].mxu1 %v5750_v39  ;;  %v4791_v39 = vld [vmem:[%s6482_s1 + $0xb0] ss:$12 sps:$4 sm:$0xff]  }
 0x2ed   : > { %2533 = vmatprep.mubr.bf16.mxu0 %v5025_v17  ;;  %4419 = vmatprep.mubr.msk.bf16.mxu1 %vm5026_vm0, %v5024_v16 }
 0x2ee   : > { %2502 = vmatpush1.bf16.msra.mxu0 %v5947_v45  ;;  %4404 = vmatpush3.bf16.msra.mxu1 %v4763_v35 }
 0x2ef   : > { %4405 = vmatprep.subr.bf16.mxu1 %v5024_v16  ;;  %2503 = vmatprep.subr.bf16.mxu0 %v5957_v46 }
 0x2f2   : > { %2504 = vmatpush1.bf16.msra.mxu0 %v5963_v49  ;;  %4406 = vmatpush3.bf16.msra.mxu1 %v4767_v52 }
 0x2f3   : > { %4407 = vmatprep.subr.bf16.mxu1 %v5024_v16  ;;  %2505 = vmatprep.subr.bf16.mxu0 %v5973_v54 }
 0x2f6   : > { %2506 = vmatpush1.bf16.msra.mxu0 %v5979_v55  ;;  %4408 = vmatpush3.bf16.msra.mxu1 %v4771_v58 }
 0x2f7   : > { %4409 = vmatprep.subr.bf16.mxu1 %v5024_v16  ;;  %2507 = vmatprep.subr.bf16.mxu0 %v5989_v60 }
 0x2fa   : > { %2508 = vmatpush1.bf16.msra.mxu0 %v5995_v61  ;;  %4410 = vmatpush3.bf16.msra.mxu1 %v4775_v63 }
 0x2fb   : > { %4411 = vmatprep.subr.bf16.mxu1 %v5024_v16  ;;  %2509 = vmatprep.subr.bf16.mxu0 %v6005_v0 }
 0x2fe   : > { %2510 = vmatpush1.bf16.msra.mxu0 %v6011_v2  ;;  %4412 = vmatpush3.bf16.msra.mxu1 %v4779_v7 }
 0x2ff   : > { %2511 = vmatprep.subr.bf16.mxu0 %v6020_v9  ;;  %4413 = vmatprep.subr.bf16.mxu1 %v5024_v16 }
 0x302   : > { %2512 = vmatpush1.bf16.msra.mxu0 %v6026_v12  ;;  %4414 = vmatpush3.bf16.msra.mxu1 %v4783_v26 }
 0x303   : > { %2513 = vmatprep.subr.bf16.mxu0 %v6036_v34  ;;  %4415 = vmatprep.subr.bf16.mxu1 %v5024_v16 }
 0x306   : > { %2514 = vmatpush1.bf16.msra.mxu0 %v6042_v62  ;;  %4416 = vmatpush3.bf16.msra.mxu1 %v4787_v41 }
 0x307   : > { %2515 = vmatprep.subr.bf16.mxu0 %v6052_v59  ;;  %4417 = vmatprep.subr.bf16.mxu1 %v5024_v16 }
 0x30a   : > { %2516 = vmatpush1.bf16.msra.mxu0 %v6058_v6  ;;  %4418 = vmatpush3.bf16.msra.mxu1 %v4791_v39  ;;  %v1563_v39 = vrot.slane %v1550_v11, %v5724_v50 }
 0x30b   : > { %2743 = vmatprep.subr.bf16.mxu0 %v6068_v4  ;;  %4423 = vmatprep.subr.bf16.mxu1 %v5024_v16 }
 0x37f   : > { %v1770_v5 = vpop.f32.mrb[16].mxu1 }
 0x380   : > { %v4361_v8 = vpop.f32.mrb[17].mxu1 }
 0x381   : > { %v1773_v37 = vpop.f32.mrb[18].mxu1 }
 0x382   : > { %v4362_v10 = vpop.f32.mrb[19].mxu1 }
 0x39f   : > { %v1971_v32 = vpop.f32.mrb[12].mxu0  ;;  %v2012_v38 = vpop.f32.mrb[20].mxu1 }
 0x3a0   : > { %v4505_v14 = vadd.f32 %v1971_v32, %v1555_v13  ;;  %v1973_v19 = vpop.f32.mrb[13].mxu0  ;;  %v4381_v22 = vpop.f32.mrb[21].mxu1  ;;  %v2039_v37 = vadd.f32 %v5729_v1, %v2012_v38  ;;  %v1771_v13 = vadd.f32 %v1770_v5, %v1563_v39 }
 0x3a1   : > { %v1975_v27 = vpop.f32.mrb[14].mxu0  ;;  %v2015_v31 = vpop.f32.mrb[22].mxu1  ;;  %v4506_v58 = vadd.f32 %v1973_v19, %v1559_v47 }
 0x3a2   : > { %v3978_v42 = vmul.f32 -1.442695, %v4505_v14  ;;  %v1976_v35 = vpop.f32.mrb[15].mxu0  ;;  %v4382_v52 = vpop.f32.mrb[23].mxu1  ;;  %v3982_v14 = vld [vmem:[%s5181_s0 + $0x30] sm:$0xff]  ;;  %v3983_v31 = vld [vmem:[%s5181_s0 + $0x38] sm:$0xff] }
 0x3a3   : > { %v3979_v63 = vmul.f32 -1.442695, %v4506_v58 }
 0x3a4   : > { %4878 = vpow2.f32 %v3978_v42 }
 0x3a5   : > { %4880 = vpow2.f32 %v3979_v63 }
 0x3ae   : > { %v4879_v7 = vpop.eup %4878 }
 0x3af   : > { %v2022_v26 = vadd.f32 1.0, %v4879_v7  ;;  %v4881_v41 = vpop.eup %4880 }
 0x3b0   : > { %v2029_v8 = vadd.f32 1.0, %v4881_v41 }
 0x3b1   : > { %4882 = vrcp.f32 %v2022_v26 }
 0x3b2   : > { %4884 = vrcp.f32 %v2029_v8 }
 0x3bb   : > { %v4883_v10 = vpop.eup %4882 }
 0x3bc   : > { %v2040_v32 = vmul.f32 %v4883_v10, %v2039_v37  ;;  %v4885_v5 = vpop.eup %4884 }
 0x3bd   : > { %v2043_v26 = vsub.f32 1.0, %v4885_v5  ;;  %v2045_v8 = vmul.f32 %v4885_v5, %v5736_v57 }
 0x3be   : > { %v2041_v22 = vadd.f32 %v2040_v32, %v1771_v13 }
 0x3bf   : > { %v2247_v47 = vpop.f32.mrb[16].mxu0  ;;  %v2288_v19 = vpop.f32.mrb[24].mxu1 }
 0x3c0   : > { %4886 = vtanh.f32 %v2041_v22  ;;  %v2294_v27 = vadd.f32 %v3982_v14, %v2247_v47  ;;  %v2249_v42 = vpop.f32.mrb[17].mxu0  ;;  %v4401_v35 = vpop.f32.mrb[25].mxu1  ;;  %v6090_v14 = vld [vmem:[%s6486_s5] ss:$0 sm:$0xff] }
 0x3c1   : > { %v2251_v52 = vpop.f32.mrb[18].mxu0  ;;  %v2291_v58 = vpop.f32.mrb[26].mxu1  ;;  %v2301_v1 = vadd.f32 %v3983_v31, %v2249_v42  ;;  %v2315_v47 = vadd.f32 %v6090_v14, %v2288_v19  ;;  %v3984_v31 = vld [vmem:[%s5181_s0 + $0x40] sm:$0xff]  ;;  %v4795_v19 = vld [vmem:[%s6485_s4 + $0x8] ss:$12 sps:$4 sm:$0xff]  }
 0x3c2   : > { %v4009_v11 = vmul.f32 -1.442695, %v2294_v27  ;;  %v2252_v63 = vpop.f32.mrb[19].mxu0  ;;  %v4402_v7 = vpop.f32.mrb[27].mxu1 }
 0x3c3   : > { %v4010_v38 = vmul.f32 -1.442695, %v2301_v1  ;;  %v6100_v1 = vld [vmem:[%s6485_s4] ss:$12 sps:$4 sm:$0xff]  }
 0x3c4   : > { %4888 = vpow2.f32 %v4009_v11 }
 0x3c5   : > { %4890 = vpow2.f32 %v4010_v38  ;;  %v6112_v38 = vld [vmem:[%s6485_s4 + $0x1c] ss:$12 sps:$4 sm:$0xff]  }
 0x3ca   : > { %v4887_v41 = vpop.eup %4886 }
 0x3cb   : > { %v2044_v39 = vmul.f32 %v4887_v41, %v2043_v26  ;;  %v4799_v26 = vld [vmem:[%s6485_s4 + $0x20] ss:$12 sps:$4 sm:$0xff]  }
 0x3cc   : > { %v6130_v41 = vld [vmem:[%s6485_s4 + $0x34] ss:$12 sps:$4 sm:$0xff]  }
 0x3cd   : > { %v6083_v37 = vadd.f32 %v2045_v8, %v2044_v39  ;;  %v6139_v39 = vld [vmem:[%s6485_s4 + $0x30] ss:$12 sps:$4 sm:$0xff]   ;;  %v4803_v8 = vld [vmem:[%s6485_s4 + $0x38] ss:$12 sps:$4 sm:$0xff]  }
 0x3ce   : > { %v4889_v10 = vpop.eup %4888 }
 0x3cf   : > { %v2298_v13 = vadd.f32 1.0, %v4889_v10  ;;  %3981 = vst [vmem:[%s5183_s15 + $0x8] sm:$0xff] %v6083_v37  ;;  %v4891_v32 = vpop.eup %4890  ;;  %v6149_v10 = vld [vmem:[%s6485_s4 + $0x4c] ss:$12 sps:$4 sm:$0xff]  }
 0x3d0   : > { %v2305_v22 = vadd.f32 1.0, %v4891_v32  ;;  %v4807_v32 = vld [vmem:[%s6485_s4 + $0x50] ss:$12 sps:$4 sm:$0xff]  }
 0x3d1   : > { %4892 = vrcp.f32 %v2298_v13  ;;  %v6155_v13 = vld [vmem:[%s6485_s4 + $0x48] ss:$12 sps:$4 sm:$0xff]  }
 0x3d2   : > { %4894 = vrcp.f32 %v2305_v22  ;;  %v6165_v22 = vld [vmem:[%s6485_s4 + $0x64] ss:$12 sps:$4 sm:$0xff]  }
 0x3db   : > { %v4893_v27 = vpop.eup %4892 }
 0x3dc   : > { %v2316_v42 = vmul.f32 %v4893_v27, %v2315_v47  ;;  %v4895_v35 = vpop.eup %4894  ;;  %v6171_v47 = vld [vmem:[%s6485_s4 + $0x60] ss:$12 sps:$4 sm:$0xff]   ;;  %v4811_v27 = vld [vmem:[%s6485_s4 + $0x68] ss:$12 sps:$4 sm:$0xff]  }
 0x3dd   : > { %v2319_v52 = vsub.f32 1.0, %v4895_v35  ;;  %v2321_v63 = vmul.f32 %v4895_v35, %v5743_v3  ;;  %v6120_v3 = vld [vmem:[%s6485_s4 + $0x18] ss:$12 sps:$4 sm:$0xff]   ;;  %v6197_v35 = vld [vmem:[%s6485_s4 + $0x94] ss:$12 sps:$4 sm:$0xff]  }
 0x3de   : > { %v2317_v57 = vadd.f32 %v3984_v31, %v2316_v42  ;;  %v6181_v31 = vld [vmem:[%s6485_s4 + $0x7c] ss:$12 sps:$4 sm:$0xff]   ;;  %v6187_v42 = vld [vmem:[%s6485_s4 + $0x78] ss:$12 sps:$4 sm:$0xff]  }
 0x3e0   : > { %4896 = vtanh.f32 %v2317_v57  ;;  %v4815_v57 = vld [vmem:[%s6485_s4 + $0x80] ss:$12 sps:$4 sm:$0xff]  }
 0x3ea   : > { %v4897_v58 = vpop.eup %4896 }
 0x3eb   : > { %v2320_v11 = vmul.f32 %v4897_v58, %v2319_v52  ;;  %v6203_v52 = vld [vmem:[%s6485_s4 + $0x90] ss:$12 sps:$4 sm:$0xff]   ;;  %v4819_v58 = vld [vmem:[%s6485_s4 + $0x98] ss:$12 sps:$4 sm:$0xff]  }
 0x3ed   : > { %v6095_v7 = vadd.f32 %v2321_v63, %v2320_v11  ;;  %v6213_v11 = vld [vmem:[%s6485_s4 + $0xac] ss:$12 sps:$4 sm:$0xff]   ;;  %v6219_v63 = vld [vmem:[%s6485_s4 + $0xa8] ss:$12 sps:$4 sm:$0xff]  }
 0x3ef   : > { %v6107_v5 = vpack.c.bf16 %v6095_v7, %v6095_v7 }
 0x3f1   : > { %2534 = vmatmul.mubr.bf16.vlgmr.msra.gmra.mrb[20].mxu0 %v6107_v5  ;;  %4420 = vmatmul.mubr.bf16.vlgmr.msra.gmra.mrb[28].mxu1 %v6107_v5 }
 0x3f2   : > { %2744 = vmatpush1.bf16.msra.mxu0 %v6100_v1  ;;  %4424 = vmatpush3.bf16.msra.mxu1 %v4795_v19  ;;  %v4823_v19 = vld [vmem:[%s6485_s4 + $0xb0] ss:$12 sps:$4 sm:$0xff]  }
 0x3f3   : > { %2745 = vmatprep.subr.bf16.mxu0 %v6112_v38  ;;  %4425 = vmatprep.subr.bf16.mxu1 %v5024_v16 }
 0x3f4   : > { %2775 = vmatprep.mubr.bf16.mxu0 %v5025_v17  ;;  %4439 = vmatprep.mubr.msk.bf16.mxu1 %vm5026_vm0, %v5024_v16 }
 0x3f6   : > { %2746 = vmatpush1.bf16.msra.mxu0 %v6120_v3  ;;  %4426 = vmatpush3.bf16.msra.mxu1 %v4799_v26  ;;  %v4824_v26 = vld [vmem:[%s6484_s3 + $0x8] ss:$12 sps:$4 sm:$0xff]  }
 0x3f7   : > { %2747 = vmatprep.subr.bf16.mxu0 %v6130_v41  ;;  %4427 = vmatprep.subr.bf16.mxu1 %v5024_v16 }
 0x3fa   : > { %2748 = vmatpush1.bf16.msra.mxu0 %v6139_v39  ;;  %4428 = vmatpush3.bf16.msra.mxu1 %v4803_v8  ;;  %v2582_v8 = vpack.c.bf16 %v6083_v37, %v6083_v37 }
 0x3fb   : > { %2749 = vmatprep.subr.bf16.mxu0 %v6149_v10  ;;  %4429 = vmatprep.subr.bf16.mxu1 %v5024_v16 }
 0x3fe   : > { %2750 = vmatpush1.bf16.msra.mxu0 %v6155_v13  ;;  %4430 = vmatpush3.bf16.msra.mxu1 %v4807_v32  ;;  %v4825_v32 = vld [vmem:[%s6484_s3 + $0x20] ss:$12 sps:$4 sm:$0xff]  }
 0x3ff   : > { %2751 = vmatprep.subr.bf16.mxu0 %v6165_v22  ;;  %4431 = vmatprep.subr.bf16.mxu1 %v5024_v16 }
 0x402   : > { %2752 = vmatpush1.bf16.msra.mxu0 %v6171_v47  ;;  %4432 = vmatpush3.bf16.msra.mxu1 %v4811_v27 }
 0x403   : > { %2753 = vmatprep.subr.bf16.mxu0 %v6181_v31  ;;  %4433 = vmatprep.subr.bf16.mxu1 %v5024_v16 }
 0x406   : > { %2754 = vmatpush1.bf16.msra.mxu0 %v6187_v42  ;;  %4434 = vmatpush3.bf16.msra.mxu1 %v4815_v57 }
 0x407   : > { %2755 = vmatprep.subr.bf16.mxu0 %v6197_v35  ;;  %4435 = vmatprep.subr.bf16.mxu1 %v5024_v16 }
 0x40a   : > { %2756 = vmatpush1.bf16.msra.mxu0 %v6203_v52  ;;  %4436 = vmatpush3.bf16.msra.mxu1 %v4819_v58  ;;  %v6343_v58 = vld [vmem:[%s6487_s6] ss:$0 sm:$0xff] }
 0x40b   : > { %2757 = vmatprep.subr.bf16.mxu0 %v6213_v11  ;;  %4437 = vmatprep.subr.bf16.mxu1 %v5024_v16 }
 0x40e   : > { %2758 = vmatpush1.bf16.msra.mxu0 %v6219_v63  ;;  %4438 = vmatpush3.bf16.msra.mxu1 %v4823_v19 }
 0x40f   : > { %3019 = vmatprep.subr.bf16.mxu0 %v5802_v23  ;;  %4443 = vmatprep.subr.bf16.mxu1 %v5024_v16  ;;  %v4826_v23 = vld [vmem:[%s6484_s3 + $0x38] ss:$12 sps:$4 sm:$0xff]  }
 0x411   : > { %2776 = vmatmul.mubr.bf16.vlgmr.msra.gmra.mrb[20].mxu0 %v2582_v8  ;;  %4440 = vmatmul.mubr.bf16.vlgmr.msra.gmra.mrb[32].mxu1 %v2582_v8 }
 0x412   : > { %3020 = vmatpush1.bf16.msra.mxu0 %v5808_v28  ;;  %4444 = vmatpush3.bf16.msra.mxu1 %v4824_v26  ;;  %v4827_v28 = vld [vmem:[%s6484_s3 + $0x50] ss:$12 sps:$4 sm:$0xff]  }
 0x413   : > { %3021 = vmatprep.subr.bf16.mxu0 %v5820_v40  ;;  %4445 = vmatprep.subr.bf16.mxu1 %v5024_v16  ;;  %v4828_v40 = vld [vmem:[%s6484_s3 + $0x68] ss:$12 sps:$4 sm:$0xff]  }
 0x414   : > { %3051 = vmatprep.mubr.bf16.mxu0 %v5025_v17  ;;  %4459 = vmatprep.mubr.msk.bf16.mxu1 %vm5026_vm0, %v5024_v16 }
 0x416   : > { %3022 = vmatpush1.bf16.msra.mxu0 %v5826_v44  ;;  %4446 = vmatpush3.bf16.msra.mxu1 %v4825_v32  ;;  %v4829_v44 = vld [vmem:[%s6484_s3 + $0x80] ss:$12 sps:$4 sm:$0xff]  }
 0x417   : > { %3023 = vmatprep.subr.bf16.mxu0 %v5836_v53  ;;  %4447 = vmatprep.subr.bf16.mxu1 %v5024_v16  ;;  %v4830_v53 = vld [vmem:[%s6484_s3 + $0x98] ss:$12 sps:$4 sm:$0xff]  }
 0x41a   : > { %3024 = vmatpush1.bf16.msra.mxu0 %v5845_v56  ;;  %4448 = vmatpush3.bf16.msra.mxu1 %v4826_v23  ;;  %v4831_v56 = vld [vmem:[%s6484_s3 + $0xb0] ss:$12 sps:$4 sm:$0xff]  }
 0x41b   : > { %3025 = vmatprep.subr.bf16.mxu0 %v5855_v15  ;;  %4449 = vmatprep.subr.bf16.mxu1 %v5024_v16  ;;  %v4832_v15 = vld [vmem:[%s6482_s1 + $0x8] ss:$12 sps:$4 sm:$0xff]  }
 0x41e   : > { %3026 = vmatpush1.bf16.msra.mxu0 %v5861_v18  ;;  %4450 = vmatpush3.bf16.msra.mxu1 %v4827_v28  ;;  %v4833_v18 = vld [vmem:[%s6482_s1 + $0x20] ss:$12 sps:$4 sm:$0xff]  }
 0x41f   : > { %3027 = vmatprep.subr.bf16.mxu0 %v5871_v20  ;;  %4451 = vmatprep.subr.bf16.mxu1 %v5024_v16  ;;  %v4834_v20 = vld [vmem:[%s6482_s1 + $0x38] ss:$12 sps:$4 sm:$0xff]  }
 0x422   : > { %3028 = vmatpush1.bf16.msra.mxu0 %v5877_v21  ;;  %4452 = vmatpush3.bf16.msra.mxu1 %v4828_v40  ;;  %v4835_v21 = vld [vmem:[%s6482_s1 + $0x50] ss:$12 sps:$4 sm:$0xff]   ;;  %v4064_v40 = vld [vmem:[%s5181_s0 + $0x48] sm:$0xff] }
 0x423   : > { %3029 = vmatprep.subr.bf16.mxu0 %v5887_v24  ;;  %4453 = vmatprep.subr.bf16.mxu1 %v5024_v16  ;;  %v4836_v24 = vld [vmem:[%s6482_s1 + $0x68] ss:$12 sps:$4 sm:$0xff]  }
 0x426   : > { %3030 = vmatpush1.bf16.msra.mxu0 %v5893_v25  ;;  %4454 = vmatpush3.bf16.msra.mxu1 %v4829_v44  ;;  %v4837_v25 = vld [vmem:[%s6482_s1 + $0x80] ss:$12 sps:$4 sm:$0xff]  }
 0x427   : > { %3031 = vmatprep.subr.bf16.mxu0 %v5903_v29  ;;  %4455 = vmatprep.subr.bf16.mxu1 %v5024_v16  ;;  %v4838_v29 = vld [vmem:[%s6482_s1 + $0x98] ss:$12 sps:$4 sm:$0xff]  }
 0x42a   : > { %3032 = vmatpush1.bf16.msra.mxu0 %v5909_v30  ;;  %4456 = vmatpush3.bf16.msra.mxu1 %v4830_v53  ;;  %v4839_v30 = vld [vmem:[%s6482_s1 + $0xb0] ss:$12 sps:$4 sm:$0xff]  }
 0x42b   : > { %3033 = vmatprep.subr.bf16.mxu0 %v5919_v33  ;;  %4457 = vmatprep.subr.bf16.mxu1 %v5024_v16 }
 0x42e   : > { %3034 = vmatpush1.bf16.msra.mxu0 %v5925_v36  ;;  %4458 = vmatpush3.bf16.msra.mxu1 %v4831_v56 }
 0x42f   : > { %3307 = vmatprep.subr.bf16.mxu0 %v5942_v43  ;;  %4463 = vmatprep.subr.bf16.mxu1 %v5024_v16 }
 0x431   : > { %3052 = vmatmul.mubr.bf16.vlgmr.msra.gmra.mrb[24].mxu0 %v6107_v5  ;;  %4460 = vmatmul.mubr.bf16.vlgmr.msra.gmra.mrb[36].mxu1 %v6107_v5 }
 0x432   : > { %3308 = vmatpush1.bf16.msra.mxu0 %v5947_v45  ;;  %3339 = vmatprep.mubr.bf16.mxu0 %v5025_v17 }
 0x433   : > { %3309 = vmatprep.subr.bf16.mxu0 %v5957_v46  ;;  %4479 = vmatprep.mubr.msk.bf16.mxu1 %vm5026_vm0, %v5024_v16  ;;  %v2356_v46 = vld [vmem:[%s6483_s2] sm:$0x7] }
 0x434   : > { %4464 = vmatpush3.bf16.msra.mxu1 %v4832_v15  ;;  %v2369_v19 = vrot.slane %v2356_v46, %v5724_v50 }
 0x435   : > { %4465 = vmatprep.subr.bf16.mxu1 %v5024_v16 }
 0x436   : > { %3310 = vmatpush1.bf16.msra.mxu0 %v5963_v49  ;;  %v2361_v49 = vrot.slane %v2356_v46, %v5715_v48 }
 0x437   : > { %3311 = vmatprep.subr.bf16.mxu0 %v5973_v54 }
 0x438   : > { %4466 = vmatpush3.bf16.msra.mxu1 %v4833_v18  ;;  %v4065_v18 = vld [vmem:[%s5181_s0 + $0x50] sm:$0xff] }
 0x439   : > { %4467 = vmatprep.subr.bf16.mxu1 %v5024_v16 }
 0x43a   : > { %3312 = vmatpush1.bf16.msra.mxu0 %v5979_v55 }
 0x43b   : > { %3313 = vmatprep.subr.bf16.mxu0 %v5989_v60  ;;  %v2365_v60 = vrot.slane %v2356_v46, %v5720_v51 }
 0x43c   : > { %4468 = vmatpush3.bf16.msra.mxu1 %v4834_v20 }
 0x43d   : > { %4469 = vmatprep.subr.bf16.mxu1 %v5024_v16 }
 0x43e   : > { %3314 = vmatpush1.bf16.msra.mxu0 %v5995_v61 }
 0x43f   : > { %3315 = vmatprep.subr.bf16.mxu0 %v6005_v0 }
 0x440   : > { %4470 = vmatpush3.bf16.msra.mxu1 %v4835_v21 }
 0x441   : > { %4471 = vmatprep.subr.bf16.mxu1 %v5024_v16 }
 0x442   : > { %3316 = vmatpush1.bf16.msra.mxu0 %v6011_v2 }
 0x443   : > { %3317 = vmatprep.subr.bf16.mxu0 %v6020_v9 }
 0x444   : > { %4472 = vmatpush3.bf16.msra.mxu1 %v4836_v24 }
 0x445   : > { %4473 = vmatprep.subr.bf16.mxu1 %v5024_v16 }
 0x446   : > { %3318 = vmatpush1.bf16.msra.mxu0 %v6026_v12 }
 0x447   : > { %3319 = vmatprep.subr.bf16.mxu0 %v6036_v34 }
 0x448   : > { %4474 = vmatpush3.bf16.msra.mxu1 %v4837_v25 }
 0x449   : > { %4475 = vmatprep.subr.bf16.mxu1 %v5024_v16 }
 0x44a   : > { %3320 = vmatpush1.bf16.msra.mxu0 %v6042_v62 }
 0x44b   : > { %3321 = vmatprep.subr.bf16.mxu0 %v6052_v59 }
 0x44c   : > { %4476 = vmatpush3.bf16.msra.mxu1 %v4838_v29 }
 0x44d   : > { %4477 = vmatprep.subr.bf16.mxu1 %v5024_v16 }
 0x44e   : > { %3322 = vmatpush1.bf16.msra.mxu0 %v6058_v6 }
 0x44f   : > { %3549 = vmatprep.subr.bf16.mxu0 %v6068_v4 }
 0x450   : > { %4478 = vmatpush3.bf16.msra.mxu1 %v4839_v30 }
 0x451   : > { %4483 = vmatprep.subr.bf16.mxu1 %v5024_v16 }
 0x4c4   : > { %v2576_v33 = vpop.f32.mrb[28].mxu1 }
 0x4c5   : > { %v4421_v36 = vpop.f32.mrb[29].mxu1  ;;  %v2577_v23 = vadd.f32 %v2576_v33, %v2369_v19 }
 0x4c6   : > { %v2579_v43 = vpop.f32.mrb[30].mxu1 }
 0x4c7   : > { %v4422_v45 = vpop.f32.mrb[31].mxu1 }
 0x4e4   : > { %v2777_v54 = vpop.f32.mrb[20].mxu0  ;;  %v2818_v55 = vpop.f32.mrb[32].mxu1 }
 0x4e5   : > { %v4507_v61 = vadd.f32 %v2777_v54, %v2361_v49  ;;  %v2779_v0 = vpop.f32.mrb[21].mxu0  ;;  %v4441_v2 = vpop.f32.mrb[33].mxu1  ;;  %v2845_v8 = vadd.f32 %v6343_v58, %v2818_v55 }
 0x4e6   : > { %v2781_v9 = vpop.f32.mrb[22].mxu0  ;;  %v2821_v12 = vpop.f32.mrb[34].mxu1  ;;  %v4508_v6 = vadd.f32 %v2779_v0, %v2365_v60 }
 0x4e7   : > { %v4060_v34 = vmul.f32 -1.442695, %v4507_v61  ;;  %v2782_v62 = vpop.f32.mrb[23].mxu0  ;;  %v4442_v59 = vpop.f32.mrb[35].mxu1 }
 0x4e8   : > { %v4061_v4 = vmul.f32 -1.442695, %v4508_v6  ;;  %v4066_v62 = vld [vmem:[%s5181_s0 + $0x58] sm:$0xff] }
 0x4e9   : > { %4898 = vpow2.f32 %v4060_v34 }
 0x4ea   : > { %4900 = vpow2.f32 %v4061_v4 }
 0x4f3   : > { %v4899_v5 = vpop.eup %4898 }
 0x4f4   : > { %v2828_v27 = vadd.f32 1.0, %v4899_v5  ;;  %v4901_v57 = vpop.eup %4900 }
 0x4f5   : > { %v2835_v26 = vadd.f32 1.0, %v4901_v57 }
 0x4f6   : > { %4902 = vrcp.f32 %v2828_v27 }
 0x4f7   : > { %4904 = vrcp.f32 %v2835_v26  ;;  %v4840_v26 = vld [vmem:[%s6485_s4 + $0x8] ss:$12 sps:$4 sm:$0xff]  }
 0x500   : > { %v4903_v32 = vpop.eup %4902 }
 0x501   : > { %v2846_v28 = vmul.f32 %v4903_v32, %v2845_v8  ;;  %v4905_v33 = vpop.eup %4904 }
 0x502   : > { %v2849_v46 = vsub.f32 1.0, %v4905_v33  ;;  %v2851_v55 = vmul.f32 %v4905_v33, %v6083_v37 }
 0x503   : > { %v2847_v44 = vadd.f32 %v2846_v28, %v2577_v23 }
 0x504   : > { %v3053_v53 = vpop.f32.mrb[24].mxu0  ;;  %v3094_v56 = vpop.f32.mrb[36].mxu1 }
 0x505   : > { %4906 = vtanh.f32 %v2847_v44  ;;  %v3100_v15 = vadd.f32 %v4064_v40, %v3053_v53  ;;  %v3055_v20 = vpop.f32.mrb[25].mxu0  ;;  %v4461_v21 = vpop.f32.mrb[37].mxu1  ;;  %v3121_v12 = vadd.f32 %v6090_v14, %v3094_v56  ;;  %v4841_v14 = vld [vmem:[%s6485_s4 + $0x20] ss:$12 sps:$4 sm:$0xff]  }
 0x506   : > { %v3057_v24 = vpop.f32.mrb[26].mxu0  ;;  %v3097_v25 = vpop.f32.mrb[38].mxu1  ;;  %v3107_v43 = vadd.f32 %v4065_v18, %v3055_v20 }
 0x507   : > { %v4091_v29 = vmul.f32 -1.442695, %v3100_v15  ;;  %v3058_v30 = vpop.f32.mrb[27].mxu0  ;;  %v4462_v36 = vpop.f32.mrb[39].mxu1 }
 0x508   : > { %v4092_v45 = vmul.f32 -1.442695, %v3107_v43 }
 0x509   : > { %4908 = vpow2.f32 %v4091_v29 }
 0x50a   : > { %4910 = vpow2.f32 %v4092_v45 }
 0x50f   : > { %v4907_v49 = vpop.eup %4906 }
 0x510   : > { %v2850_v54 = vmul.f32 %v4907_v49, %v2849_v46 }
 0x512   : > { %v6350_v60 = vadd.f32 %v2851_v55, %v2850_v54 }
 0x513   : > { %v4909_v61 = vpop.eup %4908 }
 0x514   : > { %v3104_v0 = vadd.f32 1.0, %v4909_v61  ;;  %4063 = vst [vmem:[%s5183_s15 + $0x10] sm:$0xff] %v6350_v60  ;;  %v4911_v2 = vpop.eup %4910 }
 0x515   : > { %v3111_v9 = vadd.f32 1.0, %v4911_v2 }
 0x516   : > { %4912 = vrcp.f32 %v3104_v0 }
 0x517   : > { %4914 = vrcp.f32 %v3111_v9 }
 0x520   : > { %v4913_v34 = vpop.eup %4912 }
 0x521   : > { %v3122_v59 = vmul.f32 %v4913_v34, %v3121_v12  ;;  %v4915_v4 = vpop.eup %4914 }
 0x522   : > { %v3125_v37 = vsub.f32 1.0, %v4915_v4  ;;  %v3127_v57 = vmul.f32 %v4915_v4, %v6095_v7  ;;  %v4842_v7 = vld [vmem:[%s6485_s4 + $0x38] ss:$12 sps:$4 sm:$0xff]  }
 0x523   : > { %v3123_v6 = vadd.f32 %v4066_v62, %v3122_v59 }
 0x525   : > { %4916 = vtanh.f32 %v3123_v6 }
 0x52f   : > { %v4917_v5 = vpop.eup %4916 }
 0x530   : > { %v3126_v27 = vmul.f32 %v4917_v5, %v3125_v37 }
 0x532   : > { %v3128_v19 = vadd.f32 %v3127_v57, %v3126_v27 }
 0x534   : > { %v3129_v8 = vpack.c.bf16 %v3128_v19, %v3128_v19  ;;  %3661 = vst [vmem:[%s5179_s27] sm:$0xff] %v3128_v19 }
 0x536   : > { %3340 = vmatmul.mubr.bf16.vlgmr.msra.gmra.mrb[28].mxu0 %v3129_v8  ;;  %4480 = vmatmul.mubr.bf16.vlgmr.msra.gmra.mrb[40].mxu1 %v3129_v8 }
 0x537   : > { %3550 = vmatpush1.bf16.msra.mxu0 %v6100_v1  ;;  %4484 = vmatpush3.bf16.msra.mxu1 %v4840_v26  ;;  %v4844_v1 = vld [vmem:[%s6485_s4 + $0x68] ss:$12 sps:$4 sm:$0xff]  }
 0x538   : > { %3551 = vmatprep.subr.bf16.mxu0 %v6112_v38  ;;  %4485 = vmatprep.subr.bf16.mxu1 %v5024_v16  ;;  %v4845_v38 = vld [vmem:[%s6485_s4 + $0x80] ss:$12 sps:$4 sm:$0xff]  }
 0x539   : > { %3581 = vmatprep.mubr.bf16.mxu0 %v5025_v17  ;;  %4499 = vmatprep.mubr.msk.bf16.mxu1 %vm5026_vm0, %v5024_v16  ;;  %v4843_v17 = vld [vmem:[%s6485_s4 + $0x50] ss:$12 sps:$4 sm:$0xff]  }
 0x53b   : > { %3552 = vmatpush1.bf16.msra.mxu0 %v6120_v3  ;;  %4486 = vmatpush3.bf16.msra.mxu1 %v4841_v14  ;;  %v4846_v3 = vld [vmem:[%s6485_s4 + $0x98] ss:$12 sps:$4 sm:$0xff]  }
 0x53c   : > { %3553 = vmatprep.subr.bf16.mxu0 %v6130_v41  ;;  %4487 = vmatprep.subr.bf16.mxu1 %v5024_v16  ;;  %v4847_v41 = vld [vmem:[%s6485_s4 + $0xb0] ss:$12 sps:$4 sm:$0xff]  }
 0x53f   : > { %3554 = vmatpush1.bf16.msra.mxu0 %v6139_v39  ;;  %4488 = vmatpush3.bf16.msra.mxu1 %v4842_v7  ;;  %v3388_v39 = vpack.c.bf16 %v6350_v60, %v6350_v60 }
 0x540   : > { %3555 = vmatprep.subr.bf16.mxu0 %v6149_v10  ;;  %4489 = vmatprep.subr.bf16.mxu1 %v5024_v16 }
 0x543   : > { %3556 = vmatpush1.bf16.msra.mxu0 %v6155_v13  ;;  %4490 = vmatpush3.bf16.msra.mxu1 %v4843_v17 }
 0x544   : > { %3557 = vmatprep.subr.bf16.mxu0 %v6165_v22  ;;  %4491 = vmatprep.subr.bf16.mxu1 %v5024_v16 }
 0x547   : > { %3558 = vmatpush1.bf16.msra.mxu0 %v6171_v47  ;;  %4492 = vmatpush3.bf16.msra.mxu1 %v4844_v1 }
 0x548   : > { %3559 = vmatprep.subr.bf16.mxu0 %v6181_v31  ;;  %4493 = vmatprep.subr.bf16.mxu1 %v5024_v16  ;;  %v3162_v31 = vld [vmem:[%s6483_s2] sm:$0x7] }
 0x54b   : > { %3560 = vmatpush1.bf16.msra.mxu0 %v6187_v42  ;;  %4494 = vmatpush3.bf16.msra.mxu1 %v4845_v38  ;;  %v3167_v42 = vrot.slane %v3162_v31, %v5715_v48 }
 0x54c   : > { %3561 = vmatprep.subr.bf16.mxu0 %v6197_v35  ;;  %4495 = vmatprep.subr.bf16.mxu1 %v5024_v16 }
 0x54f   : > { %3562 = vmatpush1.bf16.msra.mxu0 %v6203_v52  ;;  %4496 = vmatpush3.bf16.msra.mxu1 %v4846_v3  ;;  %v3171_v52 = vrot.slane %v3162_v31, %v5720_v51  ;;  %v3175_v51 = vrot.slane %v3162_v31, %v5724_v50 }
 0x550   : > { %3563 = vmatprep.subr.bf16.mxu0 %v6213_v11  ;;  %4497 = vmatprep.subr.bf16.mxu1 %v5024_v16 }
 0x553   : > { %3564 = vmatpush1.bf16.msra.mxu0 %v6219_v63  ;;  %4498 = vmatpush3.bf16.msra.mxu1 %v4847_v41 }
 0x556   : > { %3582 = vmatmul.mubr.bf16.vlgmr.msra.gmra.mrb[28].mxu0 %v3388_v39  ;;  %4500 = vmatmul.mubr.bf16.vlgmr.msra.gmra.mrb[44].mxu1 %v3388_v39 }
 0x609   : > { %v3382_v10 = vpop.f32.mrb[40].mxu1 }
 0x60a   : > { %v4481_v13 = vpop.f32.mrb[41].mxu1  ;;  %v3383_v29 = vadd.f32 %v3382_v10, %v3175_v51 }
 0x60b   : > { %v3385_v22 = vpop.f32.mrb[42].mxu1 }
 0x60c   : > { %v4482_v47 = vpop.f32.mrb[43].mxu1 }
 0x629   : > { %v3583_v35 = vpop.f32.mrb[28].mxu0  ;;  %v3624_v16 = vpop.f32.mrb[44].mxu1 }
 0x62a   : > { %v4509_v11 = vadd.f32 %v3583_v35, %v3167_v42  ;;  %v3585_v63 = vpop.f32.mrb[29].mxu0  ;;  %v4501_v32 = vpop.f32.mrb[45].mxu1  ;;  %v3651_v24 = vadd.f32 %v6343_v58, %v3624_v16 }
 0x62b   : > { %v3587_v23 = vpop.f32.mrb[30].mxu0  ;;  %v3627_v28 = vpop.f32.mrb[46].mxu1  ;;  %v4510_v56 = vadd.f32 %v3585_v63, %v3171_v52 }
 0x62c   : > { %v4142_v40 = vmul.f32 -1.442695, %v4509_v11  ;;  %v3588_v44 = vpop.f32.mrb[31].mxu0  ;;  %v4502_v53 = vpop.f32.mrb[47].mxu1 }
 0x62d   : > { %v4143_v15 = vmul.f32 -1.442695, %v4510_v56 }
 0x62e   : > { %4918 = vpow2.f32 %v4142_v40 }
 0x62f   : > { %4920 = vpow2.f32 %v4143_v15 }
 0x638   : > { %v4919_v18 = vpop.eup %4918 }
 0x639   : > { %v3634_v48 = vadd.f32 1.0, %v4919_v18  ;;  %v4921_v20 = vpop.eup %4920 }
 0x63a   : > { %v3641_v21 = vadd.f32 1.0, %v4921_v20 }
 0x63b   : > { %4922 = vrcp.f32 %v3634_v48 }
 0x63c   : > { %4924 = vrcp.f32 %v3641_v21 }
 0x645   : > { %v4923_v25 = vpop.eup %4922 }
 0x646   : > { %v3652_v30 = vmul.f32 %v4923_v25, %v3651_v24  ;;  %v4925_v43 = vpop.eup %4924 }
 0x647   : > { %v3655_v33 = vsub.f32 1.0, %v4925_v43  ;;  %v3657_v58 = vmul.f32 %v4925_v43, %v6350_v60 }
 0x648   : > { %v3653_v36 = vadd.f32 %v3652_v30, %v3383_v29 }
 0x64a   : > { %4926 = vtanh.f32 %v3653_v36 }
 0x654   : > { %v4927_v50 = vpop.eup %4926 }
 0x655   : > { %v3656_v45 = vmul.f32 %v4927_v50, %v3655_v33 }
 0x657   : > { %v3658_v46 = vadd.f32 %v3657_v58, %v3656_v45 }
 0x659   : > { %4145 = vst [vmem:[%s5183_s15 + $0x18] sm:$0xff] %v3658_v46  ;;  %3662 = vst [vmem:[%s5179_s27 + $0x8] sm:$0xff] %v3658_v46 }
 0x65a   : > { %4941 = shalt.err (!%p4938_p11)
}
 0x65b   : > { %s4942_s15 = scalar_lea.hbm %s6423_s25, 512  ;;  %s4946_s20 = scalar_lea.hbm %s6489_s8, 2048 }
 0x65c   : > { %p4943_p12 = scmp.ne.s32.totalorder %s6423_s25, %s4942_s15  ;;  %p4947_p1 = scmp.lt.u32.totalorder %s6423_s25, %s6489_s8 }
 0x65d   : > { %p4948_p2 = scmp.lt.u32.totalorder %s4946_s20, %s4942_s15  ;;  %p4950_p4 = scmp.lt.u32.totalorder %s4942_s15, %s6423_s25 }
 0x65e   : > { %p4944_p13 = pnand %p4943_p12, %p5141_p8 }
 0x65f   : > { %p4949_p3 = por %p4948_p2, %p4947_p1 }
 0x660   : > { %p4945_p0 = pneg %p4944_p13 }
 0x661   : > { %p4951_p5 = por %p4950_p4, %p4949_p3 }
 0x663   : > { %p4952_p6 = pnand %p4951_p5, %p4945_p0 }
 0x665   : > { %4955 = shalt.err (!%p4952_p6)
}
 0x666   : > { %s5028_s21 = smov 128   ;;  %s5029_s13 = smov 256  }
 0x667   : > { %s5030_s26 = smov 8  }
 0x668   : > { %4531 = dma.vmem_to_hbm [thread:$0]  (%p5141_p8), %s6425_s18, 512, %s6423_s25, %s3664_s12, %s5028_s21, %s5029_s13, %s5030_s26  }
 0x669 PF: > { %p4537_p7 = scmp.ge.s32.totalorder %s5022_s16, 2  ;;  %s3702_s17 = sand.u32 1, %s4994_s30  }
 0x66a   : > { %s3703_s15 = scalar_lea.sflag [#allocation4], %s3702_s17 }
 0x66b   : > { %p4534_p10 = pnand %p4537_p7, %p5145_p9 }
 0x66d   : > { %4989 = dma.done.wait (!%p4534_p10), %s3703_s15, 512  }
 0x66e   : > { %4991 = vsyncadd (!%p4534_p10), %s3703_s15, 4294966784  ;;  %s23_s16 = sadd.s32 1, %s5022_s16   ;;  %s6505_s13 = sld [smem:[#allocation6_spill]] }
 0x66f   : > { %p20_p11 = scmp.ge.s32.totalorder %s23_s16, 6   ;;  %s6506_s23 = sld [smem:[#allocation7_spill]] }
 0x670   : > { %s6507_s15 = sld [smem:[#allocation8_spill]]  ;;  %s6508_s30 = smov %s4998_s10 }
 0x671   : > { %s6509_s10 = smov %s5002_s11  ;;  %s6510_s11 = smov %s5153_s28 }
 0x672   : > { %s6511_s12 = smov %s5014_s14  ;;  %22 = sbr.rel (!%p20_p11) target bundleno = 7 (0x7), region = 140 }
 0x675   : > { %s6512_s14 = smov %s6506_s23 }
 0x679   :  { %3716 = vsyncpa [#allocation4], 1 }
 0x67a   :  { %3718 = vsyncpa [#allocation4 + $0x1], 1 }

// kernel: seq_vae_forward.6
= control target key start
LH: loop header
LB: loop body
LE: loop exit
PB: predicated region body
PF: predicated region fallthrough
CT: control target
= control target key end

     0   :  { %s6571_s0 = inlined_call_operand.vmem [shape: f32[8,16,384], index: 0, kind: input, shape index: {}]   ;;  %s6572_s1 = inlined_call_operand.vmem [shape: bf16[128,384], index: 1, kind: input, shape index: {}]   ;;  %s6573_s2 = inlined_call_operand.vmem [shape: f32[1,384], index: 2, kind: input, shape index: {}]   ;;  %s6574_s3 = inlined_call_operand.vmem [shape: bf16[128,384], index: 3, kind: input, shape index: {}]   ;;  %s6575_s4 = inlined_call_operand.vmem [shape: bf16[128,384], index: 4, kind: input, shape index: {}]   ;;  %s6576_s5 = inlined_call_operand.vmem [shape: f32[1,128], index: 5, kind: input, shape index: {}]   ;;  %s6577_s6 = inlined_call_operand.vmem [shape: f32[1,128], index: 6, kind: input, shape index: {}]   ;;  %s6578_s7 = inlined_call_operand.vmem [shape: f32[16,256], index: 7, kind: input, shape index: {}]   ;;  %s6579_s8 = inlined_call_operand.vmem [shape: f32[8,16,128], index: 8, kind: output, shape index: {0}]   ;;  %s6580_s9 = inlined_call_operand.hbm [shape: f32[16,256], index: 9, kind: output, shape index: {1}]  }
   0x1   :  { %6586 = sst [smem:[#allocation13_spill]] %s6571_s0 }
   0x2   :  { %6587 = sst [smem:[#allocation14_spill]] %s6579_s8 }
   0x3   :  { %6588 = sst [smem:[#allocation15_spill]] %s6580_s9 }
   0x4   :  { %15 = vsyncpa [#allocation5], 0 }
   0x5   :  { %17 = vsyncpa [#allocation5 + $0x1], 0  ;;  %s5150_s30 = smov 0   ;;  %s5152_s10 = smov 0  }
   0x6   :  { %s5154_s11 = smov 0   ;;  %s5156_s12 = smov 0  }
   0x7   :  { %s5158_s13 = smov 0   ;;  %s5160_s14 = smov 0  }
   0x8   :  { %s5162_s15 = smov 0   ;;  %s5164_s16 = smov 0  }
   0x9   :  { %s5166_s17 = smov 0   ;;  %s5168_s18 = smov 0  }
   0xa LB: > { %6589 = sst [smem:[#allocation7_spill]] %s5066_s11  ;;  %s3849_s19 = sadd.s32 4294967295, %s5094_s18   ;;  %s5094_s18 = sphi %s5168_s18, %s23_s18   ;;  %s5090_s17 = sphi %s5166_s17, %s6607_s17   ;;  %s5086_s16 = sphi %s5164_s16, %s6614_s16   ;;  %s5082_s15 = sphi %s5162_s15, %s6605_s15   ;;  %s5078_s14 = sphi %s5160_s14, %s6613_s14   ;;  %s5074_s13 = sphi %s5158_s13, %s6612_s13   ;;  %s5070_s12 = sphi %s5156_s12, %s6611_s12   ;;  %s5066_s11 = sphi %s5154_s11, %s6610_s11   ;;  %s5062_s10 = sphi %s5152_s10, %s6609_s10   ;;  %s5058_s30 = sphi %s5150_s30, %s6608_s30  }
   0xb   : > { %6590 = sst [smem:[#allocation8_spill]] %s5090_s17  ;;  %s3850_s20 = sadd.s32 4294967294, %s5094_s18  }
   0xc   : > { %s32_s21 = sadd.s32 1, %s5086_s16  ;;  %s35_s22 = sadd.s32 1, %s5090_s17 }
   0xd   : > { %p33_p0 = scmp.ge.s32.totalorder %s32_s21, 2  ;;  %s44_s23 = sadd.s32 1, %s5074_s13 }
   0xe   : > { %p51_p1 = scmp.ne.s32.totalorder %s5074_s13, %s5070_s12  ;;  %p52_p2 = scmp.eq.s32.totalorder %s5094_s18, 0 }
   0xf   : > { %s6616_s21 = smov (%p33_p0, %s32_s21), 0  ;;  %s6618_s22 = smov (!%p33_p0, %s35_s22), %s5090_s17 }
  0x10   : > { %6591 = sst [smem:[#allocation9_spill]] %s6616_s21  ;;  %s39_s24 = ssub.s32 %s5086_s16, %s6616_s21 }
  0x11   : > { %p5213_p3 = por %p52_p2, %p51_p1  ;;  %p37_p4 = scmp.ge.s32.totalorder %s6618_s22, 2 }
  0x12   : > { %p235_p5 = scmp.eq.s32.totalorder %s3849_s19, 3  ;;  %s250_s26 = sadd.s32 1, %s5066_s11 }
  0x13   : > { %p260_p6 = scmp.ne.s32.totalorder %s5066_s11, %s5062_s10  ;;  %s6620_s22 = smov (%p37_p4, %s6618_s22), 0 }
  0x14   : > { %6593 = sst [smem:[#allocation10_spill]] %s6620_s22  ;;  %p5222_p7 = por %p235_p5, %p51_p1 }
  0x15   : > { %p5226_p8 = por %p260_p6, %p235_p5  ;;  %s40_s29 = ssub.s32 %s5090_s17, %s6620_s22 }
  0x16   : > { %p266_p9 = scmp.ne.s32.totalorder %s5062_s10, %s5058_s30  ;;  %s41_s21 = sor.u32 %s40_s29, %s39_s24 }
  0x17   : > { %p248_p10 = scmp.eq.s32.totalorder %s40_s29, 0  ;;  %p42_p11 = scmp.eq.s32.totalorder %s41_s21, 0 }
  0x18   : > { %p267_p12 = scmp.eq.s32.totalorder %s3850_s20, 3  ;;  %p3852_p0 = scmp.ge.s32.totalorder %s5094_s18, 4 }
  0x19   : > { %s5235_s19 = scalar_select %p248_p10, %s5066_s11, %s250_s26  }
  0x1a   : > { %s5238_s9 = scalar_select %p42_p11, %s5074_s13, %s44_s23  }
  0x1b   : > { %6596 = sst [smem:[#allocation11_spill]] %s5235_s19  ;;  %p5240_p13 = por %p267_p12, %p266_p9 }
  0x1c   : > { %6597 = sst [smem:[#allocation12_spill]] %s5238_s9  ;;  %301 = sbr.rel (%p3852_p0) target bundleno = 50 (0x32), region = 40 }
  0x23   : > { %304 = sbr.rel (!%p5213_p3) target bundleno = 50 (0x32), region = 44  ;;  %s306_s24 = sand.u32 (%p5213_p3), 1, %s5074_s13  }
  0x24   : > { %s4571_s21 = smul.u32 (%p5213_p3), 3, %s5090_s17  ;;  %s6599_s0 = sld [smem:[#allocation13_spill]] (%p5213_p3) }
  0x25   : > { %s4570_s20 = smul.u32 (%p5213_p3), 96, %s306_s24 }
  0x26   : > { %s4572_s26 = smul.u32 (%p5213_p3), 24, %s5086_s16 }
  0x27   : > { %s308_s11 = scalar_lea.vmem (%p5213_p3), [#allocation2], %s4570_s20 }
  0x28   : > { %s312_s29 = sadd.s32 (%p5213_p3), %s4572_s26, %s4571_s21 }
  0x29   : > { %s3855_s23 = sshll.u32 (%p5213_p3), %s312_s29, 3 }
  0x2a   : > { %s314_s19 = scalar_lea.vmem %s6599_s0, %s3855_s23 }
  0x2b   : > { %v327_v0 = vld [vmem:[%s314_s19] sm:$0xff]  ;;  %v329_v1 = vld [vmem:[%s314_s19 + $0x8] sm:$0xff]  ;;  %v331_v2 = vld [vmem:[%s314_s19 + $0x10] sm:$0xff] }
  0x2c   : > { %328 = vst [vmem:[%s308_s11] sm:$0xff] %v327_v0  ;;  %330 = vst [vmem:[%s308_s11 + $0x8] sm:$0xff] %v329_v1  ;;  %v333_v3 = vld [vmem:[%s314_s19 + $0x30] sm:$0xff]  ;;  %v335_v4 = vld [vmem:[%s314_s19 + $0x38] sm:$0xff] }
  0x2d   : > { %332 = vst [vmem:[%s308_s11 + $0x10] sm:$0xff] %v331_v2  ;;  %v337_v5 = vld [vmem:[%s314_s19 + $0x40] sm:$0xff]  ;;  %334 = vst [vmem:[%s308_s11 + $0x18] sm:$0xff] %v333_v3  ;;  %v341_v7 = vld [vmem:[%s314_s19 + $0x68] sm:$0xff] }
  0x2e   : > { %336 = vst [vmem:[%s308_s11 + $0x20] sm:$0xff] %v335_v4  ;;  %338 = vst [vmem:[%s308_s11 + $0x28] sm:$0xff] %v337_v5  ;;  %v339_v6 = vld [vmem:[%s314_s19 + $0x60] sm:$0xff]  ;;  %v343_v8 = vld [vmem:[%s314_s19 + $0x70] sm:$0xff] }
  0x2f   : > { %340 = vst [vmem:[%s308_s11 + $0x30] sm:$0xff] %v339_v6  ;;  %342 = vst [vmem:[%s308_s11 + $0x38] sm:$0xff] %v341_v7  ;;  %v345_v9 = vld [vmem:[%s314_s19 + $0x90] sm:$0xff]  ;;  %v347_v10 = vld [vmem:[%s314_s19 + $0x98] sm:$0xff] }
  0x30   : > { %344 = vst [vmem:[%s308_s11 + $0x40] sm:$0xff] %v343_v8  ;;  %v349_v11 = vld [vmem:[%s314_s19 + $0xa0] sm:$0xff]  ;;  %346 = vst [vmem:[%s308_s11 + $0x48] sm:$0xff] %v345_v9 }
  0x31   : > { %348 = vst [vmem:[%s308_s11 + $0x50] sm:$0xff] %v347_v10  ;;  %350 = vst [vmem:[%s308_s11 + $0x58] sm:$0xff] %v349_v11 }
  0x32 PF: > { %p3856_p1 = scmp.ge.s32.totalorder %s5094_s18, 1  ;;  %p363_p2 = scmp.lt.s32.totalorder %s5094_s18, 5 }
  0x34   : > { %p364_p3 = pnand %p3856_p1, %p363_p2 }
  0x35   : > { %s370_s9 = sand.u32 (!%p364_p3), 1, %s5070_s12   ;;  %s411_s22 = sand.u32 (!%p364_p3), 1, %s5062_s10  }
  0x36   : > { %367 = sbr.rel (%p364_p3) target bundleno = 1663 (0x67f), region = 71  ;;  %s3857_s19 = sshll.u32 (!%p364_p3), %s370_s9, 5 }
  0x37   : > { %s4573_s25 = smul.u32 (!%p364_p3), 96, %s370_s9  ;;  %s3858_s24 = sshll.u32 (!%p364_p3), %s411_s22, 4 }
  0x38   : > { %p415_p4 = scmp.lt.s32.totalorder (!%p364_p3), %s5082_s15, 1  ;;  %s5266_s0 = scalar_lea.vmem (!%p364_p3), [#allocation3], %s3857_s19 }
  0x39   : > { %s5264_s23 = scalar_lea.vmem (!%p364_p3), [#allocation2], %s4573_s25  ;;  %s5268_s17 = scalar_lea.vmem (!%p364_p3), [#allocation4], %s3858_s24 }
  0x3a   : > { %p3861_p5 = scmp.ne.s32.totalorder (!%p364_p3), %s5078_s14, 0 }
  0x3d   : > { %s416_s11 = scalar_select %p415_p4, %s5082_s15, 1 }
  0x3e   : > { %425 = sbr.rel (%p3861_p5) target bundleno = 69 (0x45), region = 79 }
  0x3f   : > { %s4195_s21 = sshll.u32 %s416_s11, 4 }
  0x40   : > { %s419_s29 = scalar_lea.vmem %s6578_s7, %s4195_s21 }
  0x41   : > { %v426_v12 = vld [vmem:[%s419_s29] sm:$0xff] (!%p3861_p5)  ;;  %v427_v13 = vld [vmem:[%s419_s29 + $0x8] sm:$0xff] (!%p3861_p5) }
  0x42   : > { %428 = vst [vmem:[%s5268_s17] sm:$0xff] (!%p3861_p5), %v426_v12  ;;  %429 = vst [vmem:[%s5268_s17 + $0x8] sm:$0xff] (!%p3861_p5), %v427_v13 }
  0x45 PF: > { %v5276_v14 = vld [vmem:[%s6574_s3 + $0x4] ss:$12 sps:$4 sm:$0xff]   ;;  %v5281_v15 = vld [vmem:[%s6574_s3] ss:$12 sps:$4 sm:$0xff]   ;;  %v5096_v16 = vmov 0.0   ;;  %v5097_v17 = vmov 0  }
  0x46   : > { %4306 = vmatprep.subr.bf16.mxu1 %v5096_v16  ;;  %628 = vmatprep.mubr.bf16.mxu0 %v5097_v17  ;;  %v5289_v18 = vld [vmem:[%s6574_s3 + $0x1c] ss:$12 sps:$4 sm:$0xff]   ;;  %vm5098_vm0 = vmmov 0   ;;  %v5297_v19 = vld [vmem:[%s6574_s3 + $0x18] ss:$12 sps:$4 sm:$0xff]   ;;  %s6506_s26 = scalar_lea.sflag [#allocation5], %s411_s22 }
  0x47   : > { %596 = vmatprep.subr.bf16.mxu0 %v5276_v14  ;;  %4322 = vmatprep.mubr.msk.bf16.mxu1 %vm5098_vm0, %v5096_v16  ;;  %v5303_v20 = vld [vmem:[%s6574_s3 + $0x34] ss:$12 sps:$4 sm:$0xff]   ;;  %v5309_v21 = vld [vmem:[%s6574_s3 + $0x30] ss:$12 sps:$4 sm:$0xff]   ;;  %v5315_v22 = vld [vmem:[%s6574_s3 + $0x4c] ss:$12 sps:$4 sm:$0xff]  }
  0x48   : > { %597 = vmatpush1.bf16.msra.mxu0 %v5281_v15  ;;  %v4684_v23 = vld [vmem:[%s6574_s3 + $0x8] ss:$12 sps:$4 sm:$0xff]   ;;  %v5330_v25 = vld [vmem:[%s6574_s3 + $0x64] ss:$12 sps:$4 sm:$0xff]   ;;  %v4688_v26 = vld [vmem:[%s6574_s3 + $0x20] ss:$12 sps:$4 sm:$0xff]  }
  0x49   : > { %598 = vmatprep.subr.bf16.mxu0 %v5289_v18  ;;  %v5324_v24 = vld [vmem:[%s6574_s3 + $0x48] ss:$12 sps:$4 sm:$0xff]   ;;  %4307 = vmatpush3.bf16.msra.mxu1 %v4684_v23  ;;  %v5339_v27 = vld [vmem:[%s6574_s3 + $0x60] ss:$12 sps:$4 sm:$0xff]   ;;  %v4690_v28 = vld [vmem:[%s6574_s3 + $0x38] ss:$12 sps:$4 sm:$0xff]  }
  0x4a   : > { %4308 = vmatprep.subr.bf16.mxu1 %v5096_v16  ;;  %v5349_v29 = vld [vmem:[%s6574_s3 + $0x7c] ss:$12 sps:$4 sm:$0xff]   ;;  %v5355_v30 = vld [vmem:[%s6574_s3 + $0x78] ss:$12 sps:$4 sm:$0xff]   ;;  %v5360_v31 = vld [vmem:[%s6574_s3 + $0x94] ss:$12 sps:$4 sm:$0xff]  }
  0x4b   : > { %v4691_v32 = vld [vmem:[%s6574_s3 + $0x50] ss:$12 sps:$4 sm:$0xff]   ;;  %v4692_v34 = vld [vmem:[%s6574_s3 + $0x68] ss:$12 sps:$4 sm:$0xff]   ;;  %v5379_v35 = vld [vmem:[%s6574_s3 + $0xac] ss:$12 sps:$4 sm:$0xff]  }
  0x4c   : > { %599 = vmatpush1.bf16.msra.mxu0 %v5297_v19  ;;  %v5371_v33 = vld [vmem:[%s6574_s3 + $0x90] ss:$12 sps:$4 sm:$0xff]   ;;  %v5387_v36 = vld [vmem:[%s6574_s3 + $0xa8] ss:$12 sps:$4 sm:$0xff]   ;;  %v4693_v38 = vld [vmem:[%s6574_s3 + $0x80] ss:$12 sps:$4 sm:$0xff]  }
  0x4d   : > { %600 = vmatprep.subr.bf16.mxu0 %v5303_v20  ;;  %4309 = vmatpush3.bf16.msra.mxu1 %v4688_v26  ;;  %v5390_v37 = vld [vmem:[%s5268_s17] sm:$0xff]  ;;  %v5436_v46 = vld [vmem:[%s6572_s1 + $0x1c] ss:$12 sps:$4 sm:$0xff]   ;;  %v5463_v51 = vld [vmem:[%s6572_s1 + $0x4c] ss:$12 sps:$4 sm:$0xff]   ;;  %s4196_s29 = sshll.u32 (%p5222_p7), %s5078_s14, 3 }
  0x4e   : > { %4310 = vmatprep.subr.bf16.mxu1 %v5096_v16  ;;  %v4694_v39 = vld [vmem:[%s6574_s3 + $0x98] ss:$12 sps:$4 sm:$0xff]   ;;  %v435_v40 = vpack.c.bf16 %v5390_v37, %v5390_v37  ;;  %v4695_v41 = vld [vmem:[%s6574_s3 + $0xb0] ss:$12 sps:$4 sm:$0xff]   ;;  %v5421_v43 = vld [vmem:[%s6572_s1] ss:$12 sps:$4 sm:$0xff]   ;;  %s3671_s12 = sadd.s32 (%p5222_p7), %s5082_s15, %s4196_s29 }
  0x4f   : > { %v5416_v42 = vld [vmem:[%s6572_s1 + $0x4] ss:$12 sps:$4 sm:$0xff]   ;;  %v4699_v44 = vld [vmem:[%s6572_s1 + $0x8] ss:$12 sps:$4 sm:$0xff]   ;;  %v4703_v47 = vld [vmem:[%s6572_s1 + $0x20] ss:$12 sps:$4 sm:$0xff]  }
  0x50   : > { %601 = vmatpush1.bf16.msra.mxu0 %v5309_v21  ;;  %v5431_v45 = vld [vmem:[%s6572_s1 + $0x18] ss:$12 sps:$4 sm:$0xff]   ;;  %v5447_v48 = vld [vmem:[%s6572_s1 + $0x34] ss:$12 sps:$4 sm:$0xff]   ;;  %v5453_v49 = vld [vmem:[%s6572_s1 + $0x30] ss:$12 sps:$4 sm:$0xff]  }
  0x51   : > { %602 = vmatprep.subr.bf16.mxu0 %v5315_v22  ;;  %4311 = vmatpush3.bf16.msra.mxu1 %v4690_v28  ;;  %v4707_v50 = vld [vmem:[%s6572_s1 + $0x38] ss:$12 sps:$4 sm:$0xff]   ;;  %v5469_v52 = vld [vmem:[%s6572_s1 + $0x48] ss:$12 sps:$4 sm:$0xff]   ;;  %v4711_v53 = vld [vmem:[%s6572_s1 + $0x50] ss:$12 sps:$4 sm:$0xff]  }
  0x52   : > { %4312 = vmatprep.subr.bf16.mxu1 %v5096_v16  ;;  %v5479_v54 = vld [vmem:[%s6572_s1 + $0x64] ss:$12 sps:$4 sm:$0xff]   ;;  %v5485_v55 = vld [vmem:[%s6572_s1 + $0x60] ss:$12 sps:$4 sm:$0xff]   ;;  %v4715_v56 = vld [vmem:[%s6572_s1 + $0x68] ss:$12 sps:$4 sm:$0xff]  }
  0x53   : > { %v5494_v57 = vld [vmem:[%s6572_s1 + $0x7c] ss:$12 sps:$4 sm:$0xff]   ;;  %v5500_v58 = vld [vmem:[%s6572_s1 + $0x78] ss:$12 sps:$4 sm:$0xff]   ;;  %v4719_v59 = vld [vmem:[%s6572_s1 + $0x80] ss:$12 sps:$4 sm:$0xff]  }
  0x54   : > { %603 = vmatpush1.bf16.msra.mxu0 %v5324_v24  ;;  %v5510_v60 = vld [vmem:[%s6572_s1 + $0x94] ss:$12 sps:$4 sm:$0xff]   ;;  %v5516_v61 = vld [vmem:[%s6572_s1 + $0x90] ss:$12 sps:$4 sm:$0xff]   ;;  %v4723_v62 = vld [vmem:[%s6572_s1 + $0x98] ss:$12 sps:$4 sm:$0xff]  }
  0x55   : > { %604 = vmatprep.subr.bf16.mxu0 %v5330_v25  ;;  %4313 = vmatpush3.bf16.msra.mxu1 %v4691_v32  ;;  %v5526_v63 = vld [vmem:[%s6572_s1 + $0xac] ss:$12 sps:$4 sm:$0xff]   ;;  %v5532_v0 = vld [vmem:[%s6572_s1 + $0xa8] ss:$12 sps:$4 sm:$0xff]   ;;  %v4727_v1 = vld [vmem:[%s6572_s1 + $0xb0] ss:$12 sps:$4 sm:$0xff]  }
  0x56   : > { %4314 = vmatprep.subr.bf16.mxu1 %v5096_v16  ;;  %v5542_v2 = vld [vmem:[%s6575_s4 + $0x4] ss:$12 sps:$4 sm:$0xff]   ;;  %v433_v6 = vld [vmem:[%s5264_s23 + $0x8] sm:$0xff]  ;;  %s4190_s9 = sshll.u32 (%p5222_p7), %s3671_s12, 3  ;;  %s6600_s22 = sld [smem:[#allocation14_spill]] (%p5222_p7) }
  0x57   : > { %v432_v3 = vld [vmem:[%s5264_s23] sm:$0xff] }
  0x58   : > { %605 = vmatpush1.bf16.msra.mxu0 %v5339_v27 }
  0x59   : > { %606 = vmatprep.subr.bf16.mxu0 %v5349_v29  ;;  %4315 = vmatpush3.bf16.msra.mxu1 %v4692_v34 }
  0x5a   : > { %4316 = vmatprep.subr.bf16.mxu1 %v5096_v16 }
  0x5c   : > { %607 = vmatpush1.bf16.msra.mxu0 %v5355_v30 }
  0x5d   : > { %608 = vmatprep.subr.bf16.mxu0 %v5360_v31  ;;  %4317 = vmatpush3.bf16.msra.mxu1 %v4693_v38 }
  0x5e   : > { %4318 = vmatprep.subr.bf16.mxu1 %v5096_v16 }
  0x60   : > { %609 = vmatpush1.bf16.msra.mxu0 %v5371_v33 }
  0x61   : > { %610 = vmatprep.subr.bf16.mxu0 %v5379_v35  ;;  %4319 = vmatpush3.bf16.msra.mxu1 %v4694_v39  ;;  %v5552_v39 = vld [vmem:[%s6576_s5] ss:$0 sm:$0xff] }
  0x62   : > { %4320 = vmatprep.subr.bf16.mxu1 %v5096_v16 }
  0x64   : > { %611 = vmatpush1.bf16.msra.mxu0 %v5387_v36 }
  0x65   : > { %4321 = vmatpush3.bf16.msra.mxu1 %v4695_v41  ;;  %884 = vmatprep.subr.bf16.mxu0 %v5416_v42 }
  0x66   : > { %4326 = vmatprep.subr.bf16.mxu1 %v5096_v16 }
  0x67   : > { %629 = vmatmul.mubr.bf16.vlgmr.msra.gmra.mrb[0].mxu0 %v435_v40 }
  0x68   : > { %916 = vmatprep.mubr.bf16.mxu0 %v5097_v17  ;;  %4323 = vmatmul.mubr.bf16.vlgmr.msra.gmra.mrb[0].mxu1 %v435_v40 }
  0x69   : > { %4342 = vmatprep.mubr.msk.bf16.mxu1 %vm5098_vm0, %v5096_v16  ;;  %885 = vmatpush1.bf16.msra.mxu0 %v5421_v43 }
  0x6a   : > { %4327 = vmatpush3.bf16.msra.mxu1 %v4699_v44  ;;  %886 = vmatprep.subr.bf16.mxu0 %v5436_v46 }
  0x6b   : > { %4328 = vmatprep.subr.bf16.mxu1 %v5096_v16 }
  0x6d   : > { %887 = vmatpush1.bf16.msra.mxu0 %v5431_v45 }
  0x6e   : > { %4329 = vmatpush3.bf16.msra.mxu1 %v4703_v47  ;;  %888 = vmatprep.subr.bf16.mxu0 %v5447_v48  ;;  %v434_v47 = vld [vmem:[%s5264_s23 + $0x10] sm:$0xff] }
  0x6f   : > { %4330 = vmatprep.subr.bf16.mxu1 %v5096_v16 }
  0x71   : > { %889 = vmatpush1.bf16.msra.mxu0 %v5453_v49 }
  0x72   : > { %4331 = vmatpush3.bf16.msra.mxu1 %v4707_v50  ;;  %890 = vmatprep.subr.bf16.mxu0 %v5463_v51 }
  0x73   : > { %4332 = vmatprep.subr.bf16.mxu1 %v5096_v16 }
  0x75   : > { %891 = vmatpush1.bf16.msra.mxu0 %v5469_v52 }
  0x76   : > { %4333 = vmatpush3.bf16.msra.mxu1 %v4711_v53  ;;  %892 = vmatprep.subr.bf16.mxu0 %v5479_v54 }
  0x77   : > { %4334 = vmatprep.subr.bf16.mxu1 %v5096_v16 }
  0x79   : > { %893 = vmatpush1.bf16.msra.mxu0 %v5485_v55 }
  0x7a   : > { %4335 = vmatpush3.bf16.msra.mxu1 %v4715_v56  ;;  %894 = vmatprep.subr.bf16.mxu0 %v5494_v57 }
  0x7b   : > { %4336 = vmatprep.subr.bf16.mxu1 %v5096_v16 }
  0x7d   : > { %895 = vmatpush1.bf16.msra.mxu0 %v5500_v58 }
  0x7e   : > { %4337 = vmatpush3.bf16.msra.mxu1 %v4719_v59  ;;  %896 = vmatprep.subr.bf16.mxu0 %v5510_v60 }
  0x7f   : > { %4338 = vmatprep.subr.bf16.mxu1 %v5096_v16 }
  0x81   : > { %897 = vmatpush1.bf16.msra.mxu0 %v5516_v61 }
  0x82   : > { %4339 = vmatpush3.bf16.msra.mxu1 %v4723_v62  ;;  %898 = vmatprep.subr.bf16.mxu0 %v5526_v63 }
  0x83   : > { %4340 = vmatprep.subr.bf16.mxu1 %v5096_v16 }
  0x85   : > { %899 = vmatpush1.bf16.msra.mxu0 %v5532_v0 }
  0x86   : > { %4341 = vmatpush3.bf16.msra.mxu1 %v4727_v1  ;;  %1126 = vmatprep.subr.bf16.mxu0 %v5542_v2 }
  0x87   : > { %4346 = vmatprep.subr.bf16.mxu1 %v5096_v16 }
 0x13a   : > { %v630_v4 = vpop.f32.mrb[0].mxu0 }
 0x13b   : > { %v677_v5 = vadd.f32 %v630_v4, %v432_v3  ;;  %v632_v7 = vpop.f32.mrb[1].mxu0  ;;  %v671_v13 = vpop.f32.mrb[0].mxu1 }
 0x13c   : > { %v634_v8 = vpop.f32.mrb[2].mxu0  ;;  %v684_v11 = vadd.f32 %v632_v7, %v433_v6  ;;  %v4324_v23 = vpop.f32.mrb[1].mxu1  ;;  %v698_v41 = vadd.f32 %v5552_v39, %v671_v13  ;;  %v4731_v6 = vld [vmem:[%s6575_s4 + $0x8] ss:$12 sps:$4 sm:$0xff]   ;;  %v5611_v13 = vld [vmem:[%s6575_s4 + $0x4c] ss:$12 sps:$4 sm:$0xff]  }
 0x13d   : > { %v3886_v9 = vmul.f32 -1.442695, %v677_v5  ;;  %v635_v10 = vpop.f32.mrb[3].mxu0  ;;  %v674_v26 = vpop.f32.mrb[2].mxu1  ;;  %v5562_v5 = vld [vmem:[%s6575_s4] ss:$12 sps:$4 sm:$0xff]  }
 0x13e   : > { %v3887_v12 = vmul.f32 -1.442695, %v684_v11  ;;  %v4325_v28 = vpop.f32.mrb[3].mxu1  ;;  %v5574_v8 = vld [vmem:[%s6575_s4 + $0x1c] ss:$12 sps:$4 sm:$0xff]  }
 0x13f   : > { %4904 = vpow2.f32 %v3886_v9  ;;  %v4735_v9 = vld [vmem:[%s6575_s4 + $0x20] ss:$12 sps:$4 sm:$0xff]   ;;  %v5601_v11 = vld [vmem:[%s6575_s4 + $0x30] ss:$12 sps:$4 sm:$0xff]   ;;  %v5617_v23 = vld [vmem:[%s6575_s4 + $0x48] ss:$12 sps:$4 sm:$0xff]  }
 0x140   : > { %4906 = vpow2.f32 %v3887_v12  ;;  %v5592_v10 = vld [vmem:[%s6575_s4 + $0x34] ss:$12 sps:$4 sm:$0xff]   ;;  %v4739_v12 = vld [vmem:[%s6575_s4 + $0x38] ss:$12 sps:$4 sm:$0xff]   ;;  %v4743_v26 = vld [vmem:[%s6575_s4 + $0x50] ss:$12 sps:$4 sm:$0xff]  }
 0x141   : > { %v5627_v28 = vld [vmem:[%s6575_s4 + $0x64] ss:$12 sps:$4 sm:$0xff]  }
 0x149   : > { %v4905_v32 = vpop.eup %4904 }
 0x14a   : > { %v681_v34 = vadd.f32 1.0, %v4905_v32  ;;  %v4907_v38 = vpop.eup %4906  ;;  %v5633_v32 = vld [vmem:[%s6575_s4 + $0x60] ss:$12 sps:$4 sm:$0xff]  }
 0x14b   : > { %v688_v40 = vadd.f32 1.0, %v4907_v38  ;;  %v5643_v38 = vld [vmem:[%s6575_s4 + $0x7c] ss:$12 sps:$4 sm:$0xff]  }
 0x14c   : > { %4908 = vrcp.f32 %v681_v34  ;;  %v4747_v34 = vld [vmem:[%s6575_s4 + $0x68] ss:$12 sps:$4 sm:$0xff]  }
 0x14d   : > { %4910 = vrcp.f32 %v688_v40  ;;  %v5649_v40 = vld [vmem:[%s6575_s4 + $0x78] ss:$12 sps:$4 sm:$0xff]  }
 0x156   : > { %v4909_v44 = vpop.eup %4908 }
 0x157   : > { %v699_v50 = vmul.f32 %v4909_v44, %v698_v41  ;;  %v4911_v56 = vpop.eup %4910  ;;  %v4751_v41 = vld [vmem:[%s6575_s4 + $0x80] ss:$12 sps:$4 sm:$0xff]  }
 0x158   : > { %v702_v59 = vsub.f32 1.0, %v4911_v56  ;;  %v704_v3 = vmul.f32 %v4911_v56, %v5390_v37  ;;  %v5582_v37 = vld [vmem:[%s6575_s4 + $0x18] ss:$12 sps:$4 sm:$0xff]   ;;  %v5659_v44 = vld [vmem:[%s6575_s4 + $0x94] ss:$12 sps:$4 sm:$0xff]  }
 0x159   : > { %v700_v53 = vadd.f32 %v699_v50, %v434_v47  ;;  %v5665_v47 = vld [vmem:[%s6575_s4 + $0x90] ss:$12 sps:$4 sm:$0xff]   ;;  %v4755_v50 = vld [vmem:[%s6575_s4 + $0x98] ss:$12 sps:$4 sm:$0xff]   ;;  %v5681_v56 = vld [vmem:[%s6575_s4 + $0xa8] ss:$12 sps:$4 sm:$0xff]  }
 0x15b   : > { %4912 = vtanh.f32 %v700_v53  ;;  %v5675_v53 = vld [vmem:[%s6575_s4 + $0xac] ss:$12 sps:$4 sm:$0xff]  }
 0x165   : > { %v4913_v62 = vpop.eup %4912 }
 0x166   : > { %v703_v1 = vmul.f32 %v4913_v62, %v702_v59  ;;  %v4759_v59 = vld [vmem:[%s6575_s4 + $0xb0] ss:$12 sps:$4 sm:$0xff]  }
 0x167   : > { %v5687_v62 = vld [vmem:[%s5268_s17 + $0x8] sm:$0xff] }
 0x168   : > { %v5557_v4 = vadd.f32 %v704_v3, %v703_v1  ;;  %v965_v1 = vpack.c.bf16 %v5687_v62, %v5687_v62  ;;  %v4760_v3 = vld [vmem:[%s6574_s3 + $0x8] ss:$12 sps:$4 sm:$0xff]  }
 0x16a   : > { %v5569_v7 = vpack.c.bf16 %v5557_v4, %v5557_v4 }
 0x16c   : > { %917 = vmatmul.mubr.bf16.vlgmr.msra.gmra.mrb[4].mxu0 %v5569_v7  ;;  %4343 = vmatmul.mubr.bf16.vlgmr.msra.gmra.mrb[4].mxu1 %v5569_v7 }
 0x16d   : > { %1127 = vmatpush1.bf16.msra.mxu0 %v5562_v5  ;;  %4347 = vmatpush3.bf16.msra.mxu1 %v4731_v6  ;;  %v4761_v6 = vld [vmem:[%s6574_s3 + $0x20] ss:$12 sps:$4 sm:$0xff]  }
 0x16e   : > { %1128 = vmatprep.subr.bf16.mxu0 %v5574_v8  ;;  %4348 = vmatprep.subr.bf16.mxu1 %v5096_v16 }
 0x16f   : > { %1158 = vmatprep.mubr.bf16.mxu0 %v5097_v17  ;;  %4362 = vmatprep.mubr.msk.bf16.mxu1 %vm5098_vm0, %v5096_v16 }
 0x171   : > { %1129 = vmatpush1.bf16.msra.mxu0 %v5582_v37  ;;  %4349 = vmatpush3.bf16.msra.mxu1 %v4735_v9 }
 0x172   : > { %1130 = vmatprep.subr.bf16.mxu0 %v5592_v10  ;;  %4350 = vmatprep.subr.bf16.mxu1 %v5096_v16 }
 0x175   : > { %1131 = vmatpush1.bf16.msra.mxu0 %v5601_v11  ;;  %4351 = vmatpush3.bf16.msra.mxu1 %v4739_v12 }
 0x176   : > { %1132 = vmatprep.subr.bf16.mxu0 %v5611_v13  ;;  %4352 = vmatprep.subr.bf16.mxu1 %v5096_v16 }
 0x179   : > { %1133 = vmatpush1.bf16.msra.mxu0 %v5617_v23  ;;  %4353 = vmatpush3.bf16.msra.mxu1 %v4743_v26 }
 0x17a   : > { %1134 = vmatprep.subr.bf16.mxu0 %v5627_v28  ;;  %4354 = vmatprep.subr.bf16.mxu1 %v5096_v16 }
 0x17d   : > { %1135 = vmatpush1.bf16.msra.mxu0 %v5633_v32  ;;  %4355 = vmatpush3.bf16.msra.mxu1 %v4747_v34 }
 0x17e   : > { %1136 = vmatprep.subr.bf16.mxu0 %v5643_v38  ;;  %4356 = vmatprep.subr.bf16.mxu1 %v5096_v16 }
 0x181   : > { %1137 = vmatpush1.bf16.msra.mxu0 %v5649_v40  ;;  %4357 = vmatpush3.bf16.msra.mxu1 %v4751_v41 }
 0x182   : > { %1138 = vmatprep.subr.bf16.mxu0 %v5659_v44  ;;  %4358 = vmatprep.subr.bf16.mxu1 %v5096_v16 }
 0x185   : > { %1139 = vmatpush1.bf16.msra.mxu0 %v5665_v47  ;;  %4359 = vmatpush3.bf16.msra.mxu1 %v4755_v50 }
 0x186   : > { %1140 = vmatprep.subr.bf16.mxu0 %v5675_v53  ;;  %4360 = vmatprep.subr.bf16.mxu1 %v5096_v16 }
 0x189   : > { %1141 = vmatpush1.bf16.msra.mxu0 %v5681_v56  ;;  %4361 = vmatpush3.bf16.msra.mxu1 %v4759_v59 }
 0x18a   : > { %1401 = vmatprep.subr.bf16.mxu0 %v5276_v14  ;;  %4366 = vmatprep.subr.bf16.mxu1 %v5096_v16  ;;  %v4762_v14 = vld [vmem:[%s6574_s3 + $0x38] ss:$12 sps:$4 sm:$0xff]  }
 0x18c   : > { %1159 = vmatmul.mubr.bf16.vlgmr.msra.gmra.mrb[4].mxu0 %v965_v1  ;;  %4363 = vmatmul.mubr.bf16.vlgmr.msra.gmra.mrb[8].mxu1 %v965_v1  ;;  %v5814_v1 = vld [vmem:[%s6577_s6] ss:$0 sm:$0xff] }
 0x18d   : > { %1402 = vmatpush1.bf16.msra.mxu0 %v5281_v15  ;;  %4367 = vmatpush3.bf16.msra.mxu1 %v4760_v3  ;;  %v4763_v15 = vld [vmem:[%s6574_s3 + $0x50] ss:$12 sps:$4 sm:$0xff]  }
 0x18e   : > { %1403 = vmatprep.subr.bf16.mxu0 %v5289_v18  ;;  %4368 = vmatprep.subr.bf16.mxu1 %v5096_v16  ;;  %v4764_v18 = vld [vmem:[%s6574_s3 + $0x68] ss:$12 sps:$4 sm:$0xff]  }
 0x18f   : > { %1433 = vmatprep.mubr.bf16.mxu0 %v5097_v17  ;;  %4382 = vmatprep.mubr.msk.bf16.mxu1 %vm5098_vm0, %v5096_v16 }
 0x191   : > { %1404 = vmatpush1.bf16.msra.mxu0 %v5297_v19  ;;  %4369 = vmatpush3.bf16.msra.mxu1 %v4761_v6  ;;  %v4765_v19 = vld [vmem:[%s6574_s3 + $0x80] ss:$12 sps:$4 sm:$0xff]  }
 0x192   : > { %1405 = vmatprep.subr.bf16.mxu0 %v5303_v20  ;;  %4370 = vmatprep.subr.bf16.mxu1 %v5096_v16  ;;  %v4766_v20 = vld [vmem:[%s6574_s3 + $0x98] ss:$12 sps:$4 sm:$0xff]  }
 0x195   : > { %1406 = vmatpush1.bf16.msra.mxu0 %v5309_v21  ;;  %4371 = vmatpush3.bf16.msra.mxu1 %v4762_v14  ;;  %v4767_v21 = vld [vmem:[%s6574_s3 + $0xb0] ss:$12 sps:$4 sm:$0xff]  }
 0x196   : > { %1407 = vmatprep.subr.bf16.mxu0 %v5315_v22  ;;  %4372 = vmatprep.subr.bf16.mxu1 %v5096_v16  ;;  %v4768_v22 = vld [vmem:[%s6572_s1 + $0x8] ss:$12 sps:$4 sm:$0xff]  }
 0x199   : > { %1408 = vmatpush1.bf16.msra.mxu0 %v5324_v24  ;;  %4373 = vmatpush3.bf16.msra.mxu1 %v4763_v15  ;;  %v4769_v24 = vld [vmem:[%s6572_s1 + $0x20] ss:$12 sps:$4 sm:$0xff]  }
 0x19a   : > { %1409 = vmatprep.subr.bf16.mxu0 %v5330_v25  ;;  %4374 = vmatprep.subr.bf16.mxu1 %v5096_v16  ;;  %v4770_v25 = vld [vmem:[%s6572_s1 + $0x38] ss:$12 sps:$4 sm:$0xff]  }
 0x19d   : > { %1410 = vmatpush1.bf16.msra.mxu0 %v5339_v27  ;;  %4375 = vmatpush3.bf16.msra.mxu1 %v4764_v18  ;;  %v4771_v27 = vld [vmem:[%s6572_s1 + $0x50] ss:$12 sps:$4 sm:$0xff]  }
 0x19e   : > { %1411 = vmatprep.subr.bf16.mxu0 %v5349_v29  ;;  %4376 = vmatprep.subr.bf16.mxu1 %v5096_v16  ;;  %v4772_v29 = vld [vmem:[%s6572_s1 + $0x68] ss:$12 sps:$4 sm:$0xff]  }
 0x1a1   : > { %1412 = vmatpush1.bf16.msra.mxu0 %v5355_v30  ;;  %4377 = vmatpush3.bf16.msra.mxu1 %v4765_v19  ;;  %v4773_v30 = vld [vmem:[%s6572_s1 + $0x80] ss:$12 sps:$4 sm:$0xff]  }
 0x1a2   : > { %1413 = vmatprep.subr.bf16.mxu0 %v5360_v31  ;;  %4378 = vmatprep.subr.bf16.mxu1 %v5096_v16  ;;  %v4774_v31 = vld [vmem:[%s6572_s1 + $0x98] ss:$12 sps:$4 sm:$0xff]  }
 0x1a5   : > { %1414 = vmatpush1.bf16.msra.mxu0 %v5371_v33  ;;  %4379 = vmatpush3.bf16.msra.mxu1 %v4766_v20  ;;  %v4775_v33 = vld [vmem:[%s6572_s1 + $0xb0] ss:$12 sps:$4 sm:$0xff]  }
 0x1a6   : > { %1415 = vmatprep.subr.bf16.mxu0 %v5379_v35  ;;  %4380 = vmatprep.subr.bf16.mxu1 %v5096_v16  ;;  %v3940_v20 = vld [vmem:[%s5264_s23 + $0x18] sm:$0xff] }
 0x1a9   : > { %1416 = vmatpush1.bf16.msra.mxu0 %v5387_v36  ;;  %4381 = vmatpush3.bf16.msra.mxu1 %v4767_v21 }
 0x1aa   : > { %1689 = vmatprep.subr.bf16.mxu0 %v5416_v42  ;;  %4386 = vmatprep.subr.bf16.mxu1 %v5096_v16 }
 0x1ac   : > { %1434 = vmatmul.mubr.bf16.vlgmr.msra.gmra.mrb[8].mxu0 %v5569_v7  ;;  %4383 = vmatmul.mubr.bf16.vlgmr.msra.gmra.mrb[12].mxu1 %v5569_v7 }
 0x1ad   : > { %1690 = vmatpush1.bf16.msra.mxu0 %v5421_v43  ;;  %1721 = vmatprep.mubr.bf16.mxu0 %v5097_v17 }
 0x1ae   : > { %1691 = vmatprep.subr.bf16.mxu0 %v5436_v46  ;;  %4402 = vmatprep.mubr.msk.bf16.mxu1 %vm5098_vm0, %v5096_v16 }
 0x1af   : > { %4387 = vmatpush3.bf16.msra.mxu1 %v4768_v22 }
 0x1b0   : > { %4388 = vmatprep.subr.bf16.mxu1 %v5096_v16 }
 0x1b1   : > { %1692 = vmatpush1.bf16.msra.mxu0 %v5431_v45  ;;  %v741_v45 = vlaneseq }
 0x1b2   : > { %1693 = vmatprep.subr.bf16.mxu0 %v5447_v48 }
 0x1b3   : > { %4389 = vmatpush3.bf16.msra.mxu1 %v4769_v24  ;;  %v742_v46 = vshrl.u32 %v741_v45, 7 }
 0x1b4   : > { %4390 = vmatprep.subr.bf16.mxu1 %v5096_v16 }
 0x1b5   : > { %1694 = vmatpush1.bf16.msra.mxu0 %v5453_v49  ;;  %v5800_v48 = vsub.s32 0, %v742_v46  ;;  %v739_v49 = vld [vmem:[%s6573_s2] sm:$0x7]  ;;  %v5809_v50 = vsub.s32 2, %v742_v46 }
 0x1b6   : > { %1695 = vmatprep.subr.bf16.mxu0 %v5463_v51  ;;  %v5805_v51 = vsub.s32 1, %v742_v46 }
 0x1b7   : > { %4391 = vmatpush3.bf16.msra.mxu1 %v4770_v25  ;;  %v752_v3 = vrot.slane %v739_v49, %v5809_v50 }
 0x1b8   : > { %4392 = vmatprep.subr.bf16.mxu1 %v5096_v16 }
 0x1b9   : > { %1696 = vmatpush1.bf16.msra.mxu0 %v5469_v52  ;;  %v744_v52 = vrot.slane %v739_v49, %v5800_v48 }
 0x1ba   : > { %1697 = vmatprep.subr.bf16.mxu0 %v5479_v54 }
 0x1bb   : > { %4393 = vmatpush3.bf16.msra.mxu1 %v4771_v27  ;;  %v3941_v27 = vld [vmem:[%s5264_s23 + $0x20] sm:$0xff] }
 0x1bc   : > { %4394 = vmatprep.subr.bf16.mxu1 %v5096_v16 }
 0x1bd   : > { %1698 = vmatpush1.bf16.msra.mxu0 %v5485_v55  ;;  %v748_v55 = vrot.slane %v739_v49, %v5805_v51 }
 0x1be   : > { %1699 = vmatprep.subr.bf16.mxu0 %v5494_v57 }
 0x1bf   : > { %4395 = vmatpush3.bf16.msra.mxu1 %v4772_v29 }
 0x1c0   : > { %4396 = vmatprep.subr.bf16.mxu1 %v5096_v16 }
 0x1c1   : > { %1700 = vmatpush1.bf16.msra.mxu0 %v5500_v58 }
 0x1c2   : > { %1701 = vmatprep.subr.bf16.mxu0 %v5510_v60 }
 0x1c3   : > { %4397 = vmatpush3.bf16.msra.mxu1 %v4773_v30 }
 0x1c4   : > { %4398 = vmatprep.subr.bf16.mxu1 %v5096_v16 }
 0x1c5   : > { %1702 = vmatpush1.bf16.msra.mxu0 %v5516_v61 }
 0x1c6   : > { %1703 = vmatprep.subr.bf16.mxu0 %v5526_v63 }
 0x1c7   : > { %4399 = vmatpush3.bf16.msra.mxu1 %v4774_v31 }
 0x1c8   : > { %4400 = vmatprep.subr.bf16.mxu1 %v5096_v16 }
 0x1c9   : > { %1704 = vmatpush1.bf16.msra.mxu0 %v5532_v0 }
 0x1ca   : > { %1931 = vmatprep.subr.bf16.mxu0 %v5542_v2 }
 0x1cb   : > { %4401 = vmatpush3.bf16.msra.mxu1 %v4775_v33 }
 0x1cc   : > { %4406 = vmatprep.subr.bf16.mxu1 %v5096_v16 }
 0x23f   : > { %v959_v35 = vpop.f32.mrb[4].mxu1 }
 0x240   : > { %v4344_v36 = vpop.f32.mrb[5].mxu1  ;;  %v960_v18 = vadd.f32 %v959_v35, %v752_v3 }
 0x241   : > { %v962_v42 = vpop.f32.mrb[6].mxu1 }
 0x242   : > { %v4345_v43 = vpop.f32.mrb[7].mxu1 }
 0x25f   : > { %v1160_v54 = vpop.f32.mrb[4].mxu0  ;;  %v1201_v57 = vpop.f32.mrb[8].mxu1 }
 0x260   : > { %v4546_v58 = vadd.f32 %v1160_v54, %v744_v52  ;;  %v1162_v60 = vpop.f32.mrb[5].mxu0  ;;  %v4364_v61 = vpop.f32.mrb[9].mxu1  ;;  %v1228_v14 = vadd.f32 %v5814_v1, %v1201_v57 }
 0x261   : > { %v1164_v63 = vpop.f32.mrb[6].mxu0  ;;  %v1204_v0 = vpop.f32.mrb[10].mxu1  ;;  %v4547_v12 = vadd.f32 %v1162_v60, %v748_v55 }
 0x262   : > { %v3937_v2 = vmul.f32 -1.442695, %v4546_v58  ;;  %v1165_v7 = vpop.f32.mrb[7].mxu0  ;;  %v4365_v9 = vpop.f32.mrb[11].mxu1 }
 0x263   : > { %v3938_v26 = vmul.f32 -1.442695, %v4547_v12  ;;  %v3942_v7 = vld [vmem:[%s5264_s23 + $0x28] sm:$0xff] }
 0x264   : > { %4914 = vpow2.f32 %v3937_v2 }
 0x265   : > { %4916 = vpow2.f32 %v3938_v26 }
 0x26e   : > { %v4915_v34 = vpop.eup %4914 }
 0x26f   : > { %v1211_v41 = vadd.f32 1.0, %v4915_v34  ;;  %v4917_v59 = vpop.eup %4916 }
 0x270   : > { %v1218_v6 = vadd.f32 1.0, %v4917_v59 }
 0x271   : > { %4918 = vrcp.f32 %v1211_v41 }
 0x272   : > { %4920 = vrcp.f32 %v1218_v6  ;;  %v4776_v6 = vld [vmem:[%s6575_s4 + $0x8] ss:$12 sps:$4 sm:$0xff]  }
 0x27b   : > { %v4919_v15 = vpop.eup %4918 }
 0x27c   : > { %v1229_v19 = vmul.f32 %v4919_v15, %v1228_v14  ;;  %v4921_v35 = vpop.eup %4920  ;;  %v4795_v14 = vld [vmem:[%s6574_s3 + $0x38] ss:$12 sps:$4 sm:$0xff]  }
 0x27d   : > { %v1232_v49 = vsub.f32 1.0, %v4921_v35  ;;  %v1234_v55 = vmul.f32 %v4921_v35, %v5687_v62  ;;  %v5940_v15 = vld [vmem:[%s6574_s3 + $0x4c] ss:$12 sps:$4 sm:$0xff]   ;;  %v4819_v35 = vld [vmem:[%s6572_s1 + $0x8] ss:$12 sps:$4 sm:$0xff]  }
 0x27e   : > { %v1230_v21 = vadd.f32 %v1229_v19, %v960_v18  ;;  %v5946_v18 = vld [vmem:[%s6574_s3 + $0x48] ss:$12 sps:$4 sm:$0xff]   ;;  %v4799_v19 = vld [vmem:[%s6574_s3 + $0x50] ss:$12 sps:$4 sm:$0xff]  }
 0x27f   : > { %v1435_v22 = vpop.f32.mrb[8].mxu0  ;;  %v1476_v24 = vpop.f32.mrb[12].mxu1 }
 0x280   : > { %4922 = vtanh.f32 %v1230_v21  ;;  %v1482_v25 = vadd.f32 %v3940_v20, %v1435_v22  ;;  %v1437_v29 = vpop.f32.mrb[9].mxu0  ;;  %v4384_v30 = vpop.f32.mrb[13].mxu1  ;;  %v1503_v0 = vadd.f32 %v5552_v39, %v1476_v24  ;;  %v5956_v20 = vld [vmem:[%s6574_s3 + $0x64] ss:$12 sps:$4 sm:$0xff]   ;;  %v5962_v21 = vld [vmem:[%s6574_s3 + $0x60] ss:$12 sps:$4 sm:$0xff]  }
 0x281   : > { %v1439_v31 = vpop.f32.mrb[10].mxu0  ;;  %v1479_v33 = vpop.f32.mrb[14].mxu1  ;;  %v1489_v45 = vadd.f32 %v3941_v27, %v1437_v29  ;;  %v4803_v22 = vld [vmem:[%s6574_s3 + $0x68] ss:$12 sps:$4 sm:$0xff]   ;;  %v4807_v27 = vld [vmem:[%s6574_s3 + $0x80] ss:$12 sps:$4 sm:$0xff]  }
 0x282   : > { %v3967_v36 = vmul.f32 -1.442695, %v1482_v25  ;;  %v1440_v42 = vpop.f32.mrb[11].mxu0  ;;  %v4385_v43 = vpop.f32.mrb[15].mxu1  ;;  %v5972_v24 = vld [vmem:[%s6574_s3 + $0x7c] ss:$12 sps:$4 sm:$0xff]  }
 0x283   : > { %v3968_v46 = vmul.f32 -1.442695, %v1489_v45  ;;  %v5978_v25 = vld [vmem:[%s6574_s3 + $0x78] ss:$12 sps:$4 sm:$0xff]   ;;  %v5988_v29 = vld [vmem:[%s6574_s3 + $0x94] ss:$12 sps:$4 sm:$0xff]  }
 0x284   : > { %4924 = vpow2.f32 %v3967_v36  ;;  %v5994_v30 = vld [vmem:[%s6574_s3 + $0x90] ss:$12 sps:$4 sm:$0xff]   ;;  %v4811_v31 = vld [vmem:[%s6574_s3 + $0x98] ss:$12 sps:$4 sm:$0xff]   ;;  %v6010_v36 = vld [vmem:[%s6574_s3 + $0xa8] ss:$12 sps:$4 sm:$0xff]  }
 0x285   : > { %4926 = vpow2.f32 %v3968_v46  ;;  %v6004_v33 = vld [vmem:[%s6574_s3 + $0xac] ss:$12 sps:$4 sm:$0xff]   ;;  %v4815_v42 = vld [vmem:[%s6574_s3 + $0xb0] ss:$12 sps:$4 sm:$0xff]  }
 0x286   : > { %v6027_v43 = vld [vmem:[%s6572_s1 + $0x4] ss:$12 sps:$4 sm:$0xff]   ;;  %v6032_v45 = vld [vmem:[%s6572_s1] ss:$12 sps:$4 sm:$0xff]   ;;  %v6042_v46 = vld [vmem:[%s6572_s1 + $0x1c] ss:$12 sps:$4 sm:$0xff]  }
 0x28a   : > { %v4923_v52 = vpop.eup %4922 }
 0x28b   : > { %v1233_v54 = vmul.f32 %v4923_v52, %v1232_v49  ;;  %v6048_v49 = vld [vmem:[%s6572_s1 + $0x18] ss:$12 sps:$4 sm:$0xff]   ;;  %v4823_v52 = vld [vmem:[%s6572_s1 + $0x20] ss:$12 sps:$4 sm:$0xff]  }
 0x28d   : > { %v5821_v57 = vadd.f32 %v1234_v55, %v1233_v54  ;;  %v6058_v54 = vld [vmem:[%s6572_s1 + $0x34] ss:$12 sps:$4 sm:$0xff]   ;;  %v6064_v55 = vld [vmem:[%s6572_s1 + $0x30] ss:$12 sps:$4 sm:$0xff]  }
 0x28e   : > { %v4925_v58 = vpop.eup %4924 }
 0x28f   : > { %v1486_v60 = vadd.f32 1.0, %v4925_v58  ;;  %1236 = vst [vmem:[%s5266_s0] sm:$0xff] %v5821_v57  ;;  %v4927_v61 = vpop.eup %4926  ;;  %v4827_v58 = vld [vmem:[%s6572_s1 + $0x38] ss:$12 sps:$4 sm:$0xff]  }
 0x290   : > { %v1493_v63 = vadd.f32 1.0, %v4927_v61  ;;  %v6080_v61 = vld [vmem:[%s6572_s1 + $0x48] ss:$12 sps:$4 sm:$0xff]  }
 0x291   : > { %4928 = vrcp.f32 %v1486_v60  ;;  %v6074_v60 = vld [vmem:[%s6572_s1 + $0x4c] ss:$12 sps:$4 sm:$0xff]  }
 0x292   : > { %4930 = vrcp.f32 %v1493_v63  ;;  %v4831_v63 = vld [vmem:[%s6572_s1 + $0x50] ss:$12 sps:$4 sm:$0xff]  }
 0x29b   : > { %v4929_v2 = vpop.eup %4928 }
 0x29c   : > { %v1504_v9 = vmul.f32 %v4929_v2, %v1503_v0  ;;  %v4931_v26 = vpop.eup %4930  ;;  %v6090_v0 = vld [vmem:[%s6572_s1 + $0x64] ss:$12 sps:$4 sm:$0xff]   ;;  %v6096_v2 = vld [vmem:[%s6572_s1 + $0x60] ss:$12 sps:$4 sm:$0xff]  }
 0x29d   : > { %v1507_v34 = vsub.f32 1.0, %v4931_v26  ;;  %v1509_v59 = vmul.f32 %v4931_v26, %v5557_v4  ;;  %v4777_v4 = vld [vmem:[%s6575_s4 + $0x20] ss:$12 sps:$4 sm:$0xff]  }
 0x29e   : > { %v1505_v12 = vadd.f32 %v3942_v7, %v1504_v9  ;;  %v4835_v7 = vld [vmem:[%s6572_s1 + $0x68] ss:$12 sps:$4 sm:$0xff]   ;;  %v4839_v26 = vld [vmem:[%s6572_s1 + $0x80] ss:$12 sps:$4 sm:$0xff]  }
 0x29f   : > { %v6105_v9 = vld [vmem:[%s6572_s1 + $0x7c] ss:$12 sps:$4 sm:$0xff]  }
 0x2a0   : > { %4932 = vtanh.f32 %v1505_v12  ;;  %v6111_v12 = vld [vmem:[%s6572_s1 + $0x78] ss:$12 sps:$4 sm:$0xff]  }
 0x2aa   : > { %v4933_v62 = vpop.eup %4932 }
 0x2ab   : > { %v1508_v41 = vmul.f32 %v4933_v62, %v1507_v34  ;;  %v6121_v34 = vld [vmem:[%s6572_s1 + $0x94] ss:$12 sps:$4 sm:$0xff]   ;;  %v6127_v62 = vld [vmem:[%s6572_s1 + $0x90] ss:$12 sps:$4 sm:$0xff]  }
 0x2ad   : > { %v5828_v3 = vadd.f32 %v1509_v59, %v1508_v41  ;;  %v4843_v41 = vld [vmem:[%s6572_s1 + $0x98] ss:$12 sps:$4 sm:$0xff]  }
 0x2ae   : > { %v6137_v59 = vld [vmem:[%s6572_s1 + $0xac] ss:$12 sps:$4 sm:$0xff]  }
 0x2af   : > { %v5835_v39 = vpack.c.bf16 %v5828_v3, %v5828_v3 }
 0x2b1   : > { %1722 = vmatmul.mubr.bf16.vlgmr.msra.gmra.mrb[12].mxu0 %v5835_v39  ;;  %4403 = vmatmul.mubr.bf16.vlgmr.msra.gmra.mrb[16].mxu1 %v5835_v39 }
 0x2b2   : > { %1932 = vmatpush1.bf16.msra.mxu0 %v5562_v5  ;;  %4407 = vmatpush3.bf16.msra.mxu1 %v4776_v6  ;;  %v4778_v5 = vld [vmem:[%s6575_s4 + $0x38] ss:$12 sps:$4 sm:$0xff]   ;;  %v6143_v6 = vld [vmem:[%s6572_s1 + $0xa8] ss:$12 sps:$4 sm:$0xff]  }
 0x2b3   : > { %1933 = vmatprep.subr.bf16.mxu0 %v5574_v8  ;;  %4408 = vmatprep.subr.bf16.mxu1 %v5096_v16  ;;  %v4779_v8 = vld [vmem:[%s6575_s4 + $0x50] ss:$12 sps:$4 sm:$0xff]  }
 0x2b4   : > { %1963 = vmatprep.mubr.bf16.mxu0 %v5097_v17  ;;  %4422 = vmatprep.mubr.msk.bf16.mxu1 %vm5098_vm0, %v5096_v16 }
 0x2b6   : > { %1934 = vmatpush1.bf16.msra.mxu0 %v5582_v37  ;;  %4409 = vmatpush3.bf16.msra.mxu1 %v4777_v4  ;;  %v4780_v37 = vld [vmem:[%s6575_s4 + $0x68] ss:$12 sps:$4 sm:$0xff]   ;;  %v6153_v4 = vld [vmem:[%s6575_s4 + $0x4] ss:$12 sps:$4 sm:$0xff]  }
 0x2b7   : > { %1935 = vmatprep.subr.bf16.mxu0 %v5592_v10  ;;  %4410 = vmatprep.subr.bf16.mxu1 %v5096_v16  ;;  %v4781_v10 = vld [vmem:[%s6575_s4 + $0x80] ss:$12 sps:$4 sm:$0xff]  }
 0x2ba   : > { %1936 = vmatpush1.bf16.msra.mxu0 %v5601_v11  ;;  %4411 = vmatpush3.bf16.msra.mxu1 %v4778_v5  ;;  %v4782_v11 = vld [vmem:[%s6575_s4 + $0x98] ss:$12 sps:$4 sm:$0xff]  }
 0x2bb   : > { %1937 = vmatprep.subr.bf16.mxu0 %v5611_v13  ;;  %4412 = vmatprep.subr.bf16.mxu1 %v5096_v16  ;;  %v4783_v13 = vld [vmem:[%s6575_s4 + $0xb0] ss:$12 sps:$4 sm:$0xff]  }
 0x2be   : > { %1938 = vmatpush1.bf16.msra.mxu0 %v5617_v23  ;;  %4413 = vmatpush3.bf16.msra.mxu1 %v4779_v8  ;;  %v5887_v23 = vld [vmem:[%s6574_s3 + $0x4] ss:$12 sps:$4 sm:$0xff]  }
 0x2bf   : > { %1939 = vmatprep.subr.bf16.mxu0 %v5627_v28  ;;  %4414 = vmatprep.subr.bf16.mxu1 %v5096_v16  ;;  %v5893_v28 = vld [vmem:[%s6574_s3] ss:$12 sps:$4 sm:$0xff]  }
 0x2c2   : > { %1940 = vmatpush1.bf16.msra.mxu0 %v5633_v32  ;;  %4415 = vmatpush3.bf16.msra.mxu1 %v4780_v37  ;;  %v4787_v32 = vld [vmem:[%s6574_s3 + $0x8] ss:$12 sps:$4 sm:$0xff]  }
 0x2c3   : > { %1941 = vmatprep.subr.bf16.mxu0 %v5643_v38  ;;  %4416 = vmatprep.subr.bf16.mxu1 %v5096_v16  ;;  %v1770_v38 = vpack.c.bf16 %v5821_v57, %v5821_v57 }
 0x2c6   : > { %1942 = vmatpush1.bf16.msra.mxu0 %v5649_v40  ;;  %4417 = vmatpush3.bf16.msra.mxu1 %v4781_v10  ;;  %v5905_v40 = vld [vmem:[%s6574_s3 + $0x1c] ss:$12 sps:$4 sm:$0xff]  }
 0x2c7   : > { %1943 = vmatprep.subr.bf16.mxu0 %v5659_v44  ;;  %4418 = vmatprep.subr.bf16.mxu1 %v5096_v16  ;;  %v5911_v44 = vld [vmem:[%s6574_s3 + $0x18] ss:$12 sps:$4 sm:$0xff]  }
 0x2ca   : > { %1944 = vmatpush1.bf16.msra.mxu0 %v5665_v47  ;;  %4419 = vmatpush3.bf16.msra.mxu1 %v4782_v11  ;;  %v4791_v47 = vld [vmem:[%s6574_s3 + $0x20] ss:$12 sps:$4 sm:$0xff]  }
 0x2cb   : > { %1945 = vmatprep.subr.bf16.mxu0 %v5675_v53  ;;  %4420 = vmatprep.subr.bf16.mxu1 %v5096_v16  ;;  %v5921_v53 = vld [vmem:[%s6574_s3 + $0x34] ss:$12 sps:$4 sm:$0xff]  }
 0x2cc   : > { %v1544_v11 = vld [vmem:[%s6573_s2] sm:$0x7] }
 0x2ce   : > { %1946 = vmatpush1.bf16.msra.mxu0 %v5681_v56  ;;  %4421 = vmatpush3.bf16.msra.mxu1 %v4783_v13  ;;  %v5930_v56 = vld [vmem:[%s6574_s3 + $0x30] ss:$12 sps:$4 sm:$0xff]   ;;  %v1549_v13 = vrot.slane %v1544_v11, %v5800_v48 }
 0x2cf   : > { %2207 = vmatprep.subr.bf16.mxu0 %v5887_v23  ;;  %4426 = vmatprep.subr.bf16.mxu1 %v5096_v16 }
 0x2d1   : > { %1964 = vmatmul.mubr.bf16.vlgmr.msra.gmra.mrb[12].mxu0 %v1770_v38  ;;  %4423 = vmatmul.mubr.bf16.vlgmr.msra.gmra.mrb[20].mxu1 %v1770_v38 }
 0x2d2   : > { %2208 = vmatpush1.bf16.msra.mxu0 %v5893_v28  ;;  %4427 = vmatpush3.bf16.msra.mxu1 %v4787_v32 }
 0x2d3   : > { %2209 = vmatprep.subr.bf16.mxu0 %v5905_v40  ;;  %4428 = vmatprep.subr.bf16.mxu1 %v5096_v16 }
 0x2d4   : > { %2239 = vmatprep.mubr.bf16.mxu0 %v5097_v17  ;;  %4442 = vmatprep.mubr.msk.bf16.mxu1 %vm5098_vm0, %v5096_v16 }
 0x2d6   : > { %2210 = vmatpush1.bf16.msra.mxu0 %v5911_v44  ;;  %4429 = vmatpush3.bf16.msra.mxu1 %v4791_v47  ;;  %v1553_v47 = vrot.slane %v1544_v11, %v5805_v51 }
 0x2d7   : > { %2211 = vmatprep.subr.bf16.mxu0 %v5921_v53  ;;  %4430 = vmatprep.subr.bf16.mxu1 %v5096_v16 }
 0x2da   : > { %2212 = vmatpush1.bf16.msra.mxu0 %v5930_v56  ;;  %4431 = vmatpush3.bf16.msra.mxu1 %v4795_v14 }
 0x2db   : > { %2213 = vmatprep.subr.bf16.mxu0 %v5940_v15  ;;  %4432 = vmatprep.subr.bf16.mxu1 %v5096_v16 }
 0x2de   : > { %2214 = vmatpush1.bf16.msra.mxu0 %v5946_v18  ;;  %4433 = vmatpush3.bf16.msra.mxu1 %v4799_v19 }
 0x2df   : > { %2215 = vmatprep.subr.bf16.mxu0 %v5956_v20  ;;  %4434 = vmatprep.subr.bf16.mxu1 %v5096_v16 }
 0x2e2   : > { %2216 = vmatpush1.bf16.msra.mxu0 %v5962_v21  ;;  %4435 = vmatpush3.bf16.msra.mxu1 %v4803_v22 }
 0x2e3   : > { %2217 = vmatprep.subr.bf16.mxu0 %v5972_v24  ;;  %4436 = vmatprep.subr.bf16.mxu1 %v5096_v16 }
 0x2e6   : > { %2218 = vmatpush1.bf16.msra.mxu0 %v5978_v25  ;;  %4437 = vmatpush3.bf16.msra.mxu1 %v4807_v27 }
 0x2e7   : > { %2219 = vmatprep.subr.bf16.mxu0 %v5988_v29  ;;  %4438 = vmatprep.subr.bf16.mxu1 %v5096_v16 }
 0x2ea   : > { %2220 = vmatpush1.bf16.msra.mxu0 %v5994_v30  ;;  %4439 = vmatpush3.bf16.msra.mxu1 %v4811_v31 }
 0x2eb   : > { %2221 = vmatprep.subr.bf16.mxu0 %v6004_v33  ;;  %4440 = vmatprep.subr.bf16.mxu1 %v5096_v16 }
 0x2ee   : > { %2222 = vmatpush1.bf16.msra.mxu0 %v6010_v36  ;;  %4441 = vmatpush3.bf16.msra.mxu1 %v4815_v42 }
 0x2ef   : > { %4446 = vmatprep.subr.bf16.mxu1 %v5096_v16  ;;  %2495 = vmatprep.subr.bf16.mxu0 %v6027_v43 }
 0x2f1   : > { %2240 = vmatmul.mubr.bf16.vlgmr.msra.gmra.mrb[16].mxu0 %v5835_v39  ;;  %4443 = vmatmul.mubr.bf16.vlgmr.msra.gmra.mrb[24].mxu1 %v5835_v39  ;;  %v4847_v39 = vld [vmem:[%s6572_s1 + $0xb0] ss:$12 sps:$4 sm:$0xff]  }
 0x2f2   : > { %2527 = vmatprep.mubr.bf16.mxu0 %v5097_v17  ;;  %4462 = vmatprep.mubr.msk.bf16.mxu1 %vm5098_vm0, %v5096_v16 }
 0x2f3   : > { %2496 = vmatpush1.bf16.msra.mxu0 %v6032_v45  ;;  %4447 = vmatpush3.bf16.msra.mxu1 %v4819_v35 }
 0x2f4   : > { %4448 = vmatprep.subr.bf16.mxu1 %v5096_v16  ;;  %2497 = vmatprep.subr.bf16.mxu0 %v6042_v46 }
 0x2f7   : > { %2498 = vmatpush1.bf16.msra.mxu0 %v6048_v49  ;;  %4449 = vmatpush3.bf16.msra.mxu1 %v4823_v52 }
 0x2f8   : > { %4450 = vmatprep.subr.bf16.mxu1 %v5096_v16  ;;  %2499 = vmatprep.subr.bf16.mxu0 %v6058_v54 }
 0x2fb   : > { %2500 = vmatpush1.bf16.msra.mxu0 %v6064_v55  ;;  %4451 = vmatpush3.bf16.msra.mxu1 %v4827_v58 }
 0x2fc   : > { %4452 = vmatprep.subr.bf16.mxu1 %v5096_v16  ;;  %2501 = vmatprep.subr.bf16.mxu0 %v6074_v60 }
 0x2ff   : > { %2502 = vmatpush1.bf16.msra.mxu0 %v6080_v61  ;;  %4453 = vmatpush3.bf16.msra.mxu1 %v4831_v63 }
 0x300   : > { %4454 = vmatprep.subr.bf16.mxu1 %v5096_v16  ;;  %2503 = vmatprep.subr.bf16.mxu0 %v6090_v0 }
 0x303   : > { %2504 = vmatpush1.bf16.msra.mxu0 %v6096_v2  ;;  %4455 = vmatpush3.bf16.msra.mxu1 %v4835_v7 }
 0x304   : > { %2505 = vmatprep.subr.bf16.mxu0 %v6105_v9  ;;  %4456 = vmatprep.subr.bf16.mxu1 %v5096_v16 }
 0x307   : > { %2506 = vmatpush1.bf16.msra.mxu0 %v6111_v12  ;;  %4457 = vmatpush3.bf16.msra.mxu1 %v4839_v26 }
 0x308   : > { %2507 = vmatprep.subr.bf16.mxu0 %v6121_v34  ;;  %4458 = vmatprep.subr.bf16.mxu1 %v5096_v16 }
 0x30b   : > { %2508 = vmatpush1.bf16.msra.mxu0 %v6127_v62  ;;  %4459 = vmatpush3.bf16.msra.mxu1 %v4843_v41 }
 0x30c   : > { %2509 = vmatprep.subr.bf16.mxu0 %v6137_v59  ;;  %4460 = vmatprep.subr.bf16.mxu1 %v5096_v16 }
 0x30f   : > { %2510 = vmatpush1.bf16.msra.mxu0 %v6143_v6  ;;  %4461 = vmatpush3.bf16.msra.mxu1 %v4847_v39  ;;  %v1557_v39 = vrot.slane %v1544_v11, %v5809_v50 }
 0x310   : > { %2737 = vmatprep.subr.bf16.mxu0 %v6153_v4  ;;  %4466 = vmatprep.subr.bf16.mxu1 %v5096_v16 }
 0x384   : > { %v1764_v5 = vpop.f32.mrb[16].mxu1 }
 0x385   : > { %v4404_v8 = vpop.f32.mrb[17].mxu1 }
 0x386   : > { %v1767_v37 = vpop.f32.mrb[18].mxu1 }
 0x387   : > { %v4405_v10 = vpop.f32.mrb[19].mxu1 }
 0x3a4   : > { %v1965_v32 = vpop.f32.mrb[12].mxu0  ;;  %v2006_v38 = vpop.f32.mrb[20].mxu1 }
 0x3a5   : > { %v4548_v14 = vadd.f32 %v1965_v32, %v1549_v13  ;;  %v1967_v19 = vpop.f32.mrb[13].mxu0  ;;  %v4424_v22 = vpop.f32.mrb[21].mxu1  ;;  %v2033_v37 = vadd.f32 %v5814_v1, %v2006_v38  ;;  %v1765_v13 = vadd.f32 %v1764_v5, %v1557_v39 }
 0x3a6   : > { %v1969_v27 = vpop.f32.mrb[14].mxu0  ;;  %v2009_v31 = vpop.f32.mrb[22].mxu1  ;;  %v4549_v58 = vadd.f32 %v1967_v19, %v1553_v47 }
 0x3a7   : > { %v4018_v42 = vmul.f32 -1.442695, %v4548_v14  ;;  %v1970_v35 = vpop.f32.mrb[15].mxu0  ;;  %v4425_v52 = vpop.f32.mrb[23].mxu1  ;;  %v4022_v14 = vld [vmem:[%s5264_s23 + $0x30] sm:$0xff]  ;;  %v4023_v31 = vld [vmem:[%s5264_s23 + $0x38] sm:$0xff] }
 0x3a8   : > { %v4019_v63 = vmul.f32 -1.442695, %v4549_v58 }
 0x3a9   : > { %4934 = vpow2.f32 %v4018_v42 }
 0x3aa   : > { %4936 = vpow2.f32 %v4019_v63 }
 0x3b3   : > { %v4935_v7 = vpop.eup %4934 }
 0x3b4   : > { %v2016_v26 = vadd.f32 1.0, %v4935_v7  ;;  %v4937_v41 = vpop.eup %4936 }
 0x3b5   : > { %v2023_v8 = vadd.f32 1.0, %v4937_v41 }
 0x3b6   : > { %4938 = vrcp.f32 %v2016_v26 }
 0x3b7   : > { %4940 = vrcp.f32 %v2023_v8 }
 0x3c0   : > { %v4939_v10 = vpop.eup %4938 }
 0x3c1   : > { %v2034_v32 = vmul.f32 %v4939_v10, %v2033_v37  ;;  %v4941_v5 = vpop.eup %4940 }
 0x3c2   : > { %v2037_v26 = vsub.f32 1.0, %v4941_v5  ;;  %v2039_v8 = vmul.f32 %v4941_v5, %v5821_v57 }
 0x3c3   : > { %v2035_v22 = vadd.f32 %v2034_v32, %v1765_v13 }
 0x3c4   : > { %v2241_v47 = vpop.f32.mrb[16].mxu0  ;;  %v2282_v19 = vpop.f32.mrb[24].mxu1 }
 0x3c5   : > { %4942 = vtanh.f32 %v2035_v22  ;;  %v2288_v27 = vadd.f32 %v4022_v14, %v2241_v47  ;;  %v2243_v42 = vpop.f32.mrb[17].mxu0  ;;  %v4444_v35 = vpop.f32.mrb[25].mxu1  ;;  %v6175_v14 = vld [vmem:[%s6576_s5] ss:$0 sm:$0xff] }
 0x3c6   : > { %v2245_v52 = vpop.f32.mrb[18].mxu0  ;;  %v2285_v58 = vpop.f32.mrb[26].mxu1  ;;  %v2295_v1 = vadd.f32 %v4023_v31, %v2243_v42  ;;  %v2309_v47 = vadd.f32 %v6175_v14, %v2282_v19  ;;  %v4024_v31 = vld [vmem:[%s5264_s23 + $0x40] sm:$0xff]  ;;  %v4851_v19 = vld [vmem:[%s6575_s4 + $0x8] ss:$12 sps:$4 sm:$0xff]  }
 0x3c7   : > { %v4049_v11 = vmul.f32 -1.442695, %v2288_v27  ;;  %v2246_v63 = vpop.f32.mrb[19].mxu0  ;;  %v4445_v7 = vpop.f32.mrb[27].mxu1 }
 0x3c8   : > { %v4050_v38 = vmul.f32 -1.442695, %v2295_v1  ;;  %v6185_v1 = vld [vmem:[%s6575_s4] ss:$12 sps:$4 sm:$0xff]  }
 0x3c9   : > { %4944 = vpow2.f32 %v4049_v11 }
 0x3ca   : > { %4946 = vpow2.f32 %v4050_v38  ;;  %v6197_v38 = vld [vmem:[%s6575_s4 + $0x1c] ss:$12 sps:$4 sm:$0xff]  }
 0x3cf   : > { %v4943_v41 = vpop.eup %4942 }
 0x3d0   : > { %v2038_v39 = vmul.f32 %v4943_v41, %v2037_v26  ;;  %v4855_v26 = vld [vmem:[%s6575_s4 + $0x20] ss:$12 sps:$4 sm:$0xff]  }
 0x3d1   : > { %v6215_v41 = vld [vmem:[%s6575_s4 + $0x34] ss:$12 sps:$4 sm:$0xff]  }
 0x3d2   : > { %v6168_v37 = vadd.f32 %v2039_v8, %v2038_v39  ;;  %v6224_v39 = vld [vmem:[%s6575_s4 + $0x30] ss:$12 sps:$4 sm:$0xff]   ;;  %v4859_v8 = vld [vmem:[%s6575_s4 + $0x38] ss:$12 sps:$4 sm:$0xff]  }
 0x3d3   : > { %v4945_v10 = vpop.eup %4944 }
 0x3d4   : > { %v2292_v13 = vadd.f32 1.0, %v4945_v10  ;;  %4021 = vst [vmem:[%s5266_s0 + $0x8] sm:$0xff] %v6168_v37  ;;  %v4947_v32 = vpop.eup %4946  ;;  %v6234_v10 = vld [vmem:[%s6575_s4 + $0x4c] ss:$12 sps:$4 sm:$0xff]  }
 0x3d5   : > { %v2299_v22 = vadd.f32 1.0, %v4947_v32  ;;  %v4863_v32 = vld [vmem:[%s6575_s4 + $0x50] ss:$12 sps:$4 sm:$0xff]  }
 0x3d6   : > { %4948 = vrcp.f32 %v2292_v13  ;;  %v6240_v13 = vld [vmem:[%s6575_s4 + $0x48] ss:$12 sps:$4 sm:$0xff]  }
 0x3d7   : > { %4950 = vrcp.f32 %v2299_v22  ;;  %v6250_v22 = vld [vmem:[%s6575_s4 + $0x64] ss:$12 sps:$4 sm:$0xff]  }
 0x3e0   : > { %v4949_v27 = vpop.eup %4948 }
 0x3e1   : > { %v2310_v42 = vmul.f32 %v4949_v27, %v2309_v47  ;;  %v4951_v35 = vpop.eup %4950  ;;  %v6256_v47 = vld [vmem:[%s6575_s4 + $0x60] ss:$12 sps:$4 sm:$0xff]   ;;  %v4867_v27 = vld [vmem:[%s6575_s4 + $0x68] ss:$12 sps:$4 sm:$0xff]  }
 0x3e2   : > { %v2313_v52 = vsub.f32 1.0, %v4951_v35  ;;  %v2315_v63 = vmul.f32 %v4951_v35, %v5828_v3  ;;  %v6205_v3 = vld [vmem:[%s6575_s4 + $0x18] ss:$12 sps:$4 sm:$0xff]   ;;  %v6282_v35 = vld [vmem:[%s6575_s4 + $0x94] ss:$12 sps:$4 sm:$0xff]  }
 0x3e3   : > { %v2311_v57 = vadd.f32 %v4024_v31, %v2310_v42  ;;  %v6266_v31 = vld [vmem:[%s6575_s4 + $0x7c] ss:$12 sps:$4 sm:$0xff]   ;;  %v6272_v42 = vld [vmem:[%s6575_s4 + $0x78] ss:$12 sps:$4 sm:$0xff]  }
 0x3e5   : > { %4952 = vtanh.f32 %v2311_v57  ;;  %v4871_v57 = vld [vmem:[%s6575_s4 + $0x80] ss:$12 sps:$4 sm:$0xff]  }
 0x3ef   : > { %v4953_v58 = vpop.eup %4952 }
 0x3f0   : > { %v2314_v11 = vmul.f32 %v4953_v58, %v2313_v52  ;;  %v6288_v52 = vld [vmem:[%s6575_s4 + $0x90] ss:$12 sps:$4 sm:$0xff]   ;;  %v4875_v58 = vld [vmem:[%s6575_s4 + $0x98] ss:$12 sps:$4 sm:$0xff]  }
 0x3f2   : > { %v6180_v7 = vadd.f32 %v2315_v63, %v2314_v11  ;;  %v6298_v11 = vld [vmem:[%s6575_s4 + $0xac] ss:$12 sps:$4 sm:$0xff]   ;;  %v6304_v63 = vld [vmem:[%s6575_s4 + $0xa8] ss:$12 sps:$4 sm:$0xff]  }
 0x3f4   : > { %v6192_v5 = vpack.c.bf16 %v6180_v7, %v6180_v7 }
 0x3f6   : > { %2528 = vmatmul.mubr.bf16.vlgmr.msra.gmra.mrb[20].mxu0 %v6192_v5  ;;  %4463 = vmatmul.mubr.bf16.vlgmr.msra.gmra.mrb[28].mxu1 %v6192_v5 }
 0x3f7   : > { %2738 = vmatpush1.bf16.msra.mxu0 %v6185_v1  ;;  %4467 = vmatpush3.bf16.msra.mxu1 %v4851_v19  ;;  %v4879_v19 = vld [vmem:[%s6575_s4 + $0xb0] ss:$12 sps:$4 sm:$0xff]  }
 0x3f8   : > { %2739 = vmatprep.subr.bf16.mxu0 %v6197_v38  ;;  %4468 = vmatprep.subr.bf16.mxu1 %v5096_v16 }
 0x3f9   : > { %2769 = vmatprep.mubr.bf16.mxu0 %v5097_v17  ;;  %4482 = vmatprep.mubr.msk.bf16.mxu1 %vm5098_vm0, %v5096_v16 }
 0x3fb   : > { %2740 = vmatpush1.bf16.msra.mxu0 %v6205_v3  ;;  %4469 = vmatpush3.bf16.msra.mxu1 %v4855_v26  ;;  %v4880_v26 = vld [vmem:[%s6574_s3 + $0x8] ss:$12 sps:$4 sm:$0xff]  }
 0x3fc   : > { %2741 = vmatprep.subr.bf16.mxu0 %v6215_v41  ;;  %4470 = vmatprep.subr.bf16.mxu1 %v5096_v16 }
 0x3ff   : > { %2742 = vmatpush1.bf16.msra.mxu0 %v6224_v39  ;;  %4471 = vmatpush3.bf16.msra.mxu1 %v4859_v8  ;;  %v2576_v8 = vpack.c.bf16 %v6168_v37, %v6168_v37 }
 0x400   : > { %2743 = vmatprep.subr.bf16.mxu0 %v6234_v10  ;;  %4472 = vmatprep.subr.bf16.mxu1 %v5096_v16 }
 0x403   : > { %2744 = vmatpush1.bf16.msra.mxu0 %v6240_v13  ;;  %4473 = vmatpush3.bf16.msra.mxu1 %v4863_v32  ;;  %v4881_v32 = vld [vmem:[%s6574_s3 + $0x20] ss:$12 sps:$4 sm:$0xff]  }
 0x404   : > { %2745 = vmatprep.subr.bf16.mxu0 %v6250_v22  ;;  %4474 = vmatprep.subr.bf16.mxu1 %v5096_v16 }
 0x407   : > { %2746 = vmatpush1.bf16.msra.mxu0 %v6256_v47  ;;  %4475 = vmatpush3.bf16.msra.mxu1 %v4867_v27 }
 0x408   : > { %2747 = vmatprep.subr.bf16.mxu0 %v6266_v31  ;;  %4476 = vmatprep.subr.bf16.mxu1 %v5096_v16 }
 0x40b   : > { %2748 = vmatpush1.bf16.msra.mxu0 %v6272_v42  ;;  %4477 = vmatpush3.bf16.msra.mxu1 %v4871_v57 }
 0x40c   : > { %2749 = vmatprep.subr.bf16.mxu0 %v6282_v35  ;;  %4478 = vmatprep.subr.bf16.mxu1 %v5096_v16 }
 0x40f   : > { %2750 = vmatpush1.bf16.msra.mxu0 %v6288_v52  ;;  %4479 = vmatpush3.bf16.msra.mxu1 %v4875_v58  ;;  %v6428_v58 = vld [vmem:[%s6577_s6] ss:$0 sm:$0xff] }
 0x410   : > { %2751 = vmatprep.subr.bf16.mxu0 %v6298_v11  ;;  %4480 = vmatprep.subr.bf16.mxu1 %v5096_v16 }
 0x413   : > { %2752 = vmatpush1.bf16.msra.mxu0 %v6304_v63  ;;  %4481 = vmatpush3.bf16.msra.mxu1 %v4879_v19 }
 0x414   : > { %3013 = vmatprep.subr.bf16.mxu0 %v5887_v23  ;;  %4486 = vmatprep.subr.bf16.mxu1 %v5096_v16  ;;  %v4882_v23 = vld [vmem:[%s6574_s3 + $0x38] ss:$12 sps:$4 sm:$0xff]  }
 0x416   : > { %2770 = vmatmul.mubr.bf16.vlgmr.msra.gmra.mrb[20].mxu0 %v2576_v8  ;;  %4483 = vmatmul.mubr.bf16.vlgmr.msra.gmra.mrb[32].mxu1 %v2576_v8 }
 0x417   : > { %3014 = vmatpush1.bf16.msra.mxu0 %v5893_v28  ;;  %4487 = vmatpush3.bf16.msra.mxu1 %v4880_v26  ;;  %v4883_v28 = vld [vmem:[%s6574_s3 + $0x50] ss:$12 sps:$4 sm:$0xff]  }
 0x418   : > { %3015 = vmatprep.subr.bf16.mxu0 %v5905_v40  ;;  %4488 = vmatprep.subr.bf16.mxu1 %v5096_v16  ;;  %v4884_v40 = vld [vmem:[%s6574_s3 + $0x68] ss:$12 sps:$4 sm:$0xff]  }
 0x419   : > { %3045 = vmatprep.mubr.bf16.mxu0 %v5097_v17  ;;  %4502 = vmatprep.mubr.msk.bf16.mxu1 %vm5098_vm0, %v5096_v16 }
 0x41b   : > { %3016 = vmatpush1.bf16.msra.mxu0 %v5911_v44  ;;  %4489 = vmatpush3.bf16.msra.mxu1 %v4881_v32  ;;  %v4885_v44 = vld [vmem:[%s6574_s3 + $0x80] ss:$12 sps:$4 sm:$0xff]  }
 0x41c   : > { %3017 = vmatprep.subr.bf16.mxu0 %v5921_v53  ;;  %4490 = vmatprep.subr.bf16.mxu1 %v5096_v16  ;;  %v4886_v53 = vld [vmem:[%s6574_s3 + $0x98] ss:$12 sps:$4 sm:$0xff]  }
 0x41f   : > { %3018 = vmatpush1.bf16.msra.mxu0 %v5930_v56  ;;  %4491 = vmatpush3.bf16.msra.mxu1 %v4882_v23  ;;  %v4887_v56 = vld [vmem:[%s6574_s3 + $0xb0] ss:$12 sps:$4 sm:$0xff]  }
 0x420   : > { %3019 = vmatprep.subr.bf16.mxu0 %v5940_v15  ;;  %4492 = vmatprep.subr.bf16.mxu1 %v5096_v16  ;;  %v4888_v15 = vld [vmem:[%s6572_s1 + $0x8] ss:$12 sps:$4 sm:$0xff]  }
 0x423   : > { %3020 = vmatpush1.bf16.msra.mxu0 %v5946_v18  ;;  %4493 = vmatpush3.bf16.msra.mxu1 %v4883_v28  ;;  %v4889_v18 = vld [vmem:[%s6572_s1 + $0x20] ss:$12 sps:$4 sm:$0xff]  }
 0x424   : > { %3021 = vmatprep.subr.bf16.mxu0 %v5956_v20  ;;  %4494 = vmatprep.subr.bf16.mxu1 %v5096_v16  ;;  %v4890_v20 = vld [vmem:[%s6572_s1 + $0x38] ss:$12 sps:$4 sm:$0xff]  }
 0x427   : > { %3022 = vmatpush1.bf16.msra.mxu0 %v5962_v21  ;;  %4495 = vmatpush3.bf16.msra.mxu1 %v4884_v40  ;;  %v4891_v21 = vld [vmem:[%s6572_s1 + $0x50] ss:$12 sps:$4 sm:$0xff]   ;;  %v4104_v40 = vld [vmem:[%s5264_s23 + $0x48] sm:$0xff] }
 0x428   : > { %3023 = vmatprep.subr.bf16.mxu0 %v5972_v24  ;;  %4496 = vmatprep.subr.bf16.mxu1 %v5096_v16  ;;  %v4892_v24 = vld [vmem:[%s6572_s1 + $0x68] ss:$12 sps:$4 sm:$0xff]  }
 0x42b   : > { %3024 = vmatpush1.bf16.msra.mxu0 %v5978_v25  ;;  %4497 = vmatpush3.bf16.msra.mxu1 %v4885_v44  ;;  %v4893_v25 = vld [vmem:[%s6572_s1 + $0x80] ss:$12 sps:$4 sm:$0xff]  }
 0x42c   : > { %3025 = vmatprep.subr.bf16.mxu0 %v5988_v29  ;;  %4498 = vmatprep.subr.bf16.mxu1 %v5096_v16  ;;  %v4894_v29 = vld [vmem:[%s6572_s1 + $0x98] ss:$12 sps:$4 sm:$0xff]  }
 0x42f   : > { %3026 = vmatpush1.bf16.msra.mxu0 %v5994_v30  ;;  %4499 = vmatpush3.bf16.msra.mxu1 %v4886_v53  ;;  %v4895_v30 = vld [vmem:[%s6572_s1 + $0xb0] ss:$12 sps:$4 sm:$0xff]  }
 0x430   : > { %3027 = vmatprep.subr.bf16.mxu0 %v6004_v33  ;;  %4500 = vmatprep.subr.bf16.mxu1 %v5096_v16 }
 0x433   : > { %3028 = vmatpush1.bf16.msra.mxu0 %v6010_v36  ;;  %4501 = vmatpush3.bf16.msra.mxu1 %v4887_v56 }
 0x434   : > { %3301 = vmatprep.subr.bf16.mxu0 %v6027_v43  ;;  %4506 = vmatprep.subr.bf16.mxu1 %v5096_v16 }
 0x436   : > { %3046 = vmatmul.mubr.bf16.vlgmr.msra.gmra.mrb[24].mxu0 %v6192_v5  ;;  %4503 = vmatmul.mubr.bf16.vlgmr.msra.gmra.mrb[36].mxu1 %v6192_v5 }
 0x437   : > { %3302 = vmatpush1.bf16.msra.mxu0 %v6032_v45  ;;  %3333 = vmatprep.mubr.bf16.mxu0 %v5097_v17 }
 0x438   : > { %3303 = vmatprep.subr.bf16.mxu0 %v6042_v46  ;;  %4522 = vmatprep.mubr.msk.bf16.mxu1 %vm5098_vm0, %v5096_v16  ;;  %v2350_v46 = vld [vmem:[%s6573_s2] sm:$0x7] }
 0x439   : > { %4507 = vmatpush3.bf16.msra.mxu1 %v4888_v15  ;;  %v2363_v19 = vrot.slane %v2350_v46, %v5809_v50 }
 0x43a   : > { %4508 = vmatprep.subr.bf16.mxu1 %v5096_v16 }
 0x43b   : > { %3304 = vmatpush1.bf16.msra.mxu0 %v6048_v49  ;;  %v2355_v49 = vrot.slane %v2350_v46, %v5800_v48 }
 0x43c   : > { %3305 = vmatprep.subr.bf16.mxu0 %v6058_v54 }
 0x43d   : > { %4509 = vmatpush3.bf16.msra.mxu1 %v4889_v18  ;;  %v4105_v18 = vld [vmem:[%s5264_s23 + $0x50] sm:$0xff] }
 0x43e   : > { %4510 = vmatprep.subr.bf16.mxu1 %v5096_v16 }
 0x43f   : > { %3306 = vmatpush1.bf16.msra.mxu0 %v6064_v55 }
 0x440   : > { %3307 = vmatprep.subr.bf16.mxu0 %v6074_v60  ;;  %v2359_v60 = vrot.slane %v2350_v46, %v5805_v51 }
 0x441   : > { %4511 = vmatpush3.bf16.msra.mxu1 %v4890_v20 }
 0x442   : > { %4512 = vmatprep.subr.bf16.mxu1 %v5096_v16 }
 0x443   : > { %3308 = vmatpush1.bf16.msra.mxu0 %v6080_v61 }
 0x444   : > { %3309 = vmatprep.subr.bf16.mxu0 %v6090_v0 }
 0x445   : > { %4513 = vmatpush3.bf16.msra.mxu1 %v4891_v21 }
 0x446   : > { %4514 = vmatprep.subr.bf16.mxu1 %v5096_v16 }
 0x447   : > { %3310 = vmatpush1.bf16.msra.mxu0 %v6096_v2 }
 0x448   : > { %3311 = vmatprep.subr.bf16.mxu0 %v6105_v9 }
 0x449   : > { %4515 = vmatpush3.bf16.msra.mxu1 %v4892_v24 }
 0x44a   : > { %4516 = vmatprep.subr.bf16.mxu1 %v5096_v16 }
 0x44b   : > { %3312 = vmatpush1.bf16.msra.mxu0 %v6111_v12 }
 0x44c   : > { %3313 = vmatprep.subr.bf16.mxu0 %v6121_v34 }
 0x44d   : > { %4517 = vmatpush3.bf16.msra.mxu1 %v4893_v25 }
 0x44e   : > { %4518 = vmatprep.subr.bf16.mxu1 %v5096_v16 }
 0x44f   : > { %3314 = vmatpush1.bf16.msra.mxu0 %v6127_v62 }
 0x450   : > { %3315 = vmatprep.subr.bf16.mxu0 %v6137_v59 }
 0x451   : > { %4519 = vmatpush3.bf16.msra.mxu1 %v4894_v29 }
 0x452   : > { %4520 = vmatprep.subr.bf16.mxu1 %v5096_v16 }
 0x453   : > { %3316 = vmatpush1.bf16.msra.mxu0 %v6143_v6 }
 0x454   : > { %3543 = vmatprep.subr.bf16.mxu0 %v6153_v4 }
 0x455   : > { %4521 = vmatpush3.bf16.msra.mxu1 %v4895_v30 }
 0x456   : > { %4526 = vmatprep.subr.bf16.mxu1 %v5096_v16 }
 0x4c9   : > { %v2570_v33 = vpop.f32.mrb[28].mxu1 }
 0x4ca   : > { %v4464_v36 = vpop.f32.mrb[29].mxu1  ;;  %v2571_v23 = vadd.f32 %v2570_v33, %v2363_v19 }
 0x4cb   : > { %v2573_v43 = vpop.f32.mrb[30].mxu1 }
 0x4cc   : > { %v4465_v45 = vpop.f32.mrb[31].mxu1 }
 0x4e9   : > { %v2771_v54 = vpop.f32.mrb[20].mxu0  ;;  %v2812_v55 = vpop.f32.mrb[32].mxu1 }
 0x4ea   : > { %v4550_v61 = vadd.f32 %v2771_v54, %v2355_v49  ;;  %v2773_v0 = vpop.f32.mrb[21].mxu0  ;;  %v4484_v2 = vpop.f32.mrb[33].mxu1  ;;  %v2839_v8 = vadd.f32 %v6428_v58, %v2812_v55 }
 0x4eb   : > { %v2775_v9 = vpop.f32.mrb[22].mxu0  ;;  %v2815_v12 = vpop.f32.mrb[34].mxu1  ;;  %v4551_v6 = vadd.f32 %v2773_v0, %v2359_v60 }
 0x4ec   : > { %v4100_v34 = vmul.f32 -1.442695, %v4550_v61  ;;  %v2776_v62 = vpop.f32.mrb[23].mxu0  ;;  %v4485_v59 = vpop.f32.mrb[35].mxu1 }
 0x4ed   : > { %v4101_v4 = vmul.f32 -1.442695, %v4551_v6  ;;  %v4106_v62 = vld [vmem:[%s5264_s23 + $0x58] sm:$0xff]  ;;  %s3673_s23 = scalar_lea.vmem (%p5222_p7), %s6600_s22, %s4190_s9 }
 0x4ee   : > { %4954 = vpow2.f32 %v4100_v34 }
 0x4ef   : > { %4956 = vpow2.f32 %v4101_v4 }
 0x4f8   : > { %v4955_v5 = vpop.eup %4954 }
 0x4f9   : > { %v2822_v27 = vadd.f32 1.0, %v4955_v5  ;;  %v4957_v57 = vpop.eup %4956 }
 0x4fa   : > { %v2829_v26 = vadd.f32 1.0, %v4957_v57 }
 0x4fb   : > { %4958 = vrcp.f32 %v2822_v27 }
 0x4fc   : > { %4960 = vrcp.f32 %v2829_v26  ;;  %v4896_v26 = vld [vmem:[%s6575_s4 + $0x8] ss:$12 sps:$4 sm:$0xff]  }
 0x505   : > { %v4959_v32 = vpop.eup %4958 }
 0x506   : > { %v2840_v28 = vmul.f32 %v4959_v32, %v2839_v8  ;;  %v4961_v33 = vpop.eup %4960 }
 0x507   : > { %v2843_v46 = vsub.f32 1.0, %v4961_v33  ;;  %v2845_v55 = vmul.f32 %v4961_v33, %v6168_v37 }
 0x508   : > { %v2841_v44 = vadd.f32 %v2840_v28, %v2571_v23 }
 0x509   : > { %v3047_v53 = vpop.f32.mrb[24].mxu0  ;;  %v3088_v56 = vpop.f32.mrb[36].mxu1 }
 0x50a   : > { %4962 = vtanh.f32 %v2841_v44  ;;  %v3094_v15 = vadd.f32 %v4104_v40, %v3047_v53  ;;  %v3049_v20 = vpop.f32.mrb[25].mxu0  ;;  %v4504_v21 = vpop.f32.mrb[37].mxu1  ;;  %v3115_v12 = vadd.f32 %v6175_v14, %v3088_v56  ;;  %v4897_v14 = vld [vmem:[%s6575_s4 + $0x20] ss:$12 sps:$4 sm:$0xff]  }
 0x50b   : > { %v3051_v24 = vpop.f32.mrb[26].mxu0  ;;  %v3091_v25 = vpop.f32.mrb[38].mxu1  ;;  %v3101_v43 = vadd.f32 %v4105_v18, %v3049_v20 }
 0x50c   : > { %v4131_v29 = vmul.f32 -1.442695, %v3094_v15  ;;  %v3052_v30 = vpop.f32.mrb[27].mxu0  ;;  %v4505_v36 = vpop.f32.mrb[39].mxu1 }
 0x50d   : > { %v4132_v45 = vmul.f32 -1.442695, %v3101_v43 }
 0x50e   : > { %4964 = vpow2.f32 %v4131_v29 }
 0x50f   : > { %4966 = vpow2.f32 %v4132_v45 }
 0x514   : > { %v4963_v49 = vpop.eup %4962 }
 0x515   : > { %v2844_v54 = vmul.f32 %v4963_v49, %v2843_v46 }
 0x517   : > { %v6435_v60 = vadd.f32 %v2845_v55, %v2844_v54 }
 0x518   : > { %v4965_v61 = vpop.eup %4964 }
 0x519   : > { %v3098_v0 = vadd.f32 1.0, %v4965_v61  ;;  %4103 = vst [vmem:[%s5266_s0 + $0x10] sm:$0xff] %v6435_v60  ;;  %v4967_v2 = vpop.eup %4966 }
 0x51a   : > { %v3105_v9 = vadd.f32 1.0, %v4967_v2 }
 0x51b   : > { %4968 = vrcp.f32 %v3098_v0 }
 0x51c   : > { %4970 = vrcp.f32 %v3105_v9 }
 0x520   : > { %v3711_v55 = vld [vmem:[%s5266_s0 + $0x10] sm:$0xff] (%p5222_p7) }
 0x521   : > { %3712 = vst [vmem:[%s3673_s23 + $0x20] sm:$0xff] (%p5222_p7), %v3711_v55 }
 0x525   : > { %v4969_v34 = vpop.eup %4968 }
 0x526   : > { %v3116_v59 = vmul.f32 %v4969_v34, %v3115_v12  ;;  %v4971_v4 = vpop.eup %4970 }
 0x527   : > { %v3119_v37 = vsub.f32 1.0, %v4971_v4  ;;  %v3121_v57 = vmul.f32 %v4971_v4, %v6180_v7  ;;  %v4898_v7 = vld [vmem:[%s6575_s4 + $0x38] ss:$12 sps:$4 sm:$0xff]  }
 0x528   : > { %v3117_v6 = vadd.f32 %v4106_v62, %v3116_v59 }
 0x52a   : > { %4972 = vtanh.f32 %v3117_v6 }
 0x534   : > { %v4973_v5 = vpop.eup %4972 }
 0x535   : > { %v3120_v27 = vmul.f32 %v4973_v5, %v3119_v37 }
 0x537   : > { %v3122_v19 = vadd.f32 %v3121_v57, %v3120_v27 }
 0x539   : > { %v3123_v8 = vpack.c.bf16 %v3122_v19, %v3122_v19  ;;  %3655 = vst [vmem:[%s5268_s17] sm:$0xff] %v3122_v19 }
 0x53b   : > { %3334 = vmatmul.mubr.bf16.vlgmr.msra.gmra.mrb[28].mxu0 %v3123_v8  ;;  %4523 = vmatmul.mubr.bf16.vlgmr.msra.gmra.mrb[40].mxu1 %v3123_v8 }
 0x53c   : > { %3544 = vmatpush1.bf16.msra.mxu0 %v6185_v1  ;;  %4527 = vmatpush3.bf16.msra.mxu1 %v4896_v26  ;;  %v4900_v1 = vld [vmem:[%s6575_s4 + $0x68] ss:$12 sps:$4 sm:$0xff]  }
 0x53d   : > { %3545 = vmatprep.subr.bf16.mxu0 %v6197_v38  ;;  %4528 = vmatprep.subr.bf16.mxu1 %v5096_v16  ;;  %v4901_v38 = vld [vmem:[%s6575_s4 + $0x80] ss:$12 sps:$4 sm:$0xff]  }
 0x53e   : > { %3575 = vmatprep.mubr.bf16.mxu0 %v5097_v17  ;;  %4542 = vmatprep.mubr.msk.bf16.mxu1 %vm5098_vm0, %v5096_v16  ;;  %v4899_v17 = vld [vmem:[%s6575_s4 + $0x50] ss:$12 sps:$4 sm:$0xff]  }
 0x540   : > { %3546 = vmatpush1.bf16.msra.mxu0 %v6205_v3  ;;  %4529 = vmatpush3.bf16.msra.mxu1 %v4897_v14  ;;  %v4902_v3 = vld [vmem:[%s6575_s4 + $0x98] ss:$12 sps:$4 sm:$0xff]  }
 0x541   : > { %3547 = vmatprep.subr.bf16.mxu0 %v6215_v41  ;;  %4530 = vmatprep.subr.bf16.mxu1 %v5096_v16  ;;  %v4903_v41 = vld [vmem:[%s6575_s4 + $0xb0] ss:$12 sps:$4 sm:$0xff]  }
 0x544   : > { %3548 = vmatpush1.bf16.msra.mxu0 %v6224_v39  ;;  %4531 = vmatpush3.bf16.msra.mxu1 %v4898_v7  ;;  %v3382_v39 = vpack.c.bf16 %v6435_v60, %v6435_v60 }
 0x545   : > { %3549 = vmatprep.subr.bf16.mxu0 %v6234_v10  ;;  %4532 = vmatprep.subr.bf16.mxu1 %v5096_v16 }
 0x548   : > { %3550 = vmatpush1.bf16.msra.mxu0 %v6240_v13  ;;  %4533 = vmatpush3.bf16.msra.mxu1 %v4899_v17 }
 0x549   : > { %3551 = vmatprep.subr.bf16.mxu0 %v6250_v22  ;;  %4534 = vmatprep.subr.bf16.mxu1 %v5096_v16 }
 0x54c   : > { %3552 = vmatpush1.bf16.msra.mxu0 %v6256_v47  ;;  %4535 = vmatpush3.bf16.msra.mxu1 %v4900_v1 }
 0x54d   : > { %3553 = vmatprep.subr.bf16.mxu0 %v6266_v31  ;;  %4536 = vmatprep.subr.bf16.mxu1 %v5096_v16  ;;  %v3156_v31 = vld [vmem:[%s6573_s2] sm:$0x7] }
 0x54e   : > { %v3169_v21 = vrot.slane %v3156_v31, %v5809_v50  ;;  %v3707_v50 = vld [vmem:[%s5266_s0] sm:$0xff] (%p5222_p7) }
 0x54f   : > { %3708 = vst [vmem:[%s3673_s23] sm:$0xff] (%p5222_p7), %v3707_v50 }
 0x550   : > { %3554 = vmatpush1.bf16.msra.mxu0 %v6272_v42  ;;  %4537 = vmatpush3.bf16.msra.mxu1 %v4901_v38  ;;  %v3161_v42 = vrot.slane %v3156_v31, %v5800_v48 }
 0x551   : > { %3555 = vmatprep.subr.bf16.mxu0 %v6282_v35  ;;  %4538 = vmatprep.subr.bf16.mxu1 %v5096_v16 }
 0x554   : > { %3556 = vmatpush1.bf16.msra.mxu0 %v6288_v52  ;;  %4539 = vmatpush3.bf16.msra.mxu1 %v4902_v3  ;;  %v3165_v52 = vrot.slane %v3156_v31, %v5805_v51 }
 0x555   : > { %3557 = vmatprep.subr.bf16.mxu0 %v6298_v11  ;;  %4540 = vmatprep.subr.bf16.mxu1 %v5096_v16 }
 0x558   : > { %3558 = vmatpush1.bf16.msra.mxu0 %v6304_v63  ;;  %4541 = vmatpush3.bf16.msra.mxu1 %v4903_v41 }
 0x55b   : > { %3576 = vmatmul.mubr.bf16.vlgmr.msra.gmra.mrb[28].mxu0 %v3382_v39  ;;  %4543 = vmatmul.mubr.bf16.vlgmr.msra.gmra.mrb[44].mxu1 %v3382_v39 }
 0x60e   : > { %v3376_v10 = vpop.f32.mrb[40].mxu1 }
 0x60f   : > { %v4524_v13 = vpop.f32.mrb[41].mxu1  ;;  %v3377_v29 = vadd.f32 %v3376_v10, %v3169_v21 }
 0x610   : > { %v3379_v22 = vpop.f32.mrb[42].mxu1 }
 0x611   : > { %v4525_v47 = vpop.f32.mrb[43].mxu1 }
 0x62e   : > { %v3577_v35 = vpop.f32.mrb[28].mxu0  ;;  %v3618_v16 = vpop.f32.mrb[44].mxu1 }
 0x62f   : > { %v4552_v11 = vadd.f32 %v3577_v35, %v3161_v42  ;;  %v3579_v63 = vpop.f32.mrb[29].mxu0  ;;  %v4544_v32 = vpop.f32.mrb[45].mxu1  ;;  %v3645_v24 = vadd.f32 %v6428_v58, %v3618_v16  ;;  %v3709_v58 = vld [vmem:[%s5266_s0 + $0x8] sm:$0xff] (%p5222_p7) }
 0x630   : > { %v3581_v23 = vpop.f32.mrb[30].mxu0  ;;  %v3621_v28 = vpop.f32.mrb[46].mxu1  ;;  %v4553_v56 = vadd.f32 %v3579_v63, %v3165_v52  ;;  %3710 = vst [vmem:[%s3673_s23 + $0x10] sm:$0xff] (%p5222_p7), %v3709_v58 }
 0x631   : > { %v4182_v40 = vmul.f32 -1.442695, %v4552_v11  ;;  %v3582_v44 = vpop.f32.mrb[31].mxu0  ;;  %v4545_v53 = vpop.f32.mrb[47].mxu1 }
 0x632   : > { %v4183_v15 = vmul.f32 -1.442695, %v4553_v56 }
 0x633   : > { %4974 = vpow2.f32 %v4182_v40 }
 0x634   : > { %4976 = vpow2.f32 %v4183_v15 }
 0x63d   : > { %v4975_v18 = vpop.eup %4974 }
 0x63e   : > { %v3628_v20 = vadd.f32 1.0, %v4975_v18  ;;  %v4977_v48 = vpop.eup %4976 }
 0x63f   : > { %v3635_v51 = vadd.f32 1.0, %v4977_v48 }
 0x640   : > { %4978 = vrcp.f32 %v3628_v20 }
 0x641   : > { %4980 = vrcp.f32 %v3635_v51 }
 0x64a   : > { %v4979_v25 = vpop.eup %4978 }
 0x64b   : > { %v3646_v30 = vmul.f32 %v4979_v25, %v3645_v24  ;;  %v4981_v43 = vpop.eup %4980 }
 0x64c   : > { %v3649_v33 = vsub.f32 1.0, %v4981_v43  ;;  %v3651_v49 = vmul.f32 %v4981_v43, %v6435_v60 }
 0x64d   : > { %v3647_v36 = vadd.f32 %v3646_v30, %v3377_v29 }
 0x64f   : > { %4982 = vtanh.f32 %v3647_v36 }
 0x658   : > { %3668 = sbr.rel (!%p5222_p7) target bundleno = 1639 (0x667), region = 83 }
 0x659   : > { %v4983_v45 = vpop.eup %4982 }
 0x65a   : > { %v3650_v46 = vmul.f32 %v4983_v45, %v3649_v33 }
 0x65c   : > { %v3652_v54 = vadd.f32 %v3651_v49, %v3650_v46 }
 0x65e   : > { %4185 = vst [vmem:[%s5266_s0 + $0x18] sm:$0xff] %v3652_v54  ;;  %3656 = vst [vmem:[%s5268_s17 + $0x8] sm:$0xff] %v3652_v54 }
 0x665   : > { %v3713_v60 = vld [vmem:[%s5266_s0 + $0x18] sm:$0xff] }
 0x666   : > { %3714 = vst [vmem:[%s3673_s23 + $0x30] sm:$0xff] %v3713_v60 }
 0x667 PF: > { %s4197_s27 = sshll.u32 %s5082_s15, 8  ;;  %s3728_s14 = sshll.u32 %s5268_s17, 4  ;;  %s3729_s14 = int_to_ptr.vmem [resolvable:$true] %s3728_s14 }
 0x668   : > { %s6601_s21 = sld [smem:[#allocation15_spill]]  ;;  %s4984_s0 = scalar_lea.vmem %s3729_s14, 256 }
 0x669   : > { %p4985_p6 = scmp.ne.s32.totalorder %s3729_s14, %s4984_s0  ;;  %s5099_s29 = smov [#allocation4]  }
 0x66a   : > { %s4988_s12 = sshll.u32 %s5099_s29, 4  ;;  %s4989_s12 = int_to_ptr.vmem [resolvable:$false] %s4988_s12 }
 0x66b   : > { %p4986_p7 = pnand %p4985_p6, %p5226_p8  ;;  %s4990_s9 = scalar_lea.vmem %s4989_s12, 512 }
 0x66c   : > { %p4991_p10 = scmp.lt.s32.totalorder %s3729_s14, %s4989_s12  ;;  %p4992_p11 = scmp.lt.s32.totalorder %s4990_s9, %s4984_s0 }
 0x66d   : > { %p4987_p9 = pneg %p4986_p7 }
 0x66e   : > { %s3726_s20 = scalar_lea.hbm %s6601_s21, %s4197_s27  ;;  %p4993_p12 = por %p4992_p11, %p4991_p10 }
 0x670   : > { %p4994_p0 = pnand %p4993_p12, %p4987_p9 }
 0x672   : > { %4997 = shalt.err (!%p4994_p0)
}
 0x673   : > { %s4998_s15 = scalar_lea.hbm %s3726_s20, 256  ;;  %s5002_s19 = scalar_lea.hbm %s6601_s21, 512 }
 0x674   : > { %p4999_p1 = scmp.ne.s32.totalorder %s3726_s20, %s4998_s15  ;;  %p5003_p4 = scmp.lt.u32.totalorder %s3726_s20, %s6601_s21 }
 0x675   : > { %p5004_p5 = scmp.lt.u32.totalorder %s5002_s19, %s4998_s15  ;;  %p5006_p7 = scmp.lt.u32.totalorder %s4998_s15, %s3726_s20 }
 0x676   : > { %p5000_p2 = pnand %p4999_p1, %p5226_p8 }
 0x677   : > { %p5005_p6 = por %p5004_p5, %p5003_p4 }
 0x678   : > { %p5001_p3 = pneg %p5000_p2 }
 0x679   : > { %p5007_p10 = por %p5006_p7, %p5005_p6 }
 0x67b   : > { %p5008_p9 = pnand %p5007_p10, %p5001_p3 }
 0x67d   : > { %5011 = shalt.err (!%p5008_p9)
}
 0x67e   : > { %4574 = dma.vmem_to_hbm [thread:$0]  (%p5226_p8), %s3729_s14, 256, %s3726_s20, %s6506_s26  }
 0x67f PF: > { %p4580_p11 = scmp.ge.s32.totalorder %s5094_s18, 2  ;;  %s3747_s27 = sand.u32 1, %s5058_s30  }
 0x680   : > { %s3748_s24 = scalar_lea.sflag [#allocation5], %s3747_s27 }
 0x681   : > { %p4577_p12 = pnand %p4580_p11, %p5240_p13 }
 0x683   : > { %5053 = dma.done.wait (!%p4577_p12), %s3748_s24, 256  }
 0x684   : > { %5055 = vsyncadd (!%p4577_p12), %s3748_s24, 4294967040  ;;  %s23_s18 = sadd.s32 1, %s5094_s18   ;;  %s6602_s11 = sld [smem:[#allocation7_spill]] }
 0x685   : > { %p20_p0 = scmp.ge.s32.totalorder %s23_s18, 6   ;;  %s6603_s0 = sld [smem:[#allocation11_spill]] }
 0x686   : > { %s6604_s28 = sld [smem:[#allocation12_spill]]  ;;  %s6605_s15 = sld [smem:[#allocation8_spill]] }
 0x687   : > { %s6606_s26 = sld [smem:[#allocation9_spill]]  ;;  %s6607_s17 = sld [smem:[#allocation10_spill]] }
 0x688   : > { %s6608_s30 = smov %s5062_s10  ;;  %s6611_s12 = smov %s5074_s13 }
 0x689   : > { %s6613_s14 = smov %s5086_s16  ;;  %22 = sbr.rel (!%p20_p0) target bundleno = 10 (0xa), region = 178 }
 0x68a   : > { %s6609_s10 = smov %s6602_s11 }
 0x68b   : > { %s6610_s11 = smov %s6603_s0 }
 0x68c   : > { %s6612_s13 = smov %s6604_s28 }
 0x68d   : > { %s6614_s16 = smov %s6606_s26 }
 0x690   :  { %3753 = vsyncpa [#allocation5], 1 }
 0x691   :  { %3755 = vsyncpa [#allocation5 + $0x1], 1 }

</bundles_post_ra>
